<compile_context>
chip_gen: v7x
topology: tpu7x:2x2x1
jax: 0.10.0
libtpu: 0.0.40
codegen_flags: <defaults>
</compile_context>

<pallas_src>
import functools

import jax
import jax.numpy as jnp
from jax import lax
from jax.experimental import pallas as pl
from jax.experimental.pallas import tpu as pltpu

EPS = 1e-5
_FOLD = 8        # input rows folded onto the lane axis for the BN stats pass
_BN_ROWS = 512   # folded rows per grid step (=> 4096 original rows / step)


# ---------- Kernel A: tiled BatchNorm statistics -> per-channel scale/shift --
def bn_stats_kernel(xf_ref, gamma_ref, beta_ref, scale_ref, shift_ref,
                    acc_ref, *, n_total, C, fold):
    """Single-pass sum / sum-of-squares reduction accumulated across the grid.

    xf_ref : (rows, fold*C) lane-dense folded view of x (zero rows = padding,
             they do not perturb the sums).
    acc_ref: (2, fold*C) VMEM scratch -- row 0 = sum, row 1 = sum of squares.
    """
    i = pl.program_id(0)

    @pl.when(i == 0)
    def _():
        acc_ref[...] = jnp.zeros_like(acc_ref)

    xf = xf_ref[...]
    acc_ref[0:1, :] = acc_ref[0:1, :] + jnp.sum(xf, axis=0, keepdims=True)
    acc_ref[1:2, :] = acc_ref[1:2, :] + jnp.sum(xf * xf, axis=0, keepdims=True)

    @pl.when(i == pl.num_programs(0) - 1)
    def _():
        # fold the (1, fold*C) partials back to per-channel (1, C) sums
        s = jnp.zeros((1, C), jnp.float32)
        ss = jnp.zeros((1, C), jnp.float32)
        for a in range(fold):
            s = s + acc_ref[0:1, a * C:(a + 1) * C]
            ss = ss + acc_ref[1:2, a * C:(a + 1) * C]
        inv_n = 1.0 / n_total
        mean = s * inv_n
        # single-pass variance; clamp guards E[x^2]-E[x]^2 cancellation.
        # TODO(synk): switch to a shifted/Welford accumulation if tighter than
        # 1e-2 parity with the two-pass reference is ever required.
        var = jnp.maximum(ss * inv_n - mean * mean, 0.0)
        scale = gamma_ref[...] * lax.rsqrt(var + EPS)
        scale_ref[...] = scale
        shift_ref[...] = beta_ref[...] - mean * scale


# ---------- Kernel B: fused  to_v(BN-folded) + rel_pos dwconv + to_out -------
def fused_local_aggr_kernel(x_ref, wv_bd_ref, bv_ref, wdw_ref, wout_bd_ref,
                            bias_ref, o_ref, vbuf_ref,
                            *, k, p, T, H, W, inner):
    """One batch element per grid step; everything lane-dense.

    x_ref      : (T*H, W*C)            input rows (W folded onto lanes)
    wv_bd_ref  : (W*C, W*inner)        BN-folded to_v as block-diagonal matmul
    bv_ref     : (1, W*inner)          BN shift folded through to_v, W-tiled
    wdw_ref    : (k^3, W*inner)        depthwise taps, W-tiled + dx-boundary
                                       masked (so lane rolls can wrap freely)
    wout_bd_ref: (W*inner, W*C)        to_out as block-diagonal matmul
    bias_ref   : (1, W*C)              b_out + b_rp folded through to_out
    o_ref      : (T*H, W*C)            output rows (unmasked lane-dense stores)
    vbuf_ref   : (T+2p, H+2p, W*inner) VMEM scratch: v with zero halo on T/H
                                       only; W needs no halo (roll + masking).
    """
    WI = W * inner
    TH = T * H
    Tp, Hp = T + 2 * p, H + 2 * p

    # ---- zero only the halo faces; the interior is fully overwritten below --
    if p > 0:
        zt = jnp.zeros((p, Hp, WI), jnp.float32)
        vbuf_ref[0:p] = zt
        vbuf_ref[Tp - p:Tp] = zt
        zh = jnp.zeros((T, p, WI), jnp.float32)
        vbuf_ref[p:p + T, 0:p, :] = zh
        vbuf_ref[p:p + T, Hp - p:Hp, :] = zh

    # ---- BN-folded to_v: one (T*H, W*C) x (W*C, W*inner) matmul -------------
    v = jnp.dot(x_ref[...], wv_bd_ref[...],
                preferred_element_type=jnp.float32) + bv_ref[...]
    vbuf_ref[p:p + T, p:p + H, :] = v.reshape(T, H, WI)

    # ---- depthwise k^3 conv over all T slabs at once -------------------------
    # dx -> lane roll (XLU) with boundary-masked weights; dt/dy -> leading-dim
    # / sublane slices of the zero-padded scratch.  One partial accumulator per
    # dt keeps the FMA chains short enough to keep the 4 VALUs pipelined.
    w_all = wdw_ref[...]                                   # hoisted tap weights
    accs = [jnp.zeros((TH, WI), jnp.float32) for _ in range(k)]
    for dt in range(k):
        for dy in range(k):
            rows = vbuf_ref[dt:dt + T, dy:dy + H, :].reshape(TH, WI)
            for dx in range(k):
                tap = (dt * k + dy) * k + dx
                shift = ((p - dx) * inner) % WI
                shifted = pltpu.roll(rows, shift, 1) if shift else rows
                accs[dt] = accs[dt] + shifted * w_all[tap:tap + 1, :]
    dw = accs[0]
    for a in accs[1:]:
        dw = dw + a

    # ---- to_out (block-diagonal) + fused biases, lane-dense store -----------
    o_ref[...] = jnp.dot(dw, wout_bd_ref[...],
                         preferred_element_type=jnp.float32) + bias_ref[...]


# ----------------------------- wrapper ---------------------------------------
def local_aggr_forward(x, params, *, heads, local_aggr_size):
    """x: (B, C, T, H, W) float32 (PyTorch NCDHW-style). Returns same shape."""
    gamma, beta = params["gamma"], params["beta"]
    wv, w_rp, b_rp = params["wv"], params["w_rp"], params["b_rp"]
    w_out, b_out = params["w_out"], params["b_out"]

    B, C, T, H, W = x.shape
    k = local_aggr_size
    p = (k - 1) // 2
    dim_head = C // heads
    inner = heads * dim_head
    if inner != C:
        raise ValueError("LocalAggr requires heads * (dim // heads) == dim "
                         "(the PyTorch reshape is only valid in that case).")
    N = B * T * H * W
    Tp, Hp = T + 2 * p, H + 2 * p
    WI, WC, TH = W * inner, W * C, T * H

    # channels-last, then W folded onto lanes for the fused kernel
    x_cl = jnp.transpose(x, (0, 2, 3, 4, 1))                 # (B,T,H,W,C)
    x2d = x_cl.reshape(N, C)

    # ---- 1) BatchNorm batch statistics: tiled single-pass reduction ---------
    n_folded = pl.cdiv(N, _FOLD)
    rows_blk = min(_BN_ROWS, ((n_folded + 7) // 8) * 8)     # big HBM-bound tile
    chunk = _FOLD * rows_blk
    n_tiles = pl.cdiv(N, chunk)
    n_pad = n_tiles * chunk
    x_stats = x2d if n_pad == N else jnp.pad(x2d, ((0, n_pad - N), (0, 0)))
    x_stats = x_stats.reshape(n_pad // _FOLD, _FOLD * C)     # lane-dense view

    scale, shift = pl.pallas_call(
        functools.partial(bn_stats_kernel, n_total=float(N), C=C, fold=_FOLD),
        grid=(n_tiles,),
        in_specs=[pl.BlockSpec((rows_blk, _FOLD * C), lambda i: (i, 0)),
                  pl.BlockSpec((1, C), lambda i: (0, 0)),
                  pl.BlockSpec((1, C), lambda i: (0, 0))],
        out_specs=(pl.BlockSpec((1, C), lambda i: (0, 0)),
                   pl.BlockSpec((1, C), lambda i: (0, 0))),
        out_shape=(jax.ShapeDtypeStruct((1, C), jnp.float32),
                   jax.ShapeDtypeStruct((1, C), jnp.float32)),
        scratch_shapes=[pltpu.VMEM((2, _FOLD * C), jnp.float32)],
        compiler_params=pltpu.CompilerParams(
            dimension_semantics=("arbitrary",)),
    )(x_stats, gamma.reshape(1, C), beta.reshape(1, C))

    # ---- 2) fold affine pieces into the weights (tiny XLA ops) --------------
    # BN apply folded into to_v:  v = x @ (scale*wv) + shift@wv
    wv_f = wv * scale.reshape(C, 1)                          # (C, inner)
    bv = shift @ wv                                          # (1, inner)
    # rel_pos bias folded through to_out:  y = dw@w_out + (b_rp@w_out + b_out)
    b_rp_exp = jnp.repeat(b_rp, dim_head)                    # (inner,)
    bias_tot = b_out + b_rp_exp @ w_out                      # (C,)
    # 1x1x1 convs become block-diagonal matmuls on lane-dense (rows, W*chan)
    eyeW = jnp.eye(W, dtype=jnp.float32)
    wv_bd = (eyeW[:, None, :, None] * wv_f[None, :, None, :]).reshape(WC, WI)
    wout_bd = (eyeW[:, None, :, None] * w_out[None, :, None, :]).reshape(WI, WC)
    bv_t = jnp.tile(bv, (1, W))                              # (1, W*inner)
    bias_t = jnp.tile(bias_tot.reshape(1, C), (1, W))        # (1, W*C)
    # per-channel depthwise taps, W-tiled and masked at the W boundary so the
    # in-kernel dx shift can be a plain lane roll of an unpadded-W slab
    w_exp = jnp.repeat(w_rp.reshape(heads, k ** 3), dim_head, axis=0)  # (inner,k^3)
    xs = jnp.arange(W)
    dxs = jnp.arange(k ** 3) % k                             # tap -> dx (row-major)
    valid = ((xs[None, :] + dxs[:, None] - p >= 0) &
             (xs[None, :] + dxs[:, None] - p < W)).astype(jnp.float32)  # (k^3, W)
    wdw = (valid[:, :, None] * w_exp.T[:, None, :]).reshape(k ** 3, WI)

    # ---- 3) fused to_v + depthwise rel_pos + to_out --------------------------
    # TODO(synk): at production UniFormer resolutions, tile T/H with a p-halo
    # (manual DMA) and set vmem_limit_bytes so blocks + scratch fit v7x's 64 MiB
    # VMEM (and add a second parallel grid axis for B=1); at these demo sizes
    # one whole volume per grid step fits comfortably.
    x_rows = x_cl.reshape(B, TH, WC)
    y_rows = pl.pallas_call(
        functools.partial(fused_local_aggr_kernel, k=k, p=p, T=T, H=H, W=W,
                          inner=inner),
        grid=(B,),
        in_specs=[pl.BlockSpec((None, TH, WC), lambda b: (b, 0, 0)),
                  pl.BlockSpec((WC, WI), lambda b: (0, 0)),      # wv block-diag
                  pl.BlockSpec((1, WI), lambda b: (0, 0)),       # bv tiled
                  pl.BlockSpec((k ** 3, WI), lambda b: (0, 0)),  # dw taps
                  pl.BlockSpec((WI, WC), lambda b: (0, 0)),      # w_out block-diag
                  pl.BlockSpec((1, WC), lambda b: (0, 0))],      # fused bias
        out_specs=pl.BlockSpec((None, TH, WC), lambda b: (b, 0, 0)),
        out_shape=jax.ShapeDtypeStruct((B, TH, WC), jnp.float32),
        scratch_shapes=[pltpu.VMEM((Tp, Hp, WI), jnp.float32)],
        compiler_params=pltpu.CompilerParams(
            dimension_semantics=("parallel",)),
    )(x_rows, wv_bd, bv_t, wdw, wout_bd, bias_t)

    y_cl = y_rows.reshape(B, T, H, W, C)
    return jnp.transpose(y_cl, (0, 4, 1, 2, 3))              # back to NCDHW


# ----------------------------- pure-JAX reference ----------------------------
def reference_forward(x, params, *, heads, local_aggr_size):
    gamma, beta = params["gamma"], params["beta"]
    wv, w_rp, b_rp = params["wv"], params["w_rp"], params["b_rp"]
    w_out, b_out = params["w_out"], params["b_out"]
    B, C, T, H, W = x.shape
    k = local_aggr_size
    p = (k - 1) // 2
    dim_head = C // heads
    inner = heads * dim_head

    mean = x.mean(axis=(0, 2, 3, 4), keepdims=True)
    var = ((x - mean) ** 2).mean(axis=(0, 2, 3, 4), keepdims=True)
    xn = (x - mean) / jnp.sqrt(var + EPS)
    xn = xn * gamma[None, :, None, None, None] + beta[None, :, None, None, None]

    v = jnp.einsum("bcthw,co->bothw", xn, wv, precision=lax.Precision.HIGHEST)

    rhs = jnp.repeat(w_rp, dim_head, axis=0)[:, None]            # (inner,1,k,k,k)
    out = lax.conv_general_dilated(
        v, rhs, window_strides=(1, 1, 1), padding=[(p, p)] * 3,
        feature_group_count=inner,
        dimension_numbers=("NCDHW", "OIDHW", "NCDHW"),
        precision=lax.Precision.HIGHEST)
    out = out + jnp.repeat(b_rp, dim_head)[None, :, None, None, None]

    y = jnp.einsum("bothw,oj->bjthw", out, w_out, precision=lax.Precision.HIGHEST)
    return y + b_out[None, :, None, None, None]


if __name__ == "__main__":
    B, dim, heads, T, H, W = 2, 16, 4, 4, 8, 8
    k = 5                                   # local_aggr_size (module default)
    dim_head = dim // heads                 # required: dim_head * heads == dim
    inner = dim_head * heads

    key = jax.random.PRNGKey(0)
    ks = jax.random.split(key, 8)
    params = {
        "gamma": 1.0 + 0.1 * jax.random.normal(ks[0], (dim,), jnp.float32),
        "beta": 0.1 * jax.random.normal(ks[1], (dim,), jnp.float32),
        "wv": 0.2 * jax.random.normal(ks[2], (dim, inner), jnp.float32),
        "w_rp": 0.1 * jax.random.normal(ks[3], (heads, k, k, k), jnp.float32),
        "b_rp": 0.1 * jax.random.normal(ks[4], (heads,), jnp.float32),
        "w_out": 0.2 * jax.random.normal(ks[5], (inner, dim), jnp.float32),
        "b_out": 0.1 * jax.random.normal(ks[6], (dim,), jnp.float32),
    }
    x = jax.random.normal(ks[7], (B, dim, T, H, W), jnp.float32)

    fwd = jax.jit(functools.partial(local_aggr_forward, heads=heads,
                                    local_aggr_size=k))
    y = fwd(x, params)
    jax.block_until_ready(y)

    y_ref = reference_forward(x, params, heads=heads, local_aggr_size=k)
    assert y.shape == x.shape
    err = float(jnp.max(jnp.abs(y - y_ref)))
    assert err < 1e-2, f"max abs err {err}"
    print("KERNEL_OK")
</pallas_src>

<mosaic_0001>
module attributes {stable_mosaic.version = 11 : i64} {
  func.func @bn_stats_kernel(%arg0: i32, %arg1: memref<64x128xf32, #tpu.memory_space<vmem>>, %arg2: memref<1x16xf32, #tpu.memory_space<vmem>>, %arg3: memref<1x16xf32, #tpu.memory_space<vmem>>, %arg4: memref<1x16xf32, #tpu.memory_space<vmem>>, %arg5: memref<1x16xf32, #tpu.memory_space<vmem>>, %arg6: memref<2x128xf32, #tpu.memory_space<vmem>>) attributes {dimension_semantics = [#tpu.dimension_semantics<arbitrary>], iteration_bounds = array<i64: 1>, scalar_prefetch = 0 : i64, scratch_operands = 1 : i64, tpu.core_type = #tpu.core_type<tc>, window_params = [{transform_indices = @transform_0, window_bounds = array<i64: 64, 128>}, {pipeline_mode = #tpu.pipeline_mode<synchronous>, transform_indices = @transform_1, window_bounds = array<i64: 1, 16>}, {pipeline_mode = #tpu.pipeline_mode<synchronous>, transform_indices = @transform_2, window_bounds = array<i64: 1, 16>}, {pipeline_mode = #tpu.pipeline_mode<synchronous>, transform_indices = @transform_3, window_bounds = array<i64: 1, 16>}, {pipeline_mode = #tpu.pipeline_mode<synchronous>, transform_indices = @transform_4, window_bounds = array<i64: 1, 16>}]} {
    %c0_i32 = arith.constant 0 : i32
    %0 = arith.cmpi eq, %arg0, %c0_i32 : i32
    %1 = arith.extui %0 : i1 to i32
    %c0_i32_0 = arith.constant 0 : i32
    %2 = arith.cmpi ne, %1, %c0_i32_0 : i32
    scf.if %2 {
      %cst_12 = arith.constant 0.000000e+00 : f32
      %18 = vector.broadcast %cst_12 : f32 to vector<2x128xf32>
      %c0_13 = arith.constant 0 : index
      %c0_14 = arith.constant 0 : index
      %19 = vector.load %arg6[%c0_13, %c0_14] : memref<2x128xf32, #tpu.memory_space<vmem>>, vector<2x128xf32>
      tpu.vector_store %arg6[%c0_13, %c0_14], %18 {strides = array<i32>} : memref<2x128xf32, #tpu.memory_space<vmem>>, vector<2x128xf32>,
    } else {
    }
    %c0 = arith.constant 0 : index
    %c0_1 = arith.constant 0 : index
    %3 = vector.load %arg1[%c0, %c0_1] : memref<64x128xf32, #tpu.memory_space<vmem>>, vector<64x128xf32>
    %c0_2 = arith.constant 0 : index
    %c0_3 = arith.constant 0 : index
    %4 = vector.load %arg6[%c0_2, %c0_3] : memref<2x128xf32, #tpu.memory_space<vmem>>, vector<1x128xf32>
    %cst = arith.constant dense<0.000000e+00> : vector<128xf32>
    %5 = vector.multi_reduction <add>, %3, %cst [0] : vector<64x128xf32> to vector<128xf32>
    %6 = vector.shape_cast %5 : vector<128xf32> to vector<1x128xf32>
    %7 = arith.addf %4, %6 : vector<1x128xf32>
    %c0_4 = arith.constant 0 : index
    %c0_5 = arith.constant 0 : index
    %8 = vector.load %arg6[%c0_4, %c0_5] : memref<2x128xf32, #tpu.memory_space<vmem>>, vector<1x128xf32>
    tpu.vector_store %arg6[%c0_4, %c0_5], %7 {strides = array<i32>} : memref<2x128xf32, #tpu.memory_space<vmem>>, vector<1x128xf32>,
    %c1 = arith.constant 1 : index
    %c0_6 = arith.constant 0 : index
    %9 = vector.load %arg6[%c1, %c0_6] : memref<2x128xf32, #tpu.memory_space<vmem>>, vector<1x128xf32>
    %10 = arith.mulf %3, %3 : vector<64x128xf32>
    %cst_7 = arith.constant dense<0.000000e+00> : vector<128xf32>
    %11 = vector.multi_reduction <add>, %10, %cst_7 [0] : vector<64x128xf32> to vector<128xf32>
    %12 = vector.shape_cast %11 : vector<128xf32> to vector<1x128xf32>
    %13 = arith.addf %9, %12 : vector<1x128xf32>
    %c1_8 = arith.constant 1 : index
    %c0_9 = arith.constant 0 : index
    %14 = vector.load %arg6[%c1_8, %c0_9] : memref<2x128xf32, #tpu.memory_space<vmem>>, vector<1x128xf32>
    tpu.vector_store %arg6[%c1_8, %c0_9], %13 {strides = array<i32>} : memref<2x128xf32, #tpu.memory_space<vmem>>, vector<1x128xf32>,
    %c0_i32_10 = arith.constant 0 : i32
    %15 = arith.cmpi eq, %arg0, %c0_i32_10 : i32
    %16 = arith.extui %15 : i1 to i32
    %c0_i32_11 = arith.constant 0 : i32
    %17 = arith.cmpi ne, %16, %c0_i32_11 : i32
    scf.if %17 {
      %cst_12 = arith.constant 0.000000e+00 : f32
      %18 = vector.broadcast %cst_12 : f32 to vector<1x16xf32>
      %cst_13 = arith.constant 0.000000e+00 : f32
      %19 = vector.broadcast %cst_13 : f32 to vector<1x16xf32>
      %c0_14 = arith.constant 0 : index
      %c0_15 = arith.constant 0 : index
      %20 = vector.load %arg6[%c0_14, %c0_15] : memref<2x128xf32, #tpu.memory_space<vmem>>, vector<1x16xf32>
      %21 = arith.addf %18, %20 : vector<1x16xf32>
      %c1_16 = arith.constant 1 : index
      %c0_17 = arith.constant 0 : index
      %22 = vector.load %arg6[%c1_16, %c0_17] : memref<2x128xf32, #tpu.memory_space<vmem>>, vector<1x16xf32>
      %23 = arith.addf %19, %22 : vector<1x16xf32>
      %c0_18 = arith.constant 0 : index
      %c16 = arith.constant 16 : index
      %24 = vector.load %arg6[%c0_18, %c16] : memref<2x128xf32, #tpu.memory_space<vmem>>, vector<1x16xf32>
      %25 = arith.addf %21, %24 : vector<1x16xf32>
      %c1_19 = arith.constant 1 : index
      %c16_20 = arith.constant 16 : index
      %26 = vector.load %arg6[%c1_19, %c16_20] : memref<2x128xf32, #tpu.memory_space<vmem>>, vector<1x16xf32>
      %27 = arith.addf %23, %26 : vector<1x16xf32>
      %c0_21 = arith.constant 0 : index
      %c32 = arith.constant 32 : index
      %28 = vector.load %arg6[%c0_21, %c32] : memref<2x128xf32, #tpu.memory_space<vmem>>, vector<1x16xf32>
      %29 = arith.addf %25, %28 : vector<1x16xf32>
      %c1_22 = arith.constant 1 : index
      %c32_23 = arith.constant 32 : index
      %30 = vector.load %arg6[%c1_22, %c32_23] : memref<2x128xf32, #tpu.memory_space<vmem>>, vector<1x16xf32>
      %31 = arith.addf %27, %30 : vector<1x16xf32>
      %c0_24 = arith.constant 0 : index
      %c48 = arith.constant 48 : index
      %32 = vector.load %arg6[%c0_24, %c48] : memref<2x128xf32, #tpu.memory_space<vmem>>, vector<1x16xf32>
      %33 = arith.addf %29, %32 : vector<1x16xf32>
      %c1_25 = arith.constant 1 : index
      %c48_26 = arith.constant 48 : index
      %34 = vector.load %arg6[%c1_25, %c48_26] : memref<2x128xf32, #tpu.memory_space<vmem>>, vector<1x16xf32>
      %35 = arith.addf %31, %34 : vector<1x16xf32>
      %c0_27 = arith.constant 0 : index
      %c64 = arith.constant 64 : index
      %36 = vector.load %arg6[%c0_27, %c64] : memref<2x128xf32, #tpu.memory_space<vmem>>, vector<1x16xf32>
      %37 = arith.addf %33, %36 : vector<1x16xf32>
      %c1_28 = arith.constant 1 : index
      %c64_29 = arith.constant 64 : index
      %38 = vector.load %arg6[%c1_28, %c64_29] : memref<2x128xf32, #tpu.memory_space<vmem>>, vector<1x16xf32>
      %39 = arith.addf %35, %38 : vector<1x16xf32>
      %c0_30 = arith.constant 0 : index
      %c80 = arith.constant 80 : index
      %40 = vector.load %arg6[%c0_30, %c80] : memref<2x128xf32, #tpu.memory_space<vmem>>, vector<1x16xf32>
      %41 = arith.addf %37, %40 : vector<1x16xf32>
      %c1_31 = arith.constant 1 : index
      %c80_32 = arith.constant 80 : index
      %42 = vector.load %arg6[%c1_31, %c80_32] : memref<2x128xf32, #tpu.memory_space<vmem>>, vector<1x16xf32>
      %43 = arith.addf %39, %42 : vector<1x16xf32>
      %c0_33 = arith.constant 0 : index
      %c96 = arith.constant 96 : index
      %44 = vector.load %arg6[%c0_33, %c96] : memref<2x128xf32, #tpu.memory_space<vmem>>, vector<1x16xf32>
      %45 = arith.addf %41, %44 : vector<1x16xf32>
      %c1_34 = arith.constant 1 : index
      %c96_35 = arith.constant 96 : index
      %46 = vector.load %arg6[%c1_34, %c96_35] : memref<2x128xf32, #tpu.memory_space<vmem>>, vector<1x16xf32>
      %47 = arith.addf %43, %46 : vector<1x16xf32>
      %c0_36 = arith.constant 0 : index
      %c112 = arith.constant 112 : index
      %48 = vector.load %arg6[%c0_36, %c112] : memref<2x128xf32, #tpu.memory_space<vmem>>, vector<1x16xf32>
      %49 = arith.addf %45, %48 : vector<1x16xf32>
      %c1_37 = arith.constant 1 : index
      %c112_38 = arith.constant 112 : index
      %50 = vector.load %arg6[%c1_37, %c112_38] : memref<2x128xf32, #tpu.memory_space<vmem>>, vector<1x16xf32>
      %51 = arith.addf %47, %50 : vector<1x16xf32>
      %cst_39 = arith.constant 0.001953125 : f32
      %52 = vector.broadcast %cst_39 : f32 to vector<1x16xf32>
      %53 = arith.mulf %49, %52 : vector<1x16xf32>
      %cst_40 = arith.constant 0.001953125 : f32
      %54 = vector.broadcast %cst_40 : f32 to vector<1x16xf32>
      %55 = arith.mulf %51, %54 : vector<1x16xf32>
      %56 = arith.mulf %53, %53 : vector<1x16xf32>
      %57 = arith.subf %55, %56 : vector<1x16xf32>
      %cst_41 = arith.constant 0.000000e+00 : f32
      %58 = vector.broadcast %cst_41 : f32 to vector<1x16xf32>
      %59 = arith.maximumf %57, %58 : vector<1x16xf32>
      %c0_42 = arith.constant 0 : index
      %c0_43 = arith.constant 0 : index
      %60 = vector.load %arg2[%c0_42, %c0_43] : memref<1x16xf32, #tpu.memory_space<vmem>>, vector<1x16xf32>
      %cst_44 = arith.constant 9.99999974E-6 : f32
      %61 = vector.broadcast %cst_44 : f32 to vector<1x16xf32>
      %62 = arith.addf %59, %61 : vector<1x16xf32>
      %63 = math.rsqrt %62 : vector<1x16xf32>
      %64 = arith.mulf %60, %63 : vector<1x16xf32>
      %c0_45 = arith.constant 0 : index
      %c0_46 = arith.constant 0 : index
      %65 = vector.load %arg4[%c0_45, %c0_46] : memref<1x16xf32, #tpu.memory_space<vmem>>, vector<1x16xf32>
      tpu.vector_store %arg4[%c0_45, %c0_46], %64 {strides = array<i32>} : memref<1x16xf32, #tpu.memory_space<vmem>>, vector<1x16xf32>,
      %c0_47 = arith.constant 0 : index
      %c0_48 = arith.constant 0 : index
      %66 = vector.load %arg3[%c0_47, %c0_48] : memref<1x16xf32, #tpu.memory_space<vmem>>, vector<1x16xf32>
      %67 = arith.mulf %53, %64 : vector<1x16xf32>
      %68 = arith.subf %66, %67 : vector<1x16xf32>
      %c0_49 = arith.constant 0 : index
      %c0_50 = arith.constant 0 : index
      %69 = vector.load %arg5[%c0_49, %c0_50] : memref<1x16xf32, #tpu.memory_space<vmem>>, vector<1x16xf32>
      tpu.vector_store %arg5[%c0_49, %c0_50], %68 {strides = array<i32>} : memref<1x16xf32, #tpu.memory_space<vmem>>, vector<1x16xf32>,
    } else {
    }
    return
  }
  func.func @transform_0(%arg0: i32) -> (i32, i32) {
    %c0_i32 = arith.constant 0 : i32
    %c0_i32_0 = arith.constant 0 : i32
    return %arg0, %c0_i32 : i32, i32
  }
  func.func @transform_1(%arg0: i32) -> (i32, i32) {
    %c0_i32 = arith.constant 0 : i32
    %c0_i32_0 = arith.constant 0 : i32
    %c0_i32_1 = arith.constant 0 : i32
    return %c0_i32, %c0_i32_0 : i32, i32
  }
  func.func @transform_2(%arg0: i32) -> (i32, i32) {
    %c0_i32 = arith.constant 0 : i32
    %c0_i32_0 = arith.constant 0 : i32
    %c0_i32_1 = arith.constant 0 : i32
    return %c0_i32, %c0_i32_0 : i32, i32
  }
  func.func @transform_3(%arg0: i32) -> (i32, i32) {
    %c0_i32 = arith.constant 0 : i32
    %c0_i32_0 = arith.constant 0 : i32
    %c0_i32_1 = arith.constant 0 : i32
    return %c0_i32, %c0_i32_0 : i32, i32
  }
  func.func @transform_4(%arg0: i32) -> (i32, i32) {
    %c0_i32 = arith.constant 0 : i32
    %c0_i32_0 = arith.constant 0 : i32
    %c0_i32_1 = arith.constant 0 : i32
    return %c0_i32, %c0_i32_0 : i32, i32
  }
}

module attributes {stable_mosaic.version = 11 : i64} {
  func.func @fused_local_aggr_kernel(%arg0: i32, %arg1: memref<1x32x128xf32, #tpu.memory_space<vmem>>, %arg2: memref<128x128xf32, #tpu.memory_space<vmem>>, %arg3: memref<1x128xf32, #tpu.memory_space<vmem>>, %arg4: memref<125x128xf32, #tpu.memory_space<vmem>>, %arg5: memref<128x128xf32, #tpu.memory_space<vmem>>, %arg6: memref<1x128xf32, #tpu.memory_space<vmem>>, %arg7: memref<1x32x128xf32, #tpu.memory_space<vmem>>, %arg8: memref<8x12x128xf32, #tpu.memory_space<vmem>>) attributes {dimension_semantics = [#tpu.dimension_semantics<parallel>], iteration_bounds = array<i64: 2>, scalar_prefetch = 0 : i64, scratch_operands = 1 : i64, tpu.core_type = #tpu.core_type<tc>, window_params = [{transform_indices = @transform_0, window_bounds = array<i64: 1, 32, 128>}, {pipeline_mode = #tpu.pipeline_mode<synchronous>, transform_indices = @transform_1, window_bounds = array<i64: 128, 128>}, {pipeline_mode = #tpu.pipeline_mode<synchronous>, transform_indices = @transform_2, window_bounds = array<i64: 1, 128>}, {pipeline_mode = #tpu.pipeline_mode<synchronous>, transform_indices = @transform_3, window_bounds = array<i64: 125, 128>}, {pipeline_mode = #tpu.pipeline_mode<synchronous>, transform_indices = @transform_4, window_bounds = array<i64: 128, 128>}, {pipeline_mode = #tpu.pipeline_mode<synchronous>, transform_indices = @transform_5, window_bounds = array<i64: 1, 128>}, {transform_indices = @transform_6, window_bounds = array<i64: 1, 32, 128>}]} {
    %cst = arith.constant 0.000000e+00 : f32
    %0 = vector.broadcast %cst : f32 to vector<2x12x128xf32>
    %c0 = arith.constant 0 : index
    %c0_0 = arith.constant 0 : index
    %c0_1 = arith.constant 0 : index
    %1 = vector.load %arg8[%c0, %c0_0, %c0_1] : memref<8x12x128xf32, #tpu.memory_space<vmem>>, vector<2x12x128xf32>
    tpu.vector_store %arg8[%c0, %c0_0, %c0_1], %0 {strides = array<i32>} : memref<8x12x128xf32, #tpu.memory_space<vmem>>, vector<2x12x128xf32>,
    %c6 = arith.constant 6 : index
    %c0_2 = arith.constant 0 : index
    %c0_3 = arith.constant 0 : index
    %2 = vector.load %arg8[%c6, %c0_2, %c0_3] : memref<8x12x128xf32, #tpu.memory_space<vmem>>, vector<2x12x128xf32>
    tpu.vector_store %arg8[%c6, %c0_2, %c0_3], %0 {strides = array<i32>} : memref<8x12x128xf32, #tpu.memory_space<vmem>>, vector<2x12x128xf32>,
    %cst_4 = arith.constant 0.000000e+00 : f32
    %3 = vector.broadcast %cst_4 : f32 to vector<4x2x128xf32>
    %c2 = arith.constant 2 : index
    %c0_5 = arith.constant 0 : index
    %c0_6 = arith.constant 0 : index
    %4 = vector.load %arg8[%c2, %c0_5, %c0_6] : memref<8x12x128xf32, #tpu.memory_space<vmem>>, vector<4x2x128xf32>
    tpu.vector_store %arg8[%c2, %c0_5, %c0_6], %3 {strides = array<i32>} : memref<8x12x128xf32, #tpu.memory_space<vmem>>, vector<4x2x128xf32>,
    %c2_7 = arith.constant 2 : index
    %c10 = arith.constant 10 : index
    %c0_8 = arith.constant 0 : index
    %5 = vector.load %arg8[%c2_7, %c10, %c0_8] : memref<8x12x128xf32, #tpu.memory_space<vmem>>, vector<4x2x128xf32>
    tpu.vector_store %arg8[%c2_7, %c10, %c0_8], %3 {strides = array<i32>} : memref<8x12x128xf32, #tpu.memory_space<vmem>>, vector<4x2x128xf32>,
    %c0_9 = arith.constant 0 : index
    %c0_10 = arith.constant 0 : index
    %c0_11 = arith.constant 0 : index
    %6 = vector.load %arg1[%c0_9, %c0_10, %c0_11] : memref<1x32x128xf32, #tpu.memory_space<vmem>>, vector<1x32x128xf32>
    %7 = vector.shape_cast %6 : vector<1x32x128xf32> to vector<32x128xf32>
    %c0_12 = arith.constant 0 : index
    %c0_13 = arith.constant 0 : index
    %8 = vector.load %arg2[%c0_12, %c0_13] : memref<128x128xf32, #tpu.memory_space<vmem>>, vector<128x128xf32>
    %cst_14 = arith.constant dense<0.000000e+00> : vector<32x128xf32>
    %9 = tpu.matmul %7, %8, %cst_14 {dimension_numbers = #tpu.dot_dimension_numbers<[1], [0], [0], [1], [0, 0, 1, 1], [], []>} : vector<32x128xf32>, vector<128x128xf32>, vector<32x128xf32> -> vector<32x128xf32>
    %c0_15 = arith.constant 0 : index
    %c0_16 = arith.constant 0 : index
    %10 = vector.load %arg3[%c0_15, %c0_16] : memref<1x128xf32, #tpu.memory_space<vmem>>, vector<1x128xf32>
    %11 = vector.broadcast %10 : vector<1x128xf32> to vector<32x128xf32>
    %12 = arith.addf %9, %11 : vector<32x128xf32>
    %13 = vector.shape_cast %12 : vector<32x128xf32> to vector<4x8x128xf32>
    %c2_17 = arith.constant 2 : index
    %c2_18 = arith.constant 2 : index
    %c0_19 = arith.constant 0 : index
    %14 = vector.load %arg8[%c2_17, %c2_18, %c0_19] : memref<8x12x128xf32, #tpu.memory_space<vmem>>, vector<4x8x128xf32>
    tpu.vector_store %arg8[%c2_17, %c2_18, %c0_19], %13 {strides = array<i32>} : memref<8x12x128xf32, #tpu.memory_space<vmem>>, vector<4x8x128xf32>,
    %c0_20 = arith.constant 0 : index
    %c0_21 = arith.constant 0 : index
    %15 = vector.load %arg4[%c0_20, %c0_21] : memref<125x128xf32, #tpu.memory_space<vmem>>, vector<125x128xf32>
    %cst_22 = arith.constant 0.000000e+00 : f32
    %16 = vector.broadcast %cst_22 : f32 to vector<32x128xf32>
    %cst_23 = arith.constant 0.000000e+00 : f32
    %17 = vector.broadcast %cst_23 : f32 to vector<32x128xf32>
    %cst_24 = arith.constant 0.000000e+00 : f32
    %18 = vector.broadcast %cst_24 : f32 to vector<32x128xf32>
    %cst_25 = arith.constant 0.000000e+00 : f32
    %19 = vector.broadcast %cst_25 : f32 to vector<32x128xf32>
    %cst_26 = arith.constant 0.000000e+00 : f32
    %20 = vector.broadcast %cst_26 : f32 to vector<32x128xf32>
    %c0_27 = arith.constant 0 : index
    %c0_28 = arith.constant 0 : index
    %c0_29 = arith.constant 0 : index
    %21 = vector.load %arg8[%c0_27, %c0_28, %c0_29] : memref<8x12x128xf32, #tpu.memory_space<vmem>>, vector<4x8x128xf32>
    %22 = vector.shape_cast %21 : vector<4x8x128xf32> to vector<32x128xf32>
    %c32_i32 = arith.constant 32 : i32
    %23 = tpu.dynamic_rotate %22 by %c32_i32 dim 1 : vector<32x128xf32>, i32 -> vector<32x128xf32>
    %24 = vector.extract_strided_slice %15 {offsets = [0, 0], sizes = [1, 128], strides = [1, 1]} : vector<125x128xf32> to vector<1x128xf32>
    %25 = vector.broadcast %24 : vector<1x128xf32> to vector<32x128xf32>
    %26 = arith.mulf %23, %25 : vector<32x128xf32>
    %27 = arith.addf %16, %26 : vector<32x128xf32>
    %c16_i32 = arith.constant 16 : i32
    %28 = tpu.dynamic_rotate %22 by %c16_i32 dim 1 : vector<32x128xf32>, i32 -> vector<32x128xf32>
    %29 = vector.extract_strided_slice %15 {offsets = [1, 0], sizes = [1, 128], strides = [1, 1]} : vector<125x128xf32> to vector<1x128xf32>
    %30 = vector.broadcast %29 : vector<1x128xf32> to vector<32x128xf32>
    %31 = arith.mulf %28, %30 : vector<32x128xf32>
    %32 = arith.addf %27, %31 : vector<32x128xf32>
    %33 = vector.extract_strided_slice %15 {offsets = [2, 0], sizes = [1, 128], strides = [1, 1]} : vector<125x128xf32> to vector<1x128xf32>
    %34 = vector.broadcast %33 : vector<1x128xf32> to vector<32x128xf32>
    %35 = arith.mulf %22, %34 : vector<32x128xf32>
    %36 = arith.addf %32, %35 : vector<32x128xf32>
    %c112_i32 = arith.constant 112 : i32
    %37 = tpu.dynamic_rotate %22 by %c112_i32 dim 1 : vector<32x128xf32>, i32 -> vector<32x128xf32>
    %38 = vector.extract_strided_slice %15 {offsets = [3, 0], sizes = [1, 128], strides = [1, 1]} : vector<125x128xf32> to vector<1x128xf32>
    %39 = vector.broadcast %38 : vector<1x128xf32> to vector<32x128xf32>
    %40 = arith.mulf %37, %39 : vector<32x128xf32>
    %41 = arith.addf %36, %40 : vector<32x128xf32>
    %c96_i32 = arith.constant 96 : i32
    %42 = tpu.dynamic_rotate %22 by %c96_i32 dim 1 : vector<32x128xf32>, i32 -> vector<32x128xf32>
    %43 = vector.extract_strided_slice %15 {offsets = [4, 0], sizes = [1, 128], strides = [1, 1]} : vector<125x128xf32> to vector<1x128xf32>
    %44 = vector.broadcast %43 : vector<1x128xf32> to vector<32x128xf32>
    %45 = arith.mulf %42, %44 : vector<32x128xf32>
    %46 = arith.addf %41, %45 : vector<32x128xf32>
    %c0_30 = arith.constant 0 : index
    %c1 = arith.constant 1 : index
    %c0_31 = arith.constant 0 : index
    %47 = vector.load %arg8[%c0_30, %c1, %c0_31] : memref<8x12x128xf32, #tpu.memory_space<vmem>>, vector<4x8x128xf32>
    %48 = vector.shape_cast %47 : vector<4x8x128xf32> to vector<32x128xf32>
    %c32_i32_32 = arith.constant 32 : i32
    %49 = tpu.dynamic_rotate %48 by %c32_i32_32 dim 1 : vector<32x128xf32>, i32 -> vector<32x128xf32>
    %50 = vector.extract_strided_slice %15 {offsets = [5, 0], sizes = [1, 128], strides = [1, 1]} : vector<125x128xf32> to vector<1x128xf32>
    %51 = vector.broadcast %50 : vector<1x128xf32> to vector<32x128xf32>
    %52 = arith.mulf %49, %51 : vector<32x128xf32>
    %53 = arith.addf %46, %52 : vector<32x128xf32>
    %c16_i32_33 = arith.constant 16 : i32
    %54 = tpu.dynamic_rotate %48 by %c16_i32_33 dim 1 : vector<32x128xf32>, i32 -> vector<32x128xf32>
    %55 = vector.extract_strided_slice %15 {offsets = [6, 0], sizes = [1, 128], strides = [1, 1]} : vector<125x128xf32> to vector<1x128xf32>
    %56 = vector.broadcast %55 : vector<1x128xf32> to vector<32x128xf32>
    %57 = arith.mulf %54, %56 : vector<32x128xf32>
    %58 = arith.addf %53, %57 : vector<32x128xf32>
    %59 = vector.extract_strided_slice %15 {offsets = [7, 0], sizes = [1, 128], strides = [1, 1]} : vector<125x128xf32> to vector<1x128xf32>
    %60 = vector.broadcast %59 : vector<1x128xf32> to vector<32x128xf32>
    %61 = arith.mulf %48, %60 : vector<32x128xf32>
    %62 = arith.addf %58, %61 : vector<32x128xf32>
    %c112_i32_34 = arith.constant 112 : i32
    %63 = tpu.dynamic_rotate %48 by %c112_i32_34 dim 1 : vector<32x128xf32>, i32 -> vector<32x128xf32>
    %64 = vector.extract_strided_slice %15 {offsets = [8, 0], sizes = [1, 128], strides = [1, 1]} : vector<125x128xf32> to vector<1x128xf32>
    %65 = vector.broadcast %64 : vector<1x128xf32> to vector<32x128xf32>
    %66 = arith.mulf %63, %65 : vector<32x128xf32>
    %67 = arith.addf %62, %66 : vector<32x128xf32>
    %c96_i32_35 = arith.constant 96 : i32
    %68 = tpu.dynamic_rotate %48 by %c96_i32_35 dim 1 : vector<32x128xf32>, i32 -> vector<32x128xf32>
    %69 = vector.extract_strided_slice %15 {offsets = [9, 0], sizes = [1, 128], strides = [1, 1]} : vector<125x128xf32> to vector<1x128xf32>
    %70 = vector.broadcast %69 : vector<1x128xf32> to vector<32x128xf32>
    %71 = arith.mulf %68, %70 : vector<32x128xf32>
    %72 = arith.addf %67, %71 : vector<32x128xf32>
    %c0_36 = arith.constant 0 : index
    %c2_37 = arith.constant 2 : index
    %c0_38 = arith.constant 0 : index
    %73 = vector.load %arg8[%c0_36, %c2_37, %c0_38] : memref<8x12x128xf32, #tpu.memory_space<vmem>>, vector<4x8x128xf32>
    %74 = vector.shape_cast %73 : vector<4x8x128xf32> to vector<32x128xf32>
    %c32_i32_39 = arith.constant 32 : i32
    %75 = tpu.dynamic_rotate %74 by %c32_i32_39 dim 1 : vector<32x128xf32>, i32 -> vector<32x128xf32>
    %76 = vector.extract_strided_slice %15 {offsets = [10, 0], sizes = [1, 128], strides = [1, 1]} : vector<125x128xf32> to vector<1x128xf32>
    %77 = vector.broadcast %76 : vector<1x128xf32> to vector<32x128xf32>
    %78 = arith.mulf %75, %77 : vector<32x128xf32>
    %79 = arith.addf %72, %78 : vector<32x128xf32>
    %c16_i32_40 = arith.constant 16 : i32
    %80 = tpu.dynamic_rotate %74 by %c16_i32_40 dim 1 : vector<32x128xf32>, i32 -> vector<32x128xf32>
    %81 = vector.extract_strided_slice %15 {offsets = [11, 0], sizes = [1, 128], strides = [1, 1]} : vector<125x128xf32> to vector<1x128xf32>
    %82 = vector.broadcast %81 : vector<1x128xf32> to vector<32x128xf32>
    %83 = arith.mulf %80, %82 : vector<32x128xf32>
    %84 = arith.addf %79, %83 : vector<32x128xf32>
    %85 = vector.extract_strided_slice %15 {offsets = [12, 0], sizes = [1, 128], strides = [1, 1]} : vector<125x128xf32> to vector<1x128xf32>
    %86 = vector.broadcast %85 : vector<1x128xf32> to vector<32x128xf32>
    %87 = arith.mulf %74, %86 : vector<32x128xf32>
    %88 = arith.addf %84, %87 : vector<32x128xf32>
    %c112_i32_41 = arith.constant 112 : i32
    %89 = tpu.dynamic_rotate %74 by %c112_i32_41 dim 1 : vector<32x128xf32>, i32 -> vector<32x128xf32>
    %90 = vector.extract_strided_slice %15 {offsets = [13, 0], sizes = [1, 128], strides = [1, 1]} : vector<125x128xf32> to vector<1x128xf32>
    %91 = vector.broadcast %90 : vector<1x128xf32> to vector<32x128xf32>
    %92 = arith.mulf %89, %91 : vector<32x128xf32>
    %93 = arith.addf %88, %92 : vector<32x128xf32>
    %c96_i32_42 = arith.constant 96 : i32
    %94 = tpu.dynamic_rotate %74 by %c96_i32_42 dim 1 : vector<32x128xf32>, i32 -> vector<32x128xf32>
    %95 = vector.extract_strided_slice %15 {offsets = [14, 0], sizes = [1, 128], strides = [1, 1]} : vector<125x128xf32> to vector<1x128xf32>
    %96 = vector.broadcast %95 : vector<1x128xf32> to vector<32x128xf32>
    %97 = arith.mulf %94, %96 : vector<32x128xf32>
    %98 = arith.addf %93, %97 : vector<32x128xf32>
    %c0_43 = arith.constant 0 : index
    %c3 = arith.constant 3 : index
    %c0_44 = arith.constant 0 : index
    %99 = vector.load %arg8[%c0_43, %c3, %c0_44] : memref<8x12x128xf32, #tpu.memory_space<vmem>>, vector<4x8x128xf32>
    %100 = vector.shape_cast %99 : vector<4x8x128xf32> to vector<32x128xf32>
    %c32_i32_45 = arith.constant 32 : i32
    %101 = tpu.dynamic_rotate %100 by %c32_i32_45 dim 1 : vector<32x128xf32>, i32 -> vector<32x128xf32>
    %102 = vector.extract_strided_slice %15 {offsets = [15, 0], sizes = [1, 128], strides = [1, 1]} : vector<125x128xf32> to vector<1x128xf32>
    %103 = vector.broadcast %102 : vector<1x128xf32> to vector<32x128xf32>
    %104 = arith.mulf %101, %103 : vector<32x128xf32>
    %105 = arith.addf %98, %104 : vector<32x128xf32>
    %c16_i32_46 = arith.constant 16 : i32
    %106 = tpu.dynamic_rotate %100 by %c16_i32_46 dim 1 : vector<32x128xf32>, i32 -> vector<32x128xf32>
    %107 = vector.extract_strided_slice %15 {offsets = [16, 0], sizes = [1, 128], strides = [1, 1]} : vector<125x128xf32> to vector<1x128xf32>
    %108 = vector.broadcast %107 : vector<1x128xf32> to vector<32x128xf32>
    %109 = arith.mulf %106, %108 : vector<32x128xf32>
    %110 = arith.addf %105, %109 : vector<32x128xf32>
    %111 = vector.extract_strided_slice %15 {offsets = [17, 0], sizes = [1, 128], strides = [1, 1]} : vector<125x128xf32> to vector<1x128xf32>
    %112 = vector.broadcast %111 : vector<1x128xf32> to vector<32x128xf32>
    %113 = arith.mulf %100, %112 : vector<32x128xf32>
    %114 = arith.addf %110, %113 : vector<32x128xf32>
    %c112_i32_47 = arith.constant 112 : i32
    %115 = tpu.dynamic_rotate %100 by %c112_i32_47 dim 1 : vector<32x128xf32>, i32 -> vector<32x128xf32>
    %116 = vector.extract_strided_slice %15 {offsets = [18, 0], sizes = [1, 128], strides = [1, 1]} : vector<125x128xf32> to vector<1x128xf32>
    %117 = vector.broadcast %116 : vector<1x128xf32> to vector<32x128xf32>
    %118 = arith.mulf %115, %117 : vector<32x128xf32>
    %119 = arith.addf %114, %118 : vector<32x128xf32>
    %c96_i32_48 = arith.constant 96 : i32
    %120 = tpu.dynamic_rotate %100 by %c96_i32_48 dim 1 : vector<32x128xf32>, i32 -> vector<32x128xf32>
    %121 = vector.extract_strided_slice %15 {offsets = [19, 0], sizes = [1, 128], strides = [1, 1]} : vector<125x128xf32> to vector<1x128xf32>
    %122 = vector.broadcast %121 : vector<1x128xf32> to vector<32x128xf32>
    %123 = arith.mulf %120, %122 : vector<32x128xf32>
    %124 = arith.addf %119, %123 : vector<32x128xf32>
    %c0_49 = arith.constant 0 : index
    %c4 = arith.constant 4 : index
    %c0_50 = arith.constant 0 : index
    %125 = vector.load %arg8[%c0_49, %c4, %c0_50] : memref<8x12x128xf32, #tpu.memory_space<vmem>>, vector<4x8x128xf32>
    %126 = vector.shape_cast %125 : vector<4x8x128xf32> to vector<32x128xf32>
    %c32_i32_51 = arith.constant 32 : i32
    %127 = tpu.dynamic_rotate %126 by %c32_i32_51 dim 1 : vector<32x128xf32>, i32 -> vector<32x128xf32>
    %128 = vector.extract_strided_slice %15 {offsets = [20, 0], sizes = [1, 128], strides = [1, 1]} : vector<125x128xf32> to vector<1x128xf32>
    %129 = vector.broadcast %128 : vector<1x128xf32> to vector<32x128xf32>
    %130 = arith.mulf %127, %129 : vector<32x128xf32>
    %131 = arith.addf %124, %130 : vector<32x128xf32>
    %c16_i32_52 = arith.constant 16 : i32
    %132 = tpu.dynamic_rotate %126 by %c16_i32_52 dim 1 : vector<32x128xf32>, i32 -> vector<32x128xf32>
    %133 = vector.extract_strided_slice %15 {offsets = [21, 0], sizes = [1, 128], strides = [1, 1]} : vector<125x128xf32> to vector<1x128xf32>
    %134 = vector.broadcast %133 : vector<1x128xf32> to vector<32x128xf32>
    %135 = arith.mulf %132, %134 : vector<32x128xf32>
    %136 = arith.addf %131, %135 : vector<32x128xf32>
    %137 = vector.extract_strided_slice %15 {offsets = [22, 0], sizes = [1, 128], strides = [1, 1]} : vector<125x128xf32> to vector<1x128xf32>
    %138 = vector.broadcast %137 : vector<1x128xf32> to vector<32x128xf32>
    %139 = arith.mulf %126, %138 : vector<32x128xf32>
    %140 = arith.addf %136, %139 : vector<32x128xf32>
    %c112_i32_53 = arith.constant 112 : i32
    %141 = tpu.dynamic_rotate %126 by %c112_i32_53 dim 1 : vector<32x128xf32>, i32 -> vector<32x128xf32>
    %142 = vector.extract_strided_slice %15 {offsets = [23, 0], sizes = [1, 128], strides = [1, 1]} : vector<125x128xf32> to vector<1x128xf32>
    %143 = vector.broadcast %142 : vector<1x128xf32> to vector<32x128xf32>
    %144 = arith.mulf %141, %143 : vector<32x128xf32>
    %145 = arith.addf %140, %144 : vector<32x128xf32>
    %c96_i32_54 = arith.constant 96 : i32
    %146 = tpu.dynamic_rotate %126 by %c96_i32_54 dim 1 : vector<32x128xf32>, i32 -> vector<32x128xf32>
    %147 = vector.extract_strided_slice %15 {offsets = [24, 0], sizes = [1, 128], strides = [1, 1]} : vector<125x128xf32> to vector<1x128xf32>
    %148 = vector.broadcast %147 : vector<1x128xf32> to vector<32x128xf32>
    %149 = arith.mulf %146, %148 : vector<32x128xf32>
    %150 = arith.addf %145, %149 : vector<32x128xf32>
    %c1_55 = arith.constant 1 : index
    %c0_56 = arith.constant 0 : index
    %c0_57 = arith.constant 0 : index
    %151 = vector.load %arg8[%c1_55, %c0_56, %c0_57] : memref<8x12x128xf32, #tpu.memory_space<vmem>>, vector<4x8x128xf32>
    %152 = vector.shape_cast %151 : vector<4x8x128xf32> to vector<32x128xf32>
    %c32_i32_58 = arith.constant 32 : i32
    %153 = tpu.dynamic_rotate %152 by %c32_i32_58 dim 1 : vector<32x128xf32>, i32 -> vector<32x128xf32>
    %154 = vector.extract_strided_slice %15 {offsets = [25, 0], sizes = [1, 128], strides = [1, 1]} : vector<125x128xf32> to vector<1x128xf32>
    %155 = vector.broadcast %154 : vector<1x128xf32> to vector<32x128xf32>
    %156 = arith.mulf %153, %155 : vector<32x128xf32>
    %157 = arith.addf %17, %156 : vector<32x128xf32>
    %c16_i32_59 = arith.constant 16 : i32
    %158 = tpu.dynamic_rotate %152 by %c16_i32_59 dim 1 : vector<32x128xf32>, i32 -> vector<32x128xf32>
    %159 = vector.extract_strided_slice %15 {offsets = [26, 0], sizes = [1, 128], strides = [1, 1]} : vector<125x128xf32> to vector<1x128xf32>
    %160 = vector.broadcast %159 : vector<1x128xf32> to vector<32x128xf32>
    %161 = arith.mulf %158, %160 : vector<32x128xf32>
    %162 = arith.addf %157, %161 : vector<32x128xf32>
    %163 = vector.extract_strided_slice %15 {offsets = [27, 0], sizes = [1, 128], strides = [1, 1]} : vector<125x128xf32> to vector<1x128xf32>
    %164 = vector.broadcast %163 : vector<1x128xf32> to vector<32x128xf32>
    %165 = arith.mulf %152, %164 : vector<32x128xf32>
    %166 = arith.addf %162, %165 : vector<32x128xf32>
    %c112_i32_60 = arith.constant 112 : i32
    %167 = tpu.dynamic_rotate %152 by %c112_i32_60 dim 1 : vector<32x128xf32>, i32 -> vector<32x128xf32>
    %168 = vector.extract_strided_slice %15 {offsets = [28, 0], sizes = [1, 128], strides = [1, 1]} : vector<125x128xf32> to vector<1x128xf32>
    %169 = vector.broadcast %168 : vector<1x128xf32> to vector<32x128xf32>
    %170 = arith.mulf %167, %169 : vector<32x128xf32>
    %171 = arith.addf %166, %170 : vector<32x128xf32>
    %c96_i32_61 = arith.constant 96 : i32
    %172 = tpu.dynamic_rotate %152 by %c96_i32_61 dim 1 : vector<32x128xf32>, i32 -> vector<32x128xf32>
    %173 = vector.extract_strided_slice %15 {offsets = [29, 0], sizes = [1, 128], strides = [1, 1]} : vector<125x128xf32> to vector<1x128xf32>
    %174 = vector.broadcast %173 : vector<1x128xf32> to vector<32x128xf32>
    %175 = arith.mulf %172, %174 : vector<32x128xf32>
    %176 = arith.addf %171, %175 : vector<32x128xf32>
    %c1_62 = arith.constant 1 : index
    %c1_63 = arith.constant 1 : index
    %c0_64 = arith.constant 0 : index
    %177 = vector.load %arg8[%c1_62, %c1_63, %c0_64] : memref<8x12x128xf32, #tpu.memory_space<vmem>>, vector<4x8x128xf32>
    %178 = vector.shape_cast %177 : vector<4x8x128xf32> to vector<32x128xf32>
    %c32_i32_65 = arith.constant 32 : i32
    %179 = tpu.dynamic_rotate %178 by %c32_i32_65 dim 1 : vector<32x128xf32>, i32 -> vector<32x128xf32>
    %180 = vector.extract_strided_slice %15 {offsets = [30, 0], sizes = [1, 128], strides = [1, 1]} : vector<125x128xf32> to vector<1x128xf32>
    %181 = vector.broadcast %180 : vector<1x128xf32> to vector<32x128xf32>
    %182 = arith.mulf %179, %181 : vector<32x128xf32>
    %183 = arith.addf %176, %182 : vector<32x128xf32>
    %c16_i32_66 = arith.constant 16 : i32
    %184 = tpu.dynamic_rotate %178 by %c16_i32_66 dim 1 : vector<32x128xf32>, i32 -> vector<32x128xf32>
    %185 = vector.extract_strided_slice %15 {offsets = [31, 0], sizes = [1, 128], strides = [1, 1]} : vector<125x128xf32> to vector<1x128xf32>
    %186 = vector.broadcast %185 : vector<1x128xf32> to vector<32x128xf32>
    %187 = arith.mulf %184, %186 : vector<32x128xf32>
    %188 = arith.addf %183, %187 : vector<32x128xf32>
    %189 = vector.extract_strided_slice %15 {offsets = [32, 0], sizes = [1, 128], strides = [1, 1]} : vector<125x128xf32> to vector<1x128xf32>
    %190 = vector.broadcast %189 : vector<1x128xf32> to vector<32x128xf32>
    %191 = arith.mulf %178, %190 : vector<32x128xf32>
    %192 = arith.addf %188, %191 : vector<32x128xf32>
    %c112_i32_67 = arith.constant 112 : i32
    %193 = tpu.dynamic_rotate %178 by %c112_i32_67 dim 1 : vector<32x128xf32>, i32 -> vector<32x128xf32>
    %194 = vector.extract_strided_slice %15 {offsets = [33, 0], sizes = [1, 128], strides = [1, 1]} : vector<125x128xf32> to vector<1x128xf32>
    %195 = vector.broadcast %194 : vector<1x128xf32> to vector<32x128xf32>
    %196 = arith.mulf %193, %195 : vector<32x128xf32>
    %197 = arith.addf %192, %196 : vector<32x128xf32>
    %c96_i32_68 = arith.constant 96 : i32
    %198 = tpu.dynamic_rotate %178 by %c96_i32_68 dim 1 : vector<32x128xf32>, i32 -> vector<32x128xf32>
    %199 = vector.extract_strided_slice %15 {offsets = [34, 0], sizes = [1, 128], strides = [1, 1]} : vector<125x128xf32> to vector<1x128xf32>
    %200 = vector.broadcast %199 : vector<1x128xf32> to vector<32x128xf32>
    %201 = arith.mulf %198, %200 : vector<32x128xf32>
    %202 = arith.addf %197, %201 : vector<32x128xf32>
    %c1_69 = arith.constant 1 : index
    %c2_70 = arith.constant 2 : index
    %c0_71 = arith.constant 0 : index
    %203 = vector.load %arg8[%c1_69, %c2_70, %c0_71] : memref<8x12x128xf32, #tpu.memory_space<vmem>>, vector<4x8x128xf32>
    %204 = vector.shape_cast %203 : vector<4x8x128xf32> to vector<32x128xf32>
    %c32_i32_72 = arith.constant 32 : i32
    %205 = tpu.dynamic_rotate %204 by %c32_i32_72 dim 1 : vector<32x128xf32>, i32 -> vector<32x128xf32>
    %206 = vector.extract_strided_slice %15 {offsets = [35, 0], sizes = [1, 128], strides = [1, 1]} : vector<125x128xf32> to vector<1x128xf32>
    %207 = vector.broadcast %206 : vector<1x128xf32> to vector<32x128xf32>
    %208 = arith.mulf %205, %207 : vector<32x128xf32>
    %209 = arith.addf %202, %208 : vector<32x128xf32>
    %c16_i32_73 = arith.constant 16 : i32
    %210 = tpu.dynamic_rotate %204 by %c16_i32_73 dim 1 : vector<32x128xf32>, i32 -> vector<32x128xf32>
    %211 = vector.extract_strided_slice %15 {offsets = [36, 0], sizes = [1, 128], strides = [1, 1]} : vector<125x128xf32> to vector<1x128xf32>
    %212 = vector.broadcast %211 : vector<1x128xf32> to vector<32x128xf32>
    %213 = arith.mulf %210, %212 : vector<32x128xf32>
    %214 = arith.addf %209, %213 : vector<32x128xf32>
    %215 = vector.extract_strided_slice %15 {offsets = [37, 0], sizes = [1, 128], strides = [1, 1]} : vector<125x128xf32> to vector<1x128xf32>
    %216 = vector.broadcast %215 : vector<1x128xf32> to vector<32x128xf32>
    %217 = arith.mulf %204, %216 : vector<32x128xf32>
    %218 = arith.addf %214, %217 : vector<32x128xf32>
    %c112_i32_74 = arith.constant 112 : i32
    %219 = tpu.dynamic_rotate %204 by %c112_i32_74 dim 1 : vector<32x128xf32>, i32 -> vector<32x128xf32>
    %220 = vector.extract_strided_slice %15 {offsets = [38, 0], sizes = [1, 128], strides = [1, 1]} : vector<125x128xf32> to vector<1x128xf32>
    %221 = vector.broadcast %220 : vector<1x128xf32> to vector<32x128xf32>
    %222 = arith.mulf %219, %221 : vector<32x128xf32>
    %223 = arith.addf %218, %222 : vector<32x128xf32>
    %c96_i32_75 = arith.constant 96 : i32
    %224 = tpu.dynamic_rotate %204 by %c96_i32_75 dim 1 : vector<32x128xf32>, i32 -> vector<32x128xf32>
    %225 = vector.extract_strided_slice %15 {offsets = [39, 0], sizes = [1, 128], strides = [1, 1]} : vector<125x128xf32> to vector<1x128xf32>
    %226 = vector.broadcast %225 : vector<1x128xf32> to vector<32x128xf32>
    %227 = arith.mulf %224, %226 : vector<32x128xf32>
    %228 = arith.addf %223, %227 : vector<32x128xf32>
    %c1_76 = arith.constant 1 : index
    %c3_77 = arith.constant 3 : index
    %c0_78 = arith.constant 0 : index
    %229 = vector.load %arg8[%c1_76, %c3_77, %c0_78] : memref<8x12x128xf32, #tpu.memory_space<vmem>>, vector<4x8x128xf32>
    %230 = vector.shape_cast %229 : vector<4x8x128xf32> to vector<32x128xf32>
    %c32_i32_79 = arith.constant 32 : i32
    %231 = tpu.dynamic_rotate %230 by %c32_i32_79 dim 1 : vector<32x128xf32>, i32 -> vector<32x128xf32>
    %232 = vector.extract_strided_slice %15 {offsets = [40, 0], sizes = [1, 128], strides = [1, 1]} : vector<125x128xf32> to vector<1x128xf32>
    %233 = vector.broadcast %232 : vector<1x128xf32> to vector<32x128xf32>
    %234 = arith.mulf %231, %233 : vector<32x128xf32>
    %235 = arith.addf %228, %234 : vector<32x128xf32>
    %c16_i32_80 = arith.constant 16 : i32
    %236 = tpu.dynamic_rotate %230 by %c16_i32_80 dim 1 : vector<32x128xf32>, i32 -> vector<32x128xf32>
    %237 = vector.extract_strided_slice %15 {offsets = [41, 0], sizes = [1, 128], strides = [1, 1]} : vector<125x128xf32> to vector<1x128xf32>
    %238 = vector.broadcast %237 : vector<1x128xf32> to vector<32x128xf32>
    %239 = arith.mulf %236, %238 : vector<32x128xf32>
    %240 = arith.addf %235, %239 : vector<32x128xf32>
    %241 = vector.extract_strided_slice %15 {offsets = [42, 0], sizes = [1, 128], strides = [1, 1]} : vector<125x128xf32> to vector<1x128xf32>
    %242 = vector.broadcast %241 : vector<1x128xf32> to vector<32x128xf32>
    %243 = arith.mulf %230, %242 : vector<32x128xf32>
    %244 = arith.addf %240, %243 : vector<32x128xf32>
    %c112_i32_81 = arith.constant 112 : i32
    %245 = tpu.dynamic_rotate %230 by %c112_i32_81 dim 1 : vector<32x128xf32>, i32 -> vector<32x128xf32>
    %246 = vector.extract_strided_slice %15 {offsets = [43, 0], sizes = [1, 128], strides = [1, 1]} : vector<125x128xf32> to vector<1x128xf32>
    %247 = vector.broadcast %246 : vector<1x128xf32> to vector<32x128xf32>
    %248 = arith.mulf %245, %247 : vector<32x128xf32>
    %249 = arith.addf %244, %248 : vector<32x128xf32>
    %c96_i32_82 = arith.constant 96 : i32
    %250 = tpu.dynamic_rotate %230 by %c96_i32_82 dim 1 : vector<32x128xf32>, i32 -> vector<32x128xf32>
    %251 = vector.extract_strided_slice %15 {offsets = [44, 0], sizes = [1, 128], strides = [1, 1]} : vector<125x128xf32> to vector<1x128xf32>
    %252 = vector.broadcast %251 : vector<1x128xf32> to vector<32x128xf32>
    %253 = arith.mulf %250, %252 : vector<32x128xf32>
    %254 = arith.addf %249, %253 : vector<32x128xf32>
    %c1_83 = arith.constant 1 : index
    %c4_84 = arith.constant 4 : index
    %c0_85 = arith.constant 0 : index
    %255 = vector.load %arg8[%c1_83, %c4_84, %c0_85] : memref<8x12x128xf32, #tpu.memory_space<vmem>>, vector<4x8x128xf32>
    %256 = vector.shape_cast %255 : vector<4x8x128xf32> to vector<32x128xf32>
    %c32_i32_86 = arith.constant 32 : i32
    %257 = tpu.dynamic_rotate %256 by %c32_i32_86 dim 1 : vector<32x128xf32>, i32 -> vector<32x128xf32>
    %258 = vector.extract_strided_slice %15 {offsets = [45, 0], sizes = [1, 128], strides = [1, 1]} : vector<125x128xf32> to vector<1x128xf32>
    %259 = vector.broadcast %258 : vector<1x128xf32> to vector<32x128xf32>
    %260 = arith.mulf %257, %259 : vector<32x128xf32>
    %261 = arith.addf %254, %260 : vector<32x128xf32>
    %c16_i32_87 = arith.constant 16 : i32
    %262 = tpu.dynamic_rotate %256 by %c16_i32_87 dim 1 : vector<32x128xf32>, i32 -> vector<32x128xf32>
    %263 = vector.extract_strided_slice %15 {offsets = [46, 0], sizes = [1, 128], strides = [1, 1]} : vector<125x128xf32> to vector<1x128xf32>
    %264 = vector.broadcast %263 : vector<1x128xf32> to vector<32x128xf32>
    %265 = arith.mulf %262, %264 : vector<32x128xf32>
    %266 = arith.addf %261, %265 : vector<32x128xf32>
    %267 = vector.extract_strided_slice %15 {offsets = [47, 0], sizes = [1, 128], strides = [1, 1]} : vector<125x128xf32> to vector<1x128xf32>
    %268 = vector.broadcast %267 : vector<1x128xf32> to vector<32x128xf32>
    %269 = arith.mulf %256, %268 : vector<32x128xf32>
    %270 = arith.addf %266, %269 : vector<32x128xf32>
    %c112_i32_88 = arith.constant 112 : i32
    %271 = tpu.dynamic_rotate %256 by %c112_i32_88 dim 1 : vector<32x128xf32>, i32 -> vector<32x128xf32>
    %272 = vector.extract_strided_slice %15 {offsets = [48, 0], sizes = [1, 128], strides = [1, 1]} : vector<125x128xf32> to vector<1x128xf32>
    %273 = vector.broadcast %272 : vector<1x128xf32> to vector<32x128xf32>
    %274 = arith.mulf %271, %273 : vector<32x128xf32>
    %275 = arith.addf %270, %274 : vector<32x128xf32>
    %c96_i32_89 = arith.constant 96 : i32
    %276 = tpu.dynamic_rotate %256 by %c96_i32_89 dim 1 : vector<32x128xf32>, i32 -> vector<32x128xf32>
    %277 = vector.extract_strided_slice %15 {offsets = [49, 0], sizes = [1, 128], strides = [1, 1]} : vector<125x128xf32> to vector<1x128xf32>
    %278 = vector.broadcast %277 : vector<1x128xf32> to vector<32x128xf32>
    %279 = arith.mulf %276, %278 : vector<32x128xf32>
    %280 = arith.addf %275, %279 : vector<32x128xf32>
    %c2_90 = arith.constant 2 : index
    %c0_91 = arith.constant 0 : index
    %c0_92 = arith.constant 0 : index
    %281 = vector.load %arg8[%c2_90, %c0_91, %c0_92] : memref<8x12x128xf32, #tpu.memory_space<vmem>>, vector<4x8x128xf32>
    %282 = vector.shape_cast %281 : vector<4x8x128xf32> to vector<32x128xf32>
    %c32_i32_93 = arith.constant 32 : i32
    %283 = tpu.dynamic_rotate %282 by %c32_i32_93 dim 1 : vector<32x128xf32>, i32 -> vector<32x128xf32>
    %284 = vector.extract_strided_slice %15 {offsets = [50, 0], sizes = [1, 128], strides = [1, 1]} : vector<125x128xf32> to vector<1x128xf32>
    %285 = vector.broadcast %284 : vector<1x128xf32> to vector<32x128xf32>
    %286 = arith.mulf %283, %285 : vector<32x128xf32>
    %287 = arith.addf %18, %286 : vector<32x128xf32>
    %c16_i32_94 = arith.constant 16 : i32
    %288 = tpu.dynamic_rotate %282 by %c16_i32_94 dim 1 : vector<32x128xf32>, i32 -> vector<32x128xf32>
    %289 = vector.extract_strided_slice %15 {offsets = [51, 0], sizes = [1, 128], strides = [1, 1]} : vector<125x128xf32> to vector<1x128xf32>
    %290 = vector.broadcast %289 : vector<1x128xf32> to vector<32x128xf32>
    %291 = arith.mulf %288, %290 : vector<32x128xf32>
    %292 = arith.addf %287, %291 : vector<32x128xf32>
    %293 = vector.extract_strided_slice %15 {offsets = [52, 0], sizes = [1, 128], strides = [1, 1]} : vector<125x128xf32> to vector<1x128xf32>
    %294 = vector.broadcast %293 : vector<1x128xf32> to vector<32x128xf32>
    %295 = arith.mulf %282, %294 : vector<32x128xf32>
    %296 = arith.addf %292, %295 : vector<32x128xf32>
    %c112_i32_95 = arith.constant 112 : i32
    %297 = tpu.dynamic_rotate %282 by %c112_i32_95 dim 1 : vector<32x128xf32>, i32 -> vector<32x128xf32>
    %298 = vector.extract_strided_slice %15 {offsets = [53, 0], sizes = [1, 128], strides = [1, 1]} : vector<125x128xf32> to vector<1x128xf32>
    %299 = vector.broadcast %298 : vector<1x128xf32> to vector<32x128xf32>
    %300 = arith.mulf %297, %299 : vector<32x128xf32>
    %301 = arith.addf %296, %300 : vector<32x128xf32>
    %c96_i32_96 = arith.constant 96 : i32
    %302 = tpu.dynamic_rotate %282 by %c96_i32_96 dim 1 : vector<32x128xf32>, i32 -> vector<32x128xf32>
    %303 = vector.extract_strided_slice %15 {offsets = [54, 0], sizes = [1, 128], strides = [1, 1]} : vector<125x128xf32> to vector<1x128xf32>
    %304 = vector.broadcast %303 : vector<1x128xf32> to vector<32x128xf32>
    %305 = arith.mulf %302, %304 : vector<32x128xf32>
    %306 = arith.addf %301, %305 : vector<32x128xf32>
    %c2_97 = arith.constant 2 : index
    %c1_98 = arith.constant 1 : index
    %c0_99 = arith.constant 0 : index
    %307 = vector.load %arg8[%c2_97, %c1_98, %c0_99] : memref<8x12x128xf32, #tpu.memory_space<vmem>>, vector<4x8x128xf32>
    %308 = vector.shape_cast %307 : vector<4x8x128xf32> to vector<32x128xf32>
    %c32_i32_100 = arith.constant 32 : i32
    %309 = tpu.dynamic_rotate %308 by %c32_i32_100 dim 1 : vector<32x128xf32>, i32 -> vector<32x128xf32>
    %310 = vector.extract_strided_slice %15 {offsets = [55, 0], sizes = [1, 128], strides = [1, 1]} : vector<125x128xf32> to vector<1x128xf32>
    %311 = vector.broadcast %310 : vector<1x128xf32> to vector<32x128xf32>
    %312 = arith.mulf %309, %311 : vector<32x128xf32>
    %313 = arith.addf %306, %312 : vector<32x128xf32>
    %c16_i32_101 = arith.constant 16 : i32
    %314 = tpu.dynamic_rotate %308 by %c16_i32_101 dim 1 : vector<32x128xf32>, i32 -> vector<32x128xf32>
    %315 = vector.extract_strided_slice %15 {offsets = [56, 0], sizes = [1, 128], strides = [1, 1]} : vector<125x128xf32> to vector<1x128xf32>
    %316 = vector.broadcast %315 : vector<1x128xf32> to vector<32x128xf32>
    %317 = arith.mulf %314, %316 : vector<32x128xf32>
    %318 = arith.addf %313, %317 : vector<32x128xf32>
    %319 = vector.extract_strided_slice %15 {offsets = [57, 0], sizes = [1, 128], strides = [1, 1]} : vector<125x128xf32> to vector<1x128xf32>
    %320 = vector.broadcast %319 : vector<1x128xf32> to vector<32x128xf32>
    %321 = arith.mulf %308, %320 : vector<32x128xf32>
    %322 = arith.addf %318, %321 : vector<32x128xf32>
    %c112_i32_102 = arith.constant 112 : i32
    %323 = tpu.dynamic_rotate %308 by %c112_i32_102 dim 1 : vector<32x128xf32>, i32 -> vector<32x128xf32>
    %324 = vector.extract_strided_slice %15 {offsets = [58, 0], sizes = [1, 128], strides = [1, 1]} : vector<125x128xf32> to vector<1x128xf32>
    %325 = vector.broadcast %324 : vector<1x128xf32> to vector<32x128xf32>
    %326 = arith.mulf %323, %325 : vector<32x128xf32>
    %327 = arith.addf %322, %326 : vector<32x128xf32>
    %c96_i32_103 = arith.constant 96 : i32
    %328 = tpu.dynamic_rotate %308 by %c96_i32_103 dim 1 : vector<32x128xf32>, i32 -> vector<32x128xf32>
    %329 = vector.extract_strided_slice %15 {offsets = [59, 0], sizes = [1, 128], strides = [1, 1]} : vector<125x128xf32> to vector<1x128xf32>
    %330 = vector.broadcast %329 : vector<1x128xf32> to vector<32x128xf32>
    %331 = arith.mulf %328, %330 : vector<32x128xf32>
    %332 = arith.addf %327, %331 : vector<32x128xf32>
    %c2_104 = arith.constant 2 : index
    %c2_105 = arith.constant 2 : index
    %c0_106 = arith.constant 0 : index
    %333 = vector.load %arg8[%c2_104, %c2_105, %c0_106] : memref<8x12x128xf32, #tpu.memory_space<vmem>>, vector<4x8x128xf32>
    %334 = vector.shape_cast %333 : vector<4x8x128xf32> to vector<32x128xf32>
    %c32_i32_107 = arith.constant 32 : i32
    %335 = tpu.dynamic_rotate %334 by %c32_i32_107 dim 1 : vector<32x128xf32>, i32 -> vector<32x128xf32>
    %336 = vector.extract_strided_slice %15 {offsets = [60, 0], sizes = [1, 128], strides = [1, 1]} : vector<125x128xf32> to vector<1x128xf32>
    %337 = vector.broadcast %336 : vector<1x128xf32> to vector<32x128xf32>
    %338 = arith.mulf %335, %337 : vector<32x128xf32>
    %339 = arith.addf %332, %338 : vector<32x128xf32>
    %c16_i32_108 = arith.constant 16 : i32
    %340 = tpu.dynamic_rotate %334 by %c16_i32_108 dim 1 : vector<32x128xf32>, i32 -> vector<32x128xf32>
    %341 = vector.extract_strided_slice %15 {offsets = [61, 0], sizes = [1, 128], strides = [1, 1]} : vector<125x128xf32> to vector<1x128xf32>
    %342 = vector.broadcast %341 : vector<1x128xf32> to vector<32x128xf32>
    %343 = arith.mulf %340, %342 : vector<32x128xf32>
    %344 = arith.addf %339, %343 : vector<32x128xf32>
    %345 = vector.extract_strided_slice %15 {offsets = [62, 0], sizes = [1, 128], strides = [1, 1]} : vector<125x128xf32> to vector<1x128xf32>
    %346 = vector.broadcast %345 : vector<1x128xf32> to vector<32x128xf32>
    %347 = arith.mulf %334, %346 : vector<32x128xf32>
    %348 = arith.addf %344, %347 : vector<32x128xf32>
    %c112_i32_109 = arith.constant 112 : i32
    %349 = tpu.dynamic_rotate %334 by %c112_i32_109 dim 1 : vector<32x128xf32>, i32 -> vector<32x128xf32>
    %350 = vector.extract_strided_slice %15 {offsets = [63, 0], sizes = [1, 128], strides = [1, 1]} : vector<125x128xf32> to vector<1x128xf32>
    %351 = vector.broadcast %350 : vector<1x128xf32> to vector<32x128xf32>
    %352 = arith.mulf %349, %351 : vector<32x128xf32>
    %353 = arith.addf %348, %352 : vector<32x128xf32>
    %c96_i32_110 = arith.constant 96 : i32
    %354 = tpu.dynamic_rotate %334 by %c96_i32_110 dim 1 : vector<32x128xf32>, i32 -> vector<32x128xf32>
    %355 = vector.extract_strided_slice %15 {offsets = [64, 0], sizes = [1, 128], strides = [1, 1]} : vector<125x128xf32> to vector<1x128xf32>
    %356 = vector.broadcast %355 : vector<1x128xf32> to vector<32x128xf32>
    %357 = arith.mulf %354, %356 : vector<32x128xf32>
    %358 = arith.addf %353, %357 : vector<32x128xf32>
    %c2_111 = arith.constant 2 : index
    %c3_112 = arith.constant 3 : index
    %c0_113 = arith.constant 0 : index
    %359 = vector.load %arg8[%c2_111, %c3_112, %c0_113] : memref<8x12x128xf32, #tpu.memory_space<vmem>>, vector<4x8x128xf32>
    %360 = vector.shape_cast %359 : vector<4x8x128xf32> to vector<32x128xf32>
    %c32_i32_114 = arith.constant 32 : i32
    %361 = tpu.dynamic_rotate %360 by %c32_i32_114 dim 1 : vector<32x128xf32>, i32 -> vector<32x128xf32>
    %362 = vector.extract_strided_slice %15 {offsets = [65, 0], sizes = [1, 128], strides = [1, 1]} : vector<125x128xf32> to vector<1x128xf32>
    %363 = vector.broadcast %362 : vector<1x128xf32> to vector<32x128xf32>
    %364 = arith.mulf %361, %363 : vector<32x128xf32>
    %365 = arith.addf %358, %364 : vector<32x128xf32>
    %c16_i32_115 = arith.constant 16 : i32
    %366 = tpu.dynamic_rotate %360 by %c16_i32_115 dim 1 : vector<32x128xf32>, i32 -> vector<32x128xf32>
    %367 = vector.extract_strided_slice %15 {offsets = [66, 0], sizes = [1, 128], strides = [1, 1]} : vector<125x128xf32> to vector<1x128xf32>
    %368 = vector.broadcast %367 : vector<1x128xf32> to vector<32x128xf32>
    %369 = arith.mulf %366, %368 : vector<32x128xf32>
    %370 = arith.addf %365, %369 : vector<32x128xf32>
    %371 = vector.extract_strided_slice %15 {offsets = [67, 0], sizes = [1, 128], strides = [1, 1]} : vector<125x128xf32> to vector<1x128xf32>
    %372 = vector.broadcast %371 : vector<1x128xf32> to vector<32x128xf32>
    %373 = arith.mulf %360, %372 : vector<32x128xf32>
    %374 = arith.addf %370, %373 : vector<32x128xf32>
    %c112_i32_116 = arith.constant 112 : i32
    %375 = tpu.dynamic_rotate %360 by %c112_i32_116 dim 1 : vector<32x128xf32>, i32 -> vector<32x128xf32>
    %376 = vector.extract_strided_slice %15 {offsets = [68, 0], sizes = [1, 128], strides = [1, 1]} : vector<125x128xf32> to vector<1x128xf32>
    %377 = vector.broadcast %376 : vector<1x128xf32> to vector<32x128xf32>
    %378 = arith.mulf %375, %377 : vector<32x128xf32>
    %379 = arith.addf %374, %378 : vector<32x128xf32>
    %c96_i32_117 = arith.constant 96 : i32
    %380 = tpu.dynamic_rotate %360 by %c96_i32_117 dim 1 : vector<32x128xf32>, i32 -> vector<32x128xf32>
    %381 = vector.extract_strided_slice %15 {offsets = [69, 0], sizes = [1, 128], strides = [1, 1]} : vector<125x128xf32> to vector<1x128xf32>
    %382 = vector.broadcast %381 : vector<1x128xf32> to vector<32x128xf32>
    %383 = arith.mulf %380, %382 : vector<32x128xf32>
    %384 = arith.addf %379, %383 : vector<32x128xf32>
    %c2_118 = arith.constant 2 : index
    %c4_119 = arith.constant 4 : index
    %c0_120 = arith.constant 0 : index
    %385 = vector.load %arg8[%c2_118, %c4_119, %c0_120] : memref<8x12x128xf32, #tpu.memory_space<vmem>>, vector<4x8x128xf32>
    %386 = vector.shape_cast %385 : vector<4x8x128xf32> to vector<32x128xf32>
    %c32_i32_121 = arith.constant 32 : i32
    %387 = tpu.dynamic_rotate %386 by %c32_i32_121 dim 1 : vector<32x128xf32>, i32 -> vector<32x128xf32>
    %388 = vector.extract_strided_slice %15 {offsets = [70, 0], sizes = [1, 128], strides = [1, 1]} : vector<125x128xf32> to vector<1x128xf32>
    %389 = vector.broadcast %388 : vector<1x128xf32> to vector<32x128xf32>
    %390 = arith.mulf %387, %389 : vector<32x128xf32>
    %391 = arith.addf %384, %390 : vector<32x128xf32>
    %c16_i32_122 = arith.constant 16 : i32
    %392 = tpu.dynamic_rotate %386 by %c16_i32_122 dim 1 : vector<32x128xf32>, i32 -> vector<32x128xf32>
    %393 = vector.extract_strided_slice %15 {offsets = [71, 0], sizes = [1, 128], strides = [1, 1]} : vector<125x128xf32> to vector<1x128xf32>
    %394 = vector.broadcast %393 : vector<1x128xf32> to vector<32x128xf32>
    %395 = arith.mulf %392, %394 : vector<32x128xf32>
    %396 = arith.addf %391, %395 : vector<32x128xf32>
    %397 = vector.extract_strided_slice %15 {offsets = [72, 0], sizes = [1, 128], strides = [1, 1]} : vector<125x128xf32> to vector<1x128xf32>
    %398 = vector.broadcast %397 : vector<1x128xf32> to vector<32x128xf32>
    %399 = arith.mulf %386, %398 : vector<32x128xf32>
    %400 = arith.addf %396, %399 : vector<32x128xf32>
    %c112_i32_123 = arith.constant 112 : i32
    %401 = tpu.dynamic_rotate %386 by %c112_i32_123 dim 1 : vector<32x128xf32>, i32 -> vector<32x128xf32>
    %402 = vector.extract_strided_slice %15 {offsets = [73, 0], sizes = [1, 128], strides = [1, 1]} : vector<125x128xf32> to vector<1x128xf32>
    %403 = vector.broadcast %402 : vector<1x128xf32> to vector<32x128xf32>
    %404 = arith.mulf %401, %403 : vector<32x128xf32>
    %405 = arith.addf %400, %404 : vector<32x128xf32>
    %c96_i32_124 = arith.constant 96 : i32
    %406 = tpu.dynamic_rotate %386 by %c96_i32_124 dim 1 : vector<32x128xf32>, i32 -> vector<32x128xf32>
    %407 = vector.extract_strided_slice %15 {offsets = [74, 0], sizes = [1, 128], strides = [1, 1]} : vector<125x128xf32> to vector<1x128xf32>
    %408 = vector.broadcast %407 : vector<1x128xf32> to vector<32x128xf32>
    %409 = arith.mulf %406, %408 : vector<32x128xf32>
    %410 = arith.addf %405, %409 : vector<32x128xf32>
    %c3_125 = arith.constant 3 : index
    %c0_126 = arith.constant 0 : index
    %c0_127 = arith.constant 0 : index
    %411 = vector.load %arg8[%c3_125, %c0_126, %c0_127] : memref<8x12x128xf32, #tpu.memory_space<vmem>>, vector<4x8x128xf32>
    %412 = vector.shape_cast %411 : vector<4x8x128xf32> to vector<32x128xf32>
    %c32_i32_128 = arith.constant 32 : i32
    %413 = tpu.dynamic_rotate %412 by %c32_i32_128 dim 1 : vector<32x128xf32>, i32 -> vector<32x128xf32>
    %414 = vector.extract_strided_slice %15 {offsets = [75, 0], sizes = [1, 128], strides = [1, 1]} : vector<125x128xf32> to vector<1x128xf32>
    %415 = vector.broadcast %414 : vector<1x128xf32> to vector<32x128xf32>
    %416 = arith.mulf %413, %415 : vector<32x128xf32>
    %417 = arith.addf %19, %416 : vector<32x128xf32>
    %c16_i32_129 = arith.constant 16 : i32
    %418 = tpu.dynamic_rotate %412 by %c16_i32_129 dim 1 : vector<32x128xf32>, i32 -> vector<32x128xf32>
    %419 = vector.extract_strided_slice %15 {offsets = [76, 0], sizes = [1, 128], strides = [1, 1]} : vector<125x128xf32> to vector<1x128xf32>
    %420 = vector.broadcast %419 : vector<1x128xf32> to vector<32x128xf32>
    %421 = arith.mulf %418, %420 : vector<32x128xf32>
    %422 = arith.addf %417, %421 : vector<32x128xf32>
    %423 = vector.extract_strided_slice %15 {offsets = [77, 0], sizes = [1, 128], strides = [1, 1]} : vector<125x128xf32> to vector<1x128xf32>
    %424 = vector.broadcast %423 : vector<1x128xf32> to vector<32x128xf32>
    %425 = arith.mulf %412, %424 : vector<32x128xf32>
    %426 = arith.addf %422, %425 : vector<32x128xf32>
    %c112_i32_130 = arith.constant 112 : i32
    %427 = tpu.dynamic_rotate %412 by %c112_i32_130 dim 1 : vector<32x128xf32>, i32 -> vector<32x128xf32>
    %428 = vector.extract_strided_slice %15 {offsets = [78, 0], sizes = [1, 128], strides = [1, 1]} : vector<125x128xf32> to vector<1x128xf32>
    %429 = vector.broadcast %428 : vector<1x128xf32> to vector<32x128xf32>
    %430 = arith.mulf %427, %429 : vector<32x128xf32>
    %431 = arith.addf %426, %430 : vector<32x128xf32>
    %c96_i32_131 = arith.constant 96 : i32
    %432 = tpu.dynamic_rotate %412 by %c96_i32_131 dim 1 : vector<32x128xf32>, i32 -> vector<32x128xf32>
    %433 = vector.extract_strided_slice %15 {offsets = [79, 0], sizes = [1, 128], strides = [1, 1]} : vector<125x128xf32> to vector<1x128xf32>
    %434 = vector.broadcast %433 : vector<1x128xf32> to vector<32x128xf32>
    %435 = arith.mulf %432, %434 : vector<32x128xf32>
    %436 = arith.addf %431, %435 : vector<32x128xf32>
    %c3_132 = arith.constant 3 : index
    %c1_133 = arith.constant 1 : index
    %c0_134 = arith.constant 0 : index
    %437 = vector.load %arg8[%c3_132, %c1_133, %c0_134] : memref<8x12x128xf32, #tpu.memory_space<vmem>>, vector<4x8x128xf32>
    %438 = vector.shape_cast %437 : vector<4x8x128xf32> to vector<32x128xf32>
    %c32_i32_135 = arith.constant 32 : i32
    %439 = tpu.dynamic_rotate %438 by %c32_i32_135 dim 1 : vector<32x128xf32>, i32 -> vector<32x128xf32>
    %440 = vector.extract_strided_slice %15 {offsets = [80, 0], sizes = [1, 128], strides = [1, 1]} : vector<125x128xf32> to vector<1x128xf32>
    %441 = vector.broadcast %440 : vector<1x128xf32> to vector<32x128xf32>
    %442 = arith.mulf %439, %441 : vector<32x128xf32>
    %443 = arith.addf %436, %442 : vector<32x128xf32>
    %c16_i32_136 = arith.constant 16 : i32
    %444 = tpu.dynamic_rotate %438 by %c16_i32_136 dim 1 : vector<32x128xf32>, i32 -> vector<32x128xf32>
    %445 = vector.extract_strided_slice %15 {offsets = [81, 0], sizes = [1, 128], strides = [1, 1]} : vector<125x128xf32> to vector<1x128xf32>
    %446 = vector.broadcast %445 : vector<1x128xf32> to vector<32x128xf32>
    %447 = arith.mulf %444, %446 : vector<32x128xf32>
    %448 = arith.addf %443, %447 : vector<32x128xf32>
    %449 = vector.extract_strided_slice %15 {offsets = [82, 0], sizes = [1, 128], strides = [1, 1]} : vector<125x128xf32> to vector<1x128xf32>
    %450 = vector.broadcast %449 : vector<1x128xf32> to vector<32x128xf32>
    %451 = arith.mulf %438, %450 : vector<32x128xf32>
    %452 = arith.addf %448, %451 : vector<32x128xf32>
    %c112_i32_137 = arith.constant 112 : i32
    %453 = tpu.dynamic_rotate %438 by %c112_i32_137 dim 1 : vector<32x128xf32>, i32 -> vector<32x128xf32>
    %454 = vector.extract_strided_slice %15 {offsets = [83, 0], sizes = [1, 128], strides = [1, 1]} : vector<125x128xf32> to vector<1x128xf32>
    %455 = vector.broadcast %454 : vector<1x128xf32> to vector<32x128xf32>
    %456 = arith.mulf %453, %455 : vector<32x128xf32>
    %457 = arith.addf %452, %456 : vector<32x128xf32>
    %c96_i32_138 = arith.constant 96 : i32
    %458 = tpu.dynamic_rotate %438 by %c96_i32_138 dim 1 : vector<32x128xf32>, i32 -> vector<32x128xf32>
    %459 = vector.extract_strided_slice %15 {offsets = [84, 0], sizes = [1, 128], strides = [1, 1]} : vector<125x128xf32> to vector<1x128xf32>
    %460 = vector.broadcast %459 : vector<1x128xf32> to vector<32x128xf32>
    %461 = arith.mulf %458, %460 : vector<32x128xf32>
    %462 = arith.addf %457, %461 : vector<32x128xf32>
    %c3_139 = arith.constant 3 : index
    %c2_140 = arith.constant 2 : index
    %c0_141 = arith.constant 0 : index
    %463 = vector.load %arg8[%c3_139, %c2_140, %c0_141] : memref<8x12x128xf32, #tpu.memory_space<vmem>>, vector<4x8x128xf32>
    %464 = vector.shape_cast %463 : vector<4x8x128xf32> to vector<32x128xf32>
    %c32_i32_142 = arith.constant 32 : i32
    %465 = tpu.dynamic_rotate %464 by %c32_i32_142 dim 1 : vector<32x128xf32>, i32 -> vector<32x128xf32>
    %466 = vector.extract_strided_slice %15 {offsets = [85, 0], sizes = [1, 128], strides = [1, 1]} : vector<125x128xf32> to vector<1x128xf32>
    %467 = vector.broadcast %466 : vector<1x128xf32> to vector<32x128xf32>
    %468 = arith.mulf %465, %467 : vector<32x128xf32>
    %469 = arith.addf %462, %468 : vector<32x128xf32>
    %c16_i32_143 = arith.constant 16 : i32
    %470 = tpu.dynamic_rotate %464 by %c16_i32_143 dim 1 : vector<32x128xf32>, i32 -> vector<32x128xf32>
    %471 = vector.extract_strided_slice %15 {offsets = [86, 0], sizes = [1, 128], strides = [1, 1]} : vector<125x128xf32> to vector<1x128xf32>
    %472 = vector.broadcast %471 : vector<1x128xf32> to vector<32x128xf32>
    %473 = arith.mulf %470, %472 : vector<32x128xf32>
    %474 = arith.addf %469, %473 : vector<32x128xf32>
    %475 = vector.extract_strided_slice %15 {offsets = [87, 0], sizes = [1, 128], strides = [1, 1]} : vector<125x128xf32> to vector<1x128xf32>
    %476 = vector.broadcast %475 : vector<1x128xf32> to vector<32x128xf32>
    %477 = arith.mulf %464, %476 : vector<32x128xf32>
    %478 = arith.addf %474, %477 : vector<32x128xf32>
    %c112_i32_144 = arith.constant 112 : i32
    %479 = tpu.dynamic_rotate %464 by %c112_i32_144 dim 1 : vector<32x128xf32>, i32 -> vector<32x128xf32>
    %480 = vector.extract_strided_slice %15 {offsets = [88, 0], sizes = [1, 128], strides = [1, 1]} : vector<125x128xf32> to vector<1x128xf32>
    %481 = vector.broadcast %480 : vector<1x128xf32> to vector<32x128xf32>
    %482 = arith.mulf %479, %481 : vector<32x128xf32>
    %483 = arith.addf %478, %482 : vector<32x128xf32>
    %c96_i32_145 = arith.constant 96 : i32
    %484 = tpu.dynamic_rotate %464 by %c96_i32_145 dim 1 : vector<32x128xf32>, i32 -> vector<32x128xf32>
    %485 = vector.extract_strided_slice %15 {offsets = [89, 0], sizes = [1, 128], strides = [1, 1]} : vector<125x128xf32> to vector<1x128xf32>
    %486 = vector.broadcast %485 : vector<1x128xf32> to vector<32x128xf32>
    %487 = arith.mulf %484, %486 : vector<32x128xf32>
    %488 = arith.addf %483, %487 : vector<32x128xf32>
    %c3_146 = arith.constant 3 : index
    %c3_147 = arith.constant 3 : index
    %c0_148 = arith.constant 0 : index
    %489 = vector.load %arg8[%c3_146, %c3_147, %c0_148] : memref<8x12x128xf32, #tpu.memory_space<vmem>>, vector<4x8x128xf32>
    %490 = vector.shape_cast %489 : vector<4x8x128xf32> to vector<32x128xf32>
    %c32_i32_149 = arith.constant 32 : i32
    %491 = tpu.dynamic_rotate %490 by %c32_i32_149 dim 1 : vector<32x128xf32>, i32 -> vector<32x128xf32>
    %492 = vector.extract_strided_slice %15 {offsets = [90, 0], sizes = [1, 128], strides = [1, 1]} : vector<125x128xf32> to vector<1x128xf32>
    %493 = vector.broadcast %492 : vector<1x128xf32> to vector<32x128xf32>
    %494 = arith.mulf %491, %493 : vector<32x128xf32>
    %495 = arith.addf %488, %494 : vector<32x128xf32>
    %c16_i32_150 = arith.constant 16 : i32
    %496 = tpu.dynamic_rotate %490 by %c16_i32_150 dim 1 : vector<32x128xf32>, i32 -> vector<32x128xf32>
    %497 = vector.extract_strided_slice %15 {offsets = [91, 0], sizes = [1, 128], strides = [1, 1]} : vector<125x128xf32> to vector<1x128xf32>
    %498 = vector.broadcast %497 : vector<1x128xf32> to vector<32x128xf32>
    %499 = arith.mulf %496, %498 : vector<32x128xf32>
    %500 = arith.addf %495, %499 : vector<32x128xf32>
    %501 = vector.extract_strided_slice %15 {offsets = [92, 0], sizes = [1, 128], strides = [1, 1]} : vector<125x128xf32> to vector<1x128xf32>
    %502 = vector.broadcast %501 : vector<1x128xf32> to vector<32x128xf32>
    %503 = arith.mulf %490, %502 : vector<32x128xf32>
    %504 = arith.addf %500, %503 : vector<32x128xf32>
    %c112_i32_151 = arith.constant 112 : i32
    %505 = tpu.dynamic_rotate %490 by %c112_i32_151 dim 1 : vector<32x128xf32>, i32 -> vector<32x128xf32>
    %506 = vector.extract_strided_slice %15 {offsets = [93, 0], sizes = [1, 128], strides = [1, 1]} : vector<125x128xf32> to vector<1x128xf32>
    %507 = vector.broadcast %506 : vector<1x128xf32> to vector<32x128xf32>
    %508 = arith.mulf %505, %507 : vector<32x128xf32>
    %509 = arith.addf %504, %508 : vector<32x128xf32>
    %c96_i32_152 = arith.constant 96 : i32
    %510 = tpu.dynamic_rotate %490 by %c96_i32_152 dim 1 : vector<32x128xf32>, i32 -> vector<32x128xf32>
    %511 = vector.extract_strided_slice %15 {offsets = [94, 0], sizes = [1, 128], strides = [1, 1]} : vector<125x128xf32> to vector<1x128xf32>
    %512 = vector.broadcast %511 : vector<1x128xf32> to vector<32x128xf32>
    %513 = arith.mulf %510, %512 : vector<32x128xf32>
    %514 = arith.addf %509, %513 : vector<32x128xf32>
    %c3_153 = arith.constant 3 : index
    %c4_154 = arith.constant 4 : index
    %c0_155 = arith.constant 0 : index
    %515 = vector.load %arg8[%c3_153, %c4_154, %c0_155] : memref<8x12x128xf32, #tpu.memory_space<vmem>>, vector<4x8x128xf32>
    %516 = vector.shape_cast %515 : vector<4x8x128xf32> to vector<32x128xf32>
    %c32_i32_156 = arith.constant 32 : i32
    %517 = tpu.dynamic_rotate %516 by %c32_i32_156 dim 1 : vector<32x128xf32>, i32 -> vector<32x128xf32>
    %518 = vector.extract_strided_slice %15 {offsets = [95, 0], sizes = [1, 128], strides = [1, 1]} : vector<125x128xf32> to vector<1x128xf32>
    %519 = vector.broadcast %518 : vector<1x128xf32> to vector<32x128xf32>
    %520 = arith.mulf %517, %519 : vector<32x128xf32>
    %521 = arith.addf %514, %520 : vector<32x128xf32>
    %c16_i32_157 = arith.constant 16 : i32
    %522 = tpu.dynamic_rotate %516 by %c16_i32_157 dim 1 : vector<32x128xf32>, i32 -> vector<32x128xf32>
    %523 = vector.extract_strided_slice %15 {offsets = [96, 0], sizes = [1, 128], strides = [1, 1]} : vector<125x128xf32> to vector<1x128xf32>
    %524 = vector.broadcast %523 : vector<1x128xf32> to vector<32x128xf32>
    %525 = arith.mulf %522, %524 : vector<32x128xf32>
    %526 = arith.addf %521, %525 : vector<32x128xf32>
    %527 = vector.extract_strided_slice %15 {offsets = [97, 0], sizes = [1, 128], strides = [1, 1]} : vector<125x128xf32> to vector<1x128xf32>
    %528 = vector.broadcast %527 : vector<1x128xf32> to vector<32x128xf32>
    %529 = arith.mulf %516, %528 : vector<32x128xf32>
    %530 = arith.addf %526, %529 : vector<32x128xf32>
    %c112_i32_158 = arith.constant 112 : i32
    %531 = tpu.dynamic_rotate %516 by %c112_i32_158 dim 1 : vector<32x128xf32>, i32 -> vector<32x128xf32>
    %532 = vector.extract_strided_slice %15 {offsets = [98, 0], sizes = [1, 128], strides = [1, 1]} : vector<125x128xf32> to vector<1x128xf32>
    %533 = vector.broadcast %532 : vector<1x128xf32> to vector<32x128xf32>
    %534 = arith.mulf %531, %533 : vector<32x128xf32>
    %535 = arith.addf %530, %534 : vector<32x128xf32>
    %c96_i32_159 = arith.constant 96 : i32
    %536 = tpu.dynamic_rotate %516 by %c96_i32_159 dim 1 : vector<32x128xf32>, i32 -> vector<32x128xf32>
    %537 = vector.extract_strided_slice %15 {offsets = [99, 0], sizes = [1, 128], strides = [1, 1]} : vector<125x128xf32> to vector<1x128xf32>
    %538 = vector.broadcast %537 : vector<1x128xf32> to vector<32x128xf32>
    %539 = arith.mulf %536, %538 : vector<32x128xf32>
    %540 = arith.addf %535, %539 : vector<32x128xf32>
    %c4_160 = arith.constant 4 : index
    %c0_161 = arith.constant 0 : index
    %c0_162 = arith.constant 0 : index
    %541 = vector.load %arg8[%c4_160, %c0_161, %c0_162] : memref<8x12x128xf32, #tpu.memory_space<vmem>>, vector<4x8x128xf32>
    %542 = vector.shape_cast %541 : vector<4x8x128xf32> to vector<32x128xf32>
    %c32_i32_163 = arith.constant 32 : i32
    %543 = tpu.dynamic_rotate %542 by %c32_i32_163 dim 1 : vector<32x128xf32>, i32 -> vector<32x128xf32>
    %544 = vector.extract_strided_slice %15 {offsets = [100, 0], sizes = [1, 128], strides = [1, 1]} : vector<125x128xf32> to vector<1x128xf32>
    %545 = vector.broadcast %544 : vector<1x128xf32> to vector<32x128xf32>
    %546 = arith.mulf %543, %545 : vector<32x128xf32>
    %547 = arith.addf %20, %546 : vector<32x128xf32>
    %c16_i32_164 = arith.constant 16 : i32
    %548 = tpu.dynamic_rotate %542 by %c16_i32_164 dim 1 : vector<32x128xf32>, i32 -> vector<32x128xf32>
    %549 = vector.extract_strided_slice %15 {offsets = [101, 0], sizes = [1, 128], strides = [1, 1]} : vector<125x128xf32> to vector<1x128xf32>
    %550 = vector.broadcast %549 : vector<1x128xf32> to vector<32x128xf32>
    %551 = arith.mulf %548, %550 : vector<32x128xf32>
    %552 = arith.addf %547, %551 : vector<32x128xf32>
    %553 = vector.extract_strided_slice %15 {offsets = [102, 0], sizes = [1, 128], strides = [1, 1]} : vector<125x128xf32> to vector<1x128xf32>
    %554 = vector.broadcast %553 : vector<1x128xf32> to vector<32x128xf32>
    %555 = arith.mulf %542, %554 : vector<32x128xf32>
    %556 = arith.addf %552, %555 : vector<32x128xf32>
    %c112_i32_165 = arith.constant 112 : i32
    %557 = tpu.dynamic_rotate %542 by %c112_i32_165 dim 1 : vector<32x128xf32>, i32 -> vector<32x128xf32>
    %558 = vector.extract_strided_slice %15 {offsets = [103, 0], sizes = [1, 128], strides = [1, 1]} : vector<125x128xf32> to vector<1x128xf32>
    %559 = vector.broadcast %558 : vector<1x128xf32> to vector<32x128xf32>
    %560 = arith.mulf %557, %559 : vector<32x128xf32>
    %561 = arith.addf %556, %560 : vector<32x128xf32>
    %c96_i32_166 = arith.constant 96 : i32
    %562 = tpu.dynamic_rotate %542 by %c96_i32_166 dim 1 : vector<32x128xf32>, i32 -> vector<32x128xf32>
    %563 = vector.extract_strided_slice %15 {offsets = [104, 0], sizes = [1, 128], strides = [1, 1]} : vector<125x128xf32> to vector<1x128xf32>
    %564 = vector.broadcast %563 : vector<1x128xf32> to vector<32x128xf32>
    %565 = arith.mulf %562, %564 : vector<32x128xf32>
    %566 = arith.addf %561, %565 : vector<32x128xf32>
    %c4_167 = arith.constant 4 : index
    %c1_168 = arith.constant 1 : index
    %c0_169 = arith.constant 0 : index
    %567 = vector.load %arg8[%c4_167, %c1_168, %c0_169] : memref<8x12x128xf32, #tpu.memory_space<vmem>>, vector<4x8x128xf32>
    %568 = vector.shape_cast %567 : vector<4x8x128xf32> to vector<32x128xf32>
    %c32_i32_170 = arith.constant 32 : i32
    %569 = tpu.dynamic_rotate %568 by %c32_i32_170 dim 1 : vector<32x128xf32>, i32 -> vector<32x128xf32>
    %570 = vector.extract_strided_slice %15 {offsets = [105, 0], sizes = [1, 128], strides = [1, 1]} : vector<125x128xf32> to vector<1x128xf32>
    %571 = vector.broadcast %570 : vector<1x128xf32> to vector<32x128xf32>
    %572 = arith.mulf %569, %571 : vector<32x128xf32>
    %573 = arith.addf %566, %572 : vector<32x128xf32>
    %c16_i32_171 = arith.constant 16 : i32
    %574 = tpu.dynamic_rotate %568 by %c16_i32_171 dim 1 : vector<32x128xf32>, i32 -> vector<32x128xf32>
    %575 = vector.extract_strided_slice %15 {offsets = [106, 0], sizes = [1, 128], strides = [1, 1]} : vector<125x128xf32> to vector<1x128xf32>
    %576 = vector.broadcast %575 : vector<1x128xf32> to vector<32x128xf32>
    %577 = arith.mulf %574, %576 : vector<32x128xf32>
    %578 = arith.addf %573, %577 : vector<32x128xf32>
    %579 = vector.extract_strided_slice %15 {offsets = [107, 0], sizes = [1, 128], strides = [1, 1]} : vector<125x128xf32> to vector<1x128xf32>
    %580 = vector.broadcast %579 : vector<1x128xf32> to vector<32x128xf32>
    %581 = arith.mulf %568, %580 : vector<32x128xf32>
    %582 = arith.addf %578, %581 : vector<32x128xf32>
    %c112_i32_172 = arith.constant 112 : i32
    %583 = tpu.dynamic_rotate %568 by %c112_i32_172 dim 1 : vector<32x128xf32>, i32 -> vector<32x128xf32>
    %584 = vector.extract_strided_slice %15 {offsets = [108, 0], sizes = [1, 128], strides = [1, 1]} : vector<125x128xf32> to vector<1x128xf32>
    %585 = vector.broadcast %584 : vector<1x128xf32> to vector<32x128xf32>
    %586 = arith.mulf %583, %585 : vector<32x128xf32>
    %587 = arith.addf %582, %586 : vector<32x128xf32>
    %c96_i32_173 = arith.constant 96 : i32
    %588 = tpu.dynamic_rotate %568 by %c96_i32_173 dim 1 : vector<32x128xf32>, i32 -> vector<32x128xf32>
    %589 = vector.extract_strided_slice %15 {offsets = [109, 0], sizes = [1, 128], strides = [1, 1]} : vector<125x128xf32> to vector<1x128xf32>
    %590 = vector.broadcast %589 : vector<1x128xf32> to vector<32x128xf32>
    %591 = arith.mulf %588, %590 : vector<32x128xf32>
    %592 = arith.addf %587, %591 : vector<32x128xf32>
    %c4_174 = arith.constant 4 : index
    %c2_175 = arith.constant 2 : index
    %c0_176 = arith.constant 0 : index
    %593 = vector.load %arg8[%c4_174, %c2_175, %c0_176] : memref<8x12x128xf32, #tpu.memory_space<vmem>>, vector<4x8x128xf32>
    %594 = vector.shape_cast %593 : vector<4x8x128xf32> to vector<32x128xf32>
    %c32_i32_177 = arith.constant 32 : i32
    %595 = tpu.dynamic_rotate %594 by %c32_i32_177 dim 1 : vector<32x128xf32>, i32 -> vector<32x128xf32>
    %596 = vector.extract_strided_slice %15 {offsets = [110, 0], sizes = [1, 128], strides = [1, 1]} : vector<125x128xf32> to vector<1x128xf32>
    %597 = vector.broadcast %596 : vector<1x128xf32> to vector<32x128xf32>
    %598 = arith.mulf %595, %597 : vector<32x128xf32>
    %599 = arith.addf %592, %598 : vector<32x128xf32>
    %c16_i32_178 = arith.constant 16 : i32
    %600 = tpu.dynamic_rotate %594 by %c16_i32_178 dim 1 : vector<32x128xf32>, i32 -> vector<32x128xf32>
    %601 = vector.extract_strided_slice %15 {offsets = [111, 0], sizes = [1, 128], strides = [1, 1]} : vector<125x128xf32> to vector<1x128xf32>
    %602 = vector.broadcast %601 : vector<1x128xf32> to vector<32x128xf32>
    %603 = arith.mulf %600, %602 : vector<32x128xf32>
    %604 = arith.addf %599, %603 : vector<32x128xf32>
    %605 = vector.extract_strided_slice %15 {offsets = [112, 0], sizes = [1, 128], strides = [1, 1]} : vector<125x128xf32> to vector<1x128xf32>
    %606 = vector.broadcast %605 : vector<1x128xf32> to vector<32x128xf32>
    %607 = arith.mulf %594, %606 : vector<32x128xf32>
    %608 = arith.addf %604, %607 : vector<32x128xf32>
    %c112_i32_179 = arith.constant 112 : i32
    %609 = tpu.dynamic_rotate %594 by %c112_i32_179 dim 1 : vector<32x128xf32>, i32 -> vector<32x128xf32>
    %610 = vector.extract_strided_slice %15 {offsets = [113, 0], sizes = [1, 128], strides = [1, 1]} : vector<125x128xf32> to vector<1x128xf32>
    %611 = vector.broadcast %610 : vector<1x128xf32> to vector<32x128xf32>
    %612 = arith.mulf %609, %611 : vector<32x128xf32>
    %613 = arith.addf %608, %612 : vector<32x128xf32>
    %c96_i32_180 = arith.constant 96 : i32
    %614 = tpu.dynamic_rotate %594 by %c96_i32_180 dim 1 : vector<32x128xf32>, i32 -> vector<32x128xf32>
    %615 = vector.extract_strided_slice %15 {offsets = [114, 0], sizes = [1, 128], strides = [1, 1]} : vector<125x128xf32> to vector<1x128xf32>
    %616 = vector.broadcast %615 : vector<1x128xf32> to vector<32x128xf32>
    %617 = arith.mulf %614, %616 : vector<32x128xf32>
    %618 = arith.addf %613, %617 : vector<32x128xf32>
    %c4_181 = arith.constant 4 : index
    %c3_182 = arith.constant 3 : index
    %c0_183 = arith.constant 0 : index
    %619 = vector.load %arg8[%c4_181, %c3_182, %c0_183] : memref<8x12x128xf32, #tpu.memory_space<vmem>>, vector<4x8x128xf32>
    %620 = vector.shape_cast %619 : vector<4x8x128xf32> to vector<32x128xf32>
    %c32_i32_184 = arith.constant 32 : i32
    %621 = tpu.dynamic_rotate %620 by %c32_i32_184 dim 1 : vector<32x128xf32>, i32 -> vector<32x128xf32>
    %622 = vector.extract_strided_slice %15 {offsets = [115, 0], sizes = [1, 128], strides = [1, 1]} : vector<125x128xf32> to vector<1x128xf32>
    %623 = vector.broadcast %622 : vector<1x128xf32> to vector<32x128xf32>
    %624 = arith.mulf %621, %623 : vector<32x128xf32>
    %625 = arith.addf %618, %624 : vector<32x128xf32>
    %c16_i32_185 = arith.constant 16 : i32
    %626 = tpu.dynamic_rotate %620 by %c16_i32_185 dim 1 : vector<32x128xf32>, i32 -> vector<32x128xf32>
    %627 = vector.extract_strided_slice %15 {offsets = [116, 0], sizes = [1, 128], strides = [1, 1]} : vector<125x128xf32> to vector<1x128xf32>
    %628 = vector.broadcast %627 : vector<1x128xf32> to vector<32x128xf32>
    %629 = arith.mulf %626, %628 : vector<32x128xf32>
    %630 = arith.addf %625, %629 : vector<32x128xf32>
    %631 = vector.extract_strided_slice %15 {offsets = [117, 0], sizes = [1, 128], strides = [1, 1]} : vector<125x128xf32> to vector<1x128xf32>
    %632 = vector.broadcast %631 : vector<1x128xf32> to vector<32x128xf32>
    %633 = arith.mulf %620, %632 : vector<32x128xf32>
    %634 = arith.addf %630, %633 : vector<32x128xf32>
    %c112_i32_186 = arith.constant 112 : i32
    %635 = tpu.dynamic_rotate %620 by %c112_i32_186 dim 1 : vector<32x128xf32>, i32 -> vector<32x128xf32>
    %636 = vector.extract_strided_slice %15 {offsets = [118, 0], sizes = [1, 128], strides = [1, 1]} : vector<125x128xf32> to vector<1x128xf32>
    %637 = vector.broadcast %636 : vector<1x128xf32> to vector<32x128xf32>
    %638 = arith.mulf %635, %637 : vector<32x128xf32>
    %639 = arith.addf %634, %638 : vector<32x128xf32>
    %c96_i32_187 = arith.constant 96 : i32
    %640 = tpu.dynamic_rotate %620 by %c96_i32_187 dim 1 : vector<32x128xf32>, i32 -> vector<32x128xf32>
    %641 = vector.extract_strided_slice %15 {offsets = [119, 0], sizes = [1, 128], strides = [1, 1]} : vector<125x128xf32> to vector<1x128xf32>
    %642 = vector.broadcast %641 : vector<1x128xf32> to vector<32x128xf32>
    %643 = arith.mulf %640, %642 : vector<32x128xf32>
    %644 = arith.addf %639, %643 : vector<32x128xf32>
    %c4_188 = arith.constant 4 : index
    %c4_189 = arith.constant 4 : index
    %c0_190 = arith.constant 0 : index
    %645 = vector.load %arg8[%c4_188, %c4_189, %c0_190] : memref<8x12x128xf32, #tpu.memory_space<vmem>>, vector<4x8x128xf32>
    %646 = vector.shape_cast %645 : vector<4x8x128xf32> to vector<32x128xf32>
    %c32_i32_191 = arith.constant 32 : i32
    %647 = tpu.dynamic_rotate %646 by %c32_i32_191 dim 1 : vector<32x128xf32>, i32 -> vector<32x128xf32>
    %648 = vector.extract_strided_slice %15 {offsets = [120, 0], sizes = [1, 128], strides = [1, 1]} : vector<125x128xf32> to vector<1x128xf32>
    %649 = vector.broadcast %648 : vector<1x128xf32> to vector<32x128xf32>
    %650 = arith.mulf %647, %649 : vector<32x128xf32>
    %651 = arith.addf %644, %650 : vector<32x128xf32>
    %c16_i32_192 = arith.constant 16 : i32
    %652 = tpu.dynamic_rotate %646 by %c16_i32_192 dim 1 : vector<32x128xf32>, i32 -> vector<32x128xf32>
    %653 = vector.extract_strided_slice %15 {offsets = [121, 0], sizes = [1, 128], strides = [1, 1]} : vector<125x128xf32> to vector<1x128xf32>
    %654 = vector.broadcast %653 : vector<1x128xf32> to vector<32x128xf32>
    %655 = arith.mulf %652, %654 : vector<32x128xf32>
    %656 = arith.addf %651, %655 : vector<32x128xf32>
    %657 = vector.extract_strided_slice %15 {offsets = [122, 0], sizes = [1, 128], strides = [1, 1]} : vector<125x128xf32> to vector<1x128xf32>
    %658 = vector.broadcast %657 : vector<1x128xf32> to vector<32x128xf32>
    %659 = arith.mulf %646, %658 : vector<32x128xf32>
    %660 = arith.addf %656, %659 : vector<32x128xf32>
    %c112_i32_193 = arith.constant 112 : i32
    %661 = tpu.dynamic_rotate %646 by %c112_i32_193 dim 1 : vector<32x128xf32>, i32 -> vector<32x128xf32>
    %662 = vector.extract_strided_slice %15 {offsets = [123, 0], sizes = [1, 128], strides = [1, 1]} : vector<125x128xf32> to vector<1x128xf32>
    %663 = vector.broadcast %662 : vector<1x128xf32> to vector<32x128xf32>
    %664 = arith.mulf %661, %663 : vector<32x128xf32>
    %665 = arith.addf %660, %664 : vector<32x128xf32>
    %c96_i32_194 = arith.constant 96 : i32
    %666 = tpu.dynamic_rotate %646 by %c96_i32_194 dim 1 : vector<32x128xf32>, i32 -> vector<32x128xf32>
    %667 = vector.extract_strided_slice %15 {offsets = [124, 0], sizes = [1, 128], strides = [1, 1]} : vector<125x128xf32> to vector<1x128xf32>
    %668 = vector.broadcast %667 : vector<1x128xf32> to vector<32x128xf32>
    %669 = arith.mulf %666, %668 : vector<32x128xf32>
    %670 = arith.addf %665, %669 : vector<32x128xf32>
    %671 = arith.addf %150, %280 : vector<32x128xf32>
    %672 = arith.addf %671, %410 : vector<32x128xf32>
    %673 = arith.addf %672, %540 : vector<32x128xf32>
    %674 = arith.addf %673, %670 : vector<32x128xf32>
    %c0_195 = arith.constant 0 : index
    %c0_196 = arith.constant 0 : index
    %675 = vector.load %arg5[%c0_195, %c0_196] : memref<128x128xf32, #tpu.memory_space<vmem>>, vector<128x128xf32>
    %cst_197 = arith.constant dense<0.000000e+00> : vector<32x128xf32>
    %676 = tpu.matmul %674, %675, %cst_197 {dimension_numbers = #tpu.dot_dimension_numbers<[1], [0], [0], [1], [0, 0, 1, 1], [], []>} : vector<32x128xf32>, vector<128x128xf32>, vector<32x128xf32> -> vector<32x128xf32>
    %c0_198 = arith.constant 0 : index
    %c0_199 = arith.constant 0 : index
    %677 = vector.load %arg6[%c0_198, %c0_199] : memref<1x128xf32, #tpu.memory_space<vmem>>, vector<1x128xf32>
    %678 = vector.broadcast %677 : vector<1x128xf32> to vector<32x128xf32>
    %679 = arith.addf %676, %678 : vector<32x128xf32>
    %c0_200 = arith.constant 0 : index
    %c0_201 = arith.constant 0 : index
    %c0_202 = arith.constant 0 : index
    %680 = vector.load %arg7[%c0_200, %c0_201, %c0_202] : memref<1x32x128xf32, #tpu.memory_space<vmem>>, vector<1x32x128xf32>
    %681 = vector.shape_cast %680 : vector<1x32x128xf32> to vector<32x128xf32>
    %682 = vector.shape_cast %679 : vector<32x128xf32> to vector<1x32x128xf32>
    tpu.vector_store %arg7[%c0_200, %c0_201, %c0_202], %682 {strides = array<i32>} : memref<1x32x128xf32, #tpu.memory_space<vmem>>, vector<1x32x128xf32>,
    return
  }
  func.func @transform_0(%arg0: i32) -> (i32, i32, i32) {
    %c0_i32 = arith.constant 0 : i32
    %c0_i32_0 = arith.constant 0 : i32
    %c0_i32_1 = arith.constant 0 : i32
    return %arg0, %c0_i32, %c0_i32_0 : i32, i32, i32
  }
  func.func @transform_1(%arg0: i32) -> (i32, i32) {
    %c0_i32 = arith.constant 0 : i32
    %c0_i32_0 = arith.constant 0 : i32
    %c0_i32_1 = arith.constant 0 : i32
    return %c0_i32, %c0_i32_0 : i32, i32
  }
  func.func @transform_2(%arg0: i32) -> (i32, i32) {
    %c0_i32 = arith.constant 0 : i32
    %c0_i32_0 = arith.constant 0 : i32
    %c0_i32_1 = arith.constant 0 : i32
    return %c0_i32, %c0_i32_0 : i32, i32
  }
  func.func @transform_3(%arg0: i32) -> (i32, i32) {
    %c0_i32 = arith.constant 0 : i32
    %c0_i32_0 = arith.constant 0 : i32
    %c0_i32_1 = arith.constant 0 : i32
    return %c0_i32, %c0_i32_0 : i32, i32
  }
  func.func @transform_4(%arg0: i32) -> (i32, i32) {
    %c0_i32 = arith.constant 0 : i32
    %c0_i32_0 = arith.constant 0 : i32
    %c0_i32_1 = arith.constant 0 : i32
    return %c0_i32, %c0_i32_0 : i32, i32
  }
  func.func @transform_5(%arg0: i32) -> (i32, i32) {
    %c0_i32 = arith.constant 0 : i32
    %c0_i32_0 = arith.constant 0 : i32
    %c0_i32_1 = arith.constant 0 : i32
    return %c0_i32, %c0_i32_0 : i32, i32
  }
  func.func @transform_6(%arg0: i32) -> (i32, i32, i32) {
    %c0_i32 = arith.constant 0 : i32
    %c0_i32_0 = arith.constant 0 : i32
    %c0_i32_1 = arith.constant 0 : i32
    return %arg0, %c0_i32, %c0_i32_0 : i32, i32, i32
  }
}

</mosaic_0001>

<bundles_post_ra>
// kernel: local_aggr_forward.2
= control target key start
LH: loop header
LB: loop body
LE: loop exit
PB: predicated region body
PF: predicated region fallthrough
CT: control target
= control target key end

     0   :  { %v167_v0 = vmov 0.0   ;;  %s169_s5 = smov 112   ;;  %s170_s6 = smov 80   ;;  %vm143_vm0 = vcmask 122880   ;;  %s236_s0 = inlined_call_operand.vmem [shape: f32[64,128], index: 0, kind: input, shape index: {}]   ;;  %s237_s1 = inlined_call_operand.vmem [shape: f32[1,16], index: 1, kind: input, shape index: {}]   ;;  %s238_s2 = inlined_call_operand.vmem [shape: f32[1,16], index: 2, kind: input, shape index: {}]   ;;  %s239_s3 = inlined_call_operand.vmem [shape: f32[1,16], index: 3, kind: output, shape index: {0}]   ;;  %s240_s4 = inlined_call_operand.vmem [shape: f32[1,16], index: 4, kind: output, shape index: {1}]  }
   0x1   :  { %20 = vst [vmem:[#allocation2] sm:$0x3] %v167_v0  ;;  %v21_v1 = vld [vmem:[%s236_s0] sm:$0xff]  ;;  %v22_v2 = vld [vmem:[%s236_s0 + $0x8] sm:$0xff]  ;;  %v23_v3 = vld [vmem:[%s236_s0 + $0x10] sm:$0xff]  ;;  %s171_s7 = smov 64  }
   0x2   :  { %v30_v4 = vadd.f32 %v22_v2, %v21_v1  ;;  %v46_v5 = vmul.f32 %v21_v1, %v21_v1  ;;  %v47_v6 = vmul.f32 %v22_v2, %v22_v2  ;;  %v48_v7 = vmul.f32 %v23_v3, %v23_v3  ;;  %v24_v8 = vld [vmem:[%s236_s0 + $0x18] sm:$0xff]  ;;  %v25_v12 = vld [vmem:[%s236_s0 + $0x20] sm:$0xff]  ;;  %v26_v16 = vld [vmem:[%s236_s0 + $0x28] sm:$0xff]  ;;  %s172_s8 = smov 48   ;;  %s173_s9 = smov 32  }
   0x3   :  { %v49_v10 = vmul.f32 %v24_v8, %v24_v8  ;;  %v50_v14 = vmul.f32 %v25_v12, %v25_v12  ;;  %v51_v18 = vmul.f32 %v26_v16, %v26_v16  ;;  %v27_v20 = vld [vmem:[%s236_s0 + $0x30] sm:$0xff]  ;;  %v28_v24 = vld [vmem:[%s236_s0 + $0x38] sm:$0xff]  ;;  %s168_s0 = smov 96   ;;  %s174_s10 = smov 16  }
   0x4   :  { %v31_v9 = vadd.f32 %v30_v4, %v23_v3  ;;  %v54_v11 = vadd.f32 %v47_v6, %v46_v5  ;;  %v52_v22 = vmul.f32 %v27_v20, %v27_v20  ;;  %v53_v26 = vmul.f32 %v28_v24, %v28_v24 }
   0x6   :  { %v32_v13 = vadd.f32 %v31_v9, %v24_v8  ;;  %v55_v15 = vadd.f32 %v54_v11, %v48_v7 }
   0x8   :  { %v33_v17 = vadd.f32 %v32_v13, %v25_v12  ;;  %v56_v19 = vadd.f32 %v55_v15, %v49_v10  ;;  %v29_v40 = vld [vmem:[#allocation2] sm:$0x1]  ;;  %v45_v43 = vld [vmem:[#allocation2 + $0x1] sm:$0x1] }
   0xa   :  { %v34_v21 = vadd.f32 %v33_v17, %v26_v16  ;;  %v57_v23 = vadd.f32 %v56_v19, %v50_v14  ;;  %v139_v19 = vld [vmem:[%s237_s1] sm:$0x1] }
   0xc   :  { %v35_v25 = vadd.f32 %v34_v21, %v27_v20  ;;  %v58_v27 = vadd.f32 %v57_v23, %v51_v18 }
   0xe   :  { %v36_v28 = vadd.f32 %v35_v25, %v28_v24  ;;  %v59_v29 = vadd.f32 %v58_v27, %v52_v22  ;;  %v145_v22 = vld [vmem:[%s238_s2] sm:$0x1] }
  0x10   :  { %v37_v30 = vrot.slane %v36_v28, 4  ;;  %v60_v31 = vadd.f32 %v59_v29, %v53_v26 }
  0x12   :  { %v38_v32 = vadd.f32 %v37_v30, %v36_v28  ;;  %v61_v33 = vrot.slane %v60_v31, 4 }
  0x14   :  { %v39_v34 = vrot.slane %v38_v32, 2  ;;  %v62_v35 = vadd.f32 %v61_v33, %v60_v31 }
  0x16   :  { %v40_v36 = vadd.f32 %v39_v34, %v38_v32  ;;  %v63_v37 = vrot.slane %v62_v35, 2 }
  0x18   :  { %v41_v38 = vrot.slane %v40_v36, 1  ;;  %v64_v39 = vadd.f32 %v63_v37, %v62_v35 }
  0x1a   :  { %v42_v41 = vadd.f32 %v41_v38, %v40_v36  ;;  %v65_v42 = vrot.slane %v64_v39, 1 }
  0x1c   :  { %v43_v44 = vadd.f32 %v42_v41, %v29_v40  ;;  %v66_v45 = vadd.f32 %v65_v42, %v64_v39 }
  0x1e   :  { %44 = vst [vmem:[#allocation2] sm:$0x1] %v43_v44  ;;  %v67_v46 = vadd.f32 %v66_v45, %v45_v43 }
  0x20   :  { %68 = vst [vmem:[#allocation2 + $0x1] sm:$0x1] %v67_v46 }
  0x25   :  { %v72_v47 = vld [vmem:[#allocation2] sm:$0x1] }
  0x26   :  { %86 = vrot.lane.b32.xlu1 %v72_v47, %s168_s0  ;;  %77 = vrot.lane.b32.xlu0 %v72_v47, %s169_s5 }
  0x27   :  { %v74_v48 = vld [vmem:[#allocation2 + $0x1] sm:$0x1] }
  0x2a   :  { %90 = vrot.lane.b32.xlu1 %v74_v48, %s168_s0  ;;  %94 = vrot.lane.b32.xlu0 %v72_v47, %s170_s6 }
  0x2e   :  { %98 = vrot.lane.b32.xlu1 %v74_v48, %s170_s6  ;;  %102 = vrot.lane.b32.xlu0 %v72_v47, %s171_s7 }
  0x32   :  { %106 = vrot.lane.b32.xlu1 %v74_v48, %s171_s7  ;;  %82 = vrot.lane.b32.xlu0 %v74_v48, %s169_s5 }
  0x36   :  { %114 = vrot.lane.b32.xlu1 %v74_v48, %s172_s8  ;;  %110 = vrot.lane.b32.xlu0 %v72_v47, %s172_s8 }
  0x3a   :  { %122 = vrot.lane.b32.xlu1 %v74_v48, %s173_s9  ;;  %118 = vrot.lane.b32.xlu0 %v72_v47, %s173_s9 }
  0x3e   :  { %130 = vrot.lane.b32.xlu1 %v74_v48, %s174_s10  ;;  %126 = vrot.lane.b32.xlu0 %v72_v47, %s174_s10 }
  0x98   :  { %v87_v49 = vpop.permute.xlu1 %86  ;;  %v78_v50 = vpop.permute.xlu0 %77 }
  0x99   :  { %v80_v55 = vadd.f32 %v78_v50, %v72_v47 }
  0x9b   :  { %v89_v58 = vadd.f32 %v87_v49, %v80_v55 }
  0x9c   :  { %v91_v51 = vpop.permute.xlu1 %90  ;;  %v95_v52 = vpop.permute.xlu0 %94 }
  0x9d   :  { %v97_v63 = vadd.f32 %v95_v52, %v89_v58 }
  0xa0   :  { %v99_v53 = vpop.permute.xlu1 %98  ;;  %v103_v54 = vpop.permute.xlu0 %102 }
  0xa1   :  { %v105_v1 = vadd.f32 %v103_v54, %v97_v63 }
  0xa4   :  { %v107_v56 = vpop.permute.xlu1 %106  ;;  %v83_v57 = vpop.permute.xlu0 %82 }
  0xa5   :  { %v85_v59 = vadd.f32 %v83_v57, %v74_v48 }
  0xa7   :  { %v93_v60 = vadd.f32 %v91_v51, %v85_v59 }
  0xa8   :  { %v115_v61 = vpop.permute.xlu1 %114  ;;  %v111_v62 = vpop.permute.xlu0 %110 }
  0xa9   :  { %v101_v0 = vadd.f32 %v99_v53, %v93_v60  ;;  %v113_v6 = vadd.f32 %v111_v62, %v105_v1 }
  0xab   :  { %v109_v2 = vadd.f32 %v107_v56, %v101_v0 }
  0xac   :  { %v123_v3 = vpop.permute.xlu1 %122  ;;  %v119_v4 = vpop.permute.xlu0 %118 }
  0xad   :  { %v117_v5 = vadd.f32 %v115_v61, %v109_v2  ;;  %v121_v8 = vadd.f32 %v119_v4, %v113_v6 }
  0xaf   :  { %v125_v7 = vadd.f32 %v123_v3, %v117_v5 }
  0xb0   :  { %v131_v9 = vpop.permute.xlu1 %130  ;;  %v127_v10 = vpop.permute.xlu0 %126 }
  0xb1   :  { %v133_v11 = vadd.f32 %v131_v9, %v125_v7  ;;  %v129_v12 = vadd.f32 %v127_v10, %v121_v8 }
  0xb3   :  { %v134_v13 = vmul.f32 0.001953125, %v129_v12  ;;  %v135_v14 = vmul.f32 0.001953125, %v133_v11 }
  0xb5   :  { %v136_v15 = vmul.f32 %v134_v13, %v134_v13 }
  0xb7   :  { %v137_v16 = vsub.f32 %v135_v14, %v136_v15 }
  0xb9   :  { %v138_v17 = vmax.f32 %v137_v16, 0.0 }
  0xbb   :  { %v140_v18 = vadd.f32 1e-05, %v138_v17 }
  0xbd   :  { %165 = vrsqrt.f32 %v140_v18 }
  0xc7   :  { %v166_v20 = vpop.eup %165 }
  0xc8   :  { %v142_v21 = vmul.f32 %v166_v20, %v139_v19 }
  0xca   :  { %144 = vst.msk [vmem:[%s239_s3] sm:$0x1] %vm143_vm0, %v142_v21  ;;  %v146_v23 = vmul.f32 %v142_v21, %v134_v13 }
  0xcc   :  { %v147_v24 = vsub.f32 %v145_v22, %v146_v23 }
  0xce   :  { %148 = vst.msk [vmem:[%s240_s4] sm:$0x1] %vm143_vm0, %v147_v24 }

// kernel: local_aggr_forward.3
= control target key start
LH: loop header
LB: loop body
LE: loop exit
PB: predicated region body
PF: predicated region fallthrough
CT: control target
= control target key end

     0   :  { %s3595_s21 = smov 0   ;;  %s6807_s0 = inlined_call_operand.vmem [shape: f32[2,32,128], index: 0, kind: input, shape index: {}]   ;;  %s6808_s1 = inlined_call_operand.vmem [shape: f32[128,128], index: 1, kind: input, shape index: {}]   ;;  %s6809_s2 = inlined_call_operand.vmem [shape: f32[1,128], index: 2, kind: input, shape index: {}]   ;;  %s6810_s3 = inlined_call_operand.vmem [shape: f32[125,128], index: 3, kind: input, shape index: {}]   ;;  %s6811_s4 = inlined_call_operand.vmem [shape: f32[128,128], index: 4, kind: input, shape index: {}]   ;;  %s6812_s5 = inlined_call_operand.vmem [shape: f32[1,128], index: 5, kind: input, shape index: {}]   ;;  %s6813_s6 = inlined_call_operand.vmem [shape: f32[2,32,128], index: 6, kind: output, shape index: {}]  }
   0x1 LB: > { %s2988_s22 = sadd.s32 4294967295, %s3553_s21   ;;  %p2992_p0 = scmp.ge.s32.totalorder %s3553_s21, 1  ;;  %s3553_s21 = sphi %s3595_s21, %s16_s21  }
   0x2   : > { %p212_p1 = scmp.lt.s32.totalorder %s3553_s21, 3 }
   0x4   : > { %p213_p2 = pnand %p2992_p0, %p212_p1 }
   0x6   : > { %216 = sbr.rel (%p213_p2) target bundleno = 1254 (0x4e6), region = 44 }
   0xd   : > { %v274_v0 = vld [vmem:[%s6808_s1] sm:$0xff]  ;;  %v275_v1 = vld [vmem:[%s6808_s1 + $0x8] sm:$0xff]  ;;  %v276_v2 = vld [vmem:[%s6808_s1 + $0x10] sm:$0xff]  ;;  %p3614_p3 = scmp.lt.s32.totalorder %s2988_s22, 1  ;;  %v3555_v5 = vmov 0.0   ;;  %s3556_s12 = smov 32  }
   0xe   : > { %v3119_v3 = vpack.c.bf16 %v275_v1, %v274_v0  ;;  %v277_v4 = vld [vmem:[%s6808_s1 + $0x18] sm:$0xff]  ;;  %252 = vst [vmem:[#allocation2] sm:$0xff] %v3555_v5  ;;  %254 = vst [vmem:[#allocation2 + $0x10] sm:$0xff] %v3555_v5  ;;  %v278_v7 = vld [vmem:[%s6808_s1 + $0x20] sm:$0xff]  ;;  %3197 = vrot.lane.b32.xlu0 %v3555_v5, %s3556_s12  ;;  %s3557_s14 = smov 16   ;;  %s3558_s24 = smov 112  }
   0xf   : > { %253 = vst [vmem:[#allocation2 + $0x8] sm:$0xf] %v3555_v5  ;;  %255 = vst [vmem:[#allocation2 + $0x18] sm:$0xf] %v3555_v5  ;;  %v3123_v6 = vpack.c.bf16 %v277_v4, %v276_v2  ;;  %v279_v8 = vld [vmem:[%s6808_s1 + $0x28] sm:$0xff]  ;;  %s7755_s22 = smov (!%p3614_p3, %s2988_s22), 1  ;;  %3202 = vrot.lane.b32.xlu1 %v3555_v5, %s3557_s14 }
  0x10   : > { %257 = vst [vmem:[#allocation2 + $0x60] sm:$0xff] %v3555_v5  ;;  %258 = vst [vmem:[#allocation2 + $0x68] sm:$0xf] %v3555_v5  ;;  %3120 = vmatprep.subr.bf16.mxu0 %v3119_v3  ;;  %s3001_s13 = sshll.u32 %s7755_s22, 5  ;;  %v3127_v9 = vpack.c.bf16 %v279_v8, %v278_v7  ;;  %v280_v10 = vld [vmem:[%s6808_s1 + $0x30] sm:$0xff]  ;;  %v281_v11 = vld [vmem:[%s6808_s1 + $0x38] sm:$0xff] }
  0x11   : > { %259 = vst [vmem:[#allocation2 + $0x70] sm:$0xff] %v3555_v5  ;;  %260 = vst [vmem:[#allocation2 + $0x78] sm:$0xf] %v3555_v5  ;;  %3122 = vmatpush3.bf16.msra.mxu0 %v3119_v3  ;;  %s3659_s17 = scalar_lea.vmem %s6807_s0, %s3001_s13  ;;  %s3559_s25 = smov 96   ;;  %v3131_v15 = vpack.c.bf16 %v281_v11, %v280_v10  ;;  %v282_v17 = vld [vmem:[%s6808_s1 + $0x40] sm:$0xff]  ;;  %v283_v18 = vld [vmem:[%s6808_s1 + $0x48] sm:$0xff] }
  0x12   : > { %262 = vst [vmem:[#allocation2 + $0x20] sm:$0x3] %v3555_v5  ;;  %263 = vst [vmem:[#allocation2 + $0x30] sm:$0x3] %v3555_v5  ;;  %3124 = vmatprep.subr.bf16.mxu0 %v3123_v6  ;;  %v270_v12 = vld [vmem:[%s3659_s17] sm:$0xff]  ;;  %3207 = vrot.lane.b32.xlu0 %v3555_v5, %s3558_s24  ;;  %v3135_v21 = vpack.c.bf16 %v283_v18, %v282_v17  ;;  %v284_v22 = vld [vmem:[%s6808_s1 + $0x50] sm:$0xff]  ;;  %s251_s19 = scalar_lea.vmem %s6813_s6, %s3001_s13 }
  0x13   : > { %264 = vst [vmem:[#allocation2 + $0x40] sm:$0x3] %v3555_v5  ;;  %265 = vst [vmem:[#allocation2 + $0x50] sm:$0x3] %v3555_v5  ;;  %3075 = vmatprep.mubr.f32.mxu0 %v270_v12  ;;  %3212 = vrot.lane.b32.xlu1 %v3555_v5, %s3559_s25  ;;  %v285_v23 = vld [vmem:[%s6808_s1 + $0x58] sm:$0xff]  ;;  %v286_v26 = vld [vmem:[%s6808_s1 + $0x60] sm:$0xff] }
  0x14   : > { %266 = vst [vmem:[#allocation2 + $0x2a] sm:$0x3] %v3555_v5  ;;  %267 = vst [vmem:[#allocation2 + $0x3a] sm:$0x3] %v3555_v5  ;;  %v3139_v25 = vpack.c.bf16 %v285_v23, %v284_v22  ;;  %v287_v27 = vld [vmem:[%s6808_s1 + $0x68] sm:$0xff]  ;;  %v288_v31 = vld [vmem:[%s6808_s1 + $0x70] sm:$0xff] }
  0x15   : > { %268 = vst [vmem:[#allocation2 + $0x4a] sm:$0x3] %v3555_v5  ;;  %269 = vst [vmem:[#allocation2 + $0x5a] sm:$0x3] %v3555_v5  ;;  %3126 = vmatpush3.bf16.msra.mxu0 %v3123_v6  ;;  %v3143_v30 = vpack.c.bf16 %v287_v27, %v286_v26  ;;  %v289_v32 = vld [vmem:[%s6808_s1 + $0x78] sm:$0xff]  ;;  %v271_v38 = vld [vmem:[%s3659_s17 + $0x8] sm:$0xff]  ;;  %v414_v27 = vlaneseq }
  0x16   : > { %v498_v13 = vld [vmem:[#allocation2 + $0x1] sm:$0xff]  ;;  %v499_v14 = vld [vmem:[#allocation2 + $0x11] sm:$0xff]  ;;  %3128 = vmatprep.subr.bf16.mxu0 %v3127_v9  ;;  %v3147_v34 = vpack.c.bf16 %v289_v32, %v288_v31  ;;  %v2997_v45 = vld [vmem:[%s6809_s2] ss:$0 sm:$0xff] }
  0x17   : > { %v3216_v16 = vpack.i.bf16 %v499_v14, %v498_v13  ;;  %v594_v19 = vld [vmem:[#allocation2 + $0x2] sm:$0xff]  ;;  %v595_v20 = vld [vmem:[#allocation2 + $0x12] sm:$0xff]  ;;  %v3296_v41 = vpack.i.bf16 %v499_v14, %v3555_v5 }
  0x18   : > { %v3236_v24 = vpack.i.bf16 %v595_v20, %v594_v19  ;;  %v690_v28 = vld [vmem:[#allocation2 + $0x3] sm:$0xff]  ;;  %v691_v29 = vld [vmem:[#allocation2 + $0x13] sm:$0xff] }
  0x19   : > { %3217 = vrot.lane.b32.xlu0 %v3216_v16, %s3556_s12  ;;  %3130 = vmatpush3.bf16.msra.mxu0 %v3127_v9  ;;  %v3256_v33 = vpack.i.bf16 %v691_v29, %v690_v28  ;;  %v786_v35 = vld [vmem:[#allocation2 + $0x4] sm:$0xff]  ;;  %v787_v36 = vld [vmem:[#allocation2 + $0x14] sm:$0xff]  ;;  %v3316_v42 = vpack.i.bf16 %v691_v29, %v595_v20 }
  0x1a   : > { %3222 = vrot.lane.b32.xlu1 %v3216_v16, %s3557_s14  ;;  %3132 = vmatprep.subr.bf16.mxu0 %v3131_v15  ;;  %v3276_v37 = vpack.i.bf16 %v787_v36, %v786_v35  ;;  %v272_v39 = vld [vmem:[%s3659_s17 + $0x10] sm:$0xff]  ;;  %v273_v40 = vld [vmem:[%s3659_s17 + $0x18] sm:$0xff]  ;;  %v3336_v43 = vpack.i.bf16 %v3555_v5, %v787_v36  ;;  %v386_v32 = vld [vmem:[%s6810_s3] sm:$0xff] }
  0x1d   : > { %3227 = vrot.lane.b32.xlu0 %v3216_v16, %s3558_s24  ;;  %3134 = vmatpush3.bf16.msra.mxu0 %v3131_v15 }
  0x1e   : > { %3232 = vrot.lane.b32.xlu1 %v3216_v16, %s3559_s25  ;;  %3136 = vmatprep.subr.bf16.mxu0 %v3135_v21 }
  0x21   : > { %3237 = vrot.lane.b32.xlu0 %v3236_v24, %s3556_s12  ;;  %3138 = vmatpush3.bf16.msra.mxu0 %v3135_v21 }
  0x22   : > { %3242 = vrot.lane.b32.xlu1 %v3236_v24, %s3557_s14  ;;  %3140 = vmatprep.subr.bf16.mxu0 %v3139_v25 }
  0x25   : > { %3247 = vrot.lane.b32.xlu0 %v3236_v24, %s3558_s24  ;;  %3142 = vmatpush3.bf16.msra.mxu0 %v3139_v25 }
  0x26   : > { %3252 = vrot.lane.b32.xlu1 %v3236_v24, %s3559_s25  ;;  %3144 = vmatprep.subr.bf16.mxu0 %v3143_v30 }
  0x29   : > { %3257 = vrot.lane.b32.xlu0 %v3256_v33, %s3556_s12  ;;  %3146 = vmatpush3.bf16.msra.mxu0 %v3143_v30  ;;  %v415_v30 = vshrl.u32 %v414_v27, 7 }
  0x2a   : > { %3262 = vrot.lane.b32.xlu1 %v3256_v33, %s3557_s14  ;;  %3148 = vmatprep.subr.bf16.mxu0 %v3147_v34 }
  0x2b   : > { %v3920_v31 = vsub.s32 2, %v415_v30  ;;  %v3925_v35 = vsub.s32 0, %v415_v30  ;;  %v3927_v36 = vsub.s32 1, %v415_v30  ;;  %v3961_v27 = vsub.s32 7, %v415_v30 }
  0x2d   : > { %3267 = vrot.lane.b32.xlu0 %v3256_v33, %s3558_s24  ;;  %3150 = vmatpush3.bf16.msra.mxu0 %v3147_v34  ;;  %6993 = vst [vmem:[#allocation16_spill] sm:$0xff] %v3920_v31  ;;  %6994 = vst [vmem:[#allocation17_spill] sm:$0xff] %v3925_v35 }
  0x2e   : > { %3272 = vrot.lane.b32.xlu1 %v3256_v33, %s3559_s25  ;;  %6995 = vst [vmem:[#allocation18_spill] sm:$0xff] %v3927_v36  ;;  %7003 = vst [vmem:[#allocation26_spill] sm:$0xff] %v3961_v27 }
  0x30   : > { %3076 = vmatmul.mubr.f32.vlgmr.msra.gmra.mrb[0].mxu0 %v271_v38  ;;  %v3937_v38 = vrot.slane %v386_v32, %v3927_v36 }
  0x31   : > { %3277 = vrot.lane.b32.xlu0 %v3276_v37, %s3556_s12  ;;  %3078 = vmatprep.mubr.f32.mxu0 %v272_v39  ;;  %v3940_v39 = vrot.slane %v386_v32, %v3920_v31 }
  0x32   : > { %3282 = vrot.lane.b32.xlu1 %v3276_v37, %s3557_s14  ;;  %6997 = vst [vmem:[#allocation20_spill] sm:$0xff] %v3937_v38 }
  0x34   : > { %3079 = vmatmul.mubr.f32.gmra.mrb[2].mxu0 %v273_v40 }
  0x35   : > { %3287 = vrot.lane.b32.xlu0 %v3276_v37, %s3558_s24 }
  0x36   : > { %3292 = vrot.lane.b32.xlu1 %v3276_v37, %s3559_s25  ;;  %v3934_v37 = vrot.slane %v386_v32, %v3925_v35 }
  0x38   : > { %6996 = vst [vmem:[#allocation19_spill] sm:$0xff] %v3934_v37 }
  0x39   : > { %3297 = vrot.lane.b32.xlu0 %v3296_v41, %s3556_s12 }
  0x3d   : > { %3302 = vrot.lane.b32.xlu0 %v3296_v41, %s3557_s14 }
  0x41   : > { %3307 = vrot.lane.b32.xlu0 %v3296_v41, %s3558_s24 }
  0x45   : > { %3312 = vrot.lane.b32.xlu0 %v3296_v41, %s3559_s25 }
  0x49   : > { %3317 = vrot.lane.b32.xlu0 %v3316_v42, %s3556_s12 }
  0x4d   : > { %3322 = vrot.lane.b32.xlu0 %v3316_v42, %s3557_s14 }
  0x51   : > { %3327 = vrot.lane.b32.xlu0 %v3316_v42, %s3558_s24 }
  0x55   : > { %3332 = vrot.lane.b32.xlu0 %v3316_v42, %s3559_s25  ;;  %v3942_v42 = vsub.s32 3, %v415_v30 }
  0x57   : > { %6998 = vst [vmem:[#allocation21_spill] sm:$0xff] %v3942_v42 }
  0x59   : > { %3337 = vrot.lane.b32.xlu0 %v3336_v43, %s3556_s12 }
  0x5d   : > { %3342 = vrot.lane.b32.xlu0 %v3336_v43, %s3557_s14 }
  0x61   : > { %3347 = vrot.lane.b32.xlu0 %v3336_v43, %s3558_s24 }
  0x65   : > { %3352 = vrot.lane.b32.xlu0 %v3336_v43, %s3559_s25 }
  0x80   : > { %v3729_v44 = vpop.permute.xlu0 %3197 }
  0x81   : > { %v3832_v8 = vpop.permute.xlu1 %3202 }
  0x84   : > { %v3739_v50 = vpop.permute.xlu0 %3207 }
  0x85   : > { %v3844_v10 = vpop.permute.xlu1 %3212 }
  0x8b   : > { %v3742_v51 = vpop.permute.xlu0 %3217 }
  0x8c   : > { %v3852_v12 = vpop.permute.xlu1 %3222 }
  0x8f   : > { %v3756_v54 = vpop.permute.xlu0 %3227 }
  0x90   : > { %v3859_v14 = vpop.permute.xlu1 %3232 }
  0x93   : > { %v3762_v55 = vpop.permute.xlu0 %3237 }
  0x94   : > { %v3868_v17 = vpop.permute.xlu1 %3242 }
  0x97   : > { %v3772_v56 = vpop.permute.xlu0 %3247 }
  0x98   : > { %v3880_v20 = vpop.permute.xlu1 %3252 }
  0x9b   : > { %v3777_v60 = vpop.permute.xlu0 %3257 }
  0x9c   : > { %6980 = vst [vmem:[#allocation3_spill] sm:$0xff] %v3777_v60  ;;  %v3887_v22 = vpop.permute.xlu1 %3262 }
  0x9d   : > { %6986 = vst [vmem:[#allocation9_spill] sm:$0xff] %v3887_v22 }
  0x9f   : > { %v3790_v0 = vpop.permute.xlu0 %3267 }
  0xa0   : > { %6981 = vst [vmem:[#allocation4_spill] sm:$0xff] %v3790_v0  ;;  %v3894_v24 = vpop.permute.xlu1 %3272 }
  0xa1   : > { %6988 = vst [vmem:[#allocation11_spill] sm:$0xff] %v3894_v24 }
  0xa3   : > { %v3794_v1 = vpop.permute.xlu0 %3277 }
  0xa4   : > { %6982 = vst [vmem:[#allocation5_spill] sm:$0xff] %v3794_v1  ;;  %v3902_v26 = vpop.permute.xlu1 %3282 }
  0xa5   : > { %6990 = vst [vmem:[#allocation13_spill] sm:$0xff] %v3902_v26 }
  0xa7   : > { %v3802_v2 = vpop.permute.xlu0 %3287 }
  0xa8   : > { %6983 = vst [vmem:[#allocation6_spill] sm:$0xff] %v3802_v2  ;;  %v3912_v28 = vpop.permute.xlu1 %3292 }
  0xa9   : > { %6991 = vst [vmem:[#allocation14_spill] sm:$0xff] %v3912_v28 }
  0xab   : > { %v3808_v3 = vpop.permute.xlu0 %3297 }
  0xaf   : > { %v3817_v4 = vpop.permute.xlu0 %3302 }
  0xb3   : > { %v3822_v5 = vpop.permute.xlu0 %3307 }
  0xb7   : > { %v3838_v9 = vpop.permute.xlu0 %3312 }
  0xbb   : > { %v3846_v11 = vpop.permute.xlu0 %3317 }
  0xbf   : > { %v3854_v13 = vpop.permute.xlu0 %3322 }
  0xc3   : > { %v3866_v16 = vpop.permute.xlu0 %3327 }
  0xc7   : > { %v3873_v18 = vpop.permute.xlu0 %3332 }
  0xc8   : > { %6984 = vst [vmem:[#allocation7_spill] sm:$0xff] %v3873_v18 }
  0xcb   : > { %v3882_v21 = vpop.permute.xlu0 %3337 }
  0xcc   : > { %6985 = vst [vmem:[#allocation8_spill] sm:$0xff] %v3882_v21 }
  0xcf   : > { %v3892_v23 = vpop.permute.xlu0 %3342 }
  0xd0   : > { %6987 = vst [vmem:[#allocation10_spill] sm:$0xff] %v3892_v23 }
  0xd3   : > { %v3900_v25 = vpop.permute.xlu0 %3347 }
  0xd4   : > { %6989 = vst [vmem:[#allocation12_spill] sm:$0xff] %v3900_v25 }
  0xd7   : > { %v3914_v29 = vpop.permute.xlu0 %3352 }
  0xd8   : > { %6992 = vst [vmem:[#allocation15_spill] sm:$0xff] %v3914_v29 }
 0x103   : > { %v3077_v46 = vpop.f32.mrb[0].mxu0 }
 0x104   : > { %v3734_v47 = vadd.f32 %v3077_v46, %v2997_v45  ;;  %v363_v48 = vpop.f32.mrb[1].mxu0  ;;  %v3951_v46 = vrot.slane %v386_v32, %v3942_v42 }
 0x105   : > { %v3736_v49 = vadd.f32 %v2997_v45, %v363_v48 }
 0x106   : > { %383 = vst [vmem:[#allocation2 + $0x32] sm:$0xff] %v3734_v47  ;;  %6999 = vst [vmem:[#allocation22_spill] sm:$0xff] %v3951_v46 }
 0x107   : > { %382 = vst [vmem:[#allocation2 + $0x22] sm:$0xff] %v3736_v49  ;;  %v3080_v58 = vpop.f32.mrb[2].mxu0 }
 0x108   : > { %v373_v59 = vpop.f32.mrb[3].mxu0  ;;  %v3779_v61 = vadd.f32 %v3080_v58, %v2997_v45  ;;  %v3957_v58 = vsub.s32 5, %v415_v30 }
 0x109   : > { %v3781_v62 = vadd.f32 %v2997_v45, %v373_v59 }
 0x10a   : > { %385 = vst [vmem:[#allocation2 + $0x52] sm:$0xff] %v3779_v61  ;;  %7001 = vst [vmem:[#allocation24_spill] sm:$0xff] %v3957_v58 }
 0x10b   : > { %384 = vst [vmem:[#allocation2 + $0x42] sm:$0xff] %v3781_v62 }
 0x10d   : > { %v3744_v52 = vld [vmem:[#allocation2 + $0x30] sm:$0xff] }
 0x10e   : > { %464 = vrot.lane.b32.xlu0 %v3744_v52, %s3558_s24  ;;  %412 = vrot.lane.b32.xlu1 %v3744_v52, %s3556_s12  ;;  %v3750_v53 = vld [vmem:[#allocation2 + $0x31] sm:$0xff]  ;;  %v3824_v6 = vld [vmem:[#allocation2 + $0x20] sm:$0xff] }
 0x10f   : > { %v693_v57 = vld [vmem:[#allocation2 + $0x33] sm:$0xff]  ;;  %v3830_v7 = vld [vmem:[#allocation2 + $0x21] sm:$0xff] }
 0x110   : > { %v789_v63 = vld [vmem:[#allocation2 + $0x34] sm:$0xff]  ;;  %v3861_v15 = vld [vmem:[#allocation2 + $0x23] sm:$0xff] }
 0x111   : > { %v3875_v19 = vld [vmem:[#allocation2 + $0x24] sm:$0xff] }
 0x112   : > { %508 = vrot.lane.b32.xlu0 %v3750_v53, %s3556_s12  ;;  %432 = vrot.lane.b32.xlu1 %v3744_v52, %s3557_s14  ;;  %v4104_v22 = vld [vmem:[#allocation2 + $0x43] sm:$0xff] }
 0x116   : > { %560 = vrot.lane.b32.xlu0 %v3750_v53, %s3558_s24  ;;  %484 = vrot.lane.b32.xlu1 %v3744_v52, %s3559_s25 }
 0x11a   : > { %604 = vrot.lane.b32.xlu0 %v3734_v47, %s3556_s12  ;;  %528 = vrot.lane.b32.xlu1 %v3750_v53, %s3557_s14 }
 0x11e   : > { %656 = vrot.lane.b32.xlu0 %v3734_v47, %s3558_s24  ;;  %580 = vrot.lane.b32.xlu1 %v3750_v53, %s3559_s25 }
 0x122   : > { %700 = vrot.lane.b32.xlu0 %v693_v57, %s3556_s12  ;;  %624 = vrot.lane.b32.xlu1 %v3734_v47, %s3557_s14 }
 0x126   : > { %752 = vrot.lane.b32.xlu0 %v693_v57, %s3558_s24  ;;  %676 = vrot.lane.b32.xlu1 %v3734_v47, %s3559_s25 }
 0x12a   : > { %796 = vrot.lane.b32.xlu0 %v789_v63, %s3556_s12  ;;  %720 = vrot.lane.b32.xlu1 %v693_v57, %s3557_s14 }
 0x12e   : > { %848 = vrot.lane.b32.xlu0 %v789_v63, %s3558_s24  ;;  %772 = vrot.lane.b32.xlu1 %v693_v57, %s3559_s25 }
 0x132   : > { %891 = vrot.lane.b32.xlu0 %v3744_v52, %s3556_s12  ;;  %816 = vrot.lane.b32.xlu1 %v789_v63, %s3557_s14 }
 0x136   : > { %911 = vrot.lane.b32.xlu0 %v3744_v52, %s3557_s14  ;;  %868 = vrot.lane.b32.xlu1 %v789_v63, %s3559_s25 }
 0x13a   : > { %943 = vrot.lane.b32.xlu0 %v3744_v52, %s3558_s24  ;;  %987 = vrot.lane.b32.xlu1 %v3750_v53, %s3556_s12 }
 0x13e   : > { %963 = vrot.lane.b32.xlu0 %v3744_v52, %s3559_s25  ;;  %1039 = vrot.lane.b32.xlu1 %v3750_v53, %s3558_s24 }
 0x142   : > { %1007 = vrot.lane.b32.xlu0 %v3750_v53, %s3557_s14  ;;  %1179 = vrot.lane.b32.xlu1 %v693_v57, %s3556_s12 }
 0x146   : > { %1059 = vrot.lane.b32.xlu0 %v3750_v53, %s3559_s25  ;;  %1231 = vrot.lane.b32.xlu1 %v693_v57, %s3558_s24 }
 0x14a   : > { %1083 = vrot.lane.b32.xlu0 %v3734_v47, %s3556_s12  ;;  %462 = vrot.lane.b32.xlu1 %v3824_v6, %s3558_s24 }
 0x14e   : > { %1103 = vrot.lane.b32.xlu0 %v3734_v47, %s3557_s14  ;;  %506 = vrot.lane.b32.xlu1 %v3830_v7, %s3556_s12 }
 0x152   : > { %1135 = vrot.lane.b32.xlu0 %v3734_v47, %s3558_s24  ;;  %558 = vrot.lane.b32.xlu1 %v3830_v7, %s3558_s24 }
 0x156   : > { %1155 = vrot.lane.b32.xlu0 %v3734_v47, %s3559_s25  ;;  %602 = vrot.lane.b32.xlu1 %v3736_v49, %s3556_s12  ;;  %v3953_v47 = vsub.s32 4, %v415_v30 }
 0x158   : > { %7000 = vst [vmem:[#allocation23_spill] sm:$0xff] %v3953_v47 }
 0x15a   : > { %1199 = vrot.lane.b32.xlu0 %v693_v57, %s3557_s14  ;;  %654 = vrot.lane.b32.xlu1 %v3736_v49, %s3558_s24 }
 0x15e   : > { %1251 = vrot.lane.b32.xlu0 %v693_v57, %s3559_s25  ;;  %698 = vrot.lane.b32.xlu1 %v3861_v15, %s3556_s12  ;;  %v453_v57 = vmul.f32 %v3940_v39, %v3744_v52 }
 0x162   : > { %1275 = vrot.lane.b32.xlu0 %v789_v63, %s3556_s12  ;;  %750 = vrot.lane.b32.xlu1 %v3861_v15, %s3558_s24 }
 0x166   : > { %1295 = vrot.lane.b32.xlu0 %v789_v63, %s3557_s14  ;;  %794 = vrot.lane.b32.xlu1 %v3875_v19, %s3556_s12 }
 0x16a   : > { %1327 = vrot.lane.b32.xlu0 %v789_v63, %s3558_s24  ;;  %846 = vrot.lane.b32.xlu1 %v3875_v19, %s3558_s24 }
 0x16e   : > { %1347 = vrot.lane.b32.xlu0 %v789_v63, %s3559_s25  ;;  %889 = vrot.lane.b32.xlu1 %v3824_v6, %s3556_s12 }
 0x172   : > { %909 = vrot.lane.b32.xlu1 %v3824_v6, %s3557_s14  ;;  %410 = vrot.lane.b32.xlu0 %v3824_v6, %s3556_s12 }
 0x176   : > { %941 = vrot.lane.b32.xlu1 %v3824_v6, %s3558_s24  ;;  %430 = vrot.lane.b32.xlu0 %v3824_v6, %s3557_s14 }
 0x17a   : > { %961 = vrot.lane.b32.xlu1 %v3824_v6, %s3559_s25  ;;  %482 = vrot.lane.b32.xlu0 %v3824_v6, %s3559_s25 }
 0x17e   : > { %1005 = vrot.lane.b32.xlu1 %v3830_v7, %s3557_s14  ;;  %526 = vrot.lane.b32.xlu0 %v3830_v7, %s3557_s14 }
 0x180   : > { %v465_v33 = vpop.permute.xlu0 %464  ;;  %v413_v34 = vpop.permute.xlu1 %412 }
 0x181   : > { %v421_v43 = vmul.f32 %v3934_v37, %v413_v34  ;;  %v3964_v34 = vrot.slane %v386_v32, %v3953_v47 }
 0x182   : > { %1057 = vrot.lane.b32.xlu1 %v3830_v7, %s3559_s25  ;;  %578 = vrot.lane.b32.xlu0 %v3830_v7, %s3559_s25 }
 0x183   : > { %7004 = vst [vmem:[#allocation27_spill] sm:$0xff] %v3964_v34 }
 0x184   : > { %v509_v40 = vpop.permute.xlu0 %508  ;;  %v433_v41 = vpop.permute.xlu1 %432 }
 0x185   : > { %v441_v45 = vmul.f32 %v3937_v38, %v433_v41  ;;  %v473_v41 = vmul.f32 %v3951_v46, %v465_v33 }
 0x186   : > { %1081 = vrot.lane.b32.xlu1 %v3736_v49, %s3556_s12  ;;  %622 = vrot.lane.b32.xlu0 %v3736_v49, %s3557_s14 }
 0x187   : > { %v445_v48 = vadd.f32 %v441_v45, %v421_v43  ;;  %v3972_v43 = vrot.slane %v386_v32, %v3957_v58  ;;  %v3974_v45 = vsub.s32 6, %v415_v30 }
 0x188   : > { %v3959_v59 = vpop.permute.xlu0 %560  ;;  %v485_v63 = vpop.permute.xlu1 %484 }
 0x189   : > { %7002 = vst [vmem:[#allocation25_spill] sm:$0xff] %v3959_v59  ;;  %v457_v29 = vadd.f32 %v453_v57, %v445_v48  ;;  %7005 = vst [vmem:[#allocation28_spill] sm:$0xff] %v3972_v43  ;;  %v493_v28 = vmul.f32 %v3964_v34, %v485_v63  ;;  %v3980_v33 = vrot.slane %v386_v32, %v3974_v45 }
 0x18a   : > { %1101 = vrot.lane.b32.xlu1 %v3736_v49, %s3557_s14  ;;  %674 = vrot.lane.b32.xlu0 %v3736_v49, %s3559_s25  ;;  %7006 = vst [vmem:[#allocation29_spill] sm:$0xff] %v3974_v45  ;;  %v3983_v48 = vrot.slane %v386_v32, %v3961_v27  ;;  %v517_v57 = vmul.f32 %v3972_v43, %v509_v40 }
 0x18b   : > { %v477_v59 = vadd.f32 %v473_v41, %v457_v29  ;;  %7008 = vst [vmem:[#allocation31_spill] sm:$0xff] %v3980_v33 }
 0x18c   : > { %v3977_v25 = vpop.permute.xlu0 %604  ;;  %v529_v2 = vpop.permute.xlu1 %528  ;;  %v549_v32 = vmul.f32 %v3983_v48, %v3750_v53 }
 0x18d   : > { %7007 = vst [vmem:[#allocation30_spill] sm:$0xff] %v3977_v25  ;;  %v497_v23 = vadd.f32 %v493_v28, %v477_v59  ;;  %v537_v30 = vmul.f32 %v3980_v33, %v529_v2 }
 0x18e   : > { %1133 = vrot.lane.b32.xlu1 %v3736_v49, %s3558_s24  ;;  %718 = vrot.lane.b32.xlu0 %v3861_v15, %s3557_s14 }
 0x18f   : > { %v521_v29 = vadd.f32 %v517_v57, %v497_v23 }
 0x190   : > { %v3991_v63 = vpop.permute.xlu0 %656  ;;  %v3993_v41 = vpop.permute.xlu1 %580 }
 0x191   : > { %7009 = vst [vmem:[#allocation32_spill] sm:$0xff] %v3991_v63  ;;  %7010 = vst [vmem:[#allocation33_spill] sm:$0xff] %v3993_v41  ;;  %v541_v25 = vadd.f32 %v537_v30, %v521_v29  ;;  %v389_v30 = vld [vmem:[%s6810_s3 + $0x18] sm:$0xff] }
 0x192   : > { %1153 = vrot.lane.b32.xlu1 %v3736_v49, %s3559_s25  ;;  %770 = vrot.lane.b32.xlu0 %v3861_v15, %s3559_s25  ;;  %v4062_v63 = vrot.slane %v389_v30, %v3953_v47 }
 0x193   : > { %v4001_v28 = vadd.f32 %v549_v32, %v541_v25 }
 0x194   : > { %v4003_v40 = vpop.permute.xlu0 %700  ;;  %v4005_v23 = vpop.permute.xlu1 %624  ;;  %7024 = vst [vmem:[#allocation47_spill] sm:$0xff] %v4062_v63 }
 0x195   : > { %7011 = vst [vmem:[#allocation34_spill] sm:$0xff] %v4001_v28  ;;  %7012 = vst [vmem:[#allocation35_spill] sm:$0xff] %v4003_v40  ;;  %v4066_v28 = vld [vmem:[#allocation2 + $0x40] sm:$0xff] }
 0x196   : > { %7013 = vst [vmem:[#allocation36_spill] sm:$0xff] %v4005_v23  ;;  %1197 = vrot.lane.b32.xlu1 %v3861_v15, %s3557_s14  ;;  %814 = vrot.lane.b32.xlu0 %v3875_v19, %s3557_s14 }
 0x198   : > { %v4011_v2 = vpop.permute.xlu0 %752  ;;  %v4013_v59 = vpop.permute.xlu1 %676 }
 0x199   : > { %7014 = vst [vmem:[#allocation37_spill] sm:$0xff] %v4011_v2  ;;  %7015 = vst [vmem:[#allocation38_spill] sm:$0xff] %v4013_v59  ;;  %v4051_v2 = vrot.slane %v389_v30, %v3942_v42 }
 0x19a   : > { %1249 = vrot.lane.b32.xlu1 %v3861_v15, %s3559_s25  ;;  %866 = vrot.lane.b32.xlu0 %v3875_v19, %s3559_s25 }
 0x19b   : > { %v933_v41 = vmul.f32 %v4051_v2, %v3744_v52 }
 0x19c   : > { %v4019_v49 = vpop.permute.xlu0 %796  ;;  %v4021_v25 = vpop.permute.xlu1 %720 }
 0x19d   : > { %7016 = vst [vmem:[#allocation39_spill] sm:$0xff] %v4019_v49  ;;  %7017 = vst [vmem:[#allocation40_spill] sm:$0xff] %v4021_v25 }
 0x19e   : > { %1273 = vrot.lane.b32.xlu1 %v3875_v19, %s3556_s12  ;;  %985 = vrot.lane.b32.xlu0 %v3830_v7, %s3556_s12 }
 0x1a0   : > { %v4027_v57 = vpop.permute.xlu0 %848  ;;  %v4029_v29 = vpop.permute.xlu1 %772 }
 0x1a1   : > { %7018 = vst [vmem:[#allocation41_spill] sm:$0xff] %v4027_v57  ;;  %7019 = vst [vmem:[#allocation42_spill] sm:$0xff] %v4029_v29  ;;  %v4045_v57 = vrot.slane %v389_v30, %v3927_v36  ;;  %v4048_v29 = vrot.slane %v389_v30, %v3920_v31 }
 0x1a2   : > { %1293 = vrot.lane.b32.xlu1 %v3875_v19, %s3557_s14  ;;  %1037 = vrot.lane.b32.xlu0 %v3830_v7, %s3558_s24 }
 0x1a3   : > { %7021 = vst [vmem:[#allocation44_spill] sm:$0xff] %v4045_v57  ;;  %7022 = vst [vmem:[#allocation45_spill] sm:$0xff] %v4048_v29 }
 0x1a4   : > { %v892_v32 = vpop.permute.xlu0 %891  ;;  %v4038_v49 = vpop.permute.xlu1 %816 }
 0x1a5   : > { %7020 = vst [vmem:[#allocation43_spill] sm:$0xff] %v4038_v49  ;;  %v901_v49 = vmul.f32 %v4045_v57, %v892_v32 }
 0x1a6   : > { %1325 = vrot.lane.b32.xlu1 %v3875_v19, %s3558_s24  ;;  %1177 = vrot.lane.b32.xlu0 %v3861_v15, %s3556_s12 }
 0x1a8   : > { %v912_v25 = vpop.permute.xlu0 %911  ;;  %v4053_v40 = vpop.permute.xlu1 %868 }
 0x1a9   : > { %7023 = vst [vmem:[#allocation46_spill] sm:$0xff] %v4053_v40  ;;  %v921_v59 = vmul.f32 %v4048_v29, %v912_v25  ;;  %v4068_v40 = vld [vmem:[#allocation2 + $0x41] sm:$0xff] }
 0x1aa   : > { %1345 = vrot.lane.b32.xlu1 %v3875_v19, %s3559_s25  ;;  %1229 = vrot.lane.b32.xlu0 %v3861_v15, %s3558_s24  ;;  %v4076_v15 = vrot.slane %v389_v30, %v3957_v58 }
 0x1ab   : > { %v925_v23 = vadd.f32 %v921_v59, %v901_v49  ;;  %v4081_v59 = vrot.slane %v389_v30, %v3974_v45 }
 0x1ac   : > { %v944_v32 = vpop.permute.xlu0 %943  ;;  %v988_v26 = vpop.permute.xlu1 %987  ;;  %7025 = vst [vmem:[#allocation48_spill] sm:$0xff] %v4076_v15 }
 0x1ad   : > { %v937_v25 = vadd.f32 %v933_v41, %v925_v23  ;;  %v953_v21 = vmul.f32 %v4062_v63, %v944_v32  ;;  %7027 = vst [vmem:[#allocation50_spill] sm:$0xff] %v4081_v59  ;;  %v4087_v23 = vld [vmem:[%s6810_s3 + $0x20] sm:$0xff]  ;;  %v4094_v32 = vrot.slane %v389_v30, %v3961_v27 }
 0x1ae   : > { %893 = vrot.lane.b32.xlu1 %v4066_v28, %s3556_s12  ;;  %989 = vrot.lane.b32.xlu0 %v4068_v40, %s3556_s12 }
 0x1af   : > { %v957_v49 = vadd.f32 %v953_v21, %v937_v25  ;;  %7028 = vst [vmem:[#allocation51_spill] sm:$0xff] %v4094_v32  ;;  %v997_v21 = vmul.f32 %v4081_v59, %v988_v26 }
 0x1b0   : > { %v964_v19 = vpop.permute.xlu0 %963  ;;  %v4078_v52 = vpop.permute.xlu1 %1039 }
 0x1b1   : > { %7026 = vst [vmem:[#allocation49_spill] sm:$0xff] %v4078_v52  ;;  %v973_v41 = vmul.f32 %v4076_v15, %v964_v19  ;;  %v4098_v52 = vrot.slane %v4087_v23, %v3925_v35 }
 0x1b2   : > { %913 = vrot.lane.b32.xlu1 %v4066_v28, %s3557_s14  ;;  %1041 = vrot.lane.b32.xlu0 %v4068_v40, %s3558_s24 }
 0x1b3   : > { %v977_v25 = vadd.f32 %v973_v41, %v957_v49  ;;  %v1029_v30 = vmul.f32 %v4098_v52, %v3750_v53 }
 0x1b4   : > { %v1008_v19 = vpop.permute.xlu0 %1007  ;;  %v4101_v1 = vpop.permute.xlu1 %1179 }
 0x1b5   : > { %7029 = vst [vmem:[#allocation52_spill] sm:$0xff] %v4101_v1  ;;  %v1001_v24 = vadd.f32 %v997_v21, %v977_v25  ;;  %v1017_v0 = vmul.f32 %v4094_v32, %v1008_v19 }
 0x1b6   : > { %945 = vrot.lane.b32.xlu1 %v4066_v28, %s3558_s24  ;;  %1181 = vrot.lane.b32.xlu0 %v4104_v22, %s3556_s12 }
 0x1b7   : > { %v1021_v60 = vadd.f32 %v1017_v0, %v1001_v24 }
 0x1b8   : > { %v4112_v26 = vpop.permute.xlu0 %1059  ;;  %v4114_v49 = vpop.permute.xlu1 %1231 }
 0x1b9   : > { %7030 = vst [vmem:[#allocation53_spill] sm:$0xff] %v4112_v26  ;;  %7031 = vst [vmem:[#allocation54_spill] sm:$0xff] %v4114_v49  ;;  %v4116_v41 = vadd.f32 %v1029_v30, %v1021_v60  ;;  %v1750_v26 = vld [vmem:[#allocation2 + $0x54] sm:$0xff] }
 0x1ba   : > { %965 = vrot.lane.b32.xlu1 %v4066_v28, %s3559_s25  ;;  %1233 = vrot.lane.b32.xlu0 %v4104_v22, %s3558_s24 }
 0x1bb   : > { %7032 = vst [vmem:[#allocation55_spill] sm:$0xff] %v4116_v41 }
 0x1bc   : > { %v4122_v21 = vpop.permute.xlu0 %1083  ;;  %v4124_v25 = vpop.permute.xlu1 %462 }
 0x1bd   : > { %7033 = vst [vmem:[#allocation56_spill] sm:$0xff] %v4122_v21  ;;  %7034 = vst [vmem:[#allocation57_spill] sm:$0xff] %v4124_v25 }
 0x1be   : > { %1009 = vrot.lane.b32.xlu1 %v4068_v40, %s3557_s14  ;;  %1367 = vrot.lane.b32.xlu0 %v3824_v6, %s3556_s12 }
 0x1c0   : > { %v4130_v53 = vpop.permute.xlu0 %1103  ;;  %v4132_v60 = vpop.permute.xlu1 %506 }
 0x1c1   : > { %7035 = vst [vmem:[#allocation58_spill] sm:$0xff] %v4130_v53  ;;  %7036 = vst [vmem:[#allocation59_spill] sm:$0xff] %v4132_v60  ;;  %v4234_v53 = vld [vmem:[#allocation2 + $0x50] sm:$0xff] }
 0x1c2   : > { %1061 = vrot.lane.b32.xlu1 %v4068_v40, %s3559_s25  ;;  %1371 = vrot.lane.b32.xlu0 %v4066_v28, %s3556_s12 }
 0x1c4   : > { %v4138_v0 = vpop.permute.xlu0 %1135  ;;  %v4140_v24 = vpop.permute.xlu1 %558 }
 0x1c5   : > { %7037 = vst [vmem:[#allocation60_spill] sm:$0xff] %v4138_v0  ;;  %7038 = vst [vmem:[#allocation61_spill] sm:$0xff] %v4140_v24 }
 0x1c6   : > { %1085 = vrot.lane.b32.xlu1 %v3781_v62, %s3556_s12  ;;  %1387 = vrot.lane.b32.xlu0 %v3824_v6, %s3557_s14 }
 0x1c8   : > { %v4146_v19 = vpop.permute.xlu0 %1155  ;;  %v4148_v30 = vpop.permute.xlu1 %602 }
 0x1c9   : > { %7039 = vst [vmem:[#allocation62_spill] sm:$0xff] %v4146_v19  ;;  %7040 = vst [vmem:[#allocation63_spill] sm:$0xff] %v4148_v30 }
 0x1ca   : > { %1105 = vrot.lane.b32.xlu1 %v3781_v62, %s3557_s14  ;;  %1391 = vrot.lane.b32.xlu0 %v4066_v28, %s3557_s14 }
 0x1cc   : > { %v4154_v49 = vpop.permute.xlu0 %1199  ;;  %v4156_v1 = vpop.permute.xlu1 %654 }
 0x1cd   : > { %7041 = vst [vmem:[#allocation64_spill] sm:$0xff] %v4154_v49  ;;  %7042 = vst [vmem:[#allocation65_spill] sm:$0xff] %v4156_v1 }
 0x1ce   : > { %1137 = vrot.lane.b32.xlu1 %v3781_v62, %s3558_s24  ;;  %1419 = vrot.lane.b32.xlu0 %v3824_v6, %s3558_s24 }
 0x1d0   : > { %v4162_v24 = vpop.permute.xlu0 %1251  ;;  %v4164_v19 = vpop.permute.xlu1 %698 }
 0x1d1   : > { %7043 = vst [vmem:[#allocation66_spill] sm:$0xff] %v4162_v24  ;;  %7044 = vst [vmem:[#allocation67_spill] sm:$0xff] %v4164_v19 }
 0x1d2   : > { %1157 = vrot.lane.b32.xlu1 %v3781_v62, %s3559_s25  ;;  %1423 = vrot.lane.b32.xlu0 %v4066_v28, %s3558_s24 }
 0x1d4   : > { %v4170_v30 = vpop.permute.xlu0 %1275  ;;  %v4172_v49 = vpop.permute.xlu1 %750 }
 0x1d5   : > { %7045 = vst [vmem:[#allocation68_spill] sm:$0xff] %v4170_v30  ;;  %7046 = vst [vmem:[#allocation69_spill] sm:$0xff] %v4172_v49  ;;  %v4190_v49 = vld [vmem:[#allocation2 + $0x44] sm:$0xff] }
 0x1d6   : > { %1201 = vrot.lane.b32.xlu1 %v4104_v22, %s3557_s14  ;;  %1439 = vrot.lane.b32.xlu0 %v3824_v6, %s3559_s25 }
 0x1d8   : > { %v4178_v1 = vpop.permute.xlu0 %1295  ;;  %v4180_v24 = vpop.permute.xlu1 %794 }
 0x1d9   : > { %7047 = vst [vmem:[#allocation70_spill] sm:$0xff] %v4178_v1  ;;  %7048 = vst [vmem:[#allocation71_spill] sm:$0xff] %v4180_v24 }
 0x1da   : > { %1253 = vrot.lane.b32.xlu1 %v4104_v22, %s3559_s25  ;;  %1443 = vrot.lane.b32.xlu0 %v4066_v28, %s3559_s25 }
 0x1dc   : > { %v4186_v19 = vpop.permute.xlu0 %1327  ;;  %v4188_v30 = vpop.permute.xlu1 %846 }
 0x1dd   : > { %7049 = vst [vmem:[#allocation72_spill] sm:$0xff] %v4186_v19  ;;  %7050 = vst [vmem:[#allocation73_spill] sm:$0xff] %v4188_v30 }
 0x1de   : > { %1277 = vrot.lane.b32.xlu1 %v4190_v49, %s3556_s12  ;;  %1463 = vrot.lane.b32.xlu0 %v3830_v7, %s3556_s12 }
 0x1e0   : > { %v4196_v6 = vpop.permute.xlu0 %1347  ;;  %v4198_v24 = vpop.permute.xlu1 %889 }
 0x1e1   : > { %7051 = vst [vmem:[#allocation74_spill] sm:$0xff] %v4196_v6  ;;  %7052 = vst [vmem:[#allocation75_spill] sm:$0xff] %v4198_v24 }
 0x1e2   : > { %1297 = vrot.lane.b32.xlu1 %v4190_v49, %s3557_s14  ;;  %1467 = vrot.lane.b32.xlu0 %v4068_v40, %s3556_s12 }
 0x1e4   : > { %v4204_v19 = vpop.permute.xlu1 %909  ;;  %v4206_v30 = vpop.permute.xlu0 %410 }
 0x1e5   : > { %7053 = vst [vmem:[#allocation76_spill] sm:$0xff] %v4204_v19  ;;  %7054 = vst [vmem:[#allocation77_spill] sm:$0xff] %v4206_v30  ;;  %v4224_v19 = vld [vmem:[#allocation2 + $0x30] sm:$0xff] }
 0x1e6   : > { %1329 = vrot.lane.b32.xlu1 %v4190_v49, %s3558_s24  ;;  %1483 = vrot.lane.b32.xlu0 %v3830_v7, %s3557_s14 }
 0x1e8   : > { %v4212_v1 = vpop.permute.xlu1 %941  ;;  %v4214_v6 = vpop.permute.xlu0 %430 }
 0x1e9   : > { %7055 = vst [vmem:[#allocation78_spill] sm:$0xff] %v4212_v1  ;;  %7056 = vst [vmem:[#allocation79_spill] sm:$0xff] %v4214_v6 }
 0x1ea   : > { %1349 = vrot.lane.b32.xlu1 %v4190_v49, %s3559_s25  ;;  %1487 = vrot.lane.b32.xlu0 %v4068_v40, %s3557_s14 }
 0x1ec   : > { %v4220_v0 = vpop.permute.xlu1 %961  ;;  %v4222_v24 = vpop.permute.xlu0 %482 }
 0x1ed   : > { %7057 = vst [vmem:[#allocation80_spill] sm:$0xff] %v4220_v0  ;;  %7058 = vst [vmem:[#allocation81_spill] sm:$0xff] %v4222_v24 }
 0x1ee   : > { %1369 = vrot.lane.b32.xlu1 %v4224_v19, %s3556_s12  ;;  %1515 = vrot.lane.b32.xlu0 %v3830_v7, %s3558_s24 }
 0x1f0   : > { %v4230_v1 = vpop.permute.xlu1 %1005  ;;  %v4232_v60 = vpop.permute.xlu0 %526 }
 0x1f1   : > { %7059 = vst [vmem:[#allocation82_spill] sm:$0xff] %v4230_v1  ;;  %7060 = vst [vmem:[#allocation83_spill] sm:$0xff] %v4232_v60 }
 0x1f2   : > { %1373 = vrot.lane.b32.xlu1 %v4234_v53, %s3556_s12  ;;  %1519 = vrot.lane.b32.xlu0 %v4068_v40, %s3558_s24 }
 0x1f4   : > { %v4240_v0 = vpop.permute.xlu1 %1057  ;;  %v4242_v24 = vpop.permute.xlu0 %578 }
 0x1f5   : > { %7061 = vst [vmem:[#allocation84_spill] sm:$0xff] %v4240_v0  ;;  %7062 = vst [vmem:[#allocation85_spill] sm:$0xff] %v4242_v24  ;;  %v1555_v24 = vld [vmem:[#allocation2 + $0x22] sm:$0xff] }
 0x1f6   : > { %1389 = vrot.lane.b32.xlu1 %v4224_v19, %s3557_s14  ;;  %1535 = vrot.lane.b32.xlu0 %v3830_v7, %s3559_s25 }
 0x1f8   : > { %v4248_v1 = vpop.permute.xlu1 %1081  ;;  %v4250_v60 = vpop.permute.xlu0 %622 }
 0x1f9   : > { %7063 = vst [vmem:[#allocation86_spill] sm:$0xff] %v4248_v1  ;;  %7064 = vst [vmem:[#allocation87_spill] sm:$0xff] %v4250_v60  ;;  %v4299_v60 = vld [vmem:[#allocation2 + $0x51] sm:$0xff] }
 0x1fa   : > { %1393 = vrot.lane.b32.xlu1 %v4234_v53, %s3557_s14  ;;  %1539 = vrot.lane.b32.xlu0 %v4068_v40, %s3559_s25 }
 0x1fc   : > { %v4256_v25 = vpop.permute.xlu1 %1101  ;;  %v4258_v0 = vpop.permute.xlu0 %674 }
 0x1fd   : > { %7065 = vst [vmem:[#allocation88_spill] sm:$0xff] %v4256_v25  ;;  %7066 = vst [vmem:[#allocation89_spill] sm:$0xff] %v4258_v0 }
 0x1fe   : > { %1421 = vrot.lane.b32.xlu1 %v4224_v19, %s3558_s24  ;;  %1559 = vrot.lane.b32.xlu0 %v1555_v24, %s3556_s12 }
 0x200   : > { %v4263_v7 = vpop.permute.xlu1 %1133  ;;  %v4265_v1 = vpop.permute.xlu0 %718 }
 0x201   : > { %7067 = vst [vmem:[#allocation90_spill] sm:$0xff] %v4263_v7  ;;  %7068 = vst [vmem:[#allocation91_spill] sm:$0xff] %v4265_v1 }
 0x202   : > { %1425 = vrot.lane.b32.xlu1 %v4234_v53, %s3558_s24  ;;  %1563 = vrot.lane.b32.xlu0 %v3781_v62, %s3556_s12 }
 0x204   : > { %v4271_v40 = vpop.permute.xlu1 %1153  ;;  %v4273_v25 = vpop.permute.xlu0 %770 }
 0x205   : > { %7069 = vst [vmem:[#allocation92_spill] sm:$0xff] %v4271_v40  ;;  %7070 = vst [vmem:[#allocation93_spill] sm:$0xff] %v4273_v25  ;;  %v4290_v25 = vld [vmem:[#allocation2 + $0x31] sm:$0xff] }
 0x206   : > { %1441 = vrot.lane.b32.xlu1 %v4224_v19, %s3559_s25  ;;  %1579 = vrot.lane.b32.xlu0 %v1555_v24, %s3557_s14 }
 0x208   : > { %v4278_v0 = vpop.permute.xlu1 %1197  ;;  %v4280_v7 = vpop.permute.xlu0 %814 }
 0x209   : > { %7071 = vst [vmem:[#allocation94_spill] sm:$0xff] %v4278_v0  ;;  %7072 = vst [vmem:[#allocation95_spill] sm:$0xff] %v4280_v7 }
 0x20a   : > { %1445 = vrot.lane.b32.xlu1 %v4234_v53, %s3559_s25  ;;  %1583 = vrot.lane.b32.xlu0 %v3781_v62, %s3557_s14 }
 0x20c   : > { %v4286_v1 = vpop.permute.xlu1 %1249  ;;  %v4288_v40 = vpop.permute.xlu0 %866 }
 0x20d   : > { %7073 = vst [vmem:[#allocation96_spill] sm:$0xff] %v4286_v1  ;;  %7074 = vst [vmem:[#allocation97_spill] sm:$0xff] %v4288_v40 }
 0x20e   : > { %1465 = vrot.lane.b32.xlu1 %v4290_v25, %s3556_s12  ;;  %1611 = vrot.lane.b32.xlu0 %v1555_v24, %s3558_s24 }
 0x210   : > { %v4295_v0 = vpop.permute.xlu1 %1273  ;;  %v4297_v7 = vpop.permute.xlu0 %985 }
 0x211   : > { %7075 = vst [vmem:[#allocation98_spill] sm:$0xff] %v4295_v0  ;;  %7076 = vst [vmem:[#allocation99_spill] sm:$0xff] %v4297_v7 }
 0x212   : > { %1469 = vrot.lane.b32.xlu1 %v4299_v60, %s3556_s12  ;;  %1615 = vrot.lane.b32.xlu0 %v3781_v62, %s3558_s24 }
 0x214   : > { %v4305_v40 = vpop.permute.xlu1 %1293  ;;  %v4307_v1 = vpop.permute.xlu0 %1037 }
 0x215   : > { %7077 = vst [vmem:[#allocation100_spill] sm:$0xff] %v4305_v40  ;;  %7078 = vst [vmem:[#allocation101_spill] sm:$0xff] %v4307_v1  ;;  %v1651_v1 = vld [vmem:[#allocation2 + $0x23] sm:$0xff] }
 0x216   : > { %1485 = vrot.lane.b32.xlu1 %v4290_v25, %s3557_s14  ;;  %1631 = vrot.lane.b32.xlu0 %v1555_v24, %s3559_s25 }
 0x218   : > { %v4312_v0 = vpop.permute.xlu1 %1325  ;;  %v4314_v7 = vpop.permute.xlu0 %1177 }
 0x219   : > { %7079 = vst [vmem:[#allocation102_spill] sm:$0xff] %v4312_v0  ;;  %7080 = vst [vmem:[#allocation103_spill] sm:$0xff] %v4314_v7 }
 0x21a   : > { %1489 = vrot.lane.b32.xlu1 %v4299_v60, %s3557_s14  ;;  %1635 = vrot.lane.b32.xlu0 %v3781_v62, %s3559_s25 }
 0x21c   : > { %v4320_v21 = vpop.permute.xlu1 %1345  ;;  %v4322_v40 = vpop.permute.xlu0 %1229 }
 0x21d   : > { %7081 = vst [vmem:[#allocation104_spill] sm:$0xff] %v4320_v21  ;;  %7082 = vst [vmem:[#allocation105_spill] sm:$0xff] %v4322_v40 }
 0x21e   : > { %1517 = vrot.lane.b32.xlu1 %v4290_v25, %s3558_s24  ;;  %1655 = vrot.lane.b32.xlu0 %v1651_v1, %s3556_s12 }
 0x220   : > { %v4327_v24 = vpop.permute.xlu1 %893  ;;  %v4329_v0 = vpop.permute.xlu0 %989 }
 0x221   : > { %7083 = vst [vmem:[#allocation106_spill] sm:$0xff] %v4327_v24  ;;  %7084 = vst [vmem:[#allocation107_spill] sm:$0xff] %v4329_v0 }
 0x222   : > { %1521 = vrot.lane.b32.xlu1 %v4299_v60, %s3558_s24  ;;  %1659 = vrot.lane.b32.xlu0 %v4104_v22, %s3556_s12 }
 0x224   : > { %v4335_v62 = vpop.permute.xlu1 %913  ;;  %v4337_v21 = vpop.permute.xlu0 %1041 }
 0x225   : > { %7085 = vst [vmem:[#allocation108_spill] sm:$0xff] %v4335_v62  ;;  %7086 = vst [vmem:[#allocation109_spill] sm:$0xff] %v4337_v21  ;;  %v4354_v21 = vld [vmem:[#allocation2 + $0x32] sm:$0xff] }
 0x226   : > { %1537 = vrot.lane.b32.xlu1 %v4290_v25, %s3559_s25  ;;  %1675 = vrot.lane.b32.xlu0 %v1651_v1, %s3557_s14 }
 0x228   : > { %v4342_v40 = vpop.permute.xlu1 %945  ;;  %v4344_v7 = vpop.permute.xlu0 %1181 }
 0x229   : > { %7087 = vst [vmem:[#allocation110_spill] sm:$0xff] %v4342_v40  ;;  %7088 = vst [vmem:[#allocation111_spill] sm:$0xff] %v4344_v7 }
 0x22a   : > { %1541 = vrot.lane.b32.xlu1 %v4299_v60, %s3559_s25  ;;  %1679 = vrot.lane.b32.xlu0 %v4104_v22, %s3557_s14 }
 0x22c   : > { %v4350_v0 = vpop.permute.xlu1 %965  ;;  %v4352_v24 = vpop.permute.xlu0 %1233 }
 0x22d   : > { %7089 = vst [vmem:[#allocation112_spill] sm:$0xff] %v4350_v0  ;;  %7090 = vst [vmem:[#allocation113_spill] sm:$0xff] %v4352_v24 }
 0x22e   : > { %1561 = vrot.lane.b32.xlu1 %v4354_v21, %s3556_s12  ;;  %1707 = vrot.lane.b32.xlu0 %v1651_v1, %s3558_s24 }
 0x230   : > { %v4359_v40 = vpop.permute.xlu1 %1009  ;;  %v4361_v7 = vpop.permute.xlu0 %1367 }
 0x231   : > { %7091 = vst [vmem:[#allocation114_spill] sm:$0xff] %v4359_v40  ;;  %7092 = vst [vmem:[#allocation115_spill] sm:$0xff] %v4361_v7 }
 0x232   : > { %1565 = vrot.lane.b32.xlu1 %v3779_v61, %s3556_s12  ;;  %1711 = vrot.lane.b32.xlu0 %v4104_v22, %s3558_s24 }
 0x234   : > { %v4367_v0 = vpop.permute.xlu1 %1061  ;;  %v4369_v24 = vpop.permute.xlu0 %1371 }
 0x235   : > { %7093 = vst [vmem:[#allocation116_spill] sm:$0xff] %v4367_v0  ;;  %7094 = vst [vmem:[#allocation117_spill] sm:$0xff] %v4369_v24  ;;  %v1747_v24 = vld [vmem:[#allocation2 + $0x24] sm:$0xff] }
 0x236   : > { %1581 = vrot.lane.b32.xlu1 %v4354_v21, %s3557_s14  ;;  %1727 = vrot.lane.b32.xlu0 %v1651_v1, %s3559_s25 }
 0x238   : > { %v4374_v62 = vpop.permute.xlu1 %1085  ;;  %v4376_v40 = vpop.permute.xlu0 %1387 }
 0x239   : > { %7095 = vst [vmem:[#allocation118_spill] sm:$0xff] %v4374_v62  ;;  %7096 = vst [vmem:[#allocation119_spill] sm:$0xff] %v4376_v40  ;;  %v4425_v40 = vld [vmem:[#allocation2 + $0x53] sm:$0xff] }
 0x23a   : > { %1585 = vrot.lane.b32.xlu1 %v3779_v61, %s3557_s14  ;;  %1731 = vrot.lane.b32.xlu0 %v4104_v22, %s3559_s25  ;;  %7110 = vst [vmem:[#allocation133_spill] sm:$0xff] %v4425_v40 }
 0x23c   : > { %v4382_v7 = vpop.permute.xlu1 %1105  ;;  %v4384_v0 = vpop.permute.xlu0 %1391 }
 0x23d   : > { %7097 = vst [vmem:[#allocation120_spill] sm:$0xff] %v4382_v7  ;;  %7098 = vst [vmem:[#allocation121_spill] sm:$0xff] %v4384_v0 }
 0x23e   : > { %1613 = vrot.lane.b32.xlu1 %v4354_v21, %s3558_s24  ;;  %1751 = vrot.lane.b32.xlu0 %v1747_v24, %s3556_s12 }
 0x240   : > { %v4389_v1 = vpop.permute.xlu1 %1137  ;;  %v4391_v62 = vpop.permute.xlu0 %1419 }
 0x241   : > { %7099 = vst [vmem:[#allocation122_spill] sm:$0xff] %v4389_v1  ;;  %7100 = vst [vmem:[#allocation123_spill] sm:$0xff] %v4391_v62 }
 0x242   : > { %1617 = vrot.lane.b32.xlu1 %v3779_v61, %s3558_s24  ;;  %1755 = vrot.lane.b32.xlu0 %v4190_v49, %s3556_s12 }
 0x244   : > { %v4397_v22 = vpop.permute.xlu1 %1157  ;;  %v4399_v7 = vpop.permute.xlu0 %1423 }
 0x245   : > { %7101 = vst [vmem:[#allocation124_spill] sm:$0xff] %v4397_v22  ;;  %7102 = vst [vmem:[#allocation125_spill] sm:$0xff] %v4399_v7  ;;  %v4416_v7 = vld [vmem:[#allocation2 + $0x33] sm:$0xff] }
 0x246   : > { %1633 = vrot.lane.b32.xlu1 %v4354_v21, %s3559_s25  ;;  %1771 = vrot.lane.b32.xlu0 %v1747_v24, %s3557_s14  ;;  %7107 = vst [vmem:[#allocation130_spill] sm:$0xff] %v4416_v7 }
 0x248   : > { %v4404_v0 = vpop.permute.xlu1 %1201  ;;  %v4406_v1 = vpop.permute.xlu0 %1439 }
 0x249   : > { %7103 = vst [vmem:[#allocation126_spill] sm:$0xff] %v4404_v0  ;;  %7104 = vst [vmem:[#allocation127_spill] sm:$0xff] %v4406_v1 }
 0x24a   : > { %1637 = vrot.lane.b32.xlu1 %v3779_v61, %s3559_s25  ;;  %1775 = vrot.lane.b32.xlu0 %v4190_v49, %s3557_s14 }
 0x24c   : > { %v4412_v62 = vpop.permute.xlu1 %1253  ;;  %v4414_v22 = vpop.permute.xlu0 %1443 }
 0x24d   : > { %7105 = vst [vmem:[#allocation128_spill] sm:$0xff] %v4412_v62  ;;  %7106 = vst [vmem:[#allocation129_spill] sm:$0xff] %v4414_v22  ;;  %v4489_v22 = vld [vmem:[#allocation2 + $0x34] sm:$0xff] }
 0x24e   : > { %1657 = vrot.lane.b32.xlu1 %v4416_v7, %s3556_s12  ;;  %1803 = vrot.lane.b32.xlu0 %v1747_v24, %s3558_s24  ;;  %7125 = vst [vmem:[#allocation148_spill] sm:$0xff] %v4489_v22 }
 0x250   : > { %v4421_v0 = vpop.permute.xlu1 %1277  ;;  %v4423_v1 = vpop.permute.xlu0 %1463 }
 0x251   : > { %7108 = vst [vmem:[#allocation131_spill] sm:$0xff] %v4421_v0  ;;  %7109 = vst [vmem:[#allocation132_spill] sm:$0xff] %v4423_v1 }
 0x252   : > { %1661 = vrot.lane.b32.xlu1 %v4425_v40, %s3556_s12  ;;  %1848 = vrot.lane.b32.xlu0 %v4224_v19, %s3556_s12 }
 0x254   : > { %v4431_v61 = vpop.permute.xlu1 %1297  ;;  %v4433_v49 = vpop.permute.xlu0 %1467 }
 0x255   : > { %7111 = vst [vmem:[#allocation134_spill] sm:$0xff] %v4431_v61  ;;  %7112 = vst [vmem:[#allocation135_spill] sm:$0xff] %v4433_v49 }
 0x256   : > { %1677 = vrot.lane.b32.xlu1 %v4416_v7, %s3557_s14  ;;  %1850 = vrot.lane.b32.xlu0 %v4066_v28, %s3556_s12 }
 0x258   : > { %v4439_v24 = vpop.permute.xlu1 %1329  ;;  %v4441_v0 = vpop.permute.xlu0 %1483 }
 0x259   : > { %7113 = vst [vmem:[#allocation136_spill] sm:$0xff] %v4439_v24  ;;  %7114 = vst [vmem:[#allocation137_spill] sm:$0xff] %v4441_v0 }
 0x25a   : > { %1681 = vrot.lane.b32.xlu1 %v4425_v40, %s3557_s14  ;;  %2329 = vrot.lane.b32.xlu0 %v4066_v28, %s3556_s12 }
 0x25c   : > { %v4447_v62 = vpop.permute.xlu1 %1349  ;;  %v4449_v61 = vpop.permute.xlu0 %1487 }
 0x25d   : > { %7115 = vst [vmem:[#allocation138_spill] sm:$0xff] %v4447_v62  ;;  %7116 = vst [vmem:[#allocation139_spill] sm:$0xff] %v4449_v61 }
 0x25e   : > { %1709 = vrot.lane.b32.xlu1 %v4416_v7, %s3558_s24  ;;  %2331 = vrot.lane.b32.xlu0 %v4234_v53, %s3556_s12 }
 0x260   : > { %v4455_v49 = vpop.permute.xlu1 %1369  ;;  %v4457_v24 = vpop.permute.xlu0 %1515 }
 0x261   : > { %7117 = vst [vmem:[#allocation140_spill] sm:$0xff] %v4455_v49  ;;  %7118 = vst [vmem:[#allocation141_spill] sm:$0xff] %v4457_v24  ;;  %v4479_v24 = vld [vmem:[#allocation2] sm:$0xff] }
 0x262   : > { %1713 = vrot.lane.b32.xlu1 %v4425_v40, %s3558_s24  ;;  %1852 = vrot.lane.b32.xlu0 %v4234_v53, %s3556_s12 }
 0x264   : > { %v4463_v0 = vpop.permute.xlu1 %1373  ;;  %v4465_v62 = vpop.permute.xlu0 %1519 }
 0x265   : > { %7119 = vst [vmem:[#allocation142_spill] sm:$0xff] %v4463_v0  ;;  %7120 = vst [vmem:[#allocation143_spill] sm:$0xff] %v4465_v62  ;;  %v4483_v0 = vpack.i.bf16 %v4479_v24, %v4479_v24 }
 0x266   : > { %1729 = vrot.lane.b32.xlu1 %v4416_v7, %s3559_s25  ;;  %1900 = vrot.lane.b32.xlu0 %v4224_v19, %s3558_s24 }
 0x268   : > { %v4471_v61 = vpop.permute.xlu1 %1389  ;;  %v4473_v49 = vpop.permute.xlu0 %1535 }
 0x269   : > { %7121 = vst [vmem:[#allocation144_spill] sm:$0xff] %v4471_v61  ;;  %7122 = vst [vmem:[#allocation145_spill] sm:$0xff] %v4473_v49 }
 0x26a   : > { %1733 = vrot.lane.b32.xlu1 %v4425_v40, %s3559_s25  ;;  %1920 = vrot.lane.b32.xlu0 %v4224_v19, %s3559_s25  ;;  %v3205_v40 = vunpack.i.h.bf16 %v3832_v8 }
 0x26c   : > { %v4485_v62 = vpop.permute.xlu1 %1393  ;;  %v4487_v1 = vpop.permute.xlu0 %1539 }
 0x26d   : > { %7123 = vst [vmem:[#allocation146_spill] sm:$0xff] %v4485_v62  ;;  %7124 = vst [vmem:[#allocation147_spill] sm:$0xff] %v4487_v1 }
 0x26e   : > { %1753 = vrot.lane.b32.xlu1 %v4489_v22, %s3556_s12  ;;  %3362 = vrot.lane.b32.xlu0 %v4483_v0, %s3557_s14 }
 0x270   : > { %v4495_v49 = vpop.permute.xlu1 %1421  ;;  %v4497_v61 = vpop.permute.xlu0 %1559 }
 0x271   : > { %7126 = vst [vmem:[#allocation149_spill] sm:$0xff] %v4495_v49  ;;  %7127 = vst [vmem:[#allocation150_spill] sm:$0xff] %v4497_v61 }
 0x272   : > { %1757 = vrot.lane.b32.xlu1 %v1750_v26, %s3556_s12  ;;  %1922 = vrot.lane.b32.xlu0 %v4066_v28, %s3559_s25 }
 0x274   : > { %v4502_v62 = vpop.permute.xlu1 %1425  ;;  %v4504_v1 = vpop.permute.xlu0 %1563 }
 0x275   : > { %7128 = vst [vmem:[#allocation151_spill] sm:$0xff] %v4502_v62  ;;  %7129 = vst [vmem:[#allocation152_spill] sm:$0xff] %v4504_v1 }
 0x276   : > { %1773 = vrot.lane.b32.xlu1 %v4489_v22, %s3557_s14  ;;  %1904 = vrot.lane.b32.xlu0 %v4234_v53, %s3558_s24 }
 0x278   : > { %v4510_v41 = vpop.permute.xlu1 %1441  ;;  %v4512_v49 = vpop.permute.xlu0 %1579 }
 0x279   : > { %7130 = vst [vmem:[#allocation153_spill] sm:$0xff] %v4510_v41  ;;  %7131 = vst [vmem:[#allocation154_spill] sm:$0xff] %v4512_v49 }
 0x27a   : > { %1777 = vrot.lane.b32.xlu1 %v1750_v26, %s3557_s14  ;;  %2401 = vrot.lane.b32.xlu0 %v4066_v28, %s3559_s25 }
 0x27c   : > { %v4517_v61 = vpop.permute.xlu1 %1445  ;;  %v4519_v62 = vpop.permute.xlu0 %1583 }
 0x27d   : > { %7132 = vst [vmem:[#allocation155_spill] sm:$0xff] %v4517_v61  ;;  %7133 = vst [vmem:[#allocation156_spill] sm:$0xff] %v4519_v62  ;;  %v4537_v62 = vld [vmem:[#allocation2 + $0x41] sm:$0xff] }
 0x27e   : > { %1805 = vrot.lane.b32.xlu1 %v4489_v22, %s3558_s24  ;;  %2403 = vrot.lane.b32.xlu0 %v4234_v53, %s3559_s25  ;;  %v3299_v22 = vunpack.i.l.bf16 %v3808_v3 }
 0x280   : > { %v4525_v1 = vpop.permute.xlu1 %1465  ;;  %v4527_v41 = vpop.permute.xlu0 %1611  ;;  %v899_v18 = vmul.f32 %v3299_v22, %v4045_v57  ;;  %v3309_v57 = vunpack.i.l.bf16 %v3822_v5 }
 0x281   : > { %7134 = vst [vmem:[#allocation157_spill] sm:$0xff] %v4525_v1  ;;  %7135 = vst [vmem:[#allocation158_spill] sm:$0xff] %v4527_v41 }
 0x282   : > { %1868 = vrot.lane.b32.xlu1 %v4224_v19, %s3557_s14  ;;  %1964 = vrot.lane.b32.xlu0 %v4290_v25, %s3557_s14  ;;  %v1943_v19 = vld [vmem:[#allocation2 + $0x61] sm:$0xff] }
 0x284   : > { %v4533_v26 = vpop.permute.xlu1 %1469  ;;  %v4535_v61 = vpop.permute.xlu0 %1615 }
 0x285   : > { %7136 = vst [vmem:[#allocation159_spill] sm:$0xff] %v4533_v26  ;;  %7137 = vst [vmem:[#allocation160_spill] sm:$0xff] %v4535_v61 }
 0x286   : > { %1870 = vrot.lane.b32.xlu1 %v4066_v28, %s3557_s14  ;;  %2425 = vrot.lane.b32.xlu0 %v4537_v62, %s3556_s12 }
 0x288   : > { %v4543_v1 = vpop.permute.xlu1 %1485  ;;  %v4545_v41 = vpop.permute.xlu0 %1631 }
 0x289   : > { %7138 = vst [vmem:[#allocation161_spill] sm:$0xff] %v4543_v1  ;;  %7139 = vst [vmem:[#allocation162_spill] sm:$0xff] %v4545_v41  ;;  %v4559_v1 = vpack.i.bf16 %v1943_v19, %v1943_v19  ;;  %v4577_v19 = vld [vmem:[#allocation2 + $0x62] sm:$0xff] }
 0x28a   : > { %2349 = vrot.lane.b32.xlu1 %v4066_v28, %s3557_s14  ;;  %2427 = vrot.lane.b32.xlu0 %v4299_v60, %s3556_s12 }
 0x28c   : > { %v4551_v61 = vpop.permute.xlu1 %1489  ;;  %v4553_v26 = vpop.permute.xlu0 %1635 }
 0x28d   : > { %7140 = vst [vmem:[#allocation163_spill] sm:$0xff] %v4551_v61  ;;  %7141 = vst [vmem:[#allocation164_spill] sm:$0xff] %v4553_v26 }
 0x28e   : > { %2351 = vrot.lane.b32.xlu1 %v4234_v53, %s3557_s14  ;;  %3372 = vrot.lane.b32.xlu0 %v4483_v0, %s3559_s25 }
 0x290   : > { %v4561_v41 = vpop.permute.xlu1 %1517  ;;  %v4563_v49 = vpop.permute.xlu0 %1655 }
 0x291   : > { %7142 = vst [vmem:[#allocation165_spill] sm:$0xff] %v4561_v41  ;;  %7143 = vst [vmem:[#allocation166_spill] sm:$0xff] %v4563_v49  ;;  %v2424_v41 = vld [vmem:[#allocation2 + $0x71] sm:$0xff] }
 0x292   : > { %1872 = vrot.lane.b32.xlu1 %v4234_v53, %s3557_s14  ;;  %3377 = vrot.lane.b32.xlu0 %v4559_v1, %s3556_s12 }
 0x294   : > { %v4569_v61 = vpop.permute.xlu1 %1521  ;;  %v4571_v26 = vpop.permute.xlu0 %1659 }
 0x295   : > { %7144 = vst [vmem:[#allocation167_spill] sm:$0xff] %v4569_v61  ;;  %7145 = vst [vmem:[#allocation168_spill] sm:$0xff] %v4571_v26  ;;  %v4588_v26 = vpack.i.bf16 %v4577_v19, %v2424_v41 }
 0x296   : > { %1902 = vrot.lane.b32.xlu1 %v4066_v28, %s3558_s24  ;;  %1968 = vrot.lane.b32.xlu0 %v4299_v60, %s3557_s14 }
 0x297   : > { %7148 = vst [vmem:[#allocation171_spill] sm:$0xff] %v4588_v26 }
 0x298   : > { %v4579_v49 = vpop.permute.xlu1 %1537  ;;  %v4581_v6 = vpop.permute.xlu0 %1675 }
 0x299   : > { %7146 = vst [vmem:[#allocation169_spill] sm:$0xff] %v4579_v49  ;;  %7147 = vst [vmem:[#allocation170_spill] sm:$0xff] %v4581_v6 }
 0x29a   : > { %3357 = vrot.lane.b32.xlu1 %v4483_v0, %s3556_s12  ;;  %3382 = vrot.lane.b32.xlu0 %v4559_v1, %s3557_s14 }
 0x29c   : > { %v4590_v61 = vpop.permute.xlu1 %1541  ;;  %v4592_v30 = vpop.permute.xlu0 %1679 }
 0x29d   : > { %7149 = vst [vmem:[#allocation172_spill] sm:$0xff] %v4590_v61  ;;  %7150 = vst [vmem:[#allocation173_spill] sm:$0xff] %v4592_v30 }
 0x29e   : > { %2381 = vrot.lane.b32.xlu1 %v4066_v28, %s3558_s24  ;;  %3387 = vrot.lane.b32.xlu0 %v4588_v26, %s3556_s12 }
 0x2a0   : > { %v4598_v49 = vpop.permute.xlu1 %1561  ;;  %v4600_v6 = vpop.permute.xlu0 %1707 }
 0x2a1   : > { %7151 = vst [vmem:[#allocation174_spill] sm:$0xff] %v4598_v49  ;;  %7152 = vst [vmem:[#allocation175_spill] sm:$0xff] %v4600_v6 }
 0x2a2   : > { %2383 = vrot.lane.b32.xlu1 %v4234_v53, %s3558_s24  ;;  %2477 = vrot.lane.b32.xlu0 %v4537_v62, %s3558_s24 }
 0x2a4   : > { %v4606_v41 = vpop.permute.xlu1 %1565  ;;  %v4608_v61 = vpop.permute.xlu0 %1711 }
 0x2a5   : > { %7153 = vst [vmem:[#allocation176_spill] sm:$0xff] %v4606_v41  ;;  %7154 = vst [vmem:[#allocation177_spill] sm:$0xff] %v4608_v61  ;;  %v3199_v41 = vunpack.i.l.bf16 %v3729_v44  ;;  %v3204_v61 = vunpack.i.l.bf16 %v3832_v8  ;;  %v439_v8 = vmul.f32 %v3205_v40, %v3937_v38 }
 0x2a6   : > { %1944 = vrot.lane.b32.xlu1 %v4290_v25, %s3556_s12  ;;  %3392 = vrot.lane.b32.xlu0 %v4588_v26, %s3557_s14 }
 0x2a7   : > { %v418_v26 = vmul.f32 %v3199_v41, %v3934_v37  ;;  %v451_v41 = vmul.f32 %v4479_v24, %v3940_v39 }
 0x2a8   : > { %v4614_v28 = vpop.permute.xlu1 %1581  ;;  %v4616_v30 = vpop.permute.xlu0 %1727 }
 0x2a9   : > { %7155 = vst [vmem:[#allocation178_spill] sm:$0xff] %v4614_v28  ;;  %7156 = vst [vmem:[#allocation179_spill] sm:$0xff] %v4616_v30  ;;  %v3304_v28 = vunpack.i.l.bf16 %v3817_v4  ;;  %v3200_v30 = vunpack.i.h.bf16 %v3729_v44 }
 0x2aa   : > { %1946 = vrot.lane.b32.xlu1 %v4537_v62, %s3556_s12  ;;  %2000 = vrot.lane.b32.xlu0 %v4299_v60, %s3558_s24 }
 0x2ab   : > { %v919_v27 = vmul.f32 %v3304_v28, %v4048_v29  ;;  %v419_v44 = vmul.f32 %v3200_v30, %v3934_v37  ;;  %v3210_v30 = vunpack.i.h.bf16 %v3739_v50  ;;  %v951_v29 = vmul.f32 %v3309_v57, %v4062_v63 }
 0x2ac   : > { %v4624_v6 = vpop.permute.xlu1 %1585  ;;  %v4626_v49 = vpop.permute.xlu0 %1731 }
 0x2ad   : > { %7157 = vst [vmem:[#allocation180_spill] sm:$0xff] %v4624_v6  ;;  %7158 = vst [vmem:[#allocation181_spill] sm:$0xff] %v4626_v49  ;;  %v438_v6 = vmul.f32 %v3204_v61, %v3937_v38  ;;  %v3209_v61 = vunpack.i.l.bf16 %v3739_v50  ;;  %v443_v40 = vadd.f32 %v439_v8, %v419_v44  ;;  %v3314_v38 = vunpack.i.l.bf16 %v3838_v9 }
 0x2ae   : > { %1924 = vrot.lane.b32.xlu1 %v4234_v53, %s3559_s25  ;;  %2497 = vrot.lane.b32.xlu0 %v4537_v62, %s3559_s25  ;;  %v4644_v53 = vld [vmem:[#allocation2 + $0x42] sm:$0xff]  ;;  %v471_v50 = vmul.f32 %v3210_v30, %v3951_v46  ;;  %v3215_v8 = vunpack.i.h.bf16 %v3844_v10 }
 0x2af   : > { %v442_v22 = vadd.f32 %v438_v6, %v418_v26  ;;  %v470_v6 = vmul.f32 %v3209_v61, %v3951_v46  ;;  %v455_v44 = vadd.f32 %v451_v41, %v443_v40  ;;  %v3219_v61 = vunpack.i.l.bf16 %v3742_v51 }
 0x2b0   : > { %v4638_v7 = vpop.permute.xlu1 %1613  ;;  %v4640_v49 = vpop.permute.xlu0 %1751  ;;  %v971_v63 = vmul.f32 %v3314_v38, %v4076_v15  ;;  %v3329_v15 = vunpack.i.l.bf16 %v3866_v16 }
 0x2b1   : > { %7159 = vst [vmem:[#allocation182_spill] sm:$0xff] %v4638_v7  ;;  %7160 = vst [vmem:[#allocation183_spill] sm:$0xff] %v4640_v49  ;;  %v923_v7 = vadd.f32 %v919_v27, %v899_v18  ;;  %v454_v26 = vadd.f32 %v451_v41, %v442_v22  ;;  %v491_v41 = vmul.f32 %v3215_v8, %v3964_v34 }
 0x2b2   : > { %3367 = vrot.lane.b32.xlu1 %v4483_v0, %s3558_s24  ;;  %2042 = vrot.lane.b32.xlu0 %v4644_v53, %s3556_s12  ;;  %v931_v0 = vmul.f32 %v4479_v24, %v4051_v2  ;;  %v514_v30 = vmul.f32 %v3219_v61, %v3972_v43 }
 0x2b3   : > { %v474_v22 = vadd.f32 %v470_v6, %v454_v26  ;;  %v3224_v6 = vunpack.i.l.bf16 %v3852_v12 }
 0x2b4   : > { %v4655_v49 = vpop.permute.xlu1 %1617  ;;  %v4657_v28 = vpop.permute.xlu0 %1755 }
 0x2b5   : > { %7161 = vst [vmem:[#allocation184_spill] sm:$0xff] %v4655_v49  ;;  %7162 = vst [vmem:[#allocation185_spill] sm:$0xff] %v4657_v28  ;;  %v3214_v28 = vunpack.i.l.bf16 %v3844_v10  ;;  %v935_v49 = vadd.f32 %v931_v0, %v923_v7  ;;  %v3220_v10 = vunpack.i.h.bf16 %v3742_v51  ;;  %v534_v61 = vmul.f32 %v3224_v6, %v3980_v33 }
 0x2b6   : > { %1966 = vrot.lane.b32.xlu1 %v4537_v62, %s3557_s14  ;;  %2020 = vrot.lane.b32.xlu0 %v4299_v60, %s3559_s25 }
 0x2b7   : > { %v490_v7 = vmul.f32 %v3214_v28, %v3964_v34  ;;  %v475_v28 = vadd.f32 %v471_v50, %v455_v44  ;;  %v515_v51 = vmul.f32 %v3220_v10, %v3972_v43  ;;  %v3225_v44 = vunpack.i.h.bf16 %v3852_v12  ;;  %v4724_v12 = vld [vmem:[%s6810_s3 + $0x8] sm:$0xff] }
 0x2b8   : > { %v4669_v18 = vpop.permute.xlu1 %1633  ;;  %v4671_v27 = vpop.permute.xlu0 %1771  ;;  %v4729_v10 = vrot.slane %v4724_v12, %v3925_v35 }
 0x2b9   : > { %7163 = vst [vmem:[#allocation186_spill] sm:$0xff] %v4669_v18  ;;  %7164 = vst [vmem:[#allocation187_spill] sm:$0xff] %v4671_v27  ;;  %v3300_v27 = vunpack.i.h.bf16 %v3808_v3  ;;  %v955_v18 = vadd.f32 %v951_v29, %v935_v49  ;;  %v494_v40 = vadd.f32 %v490_v7, %v474_v22  ;;  %v3305_v49 = vunpack.i.h.bf16 %v3817_v4 }
 0x2ba   : > { %1948 = vrot.lane.b32.xlu1 %v4299_v60, %s3556_s12  ;;  %2521 = vrot.lane.b32.xlu0 %v4644_v53, %s3556_s12  ;;  %v495_v50 = vadd.f32 %v491_v41, %v475_v28  ;;  %v535_v22 = vmul.f32 %v3225_v44, %v3980_v33  ;;  %7171 = vst [vmem:[#allocation194_spill] sm:$0xff] %v4729_v10  ;;  %v3229_v41 = vunpack.i.l.bf16 %v3756_v54  ;;  %v3492_v28 = vld [vmem:[#allocation2 + $0x1] sm:$0xff]  ;;  %v3254_v33 = vunpack.i.l.bf16 %v3880_v20 }
 0x2bb   : > { %v995_v38 = vmul.f32 %v3300_v27, %v4081_v59  ;;  %v975_v26 = vadd.f32 %v971_v63, %v955_v18  ;;  %v518_v8 = vadd.f32 %v514_v30, %v494_v40  ;;  %v1015_v63 = vmul.f32 %v3305_v49, %v4094_v32 }
 0x2bc   : > { %v4683_v0 = vpop.permute.xlu1 %1637  ;;  %v4685_v57 = vpop.permute.xlu0 %1775  ;;  %v519_v7 = vadd.f32 %v515_v51, %v495_v50  ;;  %v546_v30 = vmul.f32 %v3492_v28, %v3983_v48  ;;  %v4739_v49 = vrot.slane %v4087_v23, %v3927_v36  ;;  %v3493_v51 = vld [vmem:[#allocation2 + $0x11] sm:$0xff]  ;;  %v4826_v59 = vrot.slane %v4724_v12, %v3953_v47 }
 0x2bd   : > { %7165 = vst [vmem:[#allocation188_spill] sm:$0xff] %v4683_v0  ;;  %7166 = vst [vmem:[#allocation189_spill] sm:$0xff] %v4685_v57  ;;  %v4703_v57 = vld [vmem:[#allocation2 + $0x52] sm:$0xff]  ;;  %v999_v18 = vadd.f32 %v995_v38, %v975_v26  ;;  %v538_v40 = vadd.f32 %v534_v61, %v518_v8  ;;  %v3310_v26 = vunpack.i.h.bf16 %v3822_v5  ;;  %v1027_v50 = vmul.f32 %v3493_v51, %v4098_v52 }
 0x2be   : > { %2445 = vrot.lane.b32.xlu1 %v4537_v62, %s3557_s14  ;;  %2062 = vrot.lane.b32.xlu0 %v4644_v53, %s3557_s14  ;;  %7174 = vst [vmem:[#allocation197_spill] sm:$0xff] %v4739_v49  ;;  %v3230_v8 = vunpack.i.h.bf16 %v3756_v54  ;;  %v547_v61 = vmul.f32 %v3493_v51, %v3983_v48  ;;  %v539_v28 = vadd.f32 %v535_v22, %v519_v7  ;;  %v3315_v22 = vunpack.i.h.bf16 %v3838_v9  ;;  %v2520_v51 = vld [vmem:[#allocation2 + $0x72] sm:$0xff] }
 0x2bf   : > { %v1019_v44 = vadd.f32 %v1015_v63, %v999_v18  ;;  %v550_v0 = vadd.f32 %v546_v30, %v538_v40  ;;  %v4752_v5 = vrot.slane %v4724_v12, %v3927_v36  ;;  %v3234_v63 = vunpack.i.l.bf16 %v3859_v14 }
 0x2c0   : > { %v4697_v3 = vpop.permute.xlu1 %1657  ;;  %v4699_v29 = vpop.permute.xlu0 %1803  ;;  %v4762_v54 = vrot.slane %v4087_v23, %v3920_v31  ;;  %v551_v30 = vadd.f32 %v547_v61, %v539_v28  ;;  %v3235_v40 = vunpack.i.h.bf16 %v3859_v14  ;;  %v4784_v14 = vrot.slane %v4087_v23, %v3942_v42 }
 0x2c1   : > { %7167 = vst [vmem:[#allocation190_spill] sm:$0xff] %v4697_v3  ;;  %7168 = vst [vmem:[#allocation191_spill] sm:$0xff] %v4699_v29  ;;  %v1031_v7 = vadd.f32 %v1027_v50, %v1019_v44  ;;  %v586_v50 = vmul.f32 %v3234_v63, %v4752_v5  ;;  %v3319_v61 = vunpack.i.l.bf16 %v3846_v11 }
 0x2c2   : > { %2447 = vrot.lane.b32.xlu1 %v4299_v60, %s3557_s14  ;;  %2523 = vrot.lane.b32.xlu0 %v4703_v57, %s3556_s12  ;;  %7175 = vst [vmem:[#allocation198_spill] sm:$0xff] %v4752_v5  ;;  %7177 = vst [vmem:[#allocation200_spill] sm:$0xff] %v4762_v54  ;;  %v1067_v3 = vmul.f32 %v3315_v22, %v4762_v54  ;;  %v587_v28 = vmul.f32 %v3235_v40, %v4752_v5  ;;  %v3245_v40 = vunpack.i.h.bf16 %v3868_v17 }
 0x2c3   : > { %7181 = vst [vmem:[#allocation204_spill] sm:$0xff] %v4784_v14 }
 0x2c4   : > { %v4712_v27 = vpop.permute.xlu1 %1661  ;;  %v4714_v4 = vpop.permute.xlu0 %1848 }
 0x2c5   : > { %7169 = vst [vmem:[#allocation192_spill] sm:$0xff] %v4712_v27  ;;  %7170 = vst [vmem:[#allocation193_spill] sm:$0xff] %v4714_v4  ;;  %v566_v27 = vmul.f32 %v3229_v41, %v4729_v10  ;;  %v567_v41 = vmul.f32 %v3230_v8, %v4729_v10  ;;  %v7243_v10 = vld [vmem:[#allocation14_spill] sm:$0xff] }
 0x2c6   : > { %1996 = vrot.lane.b32.xlu1 %v4290_v25, %s3558_s24  ;;  %2541 = vrot.lane.b32.xlu0 %v4644_v53, %s3557_s14 }
 0x2c7   : > { %v570_v9 = vadd.f32 %v566_v27, %v550_v0  ;;  %v4792_v0 = vpack.i.bf16 %v2520_v51, %v4577_v19  ;;  %v3240_v27 = vunpack.i.h.bf16 %v3762_v55  ;;  %v1091_v51 = vmul.f32 %v3319_v61, %v4784_v14 }
 0x2c8   : > { %v4733_v6 = vpop.permute.xlu1 %1677  ;;  %v4735_v38 = vpop.permute.xlu0 %1850 }
 0x2c9   : > { %7172 = vst [vmem:[#allocation195_spill] sm:$0xff] %v4733_v6  ;;  %7173 = vst [vmem:[#allocation196_spill] sm:$0xff] %v4735_v38  ;;  %v1047_v6 = vmul.f32 %v3310_v26, %v4739_v49  ;;  %v4773_v26 = vrot.slane %v4724_v12, %v3920_v31  ;;  %v590_v22 = vadd.f32 %v586_v50, %v570_v9 }
 0x2ca   : > { %1998 = vrot.lane.b32.xlu1 %v4537_v62, %s3558_s24  ;;  %2543 = vrot.lane.b32.xlu0 %v4703_v57, %s3557_s14 }
 0x2cb   : > { %7178 = vst [vmem:[#allocation201_spill] sm:$0xff] %v4773_v26  ;;  %v1051_v8 = vadd.f32 %v1047_v6, %v1031_v7  ;;  %v571_v6 = vadd.f32 %v567_v41, %v551_v30  ;;  %v4799_v7 = vrot.slane %v4724_v12, %v3942_v42  ;;  %v611_v41 = vmul.f32 %v3240_v27, %v4773_v26 }
 0x2cc   : > { %v4755_v18 = vpop.permute.xlu1 %1681  ;;  %v4757_v29 = vpop.permute.xlu0 %2329 }
 0x2cd   : > { %7176 = vst [vmem:[#allocation199_spill] sm:$0xff] %v4755_v18  ;;  %v3239_v18 = vunpack.i.l.bf16 %v3762_v55  ;;  %7182 = vst [vmem:[#allocation205_spill] sm:$0xff] %v4799_v7  ;;  %v1071_v19 = vadd.f32 %v1067_v3, %v1051_v8  ;;  %v4809_v55 = vrot.slane %v4087_v23, %v3953_v47  ;;  %v591_v30 = vadd.f32 %v587_v28, %v571_v6 }
 0x2ce   : > { %2016 = vrot.lane.b32.xlu1 %v4290_v25, %s3559_s25  ;;  %2092 = vrot.lane.b32.xlu0 %v4354_v21, %s3558_s24  ;;  %v4835_v28 = vrot.slane %v4087_v23, %v3957_v58  ;;  %v4839_v6 = vrot.slane %v4724_v12, %v3957_v58 }
 0x2cf   : > { %v610_v63 = vmul.f32 %v3239_v18, %v4773_v26  ;;  %7184 = vst [vmem:[#allocation207_spill] sm:$0xff] %v4809_v55  ;;  %v3324_v18 = vunpack.i.l.bf16 %v3854_v13  ;;  %v1095_v61 = vadd.f32 %v1091_v51, %v1071_v19  ;;  %v615_v27 = vadd.f32 %v611_v41, %v591_v30  ;;  %v3495_v41 = vld [vmem:[#allocation2 + $0x12] sm:$0xff] }
 0x2d0   : > { %v4777_v44 = vpop.permute.xlu1 %1709  ;;  %v4779_v25 = vpop.permute.xlu0 %2331  ;;  %7187 = vst [vmem:[#allocation210_spill] sm:$0xff] %v4839_v6  ;;  %v1123_v30 = vmul.f32 %v3495_v41, %v4835_v28 }
 0x2d1   : > { %7179 = vst [vmem:[#allocation202_spill] sm:$0xff] %v4777_v44  ;;  %7180 = vst [vmem:[#allocation203_spill] sm:$0xff] %v4779_v25  ;;  %v614_v3 = vadd.f32 %v610_v63, %v590_v22  ;;  %v3249_v63 = vunpack.i.l.bf16 %v3772_v56  ;;  %v3494_v22 = vld [vmem:[#allocation2 + $0x2] sm:$0xff] }
 0x2d2   : > { %2018 = vrot.lane.b32.xlu1 %v4537_v62, %s3559_s25  ;;  %2094 = vrot.lane.b32.xlu0 %v4644_v53, %s3558_s24  ;;  %v3244_v62 = vunpack.i.l.bf16 %v3868_v17  ;;  %v631_v17 = vmul.f32 %v3245_v40, %v4799_v7 }
 0x2d4   : > { %v4802_v44 = vpop.permute.xlu1 %1713  ;;  %v4804_v32 = vpop.permute.xlu0 %1852  ;;  %v630_v9 = vmul.f32 %v3244_v62, %v4799_v7  ;;  %v642_v62 = vmul.f32 %v3494_v22, %v4826_v59 }
 0x2d5   : > { %7183 = vst [vmem:[#allocation206_spill] sm:$0xff] %v4802_v44  ;;  %v1111_v44 = vmul.f32 %v3324_v18, %v4809_v55 }
 0x2d6   : > { %2479 = vrot.lane.b32.xlu1 %v4299_v60, %s3558_s24  ;;  %3422 = vrot.lane.b32.xlu0 %v4792_v0, %s3557_s14  ;;  %v634_v19 = vadd.f32 %v630_v9, %v614_v3  ;;  %v3250_v3 = vunpack.i.h.bf16 %v3772_v56  ;;  %v643_v9 = vmul.f32 %v3495_v41, %v4826_v59  ;;  %v7193_v56 = vld [vmem:[#allocation26_spill] sm:$0xff] }
 0x2d7   : > { %v1115_v40 = vadd.f32 %v1111_v44, %v1095_v61  ;;  %v635_v44 = vadd.f32 %v631_v17, %v615_v27  ;;  %v662_v61 = vmul.f32 %v3249_v63, %v4839_v6  ;;  %v4872_v41 = vrot.slane %v4087_v23, %v7193_v56  ;;  %v7195_v17 = vld [vmem:[#allocation7_spill] sm:$0xff] }
 0x2d8   : > { %v4819_v50 = vpop.permute.xlu1 %1729  ;;  %v4821_v8 = vpop.permute.xlu0 %1900  ;;  %v646_v22 = vadd.f32 %v642_v62, %v634_v19  ;;  %v3334_v27 = vunpack.i.l.bf16 %v7195_v17  ;;  %v663_v63 = vmul.f32 %v3250_v3, %v4839_v6  ;;  %v3255_v19 = vunpack.i.h.bf16 %v3880_v20 }
 0x2d9   : > { %7185 = vst [vmem:[#allocation208_spill] sm:$0xff] %v4819_v50  ;;  %7186 = vst [vmem:[#allocation209_spill] sm:$0xff] %v4821_v8  ;;  %v4850_v50 = vrot.slane %v4087_v23, %v3974_v45  ;;  %v1127_v34 = vadd.f32 %v1123_v30, %v1115_v40  ;;  %v647_v62 = vadd.f32 %v643_v9, %v635_v44  ;;  %v7197_v40 = vld [vmem:[#allocation3_spill] sm:$0xff]  ;;  %v4889_v30 = vld [vmem:[%s6810_s3 + $0x28] sm:$0xff] }
 0x2da   : > { %2040 = vrot.lane.b32.xlu1 %v4354_v21, %s3556_s12  ;;  %2114 = vrot.lane.b32.xlu0 %v4644_v53, %s3559_s25  ;;  %7194 = vst [vmem:[#allocation216_spill] sm:$0xff] %v4872_v41  ;;  %v3259_v23 = vunpack.i.l.bf16 %v7197_v40  ;;  %v4898_v20 = vrot.slane %v4889_v30, %v3925_v35  ;;  %v1163_v44 = vmul.f32 %v3334_v27, %v4872_v41  ;;  %v7202_v27 = vld [vmem:[#allocation9_spill] sm:$0xff] }
 0x2db   : > { %7190 = vst [vmem:[#allocation213_spill] sm:$0xff] %v4850_v50  ;;  %v1143_v46 = vmul.f32 %v3329_v15, %v4850_v50  ;;  %v4883_v15 = vrot.slane %v4724_v12, %v7193_v56  ;;  %v3264_v41 = vunpack.i.l.bf16 %v7202_v27  ;;  %v4926_v37 = vrot.slane %v4889_v30, %v3927_v36 }
 0x2dc   : > { %v4843_v51 = vpop.permute.xlu1 %1733  ;;  %v4845_v18 = vpop.permute.xlu0 %1920  ;;  %7200 = vst [vmem:[#allocation218_spill] sm:$0xff] %v4898_v20 }
 0x2dd   : > { %7188 = vst [vmem:[#allocation211_spill] sm:$0xff] %v4843_v51  ;;  %7189 = vst [vmem:[#allocation212_spill] sm:$0xff] %v4845_v18  ;;  %v4862_v51 = vrot.slane %v4724_v12, %v3974_v45  ;;  %v3320_v12 = vunpack.i.h.bf16 %v3846_v11  ;;  %v1147_v9 = vadd.f32 %v1143_v46, %v1127_v34  ;;  %v706_v11 = vmul.f32 %v3259_v23, %v4883_v15 }
 0x2de   : > { %3397 = vrot.lane.b32.xlu1 %v4559_v1, %s3558_s24  ;;  %2096 = vrot.lane.b32.xlu0 %v4703_v57, %s3558_s24  ;;  %7196 = vst [vmem:[#allocation7_spill] sm:$0xff] %v4883_v15  ;;  %7204 = vst [vmem:[#allocation220_spill] sm:$0xff] %v4926_v37 }
 0x2df   : > { %7191 = vst [vmem:[#allocation214_spill] sm:$0xff] %v4862_v51  ;;  %v1187_v54 = vmul.f32 %v3320_v12, %v4898_v20 }
 0x2e0   : > { %v4865_v43 = vpop.permute.xlu1 %1753  ;;  %v4867_v55 = vpop.permute.xlu0 %3362 }
 0x2e1   : > { %7192 = vst [vmem:[#allocation215_spill] sm:$0xff] %v4865_v43  ;;  %v682_v43 = vmul.f32 %v3254_v33, %v4862_v51  ;;  %v3260_v33 = vunpack.i.h.bf16 %v7197_v40 }
 0x2e2   : > { %2499 = vrot.lane.b32.xlu1 %v4299_v60, %s3559_s25  ;;  %2593 = vrot.lane.b32.xlu0 %v4644_v53, %s3559_s25  ;;  %v666_v60 = vadd.f32 %v662_v61, %v646_v22  ;;  %v4910_v61 = vld [vmem:[%s6810_s3 + $0x10] sm:$0xff]  ;;  %v683_v22 = vmul.f32 %v3255_v19, %v4862_v51 }
 0x2e3   : > { %v4916_v34 = vrot.slane %v4910_v61, %v3925_v35  ;;  %v707_v19 = vmul.f32 %v3260_v33, %v4883_v15  ;;  %v4968_v15 = vrot.slane %v4889_v30, %v3942_v42  ;;  %v5067_v5 = vrot.slane %v4910_v61, %v3974_v45 }
 0x2e4   : > { %v4892_v50 = vpop.permute.xlu1 %1757  ;;  %v4894_v3 = vpop.permute.xlu0 %1922  ;;  %v686_v46 = vadd.f32 %v682_v43, %v666_v60  ;;  %v7205_v43 = vld [vmem:[#allocation130_spill] sm:$0xff]  ;;  %v3265_v60 = vunpack.i.h.bf16 %v7202_v27  ;;  %v3496_v27 = vld [vmem:[#allocation2 + $0x3] sm:$0xff] }
 0x2e5   : > { %7198 = vst [vmem:[#allocation3_spill] sm:$0xff] %v4892_v50  ;;  %7199 = vst [vmem:[#allocation217_spill] sm:$0xff] %v4894_v3  ;;  %v667_v50 = vadd.f32 %v663_v63, %v647_v62  ;;  %v3325_v63 = vunpack.i.h.bf16 %v3854_v13  ;;  %v1167_v62 = vadd.f32 %v1163_v44, %v1147_v9  ;;  %v726_v12 = vmul.f32 %v3264_v41, %v4916_v34  ;;  %v4941_v44 = vld [vmem:[#allocation2 + $0x43] sm:$0xff] }
 0x2e6   : > { %2060 = vrot.lane.b32.xlu1 %v4354_v21, %s3557_s14  ;;  %2595 = vrot.lane.b32.xlu0 %v4703_v57, %s3559_s25  ;;  %7201 = vst [vmem:[#allocation219_spill] sm:$0xff] %v4916_v34  ;;  %v4953_v41 = vrot.slane %v4889_v30, %v3920_v31  ;;  %v727_v33 = vmul.f32 %v3265_v60, %v4916_v34  ;;  %7212 = vst [vmem:[#allocation222_spill] sm:$0xff] %v4968_v15 }
 0x2e7   : > { %v687_v23 = vadd.f32 %v683_v22, %v667_v50  ;;  %v1207_v13 = vmul.f32 %v3325_v63, %v4926_v37  ;;  %v1191_v9 = vadd.f32 %v1187_v54, %v1167_v62  ;;  %v7207_v50 = vld [vmem:[#allocation171_spill] sm:$0xff]  ;;  %v4958_v54 = vrot.slane %v4910_v61, %v3920_v31 }
 0x2e8   : > { %v4919_v14 = vpop.permute.xlu1 %1773  ;;  %v4921_v40 = vpop.permute.xlu0 %1904 }
 0x2e9   : > { %7203 = vst [vmem:[#allocation9_spill] sm:$0xff] %v4919_v14  ;;  %v710_v14 = vadd.f32 %v706_v11, %v686_v46  ;;  %v711_v22 = vadd.f32 %v707_v19, %v687_v23  ;;  %7208 = vst [vmem:[#allocation171_spill] sm:$0xff] %v4958_v54  ;;  %v7209_v11 = vld [vmem:[#allocation4_spill] sm:$0xff]  ;;  %v3330_v19 = vunpack.i.h.bf16 %v3866_v16  ;;  %v3497_v23 = vld [vmem:[#allocation2 + $0x13] sm:$0xff]  ;;  %v1211_v34 = vadd.f32 %v1207_v13, %v1191_v9 }
 0x2ea   : > { %3402 = vrot.lane.b32.xlu1 %v4559_v1, %s3559_s25  ;;  %2156 = vrot.lane.b32.xlu0 %v7205_v43, %s3557_s14  ;;  %v4945_v1 = vrot.slane %v4910_v61, %v3927_v36  ;;  %v3269_v46 = vunpack.i.l.bf16 %v7209_v11  ;;  %v1219_v60 = vmul.f32 %v3497_v23, %v4953_v41  ;;  %v4981_v16 = vrot.slane %v4910_v61, %v3942_v42  ;;  %v7215_v13 = vld [vmem:[#allocation11_spill] sm:$0xff] }
 0x2eb   : > { %v730_v62 = vadd.f32 %v726_v12, %v710_v14  ;;  %v3270_v14 = vunpack.i.h.bf16 %v7209_v11  ;;  %v3274_v9 = vunpack.i.l.bf16 %v7215_v13  ;;  %v1239_v7 = vmul.f32 %v3330_v19, %v4968_v15  ;;  %v7221_v15 = vld [vmem:[#allocation5_spill] sm:$0xff] }
 0x2ec   : > { %v4936_v20 = vpop.permute.xlu1 %1777  ;;  %v4938_v49 = vpop.permute.xlu0 %2401  ;;  %v738_v63 = vmul.f32 %v3496_v27, %v4945_v1  ;;  %v7213_v27 = vld [vmem:[#allocation133_spill] sm:$0xff]  ;;  %v739_v12 = vmul.f32 %v3497_v23, %v4945_v1  ;;  %v758_v51 = vmul.f32 %v3269_v46, %v4958_v54  ;;  %v4991_v11 = vrot.slane %v4889_v30, %v3953_v47 }
 0x2ed   : > { %7206 = vst [vmem:[#allocation130_spill] sm:$0xff] %v4936_v20  ;;  %7214 = vst [vmem:[#allocation133_spill] sm:$0xff] %v4981_v16  ;;  %v3275_v19 = vunpack.i.h.bf16 %v7215_v13  ;;  %v5004_v23 = vrot.slane %v4910_v61, %v3953_v47 }
 0x2ee   : > { %3407 = vrot.lane.b32.xlu1 %v7207_v50, %s3558_s24  ;;  %2617 = vrot.lane.b32.xlu0 %v4941_v44, %s3556_s12  ;;  %v742_v6 = vadd.f32 %v738_v63, %v730_v62  ;;  %7218 = vst [vmem:[#allocation224_spill] sm:$0xff] %v4991_v11  ;;  %v759_v63 = vmul.f32 %v3270_v14, %v4958_v54  ;;  %v7225_v14 = vld [vmem:[#allocation8_spill] sm:$0xff] }
 0x2ef   : > { %7220 = vst [vmem:[#allocation226_spill] sm:$0xff] %v5004_v23 }
 0x2f0   : > { %v4962_v20 = vpop.permute.xlu1 %1805  ;;  %v4964_v37 = vpop.permute.xlu0 %2403 }
 0x2f1   : > { %7210 = vst [vmem:[#allocation4_spill] sm:$0xff] %v4962_v20  ;;  %7211 = vst [vmem:[#allocation221_spill] sm:$0xff] %v4964_v37  ;;  %v731_v20 = vadd.f32 %v727_v33, %v711_v22  ;;  %v2135_v37 = vld [vmem:[#allocation2 + $0x63] sm:$0xff]  ;;  %v3335_v33 = vunpack.i.h.bf16 %v7195_v17  ;;  %v1223_v22 = vadd.f32 %v1219_v60, %v1211_v34  ;;  %v3279_v17 = vunpack.i.l.bf16 %v7221_v15 }
 0x2f2   : > { %2044 = vrot.lane.b32.xlu1 %v4703_v57, %s3556_s12  ;;  %2619 = vrot.lane.b32.xlu0 %v7213_v27, %s3556_s12  ;;  %v4998_v46 = vpack.i.bf16 %v2135_v37, %v2135_v37  ;;  %v762_v34 = vadd.f32 %v758_v51, %v742_v6  ;;  %v778_v60 = vmul.f32 %v3274_v9, %v4981_v16  ;;  %v3280_v6 = vunpack.i.h.bf16 %v7221_v15  ;;  %v5037_v15 = vld [vmem:[%s6810_s3 + $0x48] sm:$0xff] }
 0x2f3   : > { %v743_v62 = vadd.f32 %v739_v12, %v731_v20  ;;  %v1259_v37 = vmul.f32 %v3335_v33, %v4991_v11  ;;  %v1243_v3 = vadd.f32 %v1239_v7, %v1223_v22  ;;  %v5015_v20 = vrot.slane %v4889_v30, %v3957_v58  ;;  %v7227_v22 = vld [vmem:[#allocation13_spill] sm:$0xff] }
 0x2f4   : > { %v4984_v18 = vpop.permute.xlu1 %1868  ;;  %v4986_v25 = vpop.permute.xlu0 %1964  ;;  %7219 = vst [vmem:[#allocation225_spill] sm:$0xff] %v4998_v46  ;;  %v3339_v12 = vunpack.i.l.bf16 %v7225_v14  ;;  %v779_v51 = vmul.f32 %v3275_v19, %v4981_v16  ;;  %v802_v9 = vmul.f32 %v3279_v17, %v5004_v23  ;;  %v782_v7 = vadd.f32 %v778_v60, %v762_v34  ;;  %v7230_v19 = vld [vmem:[#allocation10_spill] sm:$0xff] }
 0x2f5   : > { %7216 = vst [vmem:[#allocation11_spill] sm:$0xff] %v4984_v18  ;;  %7217 = vst [vmem:[#allocation223_spill] sm:$0xff] %v4986_v25  ;;  %v763_v13 = vadd.f32 %v759_v63, %v743_v62  ;;  %v5027_v33 = vrot.slane %v4910_v61, %v3957_v58  ;;  %v3284_v11 = vunpack.i.l.bf16 %v7227_v22  ;;  %v1263_v26 = vadd.f32 %v1259_v37, %v1243_v3 }
 0x2f6   : > { %3412 = vrot.lane.b32.xlu1 %v7207_v50, %s3559_s25  ;;  %3432 = vrot.lane.b32.xlu0 %v4792_v0, %s3559_s25  ;;  %7224 = vst [vmem:[#allocation228_spill] sm:$0xff] %v5015_v20  ;;  %v1283_v63 = vmul.f32 %v3339_v12, %v5015_v20  ;;  %v5042_v62 = vrot.slane %v4889_v30, %v3974_v45  ;;  %v3344_v17 = vunpack.i.l.bf16 %v7230_v19  ;;  %v3340_v60 = vunpack.i.h.bf16 %v7225_v14  ;;  %v5063_v14 = vld [vmem:[#allocation2 + $0x73] sm:$0xff] }
 0x2f7   : > { %7226 = vst [vmem:[#allocation8_spill] sm:$0xff] %v5027_v33  ;;  %v5047_v34 = vrot.slane %v5037_v15, %v3942_v42  ;;  %v5052_v3 = vrot.slane %v5037_v15, %v3953_v47  ;;  %v3345_v37 = vunpack.i.h.bf16 %v7230_v19  ;;  %v803_v12 = vmul.f32 %v3280_v6, %v5004_v23  ;;  %7232 = vst [vmem:[#allocation230_spill] sm:$0xff] %v5063_v14 }
 0x2f8   : > { %v5008_v50 = vpop.permute.xlu1 %1870  ;;  %v5010_v25 = vpop.permute.xlu0 %2425  ;;  %7229 = vst [vmem:[#allocation229_spill] sm:$0xff] %v5042_v62  ;;  %v783_v20 = vadd.f32 %v779_v51, %v763_v13  ;;  %v3285_v16 = vunpack.i.h.bf16 %v7227_v22  ;;  %v806_v19 = vadd.f32 %v802_v9, %v782_v7  ;;  %v822_v4 = vmul.f32 %v3284_v11, %v5027_v33  ;;  %v7237_v11 = vld [vmem:[#allocation6_spill] sm:$0xff] }
 0x2f9   : > { %7222 = vst [vmem:[#allocation5_spill] sm:$0xff] %v5008_v50  ;;  %7223 = vst [vmem:[#allocation227_spill] sm:$0xff] %v5010_v25  ;;  %v1287_v38 = vadd.f32 %v1283_v63, %v1263_v26  ;;  %v1303_v6 = vmul.f32 %v3344_v17, %v5042_v62  ;;  %v5077_v51 = vrot.slane %v4889_v30, %v7193_v56  ;;  %v3289_v7 = vunpack.i.l.bf16 %v7237_v11 }
 0x2fa   : > { %2064 = vrot.lane.b32.xlu1 %v4703_v57, %s3557_s14  ;;  %3437 = vrot.lane.b32.xlu0 %v4998_v46, %s3556_s12  ;;  %v5081_v13 = vrot.slane %v5037_v15, %v3957_v58  ;;  %v1863_v22 = vmul.f32 %v3340_v60, %v5047_v34  ;;  %v1883_v9 = vmul.f32 %v3345_v37, %v5052_v3  ;;  %v3498_v60 = vld [vmem:[#allocation2 + $0x4] sm:$0xff] }
 0x2fb   : > { %v5095_v30 = vrot.slane %v4910_v61, %v7193_v56  ;;  %v823_v63 = vmul.f32 %v3285_v16, %v5027_v33  ;;  %v807_v17 = vadd.f32 %v803_v12, %v783_v20  ;;  %v834_v37 = vmul.f32 %v3498_v60, %v5067_v5  ;;  %v3499_v12 = vld [vmem:[#allocation2 + $0x14] sm:$0xff] }
 0x2fc   : > { %v5030_v54 = vpop.permute.xlu1 %2349  ;;  %v5032_v8 = vpop.permute.xlu0 %2427  ;;  %v826_v62 = vadd.f32 %v822_v4, %v806_v19  ;;  %v3290_v16 = vunpack.i.h.bf16 %v7237_v11  ;;  %v1307_v20 = vadd.f32 %v1303_v6, %v1287_v38  ;;  %v1315_v33 = vmul.f32 %v3499_v12, %v5077_v51  ;;  %v3500_v11 = vld [vmem:[%s6810_s3 + $0x18] sm:$0xff] }
 0x2fd   : > { %7228 = vst [vmem:[#allocation13_spill] sm:$0xff] %v5032_v8  ;;  %v5061_v8 = vld [vmem:[#allocation2 + $0x64] sm:$0xff]  ;;  %7236 = vst [vmem:[#allocation234_spill] sm:$0xff] %v5095_v30  ;;  %v1895_v60 = vmul.f32 %v4479_v24, %v5081_v13  ;;  %v5117_v4 = vrot.slane %v5037_v15, %v3974_v45  ;;  %v835_v38 = vmul.f32 %v3499_v12, %v5067_v5  ;;  %v3294_v12 = vunpack.i.l.bf16 %v7243_v10 }
 0x2fe   : > { %3417 = vrot.lane.b32.xlu1 %v4792_v0, %s3556_s12  ;;  %2160 = vrot.lane.b32.xlu0 %v7213_v27, %s3557_s14  ;;  %7231 = vst [vmem:[#allocation10_spill] sm:$0xff] %v5061_v8  ;;  %v5091_v26 = vpack.i.bf16 %v5061_v8, %v5063_v14  ;;  %v7239_v14 = vld [vmem:[#allocation12_spill] sm:$0xff]  ;;  %v1887_v8 = vadd.f32 %v1883_v9, %v1863_v22 }
 0x2ff   : > { %v3350_v19 = vunpack.i.h.bf16 %v7239_v14  ;;  %v827_v6 = vadd.f32 %v823_v63, %v807_v17  ;;  %v854_v22 = vmul.f32 %v3289_v7, %v5095_v30  ;;  %v838_v9 = vadd.f32 %v834_v37, %v826_v62  ;;  %v7245_v62 = vld [vmem:[#allocation15_spill] sm:$0xff] }
 0x300   : > { %v5070_v25 = vpop.permute.xlu1 %2351  ;;  %v5072_v18 = vpop.permute.xlu0 %3372  ;;  %7235 = vst [vmem:[#allocation233_spill] sm:$0xff] %v5091_v26  ;;  %v1319_v50 = vadd.f32 %v1315_v33, %v1307_v20  ;;  %v3354_v7 = vunpack.i.l.bf16 %v7245_v62  ;;  %v1899_v37 = vadd.f32 %v1895_v60, %v1887_v8  ;;  %v3295_v33 = vunpack.i.h.bf16 %v7243_v10  ;;  %v393_v10 = vld [vmem:[%s6810_s3 + $0x38] sm:$0xff] }
 0x301   : > { %7233 = vst [vmem:[#allocation231_spill] sm:$0xff] %v5070_v25  ;;  %7234 = vst [vmem:[#allocation232_spill] sm:$0xff] %v5072_v18  ;;  %v1915_v17 = vmul.f32 %v3350_v19, %v5117_v4  ;;  %v5151_v20 = vrot.slane %v5037_v15, %v7193_v56  ;;  %v858_v60 = vadd.f32 %v854_v22, %v838_v9 }
 0x302   : > { %2112 = vrot.lane.b32.xlu1 %v4354_v21, %s3559_s25  ;;  %3442 = vrot.lane.b32.xlu0 %v4998_v46, %s3557_s14  ;;  %v392_v21 = vld [vmem:[%s6810_s3 + $0x30] sm:$0xff]  ;;  %v3349_v46 = vunpack.i.l.bf16 %v7239_v14  ;;  %v5131_v14 = vrot.slane %v3500_v11, %v3925_v35  ;;  %v839_v11 = vadd.f32 %v835_v38, %v827_v6  ;;  %v394_v38 = vld [vmem:[%s6810_s3 + $0x40] sm:$0xff] }
 0x303   : > { %v5104_v23 = vrot.slane %v392_v21, %v3925_v35  ;;  %v5139_v63 = vrot.slane %v392_v21, %v3927_v36 }
 0x304   : > { %v5107_v61 = vpop.permute.xlu1 %1872  ;;  %v5109_v25 = vpop.permute.xlu0 %3377  ;;  %7241 = vst [vmem:[#allocation235_spill] sm:$0xff] %v5131_v14  ;;  %v874_v19 = vmul.f32 %v3294_v12, %v5131_v14  ;;  %v875_v6 = vmul.f32 %v3295_v33, %v5131_v14  ;;  %v5178_v12 = vrot.slane %v392_v21, %v3953_v47  ;;  %v5205_v33 = vrot.slane %v5037_v15, %v3925_v35  ;;  %v3502_v14 = vld [vmem:[#allocation2 + $0x22] sm:$0xff] }
 0x305   : > { %7238 = vst [vmem:[#allocation6_spill] sm:$0xff] %v5104_v23  ;;  %7240 = vst [vmem:[#allocation12_spill] sm:$0xff] %v5109_v25  ;;  %v1335_v24 = vmul.f32 %v3349_v46, %v5104_v23  ;;  %v855_v46 = vmul.f32 %v3290_v16, %v5095_v30  ;;  %v3355_v23 = vunpack.i.h.bf16 %v7245_v62  ;;  %v1355_v30 = vmul.f32 %v3354_v7, %v5139_v63 }
 0x306   : > { %2573 = vrot.lane.b32.xlu1 %v4644_v53, %s3558_s24  ;;  %3447 = vrot.lane.b32.xlu0 %v5091_v26, %s3556_s12  ;;  %7244 = vst [vmem:[#allocation14_spill] sm:$0xff] %v5139_v63  ;;  %v5181_v62 = vrot.slane %v393_v10, %v3927_v36  ;;  %7249 = vst [vmem:[#allocation239_spill] sm:$0xff] %v5205_v33 }
 0x307   : > { %v1339_v8 = vadd.f32 %v1335_v24, %v1319_v50  ;;  %v1919_v50 = vadd.f32 %v1915_v17, %v1899_v37  ;;  %v859_v22 = vadd.f32 %v855_v46, %v839_v11  ;;  %v1935_v9 = vmul.f32 %v3355_v23, %v5151_v20  ;;  %v5175_v24 = vld [vmem:[%s6810_s3 + $0x50] sm:$0xff]  ;;  %v5195_v23 = vld [vmem:[%s6810_s3 + $0x58] sm:$0xff] }
 0x308   : > { %v5133_v25 = vpop.permute.xlu1 %1902  ;;  %v5135_v53 = vpop.permute.xlu0 %1968  ;;  %7248 = vst [vmem:[#allocation238_spill] sm:$0xff] %v5195_v23  ;;  %v878_v17 = vadd.f32 %v874_v19, %v858_v60  ;;  %v5198_v37 = vrot.slane %v393_v10, %v3974_v45  ;;  %v5201_v11 = vrot.slane %v394_v38, %v3942_v42  ;;  %v5213_v60 = vrot.slane %v5175_v24, %v3920_v31 }
 0x309   : > { %7242 = vst [vmem:[#allocation236_spill] sm:$0xff] %v5133_v25  ;;  %v1359_v21 = vadd.f32 %v1355_v30, %v1339_v8  ;;  %v5217_v30 = vrot.slane %v5175_v24, %v7193_v56  ;;  %v5219_v8 = vadd.f32 %v875_v6, %v859_v22  ;;  %v5221_v19 = vadd.f32 %v1935_v9, %v1919_v50 }
 0x30a   : > { %2575 = vrot.lane.b32.xlu1 %v4703_v57, %s3558_s24  ;;  %2669 = vrot.lane.b32.xlu0 %v4941_v44, %s3558_s24  ;;  %7250 = vst [vmem:[#allocation240_spill] sm:$0xff] %v5213_v60  ;;  %v5225_v15 = vrot.slane %v5195_v23, %v3953_v47  ;;  %v5238_v6 = vmul.f32 %v3502_v14, %v4826_v59 }
 0x30b   : > { %7251 = vst [vmem:[#allocation241_spill] sm:$0xff] %v5217_v30  ;;  %7252 = vst [vmem:[#allocation242_spill] sm:$0xff] %v5219_v8  ;;  %v5241_v50 = vmul.f32 %v3502_v14, %v4835_v28  ;;  %v3503_v8 = vld [vmem:[#allocation2 + $0x33] sm:$0xff] }
 0x30c   : > { %v5154_v25 = vpop.permute.xlu1 %3357  ;;  %v5156_v16 = vpop.permute.xlu0 %3382  ;;  %7253 = vst [vmem:[#allocation243_spill] sm:$0xff] %v5221_v19  ;;  %7254 = vst [vmem:[#allocation244_spill] sm:$0xff] %v5225_v15  ;;  %v3504_v19 = vld [vmem:[#allocation2 + $0x34] sm:$0xff] }
 0x30d   : > { %7246 = vst [vmem:[#allocation15_spill] sm:$0xff] %v5156_v16  ;;  %7258 = vst [vmem:[#allocation248_spill] sm:$0xff] %v5238_v6  ;;  %v5251_v16 = vmul.f32 %v3504_v19, %v5067_v5  ;;  %v3505_v6 = vld [vmem:[#allocation2 + $0x24] sm:$0xff] }
 0x30e   : > { %2136 = vrot.lane.b32.xlu1 %v7205_v43, %s3556_s12  ;;  %3452 = vrot.lane.b32.xlu0 %v5091_v26, %s3557_s14  ;;  %v5186_v43 = vld [vmem:[%s6810_s3 + $0x60] sm:$0xff]  ;;  %7259 = vst [vmem:[#allocation249_spill] sm:$0xff] %v5241_v50  ;;  %v5248_v26 = vmul.f32 %v3503_v8, %v4945_v1  ;;  %v5259_v14 = vmul.f32 %v3505_v6, %v5077_v51 }
 0x30f   : > { %v5229_v10 = vrot.slane %v5186_v43, %v3927_v36  ;;  %7262 = vst [vmem:[#allocation252_spill] sm:$0xff] %v5251_v16  ;;  %v5262_v50 = vmul.f32 %v3504_v19, %v5077_v51 }
 0x310   : > { %v5188_v7 = vpop.permute.xlu1 %2381  ;;  %v5190_v46 = vpop.permute.xlu0 %3387  ;;  %7261 = vst [vmem:[#allocation251_spill] sm:$0xff] %v5248_v26  ;;  %7265 = vst [vmem:[#allocation255_spill] sm:$0xff] %v5259_v14  ;;  %v5281_v14 = vmul.f32 %v3505_v6, %v5067_v5  ;;  %v3510_v6 = vld [vmem:[#allocation2 + $0x22] sm:$0xff] }
 0x311   : > { %7247 = vst [vmem:[#allocation237_spill] sm:$0xff] %v5190_v46  ;;  %7255 = vst [vmem:[#allocation245_spill] sm:$0xff] %v5229_v10 }
 0x312   : > { %2138 = vrot.lane.b32.xlu1 %v4941_v44, %s3556_s12  ;;  %2192 = vrot.lane.b32.xlu0 %v7213_v27, %s3558_s24  ;;  %v3501_v27 = vld [vmem:[#allocation2 + $0x32] sm:$0xff]  ;;  %7266 = vst [vmem:[#allocation256_spill] sm:$0xff] %v5262_v50  ;;  %7271 = vst [vmem:[#allocation261_spill] sm:$0xff] %v5281_v14  ;;  %v5303_v14 = vmul.f32 %v3510_v6, %v5198_v37 }
 0x313   : > { %v5232_v38 = vmul.f32 %v3501_v27, %v4826_v59  ;;  %v5235_v63 = vmul.f32 %v3501_v27, %v4835_v28  ;;  %v5254_v27 = vmul.f32 %v3503_v8, %v4953_v41  ;;  %v5256_v59 = vadd.f32 %v1359_v21, %v878_v17  ;;  %v3507_v21 = vld [vmem:[#allocation2 + $0x21] sm:$0xff] }
 0x314   : > { %v5243_v22 = vpop.permute.xlu1 %2383  ;;  %v5245_v9 = vpop.permute.xlu0 %2477  ;;  %v5275_v8 = vmul.f32 %v3507_v21, %v3983_v48  ;;  %v5284_v50 = vmul.f32 %v3507_v21, %v4098_v52  ;;  %v5293_v16 = vmul.f32 %v3507_v21, %v5181_v62  ;;  %7278 = vst [vmem:[#allocation268_spill] sm:$0xff] %v5303_v14  ;;  %v5324_v14 = vrot.slane %v5186_v43, %v3957_v58 }
 0x315   : > { %7256 = vst [vmem:[#allocation246_spill] sm:$0xff] %v5232_v38  ;;  %7257 = vst [vmem:[#allocation247_spill] sm:$0xff] %v5235_v63  ;;  %v3506_v63 = vld [vmem:[#allocation2 + $0x20] sm:$0xff] }
 0x316   : > { %7260 = vst [vmem:[#allocation250_spill] sm:$0xff] %v5243_v22  ;;  %7263 = vst [vmem:[#allocation253_spill] sm:$0xff] %v5254_v27  ;;  %v5265_v23 = vmul.f32 %v3506_v63, %v4051_v2  ;;  %2116 = vrot.lane.b32.xlu1 %v4703_v57, %s3559_s25  ;;  %2689 = vrot.lane.b32.xlu0 %v4941_v44, %s3559_s25  ;;  %v5272_v17 = vmul.f32 %v3506_v63, %v3940_v39 }
 0x317   : > { %7264 = vst [vmem:[#allocation254_spill] sm:$0xff] %v5256_v59  ;;  %7269 = vst [vmem:[#allocation259_spill] sm:$0xff] %v5275_v8  ;;  %v3508_v59 = vld [vmem:[#allocation2 + $0x23] sm:$0xff]  ;;  %v5290_v39 = vmul.f32 %v3506_v63, %v5178_v12  ;;  %v3360_v8 = vunpack.i.h.bf16 %v5154_v25 }
 0x318   : > { %7267 = vst [vmem:[#allocation257_spill] sm:$0xff] %v5265_v23  ;;  %7268 = vst [vmem:[#allocation258_spill] sm:$0xff] %v5272_v17  ;;  %v5278_v19 = vmul.f32 %v3508_v59, %v4945_v1  ;;  %v5287_v57 = vmul.f32 %v3508_v59, %v4953_v41  ;;  %v5295_v48 = vpop.permute.xlu1 %1944  ;;  %v5297_v27 = vpop.permute.xlu0 %3392  ;;  %v3509_v1 = vld [vmem:[#allocation2 + $0x30] sm:$0xff]  ;;  %v3512_v63 = vld [vmem:[#allocation2 + $0x23] sm:$0xff] }
 0x319   : > { %7272 = vst [vmem:[#allocation262_spill] sm:$0xff] %v5284_v50  ;;  %7274 = vst [vmem:[#allocation264_spill] sm:$0xff] %v5290_v39  ;;  %v5300_v5 = vmul.f32 %v3509_v1, %v5178_v12  ;;  %v3511_v59 = vld [vmem:[#allocation2 + $0x31] sm:$0xff]  ;;  %v5309_v21 = vmul.f32 %v3512_v63, %v5201_v11  ;;  %v5316_v50 = vld [vmem:[#allocation2 + $0x24] sm:$0xff]  ;;  %v5349_v23 = vmul.f32 %v3509_v1, %v5081_v13 }
 0x31a   : > { %7270 = vst [vmem:[#allocation260_spill] sm:$0xff] %v5278_v19  ;;  %7273 = vst [vmem:[#allocation263_spill] sm:$0xff] %v5287_v57  ;;  %v5306_v57 = vmul.f32 %v3511_v59, %v5181_v62  ;;  %v3513_v39 = vld [vmem:[#allocation2 + $0x32] sm:$0xff]  ;;  %v5320_v6 = vmul.f32 %v5316_v50, %v5205_v33  ;;  %3427 = vrot.lane.b32.xlu1 %v4792_v0, %s3558_s24  ;;  %v5346_v0 = vrot.slane %v5186_v43, %v3953_v47 }
 0x31b   : > { %7275 = vst [vmem:[#allocation265_spill] sm:$0xff] %v5293_v16  ;;  %7276 = vst [vmem:[#allocation266_spill] sm:$0xff] %v5297_v27  ;;  %v5311_v16 = vld [vmem:[#allocation2 + $0x44] sm:$0xff]  ;;  %v5314_v19 = vmul.f32 %v3513_v39, %v5198_v37  ;;  %v5330_v63 = vld [vmem:[#allocation2 + $0x34] sm:$0xff]  ;;  %v5359_v17 = vmul.f32 %v3513_v39, %v5217_v30 }
 0x31c   : > { %7277 = vst [vmem:[#allocation267_spill] sm:$0xff] %v5300_v5  ;;  %7279 = vst [vmem:[#allocation269_spill] sm:$0xff] %v5306_v57  ;;  %2234 = vrot.lane.b32.xlu0 %v5311_v16, %s3556_s12  ;;  %v7286_v57 = vld [vmem:[#allocation148_spill] sm:$0xff]  ;;  %v5353_v26 = vpop.permute.xlu0 %2000  ;;  %v5373_v22 = vmul.f32 %v5229_v10, %v5330_v63  ;;  %v3518_v39 = vld [vmem:[#allocation2 + $0x52] sm:$0xff] }
 0x31d   : > { %7280 = vst [vmem:[#allocation270_spill] sm:$0xff] %v5309_v21  ;;  %7281 = vst [vmem:[#allocation271_spill] sm:$0xff] %v5314_v19  ;;  %v5332_v21 = vld [vmem:[#allocation2 + $0x33] sm:$0xff]  ;;  %v5341_v5 = vmul.f32 %v5205_v33, %v7286_v57  ;;  %v3516_v57 = vld [vmem:[#allocation2 + $0x42] sm:$0xff] }
 0x31e   : > { %7282 = vst [vmem:[#allocation272_spill] sm:$0xff] %v5316_v50  ;;  %7283 = vst [vmem:[#allocation273_spill] sm:$0xff] %v5320_v6  ;;  %v5336_v19 = vmul.f32 %v5332_v21, %v5201_v11  ;;  %v3365_v6 = vunpack.i.h.bf16 %v4867_v55  ;;  %v5351_v50 = vpop.permute.xlu1 %1946  ;;  %v5365_v33 = vmul.f32 %v3516_v57, %v5198_v37  ;;  %v5369_v1 = vmul.f32 %v5332_v21, %v5225_v15  ;;  %v7315_v10 = vld [vmem:[#allocation5_spill] sm:$0xff] }
 0x31f   : > { %7284 = vst [vmem:[#allocation274_spill] sm:$0xff] %v5330_v63  ;;  %7287 = vst [vmem:[#allocation148_spill] sm:$0xff] %v5341_v5  ;;  %v5362_v5 = vmul.f32 %v3516_v57, %v4835_v28  ;;  %v2361_v28 = vmul.f32 %v5324_v14, %v5030_v54  ;;  %2158 = vrot.lane.b32.xlu1 %v4941_v44, %s3557_s14  ;;  %v5385_v57 = vld [vmem:[#allocation2 + $0x53] sm:$0xff] }
 0x320   : > { %7285 = vst [vmem:[#allocation275_spill] sm:$0xff] %v5336_v19  ;;  %v5356_v19 = vmul.f32 %v3511_v59, %v5213_v60  ;;  %7289 = vst [vmem:[#allocation277_spill] sm:$0xff] %v5359_v17  ;;  %v3517_v59 = vld [vmem:[#allocation2 + $0x40] sm:$0xff]  ;;  %v5379_v17 = vmul.f32 %v3518_v39, %v5198_v37  ;;  %2212 = vrot.lane.b32.xlu0 %v5385_v57, %s3559_s25  ;;  %v1882_v37 = vmul.f32 %v5052_v3, %v5107_v61  ;;  %v5426_v63 = vld [vmem:[#allocation2 + $0x51] sm:$0xff] }
 0x321   : > { %7290 = vst [vmem:[#allocation278_spill] sm:$0xff] %v5362_v5  ;;  %7291 = vst [vmem:[#allocation279_spill] sm:$0xff] %v5365_v33  ;;  %v2344_v39 = vmul.f32 %v3360_v8, %v5346_v0  ;;  %v5397_v54 = vmul.f32 %v3517_v59, %v5178_v12  ;;  %v2341_v5 = vmul.f32 %v5346_v0, %v4757_v29 }
 0x322   : > { %7288 = vst [vmem:[#allocation276_spill] sm:$0xff] %v5356_v19  ;;  %7292 = vst [vmem:[#allocation280_spill] sm:$0xff] %v5369_v1  ;;  %v5376_v19 = vmul.f32 %v3517_v59, %v4051_v2  ;;  %v2364_v2 = vmul.f32 %v3365_v6, %v5324_v14  ;;  %v5406_v6 = vpop.permute.xlu0 %2497  ;;  %v5421_v29 = vrot.slane %v5186_v43, %v7193_v56 }
 0x323   : > { %7293 = vst [vmem:[#allocation281_spill] sm:$0xff] %v5373_v22  ;;  %7295 = vst [vmem:[#allocation283_spill] sm:$0xff] %v5379_v17  ;;  %v3520_v22 = vld [vmem:[#allocation2 + $0x41] sm:$0xff]  ;;  %2140 = vrot.lane.b32.xlu1 %v5385_v57, %s3556_s12 }
 0x324   : > { %7294 = vst [vmem:[#allocation282_spill] sm:$0xff] %v5376_v19  ;;  %v5390_v1 = vmul.f32 %v3520_v22, %v4098_v52  ;;  %7297 = vst [vmem:[#allocation285_spill] sm:$0xff] %v5397_v54  ;;  %v3521_v17 = vld [vmem:[#allocation2 + $0x43] sm:$0xff]  ;;  %v2372_v52 = vrot.slane %v5186_v43, %v3974_v45  ;;  %v5415_v8 = vmul.f32 %v3520_v22, %v5181_v62  ;;  %v3375_v22 = vunpack.i.h.bf16 %v5072_v18 }
 0x325   : > { %v5400_v33 = vmul.f32 %v3521_v17, %v4953_v41  ;;  %v5408_v19 = vld [vmem:[#allocation2 + $0x44] sm:$0xff]  ;;  %v1862_v41 = vmul.f32 %v5047_v34, %v4804_v32  ;;  %7302 = vst [vmem:[#allocation290_spill] sm:$0xff] %v5421_v29  ;;  %2713 = vrot.lane.b32.xlu0 %v5311_v16, %s3556_s12  ;;  %v5438_v32 = vmul.f32 %v3521_v17, %v5201_v11 }
 0x326   : > { %7296 = vst [vmem:[#allocation284_spill] sm:$0xff] %v5390_v1  ;;  %v1925_v1 = vpop.permute.xlu1 %1924  ;;  %7299 = vst [vmem:[#allocation287_spill] sm:$0xff] %v5408_v19  ;;  %v5412_v61 = vmul.f32 %v5408_v19, %v5077_v51  ;;  %v5430_v51 = vmul.f32 %v5426_v63, %v5181_v62  ;;  %v2368_v62 = vadd.f32 %v2364_v2, %v2344_v39  ;;  %v5458_v18 = vpop.permute.xlu0 %2042 }
 0x327   : > { %7298 = vst [vmem:[#allocation286_spill] sm:$0xff] %v5400_v33  ;;  %7301 = vst [vmem:[#allocation289_spill] sm:$0xff] %v5415_v8  ;;  %v3523_v33 = vld [vmem:[#allocation2 + $0x50] sm:$0xff]  ;;  %v1886_v43 = vadd.f32 %v1882_v37, %v1862_v41  ;;  %v2393_v37 = vmul.f32 %v5421_v29, %v5188_v7  ;;  %2637 = vrot.lane.b32.xlu1 %v4941_v44, %s3557_s14  ;;  %v3394_v7 = vunpack.i.l.bf16 %v5297_v27 }
 0x328   : > { %7300 = vst [vmem:[#allocation288_spill] sm:$0xff] %v5412_v61  ;;  %v5424_v54 = vmul.f32 %v3523_v33, %v5178_v12  ;;  %7304 = vst [vmem:[#allocation292_spill] sm:$0xff] %v5430_v51  ;;  %v2365_v61 = vadd.f32 %v2361_v28, %v2341_v5  ;;  %v5443_v12 = vld [vmem:[%s6810_s3 + $0x68] sm:$0xff]  ;;  %v3525_v51 = vld [vmem:[#allocation2] sm:$0xff]  ;;  %v5449_v28 = vmul.f32 %v5385_v57, %v5201_v11  ;;  %v3389_v11 = vunpack.i.l.bf16 %v5190_v46 }
 0x329   : > { %7305 = vst [vmem:[#allocation293_spill] sm:$0xff] %v5438_v32  ;;  %v5445_v5 = vmul.f32 %v3525_v51, %v2372_v52  ;;  %v1894_v17 = vmul.f32 %v3523_v33, %v5081_v13  ;;  %v2373_v32 = vmul.f32 %v3517_v59, %v2372_v52  ;;  %7310 = vst [vmem:[#allocation298_spill] sm:$0xff] %v5458_v18  ;;  %2254 = vrot.lane.b32.xlu0 %v5311_v16, %s3557_s14 }
 0x32a   : > { %7303 = vst [vmem:[#allocation291_spill] sm:$0xff] %v5424_v54  ;;  %7307 = vst [vmem:[#allocation295_spill] sm:$0xff] %v5449_v28  ;;  %v5453_v54 = vrot.slane %v5443_v12, %v3925_v35  ;;  %v5456_v8 = vpop.permute.xlu1 %3367  ;;  %v5462_v2 = vrot.slane %v5443_v12, %v3927_v36  ;;  %v5471_v51 = vrot.slane %v5443_v12, %v3920_v31 }
 0x32b   : > { %7306 = vst [vmem:[#allocation294_spill] sm:$0xff] %v5445_v5  ;;  %7309 = vst [vmem:[#allocation297_spill] sm:$0xff] %v5456_v8  ;;  %v3370_v39 = vunpack.i.h.bf16 %v5456_v8  ;;  %v2377_v28 = vadd.f32 %v2373_v32, %v2365_v61  ;;  %v1898_v18 = vadd.f32 %v1894_v17, %v1886_v43  ;;  %v2380_v19 = vadd.f32 %v5445_v5, %v2368_v62  ;;  %v5485_v61 = vpop.permute.xlu0 %2020 }
 0x32c   : > { %7308 = vst [vmem:[#allocation296_spill] sm:$0xff] %v5453_v54  ;;  %v2416_v41 = vmul.f32 %v3375_v22, %v5453_v54  ;;  %v1914_v22 = vmul.f32 %v5117_v4, %v4921_v40  ;;  %v1893_v8 = vmul.f32 %v3517_v59, %v5081_v13  ;;  %v1990_v32 = vmul.f32 %v5426_v63, %v5213_v60  ;;  %v5503_v59 = vld [vmem:[#allocation2 + $0x54] sm:$0xff] }
 0x32d   : > { %v2396_v46 = vmul.f32 %v3370_v39, %v5421_v29  ;;  %v5491_v43 = vrot.slane %v5443_v12, %v3942_v42  ;;  %v2397_v17 = vadd.f32 %v2393_v37, %v2377_v28  ;;  %v2440_v39 = vmul.f32 %v3389_v11, %v5462_v2  ;;  %2639 = vrot.lane.b32.xlu1 %v5385_v57, %s3557_s14  ;;  %v3527_v28 = vld [vmem:[#allocation2 + $0x41] sm:$0xff]  ;;  %v7314_v11 = vld [vmem:[#allocation194_spill] sm:$0xff] }
 0x32e   : > { %v5483_v31 = vpop.permute.xlu1 %1966  ;;  %v1934_v62 = vmul.f32 %v5151_v20, %v1925_v1  ;;  %v5497_v40 = vrot.slane %v5175_v24, %v3925_v35  ;;  %v5499_v13 = vmul.f32 %v3523_v33, %v2372_v52  ;;  %2715 = vrot.lane.b32.xlu0 %v5503_v59, %s3556_s12  ;;  %v5508_v37 = vmul.f32 %v3527_v28, %v5213_v60  ;;  %v7313_v52 = vld [vmem:[#allocation25_spill] sm:$0xff] }
 0x32f   : > { %v2400_v27 = vadd.f32 %v2396_v46, %v2380_v19  ;;  %v2413_v46 = vmul.f32 %v5453_v54, %v4938_v49  ;;  %v2460_v19 = vmul.f32 %v3394_v7, %v5471_v51  ;;  %v1918_v1 = vadd.f32 %v1914_v22, %v1898_v18  ;;  %v5521_v60 = vpop.permute.xlu0 %2521  ;;  %v7317_v22 = vld [vmem:[#allocation11_spill] sm:$0xff] }
 0x330   : > { %7311 = vst [vmem:[#allocation299_spill] sm:$0xff] %v5499_v13  ;;  %7312 = vst [vmem:[#allocation300_spill] sm:$0xff] %v5508_v37  ;;  %v569_v5 = vmul.f32 %v7314_v11, %v7313_v52  ;;  %v5517_v13 = vrot.slane %v5175_v24, %v3927_v36  ;;  %v1881_v29 = vmul.f32 %v5052_v3, %v7315_v10  ;;  %v7318_v10 = vld [vmem:[#allocation227_spill] sm:$0xff] }
 0x331   : > { %v2420_v33 = vadd.f32 %v2416_v41, %v2400_v27  ;;  %v2469_v37 = vmul.f32 %v3527_v28, %v5491_v43  ;;  %v2417_v49 = vadd.f32 %v2413_v46, %v2397_v17  ;;  %v1938_v54 = vadd.f32 %v1934_v62, %v1918_v1  ;;  %v7316_v27 = vld [vmem:[#allocation196_spill] sm:$0xff]  ;;  %2188 = vrot.lane.b32.xlu1 %v5332_v21, %s3558_s24  ;;  %v7321_v46 = vld [vmem:[#allocation193_spill] sm:$0xff] }
 0x332   : > { %v1949_v38 = vpop.permute.xlu1 %1948  ;;  %v1861_v41 = vmul.f32 %v5047_v34, %v7316_v27  ;;  %v1880_v52 = vmul.f32 %v5052_v3, %v7317_v22  ;;  %v5531_v11 = vrot.slane %v5175_v24, %v3942_v42  ;;  %2733 = vrot.lane.b32.xlu0 %v5311_v16, %s3557_s14  ;;  %v2437_v17 = vmul.f32 %v5462_v2, %v7318_v10  ;;  %v7320_v3 = vld [vmem:[#allocation34_spill] sm:$0xff] }
 0x333   : > { %v2444_v7 = vadd.f32 %v2440_v39, %v2420_v33  ;;  %v1958_v18 = vmul.f32 %v5497_v40, %v1949_v38  ;;  %v1978_v38 = vmul.f32 %v5517_v13, %v5135_v53  ;;  %v573_v28 = vadd.f32 %v569_v5, %v7320_v3  ;;  %v5550_v42 = vpop.permute.xlu0 %2062  ;;  %v7322_v5 = vld [vmem:[#allocation33_spill] sm:$0xff] }
 0x334   : > { %v1860_v1 = vmul.f32 %v5047_v34, %v7321_v46  ;;  %v1885_v33 = vadd.f32 %v1881_v29, %v1861_v41  ;;  %v5548_v27 = vrot.slane %v5443_v12, %v3953_v47  ;;  %v5554_v10 = vrot.slane %v5175_v24, %v3953_v47  ;;  %v7324_v41 = vld [vmem:[#allocation236_spill] sm:$0xff]  ;;  %v5571_v3 = vld [vmem:[#allocation2 + $0x74] sm:$0xff] }
 0x335   : > { %v1962_v39 = vadd.f32 %v1958_v18, %v1938_v54  ;;  %v5541_v62 = vadd.f32 %v2460_v19, %v2444_v7  ;;  %v2441_v54 = vadd.f32 %v2437_v17, %v2417_v49  ;;  %v7323_v7 = vld [vmem:[#allocation198_spill] sm:$0xff]  ;;  %v5561_v29 = vrot.slane %v5443_v12, %v3957_v58  ;;  %2190 = vrot.lane.b32.xlu1 %v4941_v44, %s3558_s24  ;;  %v7327_v46 = vld [vmem:[#allocation201_spill] sm:$0xff] }
 0x336   : > { %v2446_v22 = vpop.permute.xlu1 %2445  ;;  %v589_v18 = vmul.f32 %v7323_v7, %v7322_v5  ;;  %v1884_v34 = vadd.f32 %v1880_v52, %v1860_v1  ;;  %2735 = vrot.lane.b32.xlu0 %v5503_v59, %s3557_s14  ;;  %v2010_v49 = vmul.f32 %v5531_v11, %v5353_v26  ;;  %7325 = vst [vmem:[#allocation5_spill] sm:$0xff] %v5571_v3  ;;  %v7326_v52 = vld [vmem:[#allocation30_spill] sm:$0xff] }
 0x337   : > { %7319 = vst [vmem:[#allocation25_spill] sm:$0xff] %v5541_v62  ;;  %v1982_v53 = vadd.f32 %v1978_v38, %v1962_v39  ;;  %v2457_v19 = vmul.f32 %v5471_v51, %v2446_v22  ;;  %v1913_v38 = vmul.f32 %v5117_v4, %v7324_v41  ;;  %v613_v1 = vmul.f32 %v7327_v46, %v7326_v52  ;;  %v5581_v62 = vpop.permute.xlu0 %2523  ;;  %v7331_v52 = vld [vmem:[#allocation217_spill] sm:$0xff] }
 0x338   : > { %v593_v22 = vadd.f32 %v589_v18, %v573_v28  ;;  %v1897_v5 = vadd.f32 %v1893_v8, %v1885_v33  ;;  %v5577_v47 = vrot.slane %v5443_v12, %v3974_v45  ;;  %v2489_v26 = vmul.f32 %v5548_v27, %v5245_v9  ;;  %v7328_v9 = vld [vmem:[#allocation10_spill] sm:$0xff] }
 0x339   : > { %v1994_v17 = vadd.f32 %v1990_v32, %v1982_v53  ;;  %v2461_v39 = vadd.f32 %v2457_v19, %v2441_v54  ;;  %v2030_v32 = vmul.f32 %v5554_v10, %v5485_v61  ;;  %v5587_v54 = vld [vmem:[#allocation2 + $0x54] sm:$0xff]  ;;  %v1896_v8 = vadd.f32 %v5349_v23, %v1884_v34  ;;  %2208 = vrot.lane.b32.xlu1 %v5332_v21, %s3559_s25 }
 0x33a   : > { %v5579_v7 = vpop.permute.xlu1 %2447  ;;  %2256 = vrot.lane.b32.xlu0 %v5587_v54, %s3557_s14  ;;  %v5596_v28 = vrot.slane %v5443_v12, %v7193_v56  ;;  %v5600_v33 = vpack.i.bf16 %v5571_v3, %v7328_v9  ;;  %v1917_v61 = vadd.f32 %v1913_v38, %v1897_v5  ;;  %v617_v34 = vadd.f32 %v613_v1, %v593_v22  ;;  %v7330_v21 = vld [vmem:[#allocation209_spill] sm:$0xff]  ;;  %v3528_v12 = vld [vmem:[#allocation2 + $0x42] sm:$0xff] }
 0x33b   : > { %v2473_v53 = vadd.f32 %v2469_v37, %v2461_v39  ;;  %v2014_v19 = vadd.f32 %v2010_v49, %v1994_v17  ;;  %v2509_v37 = vmul.f32 %v5561_v29, %v5406_v6  ;;  %v1912_v41 = vmul.f32 %v5117_v4, %v7330_v21  ;;  %v2542_v17 = vpop.permute.xlu0 %2541  ;;  %v5626_v5 = vld [vmem:[%s6810_s3 + $0x70] sm:$0xff] }
 0x33c   : > { %v5611_v39 = vmul.f32 %v3528_v12, %v5217_v30  ;;  %v5615_v38 = vmul.f32 %v5426_v63, %v5491_v43  ;;  %v1933_v6 = vmul.f32 %v5151_v20, %v7331_v52  ;;  %v1957_v1 = vmul.f32 %v5497_v40, %v5351_v50  ;;  %7332 = vst [vmem:[#allocation11_spill] sm:$0xff] %v5626_v5  ;;  %v7335_v63 = vld [vmem:[#allocation231_spill] sm:$0xff]  ;;  %v7374_v3 = vld [vmem:[#allocation13_spill] sm:$0xff] }
 0x33d   : > { %v2493_v18 = vadd.f32 %v2489_v26, %v2473_v53  ;;  %v5604_v23 = vadd.f32 %v2030_v32, %v2014_v19  ;;  %v2533_v4 = vmul.f32 %v5577_v47, %v5521_v60  ;;  %v7333_v26 = vld [vmem:[#allocation36_spill] sm:$0xff]  ;;  %v7334_v32 = vld [vmem:[#allocation205_spill] sm:$0xff]  ;;  %v2362_v19 = vmul.f32 %v5324_v14, %v7335_v63  ;;  %2210 = vrot.lane.b32.xlu1 %v4941_v44, %s3559_s25  ;;  %v7336_v52 = vld [vmem:[#allocation203_spill] sm:$0xff] }
 0x33e   : > { %v5608_v49 = vpop.permute.xlu1 %1996  ;;  %v633_v53 = vmul.f32 %v7334_v32, %v7333_v26  ;;  %v1916_v9 = vadd.f32 %v1912_v41, %v1896_v8  ;;  %3472 = vrot.lane.b32.xlu0 %v5600_v33, %s3556_s12  ;;  %v1937_v60 = vadd.f32 %v1933_v6, %v1917_v61  ;;  %v1977_v50 = vmul.f32 %v5517_v13, %v5483_v31  ;;  %v3529_v8 = vld [vmem:[#allocation2 + $0x52] sm:$0xff]  ;;  %v7339_v6 = vld [vmem:[#allocation212_spill] sm:$0xff] }
 0x33f   : > { %7329 = vst [vmem:[#allocation196_spill] sm:$0xff] %v5604_v23  ;;  %v2513_v22 = vadd.f32 %v2509_v37, %v2493_v18  ;;  %v2553_v18 = vmul.f32 %v5596_v28, %v2542_v17  ;;  %v2342_v26 = vmul.f32 %v5346_v0, %v7336_v52  ;;  %v5641_v63 = vpop.permute.xlu0 %2543  ;;  %v5644_v41 = vmul.f32 %v3529_v8, %v5217_v30 }
 0x340   : > { %v637_v21 = vadd.f32 %v633_v53, %v617_v34  ;;  %v5648_v61 = vrot.slane %v5626_v5, %v3925_v35  ;;  %v1932_v31 = vmul.f32 %v5151_v20, %v7339_v6  ;;  %v1956_v34 = vmul.f32 %v5497_v40, %v5295_v48 }
 0x341   : > { %v2537_v37 = vadd.f32 %v2533_v4, %v2513_v22  ;;  %7337 = vst [vmem:[#allocation227_spill] sm:$0xff] %v5644_v41  ;;  %v1961_v17 = vadd.f32 %v1957_v1, %v1937_v60  ;;  %v3364_v22 = vunpack.i.l.bf16 %v4867_v55  ;;  %v2366_v53 = vadd.f32 %v2362_v19, %v2342_v26  ;;  %2671 = vrot.lane.b32.xlu1 %v5385_v57, %s3558_s24  ;;  %v7345_v60 = vld [vmem:[#allocation250_spill] sm:$0xff] }
 0x342   : > { %v1999_v56 = vpop.permute.xlu1 %1998  ;;  %7338 = vst [vmem:[#allocation34_spill] sm:$0xff] %v5648_v61  ;;  %v3359_v52 = vunpack.i.l.bf16 %v5154_v25  ;;  %2286 = vrot.lane.b32.xlu0 %v5311_v16, %s3558_s24  ;;  %v5664_v20 = vmul.f32 %v5385_v57, %v5225_v15  ;;  %v1936_v6 = vadd.f32 %v1932_v31, %v1916_v9  ;;  %v5668_v1 = vrot.slane %v5626_v5, %v3957_v58  ;;  %v7344_v25 = vld [vmem:[#allocation246_spill] sm:$0xff] }
 0x343   : > { %v5654_v4 = vadd.f32 %v2553_v18, %v2537_v37  ;;  %v1981_v48 = vadd.f32 %v1977_v50, %v1961_v17  ;;  %v5672_v55 = vmul.f32 %v4941_v44, %v5225_v15  ;;  %v649_v19 = vadd.f32 %v7344_v25, %v637_v21  ;;  %v7346_v37 = vld [vmem:[#allocation290_spill] sm:$0xff]  ;;  %v5677_v32 = vpop.permute.xlu0 %2092  ;;  %v7348_v50 = vld [vmem:[#allocation245_spill] sm:$0xff]  ;;  %v7350_v17 = vld [vmem:[#allocation32_spill] sm:$0xff] }
 0x344   : > { %7341 = vst [vmem:[#allocation33_spill] sm:$0xff] %v5664_v20  ;;  %7342 = vst [vmem:[#allocation236_spill] sm:$0xff] %v5668_v1  ;;  %v2394_v18 = vmul.f32 %v7346_v37, %v7345_v60  ;;  %v5680_v20 = vmul.f32 %v3528_v12, %v5648_v61  ;;  %v401_v9 = vld [vmem:[%s6810_s3 + $0x78] sm:$0x1f]  ;;  %v5687_v31 = vmul.f32 %v7348_v50, %v5311_v16 }
 0x345   : > { %7340 = vst [vmem:[#allocation193_spill] sm:$0xff] %v5654_v4  ;;  %7343 = vst [vmem:[#allocation30_spill] sm:$0xff] %v5672_v55  ;;  %v7351_v15 = vld [vmem:[#allocation210_spill] sm:$0xff]  ;;  %v1960_v25 = vadd.f32 %v1956_v34, %v1936_v6  ;;  %v2009_v60 = vmul.f32 %v5531_v11, %v1999_v56  ;;  %v5693_v55 = vmul.f32 %v3529_v8, %v5648_v61  ;;  %v7353_v4 = vld [vmem:[#allocation299_spill] sm:$0xff] }
 0x346   : > { %v2017_v26 = vpop.permute.xlu1 %2016  ;;  %7347 = vst [vmem:[#allocation10_spill] sm:$0xff] %v5680_v20  ;;  %7349 = vst [vmem:[#allocation209_spill] sm:$0xff] %v5687_v31  ;;  %v665_v21 = vmul.f32 %v7351_v15, %v7350_v17  ;;  %v2363_v12 = vmul.f32 %v3364_v22, %v5324_v14  ;;  %v2343_v20 = vmul.f32 %v3359_v52, %v5346_v0  ;;  %v7354_v41 = vld [vmem:[#allocation274_spill] sm:$0xff]  ;;  %v7355_v31 = vld [vmem:[#allocation223_spill] sm:$0xff] }
 0x347   : > { %7352 = vst [vmem:[#allocation217_spill] sm:$0xff] %v5693_v55  ;;  %v2378_v5 = vadd.f32 %v7353_v4, %v2366_v53  ;;  %2232 = vrot.lane.b32.xlu1 %v7354_v41, %s3556_s12  ;;  %2304 = vrot.lane.b32.xlu0 %v7354_v41, %s3559_s25  ;;  %v1976_v34 = vmul.f32 %v5517_v13, %v7355_v31  ;;  %v7356_v8 = vld [vmem:[#allocation300_spill] sm:$0xff]  ;;  %v7359_v53 = vld [vmem:[#allocation297_spill] sm:$0xff]  ;;  %v2095_v61 = vpop.permute.xlu0 %2094  ;;  %v7360_v15 = vld [vmem:[#allocation239_spill] sm:$0xff] }
 0x348   : > { %v5706_v56 = vrot.slane %v5175_v24, %v3957_v58  ;;  %v1993_v6 = vadd.f32 %v7356_v8, %v1981_v48  ;;  %v7357_v14 = vld [vmem:[#allocation16_spill] sm:$0xff]  ;;  %v669_v0 = vadd.f32 %v665_v21, %v649_v19  ;;  %v3369_v52 = vunpack.i.l.bf16 %v7359_v53  ;;  %v7361_v55 = vld [vmem:[#allocation287_spill] sm:$0xff]  ;;  %v7364_v8 = vld [vmem:[#allocation214_spill] sm:$0xff] }
 0x349   : > { %v5710_v22 = vrot.slane %v401_v9, %v7357_v14  ;;  %v2398_v4 = vadd.f32 %v2394_v18, %v2378_v5  ;;  %v5715_v46 = vmul.f32 %v7361_v55, %v7360_v15  ;;  %v1980_v31 = vadd.f32 %v1976_v34, %v1960_v25  ;;  %v7363_v9 = vld [vmem:[#allocation38_spill] sm:$0xff]  ;;  %v7365_v5 = vld [vmem:[#allocation221_spill] sm:$0xff]  ;;  %v7366_v18 = vld [vmem:[#allocation296_spill] sm:$0xff] }
 0x34a   : > { %v2019_v17 = vpop.permute.xlu1 %2018  ;;  %v5719_v58 = vrot.slane %v5175_v24, %v3974_v45  ;;  %v2013_v23 = vadd.f32 %v2009_v60, %v1993_v6  ;;  %v685_v19 = vmul.f32 %v7364_v8, %v7363_v9  ;;  %v2414_v21 = vmul.f32 %v7366_v18, %v7365_v5  ;;  %v7368_v25 = vld [vmem:[#allocation35_spill] sm:$0xff]  ;;  %v7371_v45 = vld [vmem:[#allocation232_spill] sm:$0xff] }
 0x34b   : > { %7358 = vst [vmem:[#allocation36_spill] sm:$0xff] %v5710_v22  ;;  %7362 = vst [vmem:[#allocation231_spill] sm:$0xff] %v5715_v46  ;;  %v2029_v48 = vmul.f32 %v5554_v10, %v2019_v17  ;;  %v2367_v53 = vadd.f32 %v2363_v12, %v2343_v20  ;;  %v7367_v22 = vld [vmem:[#allocation225_spill] sm:$0xff]  ;;  %2765 = vrot.lane.b32.xlu0 %v5311_v16, %s3558_s24  ;;  %v7369_v34 = vld [vmem:[#allocation7_spill] sm:$0xff]  ;;  %v2008_v6 = vmul.f32 %v5531_v11, %v5608_v49  ;;  %v5738_v14 = vpop.permute.xlu0 %3422 }
 0x34c   : > { %3457 = vrot.lane.b32.xlu1 %v7367_v22, %s3558_s24  ;;  %v709_v24 = vmul.f32 %v7369_v34, %v7368_v25  ;;  %v7370_v46 = vld [vmem:[#allocation298_spill] sm:$0xff]  ;;  %v689_v9 = vadd.f32 %v685_v19, %v669_v0  ;;  %v3374_v5 = vunpack.i.l.bf16 %v7371_v45  ;;  %v2418_v20 = vadd.f32 %v2414_v21, %v2398_v4  ;;  %7372 = vst [vmem:[#allocation203_spill] sm:$0xff] %v5738_v14  ;;  %v7373_v25 = vld [vmem:[#allocation276_spill] sm:$0xff] }
 0x34d   : > { %v2053_v60 = vmul.f32 %v5706_v56, %v7370_v46  ;;  %v2033_v17 = vadd.f32 %v2029_v48, %v2013_v23  ;;  %v2395_v12 = vmul.f32 %v3369_v52, %v7346_v37  ;;  %v2073_v50 = vmul.f32 %v5719_v58, %v5550_v42  ;;  %v7375_v49 = vld [vmem:[#allocation294_spill] sm:$0xff] }
 0x34e   : > { %v2480_v8 = vpop.permute.xlu1 %2479  ;;  %v1992_v34 = vadd.f32 %v7373_v25, %v1980_v31  ;;  %v2028_v46 = vmul.f32 %v5554_v10, %v2017_v26  ;;  %v2438_v23 = vmul.f32 %v5462_v2, %v7374_v3  ;;  %v2379_v0 = vadd.f32 %v7375_v49, %v2367_v53  ;;  %v7376_v45 = vld [vmem:[#allocation238_spill] sm:$0xff]  ;;  %v7377_v31 = vld [vmem:[#allocation12_spill] sm:$0xff] }
 0x34f   : > { %v2057_v30 = vadd.f32 %v2053_v60, %v2033_v17  ;;  %v5749_v4 = vrot.slane %v7376_v45, %v3925_v35  ;;  %2306 = vrot.lane.b32.xlu0 %v5311_v16, %s3559_s25  ;;  %v2458_v42 = vmul.f32 %v5471_v51, %v5579_v7  ;;  %v5759_v3 = vrot.slane %v7376_v45, %v3927_v36  ;;  %v2115_v60 = vpop.permute.xlu0 %2114  ;;  %v7381_v35 = vld [vmem:[#allocation19_spill] sm:$0xff] }
 0x350   : > { %2691 = vrot.lane.b32.xlu1 %v5385_v57, %s3559_s25  ;;  %v2012_v37 = vadd.f32 %v2008_v6, %v1992_v34  ;;  %v2415_v52 = vmul.f32 %v3374_v5, %v7366_v18  ;;  %v3380_v48 = vunpack.i.h.bf16 %v7377_v31  ;;  %v2399_v19 = vadd.f32 %v2395_v12, %v2379_v0  ;;  %v7380_v6 = vld [vmem:[#allocation77_spill] sm:$0xff]  ;;  %v7382_v18 = vld [vmem:[#allocation79_spill] sm:$0xff]  ;;  %v7383_v5 = vld [vmem:[#allocation20_spill] sm:$0xff] }
 0x351   : > { %v2077_v26 = vadd.f32 %v2073_v50, %v2057_v30  ;;  %v2442_v21 = vadd.f32 %v2438_v23, %v2418_v20  ;;  %v2105_v49 = vmul.f32 %v5749_v4, %v2095_v61  ;;  %v7378_v30 = vld [vmem:[#allocation49_spill] sm:$0xff]  ;;  %v420_v36 = vmul.f32 %v7381_v35, %v7380_v6  ;;  %v7384_v0 = vld [vmem:[#allocation15_spill] sm:$0xff] }
 0x352   : > { %v2041_v53 = vpop.permute.xlu1 %2040  ;;  %v2032_v17 = vadd.f32 %v2028_v46, %v2012_v37  ;;  %v7379_v50 = vld [vmem:[#allocation197_spill] sm:$0xff]  ;;  %v440_v14 = vmul.f32 %v7383_v5, %v7382_v18  ;;  %v3379_v20 = vunpack.i.l.bf16 %v7377_v31  ;;  %v2125_v46 = vmul.f32 %v5759_v3, %v2115_v60  ;;  %v7385_v6 = vld [vmem:[#allocation55_spill] sm:$0xff] }
 0x353   : > { %v2089_v25 = vadd.f32 %v5611_v39, %v2077_v26  ;;  %v2052_v7 = vmul.f32 %v5706_v56, %v2041_v53  ;;  %v1049_v34 = vmul.f32 %v7379_v50, %v7378_v30  ;;  %1827 = vrot.lane.b32.xlu0 %v7361_v55, %s3559_s25  ;;  %v2462_v39 = vadd.f32 %v2458_v42, %v2442_v21  ;;  %v5781_v31 = vpop.permute.xlu0 %2096 }
 0x354   : > { %2252 = vrot.lane.b32.xlu1 %v7354_v41, %s3557_s14  ;;  %v2439_v23 = vmul.f32 %v3380_v48, %v5462_v2  ;;  %v3385_v35 = vunpack.i.h.bf16 %v7384_v0  ;;  %v3384_v37 = vunpack.i.l.bf16 %v7384_v0  ;;  %v2419_v26 = vadd.f32 %v2415_v52, %v2399_v19  ;;  %v7389_v48 = vld [vmem:[#allocation53_spill] sm:$0xff]  ;;  %v7396_v0 = vld [vmem:[#allocation243_spill] sm:$0xff] }
 0x355   : > { %v2109_v61 = vadd.f32 %v2105_v49, %v2089_v25  ;;  %v2056_v12 = vadd.f32 %v2052_v7, %v2032_v17  ;;  %v713_v30 = vadd.f32 %v709_v24, %v689_v9  ;;  %v1053_v18 = vadd.f32 %v1049_v34, %v7385_v6  ;;  %v7387_v24 = vld [vmem:[#allocation40_spill] sm:$0xff]  ;;  %v7388_v9 = vld [vmem:[#allocation219_spill] sm:$0xff] }
 0x356   : > { %v3398_v53 = vpop.permute.xlu1 %3397  ;;  %v2490_v5 = vmul.f32 %v5548_v27, %v2480_v8  ;;  %v444_v21 = vadd.f32 %v440_v14, %v420_v36  ;;  %v1959_v60 = vmul.f32 %v3379_v20, %v5497_v40  ;;  %v5794_v2 = vmul.f32 %v5668_v1, %v4941_v44  ;;  %v7390_v8 = vld [vmem:[#allocation200_spill] sm:$0xff] }
 0x357   : > { %v5785_v42 = vadd.f32 %v2125_v46, %v2109_v61  ;;  %2785 = vrot.lane.b32.xlu0 %v5311_v16, %s3559_s25  ;;  %v729_v52 = vmul.f32 %v7388_v9, %v7387_v24  ;;  %v1069_v19 = vmul.f32 %v7390_v8, %v7389_v48  ;;  %v2474_v36 = vadd.f32 %v5615_v38, %v2462_v39  ;;  %v5807_v44 = vpop.permute.xlu0 %2593  ;;  %v7393_v39 = vld [vmem:[#allocation56_spill] sm:$0xff]  ;;  %v7395_v46 = vld [vmem:[#allocation258_spill] sm:$0xff] }
 0x358   : > { %3462 = vrot.lane.b32.xlu1 %v7367_v22, %s3559_s25  ;;  %7386 = vst [vmem:[#allocation212_spill] sm:$0xff] %v5794_v2  ;;  %v5803_v40 = vmul.f32 %v5385_v57, %v5668_v1  ;;  %v2459_v14 = vmul.f32 %v3385_v35, %v5471_v51  ;;  %v1979_v22 = vmul.f32 %v3384_v37, %v5517_v13  ;;  %v7394_v57 = vld [vmem:[#allocation204_spill] sm:$0xff]  ;;  %v7397_v35 = vld [vmem:[#allocation233_spill] sm:$0xff]  ;;  %v3400_v6 = vunpack.i.h.bf16 %v3398_v53 }
 0x359   : > { %v2443_v17 = vadd.f32 %v2439_v23, %v2419_v26  ;;  %v5811_v49 = vmul.f32 %v5503_v59, %v7360_v15  ;;  %v733_v7 = vadd.f32 %v729_v52, %v713_v30  ;;  %v1073_v34 = vadd.f32 %v1069_v19, %v1053_v18  ;;  %v3530_v37 = vld [vmem:[#allocation2 + $0x61] sm:$0xff] }
 0x35a   : > { %7391 = vst [vmem:[#allocation246_spill] sm:$0xff] %v5803_v40  ;;  %v2500_v25 = vpop.permute.xlu1 %2499  ;;  %v2494_v20 = vadd.f32 %v2490_v5, %v2474_v36  ;;  %v1093_v61 = vmul.f32 %v7394_v57, %v7393_v39  ;;  %v456_v51 = vadd.f32 %v7395_v46, %v444_v21  ;;  %v1963_v13 = vadd.f32 %v1959_v60, %v7396_v0  ;;  %v7398_v26 = vld [vmem:[#allocation240_spill] sm:$0xff]  ;;  %v2821_v5 = vld [vmem:[%s6811_s4] sm:$0xff]  ;;  %v7399_v36 = vld [vmem:[#allocation57_spill] sm:$0xff] }
 0x35b   : > { %7392 = vst [vmem:[#allocation250_spill] sm:$0xff] %v5811_v49  ;;  %v2510_v38 = vmul.f32 %v5561_v29, %v2500_v25  ;;  %v3399_v23 = vunpack.i.l.bf16 %v3398_v53  ;;  %2787 = vrot.lane.b32.xlu0 %v5503_v59, %s3559_s25  ;;  %v2534_v15 = vmul.f32 %v5577_v47, %v5581_v62  ;;  %v1991_v30 = vmul.f32 %v3530_v37, %v7398_v26  ;;  %v2822_v21 = vld [vmem:[%s6811_s4 + $0x8] sm:$0xff]  ;;  %v5832_v19 = vpop.permute.xlu0 %2595  ;;  %v7400_v25 = vld [vmem:[#allocation22_spill] sm:$0xff]  ;;  %v7401_v46 = vld [vmem:[#allocation251_spill] sm:$0xff] }
 0x35c   : > { %3467 = vrot.lane.b32.xlu1 %v7397_v35, %s3558_s24  ;;  %v1983_v60 = vadd.f32 %v1979_v22, %v1963_v13  ;;  %v2471_v24 = vmul.f32 %v3530_v37, %v5491_v43  ;;  %v2463_v52 = vadd.f32 %v2459_v14, %v2443_v17  ;;  %v3151_v62 = vpack.c.bf16 %v2822_v21, %v2821_v5 }
 0x35d   : > { %v2514_v18 = vadd.f32 %v2510_v38, %v2494_v20  ;;  %v472_v53 = vmul.f32 %v7400_v25, %v7399_v36  ;;  %v2554_v20 = vmul.f32 %v5596_v28, %v5641_v63  ;;  %v5840_v0 = vadd.f32 %v7401_v46, %v733_v7  ;;  %v2823_v7 = vld [vmem:[%s6811_s4 + $0x10] sm:$0xff]  ;;  %v7405_v36 = vld [vmem:[#allocation27_spill] sm:$0xff] }
 0x35e   : > { %v2061_v48 = vpop.permute.xlu1 %2060  ;;  %v1097_v22 = vadd.f32 %v1093_v61, %v1073_v34  ;;  %v2011_v13 = vmul.f32 %v3399_v23, %v5531_v11  ;;  %v2491_v17 = vmul.f32 %v3400_v6, %v5548_v27  ;;  %3152 = vmatprep.subr.bf16.mxu1 %v3151_v62  ;;  %v2824_v11 = vld [vmem:[%s6811_s4 + $0x18] sm:$0xff]  ;;  %v7402_v34 = vld [vmem:[#allocation237_spill] sm:$0xff]  ;;  %v1995_v23 = vadd.f32 %v1991_v30, %v1983_v60 }
 0x35f   : > { %v2538_v38 = vadd.f32 %v2534_v15, %v2514_v18  ;;  %v2072_v39 = vmul.f32 %v5719_v58, %v2061_v48  ;;  %3482 = vrot.lane.b32.xlu0 %v5600_v33, %s3558_s24  ;;  %v476_v14 = vadd.f32 %v472_v53, %v456_v51  ;;  %v3390_v61 = vunpack.i.h.bf16 %v7402_v34  ;;  %v5857_v51 = vpop.permute.xlu0 %2156  ;;  %3154 = vmatpush3.bf16.msra.mxu1 %v3151_v62  ;;  %v7403_v6 = vld [vmem:[#allocation277_spill] sm:$0xff]  ;;  %v7406_v53 = vld [vmem:[#allocation266_spill] sm:$0xff]  ;;  %v7412_v34 = vld [vmem:[#allocation28_spill] sm:$0xff] }
 0x360   : > { %2236 = vrot.lane.b32.xlu1 %v5587_v54, %s3556_s12  ;;  %v2475_v15 = vadd.f32 %v2471_v24, %v2463_v52  ;;  %v2104_v26 = vmul.f32 %v5749_v4, %v5677_v32  ;;  %v7404_v48 = vld [vmem:[#allocation81_spill] sm:$0xff]  ;;  %v7407_v30 = vld [vmem:[#allocation230_spill] sm:$0xff] }
 0x361   : > { %v2076_v35 = vadd.f32 %v2072_v39, %v2056_v12  ;;  %v5848_v63 = vadd.f32 %v2554_v20, %v2538_v38  ;;  %v3155_v12 = vpack.c.bf16 %v2824_v11, %v2823_v7  ;;  %v492_v25 = vmul.f32 %v7405_v36, %v7404_v48  ;;  %v3531_v60 = vld [vmem:[#allocation2 + $0x71] sm:$0xff]  ;;  %v7410_v7 = vld [vmem:[#allocation207_spill] sm:$0xff] }
 0x362   : > { %v3403_v37 = vpop.permute.xlu1 %3402  ;;  %v3395_v20 = vunpack.i.h.bf16 %v7406_v53  ;;  %v2015_v38 = vadd.f32 %v2011_v13, %v1995_v23  ;;  %v2472_v24 = vmul.f32 %v3531_v60, %v5491_v43  ;;  %v7408_v52 = vld [vmem:[#allocation5_spill] sm:$0xff]  ;;  %v2495_v32 = vadd.f32 %v2491_v17, %v2475_v15  ;;  %v7411_v11 = vld [vmem:[#allocation59_spill] sm:$0xff]  ;;  %v7419_v60 = vld [vmem:[#allocation272_spill] sm:$0xff] }
 0x363   : > { %v2088_v18 = vadd.f32 %v7403_v6, %v2076_v35  ;;  %v3405_v5 = vunpack.i.h.bf16 %v3403_v37  ;;  %v3404_v21 = vunpack.i.l.bf16 %v3403_v37  ;;  %2791 = vrot.lane.b32.xlu0 %v7408_v52, %s3559_s25  ;;  %3156 = vmatprep.subr.bf16.mxu1 %v3155_v12  ;;  %v7409_v35 = vld [vmem:[#allocation58_spill] sm:$0xff]  ;;  %v516_v23 = vmul.f32 %v7412_v34, %v7411_v11  ;;  %v7413_v37 = vld [vmem:[#allocation76_spill] sm:$0xff]  ;;  %v7414_v6 = vld [vmem:[#allocation45_spill] sm:$0xff]  ;;  %v5880_v53 = vpop.permute.xlu0 %2617 }
 0x364   : > { %2695 = vrot.lane.b32.xlu1 %v7407_v30, %s3559_s25  ;;  %v1113_v13 = vmul.f32 %v7410_v7, %v7409_v35  ;;  %v920_v43 = vmul.f32 %v7414_v6, %v7413_v37  ;;  %v496_v48 = vadd.f32 %v492_v25, %v476_v14  ;;  %3158 = vmatpush3.bf16.msra.mxu1 %v3155_v12  ;;  %v7416_v14 = vld [vmem:[#allocation44_spill] sm:$0xff]  ;;  %v7421_v34 = vld [vmem:[#allocation37_spill] sm:$0xff]  ;;  %v7422_v37 = vld [vmem:[#allocation171_spill] sm:$0xff] }
 0x365   : > { %v2511_v62 = vmul.f32 %v3405_v5, %v5561_v29  ;;  %v2031_v39 = vmul.f32 %v3404_v21, %v5554_v10  ;;  %v5872_v46 = vadd.f32 %v2104_v26, %v2088_v18  ;;  %v2055_v17 = vmul.f32 %v3390_v61, %v5706_v56  ;;  %v2825_v18 = vld [vmem:[%s6811_s4 + $0x20] sm:$0xff]  ;;  %v2826_v5 = vld [vmem:[%s6811_s4 + $0x28] sm:$0xff]  ;;  %v7418_v61 = vld [vmem:[#allocation241_spill] sm:$0xff] }
 0x366   : > { %v3408_v36 = vpop.permute.xlu1 %3407  ;;  %v7415_v21 = vld [vmem:[#allocation75_spill] sm:$0xff]  ;;  %v2075_v30 = vmul.f32 %v3395_v20, %v5719_v58  ;;  %v3159_v52 = vpack.c.bf16 %v2826_v5, %v2825_v18  ;;  %v1117_v49 = vadd.f32 %v1113_v13, %v1097_v22  ;;  %v520_v1 = vadd.f32 %v516_v23, %v496_v48  ;;  %v7423_v22 = vld [vmem:[#allocation245_spill] sm:$0xff] }
 0x367   : > { %v2035_v10 = vadd.f32 %v2031_v39, %v2015_v38  ;;  %v5883_v15 = vadd.f32 %v2511_v62, %v2495_v32  ;;  %v3409_v26 = vunpack.i.l.bf16 %v3408_v36  ;;  %v900_v25 = vmul.f32 %v7416_v14, %v7415_v21  ;;  %v5894_v12 = vld [vmem:[#allocation2 + $0x62] sm:$0xff]  ;;  %v7420_v39 = vld [vmem:[#allocation25_spill] sm:$0xff]  ;;  %v5904_v2 = vpop.permute.xlu0 %2619 }
 0x368   : > { %7417 = vst [vmem:[#allocation290_spill] sm:$0xff] %v5894_v12  ;;  %v2087_v38 = vmul.f32 %v5894_v12, %v7418_v61  ;;  %1823 = vrot.lane.b32.xlu1 %v7419_v60, %s3559_s25  ;;  %v3410_v62 = vunpack.i.h.bf16 %v3408_v36  ;;  %v2476_v35 = vadd.f32 %v2472_v24, %v7420_v39  ;;  %v761_v21 = vmul.f32 %v7422_v37, %v7421_v34  ;;  %v2827_v24 = vld [vmem:[%s6811_s4 + $0x30] sm:$0xff]  ;;  %v7425_v23 = vld [vmem:[#allocation39_spill] sm:$0xff] }
 0x369   : > { %v2059_v32 = vadd.f32 %v2055_v17, %v2035_v10  ;;  %v2492_v11 = vmul.f32 %v3409_v26, %v5548_v27  ;;  %v924_v20 = vadd.f32 %v920_v43, %v900_v25  ;;  %3160 = vmatprep.subr.bf16.mxu1 %v3159_v52  ;;  %v2828_v27 = vld [vmem:[%s6811_s4 + $0x38] sm:$0xff]  ;;  %v5915_v13 = vmul.f32 %v7423_v22, %v5587_v54  ;;  %v7430_v5 = vld [vmem:[#allocation133_spill] sm:$0xff]  ;;  %v7432_v39 = vld [vmem:[#allocation247_spill] sm:$0xff] }
 0x36a   : > { %v2045_v40 = vpop.permute.xlu1 %2044  ;;  %3162 = vmatpush3.bf16.msra.mxu1 %v3159_v52  ;;  %v7426_v43 = vld [vmem:[#allocation226_spill] sm:$0xff]  ;;  %v765_v36 = vadd.f32 %v761_v21, %v5840_v0  ;;  %v3163_v10 = vpack.c.bf16 %v2828_v27, %v2827_v24  ;;  %v7431_v52 = vld [vmem:[#allocation196_spill] sm:$0xff]  ;;  %v7435_v21 = vld [vmem:[#allocation47_spill] sm:$0xff] }
 0x36b   : > { %v2079_v61 = vadd.f32 %v2075_v30, %v2059_v32  ;;  %v2496_v9 = vadd.f32 %v2492_v11, %v2476_v35  ;;  %v2054_v18 = vmul.f32 %v5706_v56, %v2045_v40  ;;  %7424 = vst [vmem:[#allocation32_spill] sm:$0xff] %v5915_v13  ;;  %v5919_v48 = vmul.f32 %v7426_v43, %v7425_v23  ;;  %v7427_v56 = vld [vmem:[#allocation83_spill] sm:$0xff]  ;;  %v7429_v26 = vld [vmem:[#allocation42_spill] sm:$0xff]  ;;  %v7433_v11 = vld [vmem:[#allocation257_spill] sm:$0xff]  ;;  %v5934_v13 = vpop.permute.xlu0 %3432 }
 0x36c   : > { %v7428_v40 = vld [vmem:[#allocation31_spill] sm:$0xff]  ;;  %2284 = vrot.lane.b32.xlu1 %v7354_v41, %s3558_s24  ;;  %v781_v25 = vmul.f32 %v7430_v5, %v7429_v26  ;;  %v2107_v30 = vmul.f32 %v3410_v62, %v5749_v4  ;;  %v1129_v35 = vadd.f32 %v7432_v39, %v1117_v49  ;;  %v936_v34 = vadd.f32 %v7433_v11, %v924_v20  ;;  %v7434_v0 = vld [vmem:[#allocation78_spill] sm:$0xff]  ;;  %v7437_v41 = vld [vmem:[#allocation60_spill] sm:$0xff] }
 0x36d   : > { %v536_v17 = vmul.f32 %v7428_v40, %v7427_v56  ;;  %v2091_v60 = vadd.f32 %v2087_v38, %v2079_v61  ;;  %v2058_v32 = vadd.f32 %v2054_v18, %v7431_v52  ;;  %v952_v23 = vmul.f32 %v7435_v21, %v7434_v0  ;;  %7436 = vst [vmem:[#allocation299_spill] sm:$0xff] %v5934_v13  ;;  %v7438_v24 = vld [vmem:[#allocation213_spill] sm:$0xff]  ;;  %v2829_v49 = vld [vmem:[%s6811_s4 + $0x40] sm:$0xff]  ;;  %v2830_v20 = vld [vmem:[%s6811_s4 + $0x48] sm:$0xff] }
 0x36e   : > { %v3413_v40 = vpop.permute.xlu1 %3412  ;;  %3164 = vmatprep.subr.bf16.mxu1 %v3163_v10  ;;  %v1145_v27 = vmul.f32 %v7438_v24, %v7437_v41  ;;  %v7439_v61 = vld [vmem:[#allocation52_spill] sm:$0xff]  ;;  %v7440_v18 = vld [vmem:[#allocation218_spill] sm:$0xff]  ;;  %v7447_v37 = vld [vmem:[#allocation259_spill] sm:$0xff] }
 0x36f   : > { %v540_v56 = vadd.f32 %v536_v17, %v520_v1  ;;  %v2111_v26 = vadd.f32 %v2107_v30, %v2091_v60  ;;  %v3415_v62 = vunpack.i.h.bf16 %v3413_v40  ;;  %v3414_v38 = vunpack.i.l.bf16 %v3413_v40  ;;  %3166 = vmatpush3.bf16.msra.mxu1 %v3163_v10  ;;  %v7441_v52 = vld [vmem:[#allocation80_spill] sm:$0xff]  ;;  %v3533_v30 = vld [vmem:[#allocation2 + $0x34] sm:$0xff] }
 0x370   : > { %v5944_v1 = vadd.f32 %v781_v25, %v765_v36  ;;  %v1189_v17 = vmul.f32 %v7440_v18, %v7439_v61  ;;  %v7442_v39 = vld [vmem:[#allocation48_spill] sm:$0xff]  ;;  %1825 = vrot.lane.b32.xlu1 %v3533_v30, %s3559_s25  ;;  %v3167_v10 = vpack.c.bf16 %v2830_v20, %v2829_v49  ;;  %v7443_v60 = vld [vmem:[#allocation61_spill] sm:$0xff]  ;;  %v7444_v0 = vld [vmem:[#allocation194_spill] sm:$0xff]  ;;  %v956_v25 = vadd.f32 %v952_v23, %v936_v34  ;;  %v5964_v20 = vpop.permute.xlu0 %3437 }
 0x371   : > { %v972_v11 = vmul.f32 %v7442_v39, %v7441_v52  ;;  %v568_v40 = vmul.f32 %v7444_v0, %v7443_v60  ;;  %v7445_v41 = vld [vmem:[#allocation62_spill] sm:$0xff]  ;;  %v7446_v22 = vld [vmem:[#allocation216_spill] sm:$0xff]  ;;  %v2127_v43 = vmul.f32 %v3415_v62, %v5759_v3  ;;  %v2512_v36 = vmul.f32 %v3414_v38, %v5561_v29  ;;  %v7448_v18 = vld [vmem:[#allocation99_spill] sm:$0xff] }
 0x372   : > { %v1165_v5 = vmul.f32 %v7446_v22, %v7445_v41  ;;  %v552_v61 = vadd.f32 %v7447_v37, %v540_v56  ;;  %v7449_v24 = vld [vmem:[#allocation50_spill] sm:$0xff]  ;;  %v2065_v12 = vpop.permute.xlu1 %2064  ;;  %v7450_v13 = vld [vmem:[#allocation16_spill] sm:$0xff]  ;;  %3168 = vmatprep.subr.bf16.mxu1 %v3167_v10  ;;  %v1149_v30 = vadd.f32 %v1145_v27, %v1129_v35  ;;  %v2831_v29 = vld [vmem:[%s6811_s4 + $0x50] sm:$0xff]  ;;  %v3439_v56 = vunpack.i.l.bf16 %v5964_v20 }
 0x373   : > { %v996_v52 = vmul.f32 %v7449_v24, %v7448_v18  ;;  %v5962_v49 = vrot.slane %v7376_v45, %v7450_v13  ;;  %v2131_v60 = vadd.f32 %v2127_v43, %v2111_v26  ;;  %v2516_v0 = vadd.f32 %v2512_v36, %v2496_v9  ;;  %3170 = vmatpush3.bf16.msra.mxu1 %v3167_v10  ;;  %v2832_v37 = vld [vmem:[%s6811_s4 + $0x58] sm:$0xff]  ;;  %v7451_v45 = vld [vmem:[#allocation203_spill] sm:$0xff] }
 0x374   : > { %v2074_v62 = vmul.f32 %v5719_v58, %v2065_v12  ;;  %v976_v34 = vadd.f32 %v972_v11, %v956_v25  ;;  %v3425_v23 = vunpack.i.h.bf16 %v7451_v45  ;;  %1807 = vrot.lane.b32.xlu1 %v7361_v55, %s3558_s24  ;;  %v3171_v9 = vpack.c.bf16 %v2832_v37, %v2831_v29  ;;  %v7452_v58 = vld [vmem:[#allocation63_spill] sm:$0xff]  ;;  %v7453_v12 = vld [vmem:[#allocation201_spill] sm:$0xff]  ;;  %v7454_v38 = vld [vmem:[#allocation82_spill] sm:$0xff]  ;;  %v5983_v22 = vpop.permute.xlu0 %2160 }
 0x375   : > { %v1169_v43 = vadd.f32 %v1165_v5, %v1149_v30  ;;  %v612_v35 = vmul.f32 %v7453_v12, %v7452_v58  ;;  %v3424_v27 = vunpack.i.l.bf16 %v7451_v45  ;;  %v7455_v18 = vld [vmem:[#allocation51_spill] sm:$0xff]  ;;  %v572_v41 = vadd.f32 %v568_v40, %v552_v61  ;;  %v2834_v40 = vld [vmem:[%s6811_s4 + $0x68] sm:$0xff]  ;;  %v7457_v61 = vld [vmem:[#allocation85_spill] sm:$0xff] }
 0x376   : > { %v2078_v26 = vadd.f32 %v2074_v62, %v2058_v32  ;;  %v1016_v10 = vmul.f32 %v7455_v18, %v7454_v38  ;;  %v1000_v11 = vadd.f32 %v996_v52, %v976_v34  ;;  %v2151_v36 = vmul.f32 %v3439_v56, %v5962_v49  ;;  %v3418_v25 = vpop.permute.xlu1 %3417  ;;  %3172 = vmatprep.subr.bf16.mxu1 %v3171_v9  ;;  %v7456_v5 = vld [vmem:[#allocation227_spill] sm:$0xff]  ;;  %v7458_v52 = vld [vmem:[#allocation198_spill] sm:$0xff]  ;;  %v2835_v12 = vld [vmem:[%s6811_s4 + $0x70] sm:$0xff] }
 0x377   : > { %v2106_v55 = vmul.f32 %v5749_v4, %v5781_v31  ;;  %v3420_v29 = vunpack.i.h.bf16 %v3418_v25  ;;  %v3419_v37 = vunpack.i.l.bf16 %v3418_v25  ;;  %3174 = vmatpush3.bf16.msra.mxu1 %v3171_v9  ;;  %v2833_v32 = vld [vmem:[%s6811_s4 + $0x60] sm:$0xff]  ;;  %v588_v62 = vmul.f32 %v7458_v52, %v7457_v61 }
 0x378   : > { %v2090_v30 = vadd.f32 %v7456_v5, %v2078_v26  ;;  %v2556_v34 = vmul.f32 %v3425_v23, %v5596_v28  ;;  %v2155_v45 = vadd.f32 %v2151_v36, %v2131_v60  ;;  %3477 = vrot.lane.b32.xlu1 %v5600_v33, %s3557_s14  ;;  %v3175_v4 = vpack.c.bf16 %v2834_v40, %v2833_v32  ;;  %v2836_v60 = vld [vmem:[%s6811_s4 + $0x78] sm:$0xff]  ;;  %v6010_v36 = vpop.permute.xlu0 %3442  ;;  %v7460_v5 = vld [vmem:[#allocation11_spill] sm:$0xff] }
 0x379   : > { %v2555_v31 = vmul.f32 %v3424_v27, %v5596_v28  ;;  %v2536_v56 = vmul.f32 %v3420_v29, %v5577_v47  ;;  %v2535_v9 = vmul.f32 %v3419_v37, %v5577_v47  ;;  %v1193_v23 = vadd.f32 %v1189_v17, %v1169_v43  ;;  %v7461_v29 = vld [vmem:[#allocation64_spill] sm:$0xff] }
 0x37a   : > { %v6002_v58 = vadd.f32 %v2106_v55, %v2090_v30  ;;  %v592_v26 = vadd.f32 %v588_v62, %v572_v41  ;;  %v1020_v33 = vadd.f32 %v1016_v10, %v1000_v11  ;;  %v2113_v38 = vpop.permute.xlu1 %2112  ;;  %3176 = vmatprep.subr.bf16.mxu1 %v3175_v4  ;;  %v3179_v28 = vpack.c.bf16 %v2836_v60, %v2835_v12  ;;  %v7459_v55 = vld [vmem:[#allocation18_spill] sm:$0xff]  ;;  %v7462_v37 = vld [vmem:[#allocation220_spill] sm:$0xff] }
 0x37b   : > { %v2539_v47 = vadd.f32 %v2535_v9, %v5883_v15  ;;  %v2540_v27 = vadd.f32 %v2536_v56, %v2516_v0  ;;  %v2124_v25 = vmul.f32 %v5759_v3, %v2113_v38  ;;  %v6016_v30 = vrot.slane %v7460_v5, %v7459_v55  ;;  %3178 = vmatpush3.bf16.msra.mxu1 %v3175_v4  ;;  %v7463_v43 = vld [vmem:[#allocation108_spill] sm:$0xff]  ;;  %v6025_v41 = vld [vmem:[%s6810_s3 + $0x58] sm:$0xff]  ;;  %v7464_v15 = vld [vmem:[#allocation21_spill] sm:$0xff] }
 0x37c   : > { %v1209_v17 = vmul.f32 %v7462_v37, %v7461_v29  ;;  %v922_v10 = vmul.f32 %v7414_v6, %v7463_v43  ;;  %v6029_v0 = vrot.slane %v6025_v41, %v7464_v15  ;;  %v3444_v11 = vunpack.i.l.bf16 %v6010_v36  ;;  %1809 = vrot.lane.b32.xlu1 %v5503_v59, %s3558_s24  ;;  %3180 = vmatprep.subr.bf16.mxu1 %v3179_v28  ;;  %v7465_v62 = vld [vmem:[#allocation262_spill] sm:$0xff]  ;;  %v6047_v38 = vpop.permute.xlu0 %3447 }
 0x37d   : > { %v6036_v32 = vrot.slane %v7460_v5, %v7450_v13  ;;  %v6038_v6 = vadd.f32 %v2555_v31, %v2539_v47  ;;  %v6040_v40 = vadd.f32 %v2556_v34, %v2540_v27  ;;  %v2128_v61 = vadd.f32 %v2124_v25, %v5872_v46  ;;  %v7466_v56 = vld [vmem:[#allocation106_spill] sm:$0xff]  ;;  %7467 = vst [vmem:[#allocation274_spill] sm:$0xff] %v6047_v38  ;;  %v7468_v31 = vld [vmem:[#allocation193_spill] sm:$0xff] }
 0x37e   : > { %v616_v52 = vadd.f32 %v612_v35, %v592_v26  ;;  %v1032_v4 = vadd.f32 %v7465_v62, %v1020_v33  ;;  %v902_v9 = vmul.f32 %v7416_v14, %v7466_v56  ;;  %v2171_v12 = vmul.f32 %v3444_v11, %v6029_v0  ;;  %v2574_v60 = vpop.permute.xlu1 %2573  ;;  %v7469_v46 = vld [vmem:[#allocation10_spill] sm:$0xff]  ;;  %v7470_v33 = vld [vmem:[#allocation87_spill] sm:$0xff]  ;;  %v7471_v14 = vld [vmem:[#allocation205_spill] sm:$0xff] }
 0x37f   : > { %v809_v29 = vadd.f32 %v5919_v48, %v5944_v1  ;;  %v6053_v34 = vrot.slane %v7460_v5, %v7464_v15  ;;  %v2569_v35 = vadd.f32 %v7469_v46, %v7468_v31  ;;  %v2585_v26 = vmul.f32 %v6016_v30, %v2574_v60  ;;  %3182 = vmatpush3.bf16.msra.mxu1 %v3179_v28  ;;  %v7472_v27 = vld [vmem:[#allocation101_spill] sm:$0xff]  ;;  %v7474_v62 = vld [vmem:[#allocation36_spill] sm:$0xff]  ;;  %v7477_v60 = vld [vmem:[#allocation43_spill] sm:$0xff] }
 0x380   : > { %v632_v47 = vmul.f32 %v7471_v14, %v7470_v33  ;;  %v1048_v25 = vmul.f32 %v7379_v50, %v7472_v27  ;;  %v926_v43 = vadd.f32 %v922_v10, %v902_v9  ;;  %v6062_v11 = vadd.f32 %v2171_v12, %v2155_v45  ;;  %2767 = vrot.lane.b32.xlu1 %v5503_v59, %s3558_s24  ;;  %v7478_v31 = vld [vmem:[#allocation8_spill] sm:$0xff]  ;;  %v6078_v33 = vpop.permute.xlu0 %2669 }
 0x381   : > { %v2605_v48 = vmul.f32 %v6036_v32, %v5807_v44  ;;  %v2589_v1 = vadd.f32 %v2585_v26, %v2569_v35  ;;  %v6070_v56 = vmul.f32 %v7474_v62, %v5311_v16  ;;  %v6074_v28 = vmul.f32 %v5503_v59, %v7474_v62  ;;  %7479 = vst [vmem:[#allocation239_spill] sm:$0xff] %v6078_v33  ;;  %v7480_v16 = vld [vmem:[#allocation217_spill] sm:$0xff]  ;;  %v7481_v62 = vld [vmem:[#allocation84_spill] sm:$0xff] }
 0x382   : > { %7473 = vst [vmem:[#allocation223_spill] sm:$0xff] %v6062_v11  ;;  %v825_v10 = vmul.f32 %v7478_v31, %v7477_v60  ;;  %v1213_v45 = vadd.f32 %v1209_v17, %v1193_v23  ;;  %v636_v9 = vadd.f32 %v632_v47, %v616_v52  ;;  %v1052_v12 = vadd.f32 %v1048_v25, %v1032_v4  ;;  %v2576_v46 = vpop.permute.xlu1 %2575  ;;  %v7482_v60 = vld [vmem:[#allocation282_spill] sm:$0xff]  ;;  %v7484_v4 = vld [vmem:[#allocation41_spill] sm:$0xff] }
 0x383   : > { %7475 = vst [vmem:[#allocation300_spill] sm:$0xff] %v6070_v56  ;;  %7476 = vst [vmem:[#allocation297_spill] sm:$0xff] %v6074_v28  ;;  %v2629_v44 = vmul.f32 %v6053_v34, %v5880_v53  ;;  %v2609_v35 = vadd.f32 %v2605_v48, %v2589_v1  ;;  %v2570_v26 = vadd.f32 %v7480_v16, %v5848_v63  ;;  %v7483_v17 = vld [vmem:[#allocation110_spill] sm:$0xff]  ;;  %v7489_v1 = vld [vmem:[#allocation235_spill] sm:$0xff] }
 0x384   : > { %v2586_v14 = vmul.f32 %v6016_v30, %v2576_v46  ;;  %v829_v27 = vadd.f32 %v825_v10, %v809_v29  ;;  %v1068_v28 = vmul.f32 %v7390_v8, %v7481_v62  ;;  %v938_v23 = vadd.f32 %v7482_v60, %v926_v43  ;;  %2288 = vrot.lane.b32.xlu1 %v5587_v54, %s3558_s24  ;;  %v7485_v53 = vld [vmem:[#allocation234_spill] sm:$0xff]  ;;  %v7491_v43 = vld [vmem:[#allocation248_spill] sm:$0xff] }
 0x385   : > { %v954_v52 = vmul.f32 %v7435_v21, %v7483_v17  ;;  %v6094_v47 = vmul.f32 %v7485_v53, %v7484_v4  ;;  %v2606_v63 = vmul.f32 %v6036_v32, %v5832_v19  ;;  %v6098_v29 = vadd.f32 %v2629_v44, %v2609_v35  ;;  %v7488_v48 = vld [vmem:[#allocation46_spill] sm:$0xff]  ;;  %v7492_v46 = vld [vmem:[#allocation112_spill] sm:$0xff]  ;;  %v6107_v17 = vpop.permute.xlu0 %3452  ;;  %v7494_v4 = vld [vmem:[#allocation253_spill] sm:$0xff] }
 0x386   : > { %v2590_v25 = vadd.f32 %v2586_v14, %v2570_v26  ;;  %v6102_v62 = vmul.f32 %v7489_v1, %v7488_v48  ;;  %v648_v10 = vadd.f32 %v7491_v43, %v636_v9  ;;  %v1072_v21 = vadd.f32 %v1068_v28, %v1052_v12  ;;  %v2137_v60 = vpop.permute.xlu1 %2136  ;;  %7493 = vst [vmem:[#allocation296_spill] sm:$0xff] %v6107_v17  ;;  %v7495_v26 = vld [vmem:[#allocation252_spill] sm:$0xff]  ;;  %v7497_v48 = vld [vmem:[#allocation65_spill] sm:$0xff]  ;;  %v7498_v9 = vld [vmem:[#allocation210_spill] sm:$0xff] }
 0x387   : > { %7486 = vst [vmem:[#allocation287_spill] sm:$0xff] %v6094_v47  ;;  %7487 = vst [vmem:[#allocation38_spill] sm:$0xff] %v6098_v29  ;;  %v974_v16 = vmul.f32 %v7442_v39, %v7492_v46  ;;  %v1225_v47 = vadd.f32 %v7494_v4, %v1213_v45  ;;  %v2630_v19 = vmul.f32 %v6053_v34, %v5904_v2  ;;  %v7499_v12 = vld [vmem:[#allocation86_spill] sm:$0xff]  ;;  %v7517_v1 = vld [vmem:[#allocation68_spill] sm:$0xff] }
 0x388   : > { %7490 = vst [vmem:[#allocation221_spill] sm:$0xff] %v6102_v62  ;;  %v2610_v44 = vadd.f32 %v2606_v63, %v2590_v25  ;;  %v2148_v35 = vmul.f32 %v5962_v49, %v2137_v60  ;;  %v6114_v14 = vadd.f32 %v7495_v26, %v829_v27  ;;  %v664_v28 = vmul.f32 %v7498_v9, %v7497_v48  ;;  %v7500_v45 = vld [vmem:[#allocation54_spill] sm:$0xff]  ;;  %v3535_v48 = vld [vmem:[%s6810_s3 + $0x30] sm:$0xff] }
 0x389   : > { %v1092_v39 = vmul.f32 %v7394_v57, %v7499_v12  ;;  %v958_v43 = vadd.f32 %v954_v52, %v938_v23  ;;  %1829 = vrot.lane.b32.xlu1 %v5503_v59, %s3559_s25  ;;  %v7501_v46 = vld [vmem:[#allocation222_spill] sm:$0xff]  ;;  %v2168_v2 = vmul.f32 %v6029_v0, %v5857_v51  ;;  %v6132_v23 = vrot.slane %v3535_v48, %v7450_v13  ;;  %v6134_v52 = vpop.permute.xlu0 %2192 }
 0x38a   : > { %7496 = vst [vmem:[#allocation225_spill] sm:$0xff] %v6114_v14  ;;  %v1241_v4 = vmul.f32 %v7501_v46, %v7500_v45  ;;  %v2152_v63 = vadd.f32 %v2148_v35, %v2128_v61  ;;  %v6126_v25 = vadd.f32 %v2630_v19, %v2610_v44  ;;  %v668_v27 = vadd.f32 %v664_v28, %v648_v10  ;;  %v2139_v59 = vpop.permute.xlu1 %2138  ;;  %v7503_v10 = vld [vmem:[#allocation88_spill] sm:$0xff]  ;;  %v7505_v19 = vld [vmem:[#allocation214_spill] sm:$0xff]  ;;  %v7506_v35 = vld [vmem:[#allocation107_spill] sm:$0xff] }
 0x38b   : > { %v1096_v60 = vadd.f32 %v1092_v39, %v1072_v21  ;;  %v978_v26 = vadd.f32 %v974_v16, %v958_v43  ;;  %v6137_v12 = vrot.slane %v3535_v48, %v7464_v15  ;;  %v2149_v61 = vmul.f32 %v5962_v49, %v2139_v59  ;;  %v7504_v16 = vld [vmem:[#allocation89_spill] sm:$0xff]  ;;  %v7508_v43 = vld [vmem:[#allocation66_spill] sm:$0xff]  ;;  %v7509_v45 = vld [vmem:[#allocation224_spill] sm:$0xff] }
 0x38c   : > { %v1245_v9 = vadd.f32 %v1241_v4, %v1225_v47  ;;  %v6139_v51 = vadd.f32 %v2168_v2, %v2152_v63  ;;  %v1112_v21 = vmul.f32 %v7410_v7, %v7503_v10  ;;  %v684_v44 = vmul.f32 %v7505_v19, %v7504_v16  ;;  %v6150_v47 = vld [vmem:[#allocation2 + $0x64] sm:$0xff]  ;;  %v7511_v59 = vld [vmem:[#allocation29_spill] sm:$0xff]  ;;  %v7516_v11 = vld [vmem:[#allocation26_spill] sm:$0xff] }
 0x38d   : > { %v998_v28 = vmul.f32 %v7449_v24, %v7506_v35  ;;  %2308 = vrot.lane.b32.xlu1 %v5587_v54, %s3559_s25  ;;  %7507 = vst [vmem:[#allocation298_spill] sm:$0xff] %v6150_v47  ;;  %v3486_v39 = vpack.i.bf16 %v6150_v47, %v6150_v47  ;;  %v1261_v4 = vmul.f32 %v7509_v45, %v7508_v43  ;;  %v7510_v2 = vld [vmem:[#allocation24_spill] sm:$0xff]  ;;  %v7512_v54 = vld [vmem:[#allocation114_spill] sm:$0xff]  ;;  %v6165_v56 = vpop.permute.xlu0 %2689  ;;  %v7515_v43 = vld [vmem:[#allocation7_spill] sm:$0xff] }
 0x38e   : > { %7502 = vst [vmem:[#allocation35_spill] sm:$0xff] %v6139_v51  ;;  %v6157_v63 = vrot.slane %v3535_v48, %v7510_v2  ;;  %v6160_v10 = vrot.slane %v3535_v48, %v7511_v59  ;;  %v2153_v16 = vadd.f32 %v2149_v61, %v5785_v42  ;;  %v688_v24 = vadd.f32 %v684_v44, %v668_v27  ;;  %v2117_v14 = vpop.permute.xlu1 %2116  ;;  %v7514_v51 = vld [vmem:[#allocation67_spill] sm:$0xff]  ;;  %v7518_v42 = vld [vmem:[#allocation228_spill] sm:$0xff]  ;;  %v7522_v44 = vld [vmem:[#allocation90_spill] sm:$0xff] }
 0x38f   : > { %v1116_v19 = vadd.f32 %v1112_v21, %v1096_v60  ;;  %v1002_v35 = vadd.f32 %v998_v28, %v978_v26  ;;  %v1018_v62 = vmul.f32 %v7455_v18, %v7512_v54  ;;  %7513 = vst [vmem:[#allocation232_spill] sm:$0xff] %v6165_v56  ;;  %v1265_v47 = vadd.f32 %v1261_v4, %v1245_v9  ;;  %v7519_v60 = vld [vmem:[#allocation299_spill] sm:$0xff]  ;;  %v7520_v18 = vld [vmem:[#allocation34_spill] sm:$0xff]  ;;  %v7523_v28 = vld [vmem:[#allocation213_spill] sm:$0xff] }
 0x390   : > { %v708_v33 = vmul.f32 %v7515_v43, %v7514_v51  ;;  %v6170_v29 = vrot.slane %v3535_v48, %v7516_v11  ;;  %v2126_v55 = vmul.f32 %v5759_v3, %v2117_v14  ;;  %v1285_v27 = vmul.f32 %v7518_v42, %v7517_v1  ;;  %v7521_v21 = vld [vmem:[#allocation290_spill] sm:$0xff]  ;;  %v7524_v4 = vld [vmem:[#allocation91_spill] sm:$0xff]  ;;  %v7526_v56 = vld [vmem:[#allocation249_spill] sm:$0xff] }
 0x391   : > { %v3435_v26 = vunpack.i.h.bf16 %v7519_v60  ;;  %v3434_v61 = vunpack.i.l.bf16 %v7519_v60  ;;  %3487 = vrot.lane.b32.xlu1 %v3486_v39, %s3559_s25  ;;  %v2567_v9 = vmul.f32 %v7521_v21, %v7520_v18  ;;  %v1144_v51 = vmul.f32 %v7523_v28, %v7522_v44  ;;  %v7525_v48 = vld [vmem:[#allocation219_spill] sm:$0xff]  ;;  %v3537_v14 = vld [vmem:[#allocation2 + $0x72] sm:$0xff]  ;;  %v6188_v45 = vpop.permute.xlu0 %2234 }
 0x392   : > { %v728_v54 = vmul.f32 %v7525_v48, %v7524_v4  ;;  %v2130_v3 = vadd.f32 %v2126_v55, %v6002_v58  ;;  %v2568_v1 = vmul.f32 %v3537_v14, %v7520_v18  ;;  %v712_v43 = vadd.f32 %v708_v33, %v688_v24  ;;  %v3428_v11 = vpop.permute.xlu1 %3427  ;;  %7527 = vst [vmem:[#allocation276_spill] sm:$0xff] %v6188_v45  ;;  %v7528_v21 = vld [vmem:[#allocation23_spill] sm:$0xff]  ;;  %v7530_v18 = vld [vmem:[#allocation229_spill] sm:$0xff]  ;;  %v7531_v45 = vld [vmem:[#allocation92_spill] sm:$0xff] }
 0x393   : > { %v1128_v42 = vadd.f32 %v7526_v56, %v1116_v19  ;;  %v1022_v60 = vadd.f32 %v1018_v62, %v1002_v35  ;;  %v3440_v39 = vunpack.i.h.bf16 %v5964_v20  ;;  %v6192_v44 = vrot.slane %v7460_v5, %v7528_v21  ;;  %v7529_v35 = vld [vmem:[#allocation70_spill] sm:$0xff] }
 0x394   : > { %v3449_v4 = vunpack.i.l.bf16 %v6047_v38  ;;  %v3430_v48 = vunpack.i.h.bf16 %v3428_v11  ;;  %v3429_v58 = vunpack.i.l.bf16 %v3428_v11  ;;  %v2608_v55 = vmul.f32 %v3435_v26, %v6036_v32 }
 0x395   : > { %v2607_v33 = vmul.f32 %v3434_v61, %v6036_v32  ;;  %v3445_v56 = vunpack.i.h.bf16 %v6010_v36  ;;  %v2571_v62 = vadd.f32 %v2567_v9, %v6038_v6  ;;  %v3454_v20 = vunpack.i.l.bf16 %v6107_v17  ;;  %v2213_v61 = vpop.permute.xlu0 %2212 }
 0x396   : > { %v2588_v24 = vmul.f32 %v3430_v48, %v6016_v30  ;;  %v2572_v19 = vadd.f32 %v2568_v1, %v6040_v40  ;;  %v2587_v5 = vmul.f32 %v3429_v58, %v6016_v30  ;;  %v1305_v14 = vmul.f32 %v7530_v18, %v7529_v35  ;;  %v2159_v32 = vpop.permute.xlu1 %2158  ;;  %v7532_v40 = vld [vmem:[#allocation216_spill] sm:$0xff] }
 0x397   : > { %v732_v11 = vadd.f32 %v728_v54, %v712_v43  ;;  %v1148_v38 = vadd.f32 %v1144_v51, %v1128_v42  ;;  %v2631_v26 = vmul.f32 %v3440_v39, %v6053_v34  ;;  %v2632_v36 = vmul.f32 %v3449_v4, %v6053_v34  ;;  %v7533_v30 = vld [vmem:[#allocation284_spill] sm:$0xff] }
 0x398   : > { %v2591_v6 = vadd.f32 %v2587_v5, %v2571_v62  ;;  %v2592_v9 = vadd.f32 %v2588_v24, %v2572_v19  ;;  %v2169_v17 = vmul.f32 %v6029_v0, %v2159_v32  ;;  %v1289_v48 = vadd.f32 %v1285_v27, %v1265_v47  ;;  %v7534_v34 = vld [vmem:[#allocation260_spill] sm:$0xff]  ;;  %v7535_v24 = vld [vmem:[#allocation109_spill] sm:$0xff] }
 0x399   : > { %v1164_v1 = vmul.f32 %v7532_v40, %v7531_v45  ;;  %v1034_v58 = vadd.f32 %v7533_v30, %v1022_v60  ;;  %v2651_v35 = vmul.f32 %v3445_v56, %v6192_v44  ;;  %v2652_v42 = vmul.f32 %v3454_v20, %v6192_v44  ;;  %v6218_v19 = vpop.permute.xlu0 %2713  ;;  %v7536_v45 = vld [vmem:[#allocation69_spill] sm:$0xff]  ;;  %v7537_v60 = vld [vmem:[#allocation171_spill] sm:$0xff]  ;;  %v7546_v30 = vld [vmem:[#allocation6_spill] sm:$0xff] }
 0x39a   : > { %v2611_v51 = vadd.f32 %v2607_v33, %v2591_v6  ;;  %v2612_v54 = vadd.f32 %v2608_v55, %v2592_v9  ;;  %v6213_v43 = vadd.f32 %v2169_v17, %v2153_v16  ;;  %v1309_v39 = vadd.f32 %v1305_v14, %v1289_v48  ;;  %v2141_v27 = vpop.permute.xlu1 %2140  ;;  %v7538_v55 = vld [vmem:[#allocation71_spill] sm:$0xff]  ;;  %v7539_v17 = vld [vmem:[#allocation226_spill] sm:$0xff] }
 0x39b   : > { %v744_v4 = vadd.f32 %v7534_v34, %v732_v11  ;;  %v1168_v62 = vadd.f32 %v1164_v1, %v1148_v38  ;;  %v1050_v47 = vmul.f32 %v7379_v50, %v7535_v24  ;;  %v760_v5 = vmul.f32 %v7537_v60, %v7536_v45  ;;  %v7540_v20 = vld [vmem:[#allocation103_spill] sm:$0xff]  ;;  %v7541_v14 = vld [vmem:[#allocation218_spill] sm:$0xff]  ;;  %v7545_v1 = vld [vmem:[#allocation72_spill] sm:$0xff] }
 0x39c   : > { %v2635_v56 = vadd.f32 %v2631_v26, %v2611_v51  ;;  %v2636_v32 = vadd.f32 %v2632_v36, %v2612_v54  ;;  %v2150_v33 = vmul.f32 %v5962_v49, %v2141_v27  ;;  %v804_v16 = vmul.f32 %v7539_v17, %v7538_v55  ;;  %v7544_v49 = vld [vmem:[#allocation256_spill] sm:$0xff]  ;;  %v7549_v27 = vld [vmem:[#allocation14_spill] sm:$0xff] }
 0x39d   : > { %v1188_v11 = vmul.f32 %v7541_v14, %v7540_v20  ;;  %v1054_v38 = vadd.f32 %v1050_v47, %v1034_v58  ;;  %v6229_v50 = vrot.slane %v6025_v41, %v7510_v2  ;;  %v2170_v6 = vmul.f32 %v6029_v0, %v5983_v22  ;;  %v6242_v24 = vpop.permute.xlu0 %2254  ;;  %v7548_v47 = vld [vmem:[#allocation74_spill] sm:$0xff]  ;;  %v7550_v22 = vld [vmem:[#allocation116_spill] sm:$0xff] }
 0x39e   : > { %v2154_v9 = vadd.f32 %v2150_v33, %v2130_v3  ;;  %v6233_v48 = vadd.f32 %v2651_v35, %v2635_v56  ;;  %v6235_v26 = vadd.f32 %v2652_v42, %v2636_v32  ;;  %v1321_v36 = vadd.f32 %v7544_v49, %v1309_v39  ;;  %v6240_v58 = vpop.permute.xlu1 %2637  ;;  %7547 = vst [vmem:[#allocation238_spill] sm:$0xff] %v6242_v24  ;;  %v7551_v42 = vld [vmem:[#allocation93_spill] sm:$0xff]  ;;  %v7556_v17 = vld [vmem:[#allocation118_spill] sm:$0xff]  ;;  %v7587_v24 = vld [vmem:[#allocation235_spill] sm:$0xff] }
 0x39f   : > { %v1337_v51 = vmul.f32 %v7546_v30, %v7545_v1  ;;  %v764_v54 = vadd.f32 %v760_v5, %v744_v4  ;;  %v1192_v34 = vadd.f32 %v1188_v11, %v1168_v62  ;;  %v1357_v45 = vmul.f32 %v7549_v27, %v7548_v47  ;;  %v7552_v39 = vld [vmem:[#allocation133_spill] sm:$0xff]  ;;  %v7553_v4 = vld [vmem:[#allocation94_spill] sm:$0xff]  ;;  %v7554_v5 = vld [vmem:[#allocation119_spill] sm:$0xff] }
 0x3a0   : > { %7542 = vst [vmem:[#allocation13_spill] sm:$0xff] %v6233_v48  ;;  %7543 = vst [vmem:[#allocation294_spill] sm:$0xff] %v6235_v26  ;;  %v1070_v0 = vmul.f32 %v7390_v8, %v7550_v22  ;;  %v6250_v3 = vrot.slane %v6025_v41, %v7511_v59  ;;  %v2174_v35 = vadd.f32 %v2170_v6, %v2154_v9  ;;  %v7555_v32 = vld [vmem:[#allocation121_spill] sm:$0xff]  ;;  %v7558_v1 = vld [vmem:[#allocation115_spill] sm:$0xff] }
 0x3a1   : > { %v780_v60 = vmul.f32 %v7552_v39, %v7551_v42  ;;  %v1208_v62 = vmul.f32 %v7462_v37, %v7553_v4  ;;  %v1399_v56 = vmul.f32 %v6137_v12, %v7554_v5  ;;  %v1401_v33 = vmul.f32 %v6137_v12, %v7555_v32  ;;  %v7557_v11 = vld [vmem:[#allocation33_spill] sm:$0xff]  ;;  %v6269_v4 = vpop.permute.xlu0 %2715 }
 0x3a2   : > { %v1074_v55 = vadd.f32 %v1070_v0, %v1054_v38  ;;  %v1094_v8 = vmul.f32 %v7394_v57, %v7556_v17  ;;  %v2202_v20 = vmul.f32 %v6229_v50, %v6134_v52  ;;  %v2186_v6 = vadd.f32 %v7557_v11, %v2174_v35  ;;  %v7559_v22 = vld [vmem:[#allocation117_spill] sm:$0xff]  ;;  %v2640_v39 = vpop.permute.xlu1 %2639  ;;  %7560 = vst [vmem:[#allocation12_spill] sm:$0xff] %v6269_v4  ;;  %v7561_v38 = vld [vmem:[#allocation120_spill] sm:$0xff] }
 0x3a3   : > { %v784_v9 = vadd.f32 %v780_v60, %v764_v54  ;;  %v1212_v49 = vadd.f32 %v1208_v62, %v1192_v34  ;;  %v1379_v47 = vmul.f32 %v6132_v23, %v7558_v1  ;;  %v1381_v42 = vmul.f32 %v6132_v23, %v7559_v22  ;;  %v3538_v60 = vld [vmem:[%s6810_s3 + $0x38] sm:$0xff]  ;;  %v7562_v62 = vld [vmem:[#allocation17_spill] sm:$0xff] }
 0x3a4   : > { %v1114_v0 = vmul.f32 %v7410_v7, %v7561_v38  ;;  %v2222_v57 = vmul.f32 %v6250_v3, %v2213_v61  ;;  %v2650_v52 = vmul.f32 %v6192_v44, %v2640_v39  ;;  %v2206_v5 = vadd.f32 %v2202_v20, %v2186_v6  ;;  %v7563_v17 = vld [vmem:[#allocation73_spill] sm:$0xff] }
 0x3a5   : > { %v1341_v35 = vadd.f32 %v1337_v51, %v1321_v36  ;;  %v1403_v54 = vadd.f32 %v1399_v56, %v1379_v47  ;;  %v1405_v34 = vadd.f32 %v1401_v33, %v1381_v42  ;;  %v6279_v32 = vrot.slane %v3538_v60, %v7562_v62  ;;  %v7568_v51 = vld [vmem:[#allocation123_spill] sm:$0xff]  ;;  %v7569_v33 = vld [vmem:[#allocation125_spill] sm:$0xff] }
 0x3a6   : > { %v6283_v11 = vmul.f32 %v7485_v53, %v7563_v17  ;;  %v1098_v7 = vadd.f32 %v1094_v8, %v1074_v55  ;;  %v6286_v61 = vadd.f32 %v2650_v52, %v6126_v25  ;;  %v6288_v1 = vadd.f32 %v2222_v57, %v2206_v5  ;;  %v6299_v47 = vpop.permute.xlu1 %2188  ;;  %v7570_v55 = vld [vmem:[#allocation263_spill] sm:$0xff]  ;;  %v7572_v39 = vld [vmem:[#allocation285_spill] sm:$0xff]  ;;  %v6311_v17 = vpop.permute.xlu0 %2733 }
 0x3a7   : > { %v6290_v36 = vadd.f32 %v1357_v45, %v1341_v35  ;;  %v1431_v56 = vmul.f32 %v6157_v63, %v7568_v51  ;;  %v1433_v20 = vmul.f32 %v6157_v63, %v7569_v33  ;;  %v6297_v6 = vrot.slane %v3538_v60, %v7450_v13  ;;  %v7571_v45 = vld [vmem:[#allocation264_spill] sm:$0xff]  ;;  %v7573_v57 = vld [vmem:[#allocation127_spill] sm:$0xff]  ;;  %v7574_v5 = vld [vmem:[#allocation129_spill] sm:$0xff]  ;;  %7575 = vst [vmem:[#allocation79_spill] sm:$0xff] %v6311_v17 }
 0x3a8   : > { %7564 = vst [vmem:[#allocation49_spill] sm:$0xff] %v6283_v11  ;;  %7565 = vst [vmem:[#allocation197_spill] sm:$0xff] %v6286_v61  ;;  %v808_v53 = vadd.f32 %v804_v16, %v784_v9  ;;  %v1224_v8 = vadd.f32 %v7570_v55, %v1212_v49  ;;  %v1118_v25 = vadd.f32 %v1114_v0, %v1098_v7  ;;  %v7576_v51 = vld [vmem:[#allocation95_spill] sm:$0xff]  ;;  %v7577_v9 = vld [vmem:[#allocation105_spill] sm:$0xff] }
 0x3a9   : > { %7566 = vst [vmem:[#allocation77_spill] sm:$0xff] %v6288_v1  ;;  %7567 = vst [vmem:[#allocation19_spill] sm:$0xff] %v6290_v36  ;;  %v6303_v22 = vrot.slane %v3538_v60, %v7464_v15  ;;  %v1415_v42 = vadd.f32 %v7571_v45, %v1403_v54  ;;  %v1417_v38 = vadd.f32 %v7572_v39, %v1405_v34  ;;  %v7578_v33 = vld [vmem:[#allocation132_spill] sm:$0xff]  ;;  %v7579_v45 = vld [vmem:[#allocation135_spill] sm:$0xff] }
 0x3aa   : > { %v1451_v52 = vmul.f32 %v6160_v10, %v7573_v57  ;;  %v1453_v35 = vmul.f32 %v6160_v10, %v7574_v5  ;;  %v824_v16 = vmul.f32 %v7478_v31, %v7576_v51  ;;  %v1240_v49 = vmul.f32 %v7501_v46, %v7577_v9  ;;  %v2191_v57 = vpop.permute.xlu1 %2190  ;;  %v7580_v51 = vld [vmem:[#allocation278_spill] sm:$0xff]  ;;  %v7582_v11 = vld [vmem:[#allocation137_spill] sm:$0xff]  ;;  %v7611_v17 = vld [vmem:[#allocation276_spill] sm:$0xff] }
 0x3ab   : > { %v6318_v0 = vrot.slane %v3538_v60, %v7528_v21  ;;  %v6321_v54 = vrot.slane %v3538_v60, %v7510_v2  ;;  %v1435_v34 = vadd.f32 %v1431_v56, %v1415_v42  ;;  %v1437_v7 = vadd.f32 %v1433_v20, %v1417_v38  ;;  %v7581_v9 = vld [vmem:[#allocation122_spill] sm:$0xff]  ;;  %v7583_v20 = vld [vmem:[#allocation139_spill] sm:$0xff]  ;;  %v7584_v38 = vld [vmem:[#allocation96_spill] sm:$0xff] }
 0x3ac   : > { %v1475_v55 = vmul.f32 %v6170_v29, %v7578_v33  ;;  %v1477_v39 = vmul.f32 %v6170_v29, %v7579_v45  ;;  %v828_v5 = vadd.f32 %v824_v16, %v808_v53  ;;  %v1244_v31 = vadd.f32 %v1240_v49, %v1224_v8  ;;  %v7585_v33 = vld [vmem:[#allocation224_spill] sm:$0xff]  ;;  %v7586_v45 = vld [vmem:[#allocation97_spill] sm:$0xff]  ;;  %v7589_v8 = vld [vmem:[#allocation26_spill] sm:$0xff] }
 0x3ad   : > { %v1130_v36 = vadd.f32 %v7580_v51, %v1118_v25  ;;  %v1146_v1 = vmul.f32 %v7523_v28, %v7581_v9  ;;  %v1455_v26 = vadd.f32 %v1451_v52, %v1435_v34  ;;  %v1457_v48 = vadd.f32 %v1453_v35, %v1437_v7  ;;  %v6346_v28 = vld [vmem:[%s6810_s3 + $0x40] sm:$0xff]  ;;  %v7590_v52 = vld [vmem:[#allocation98_spill] sm:$0xff]  ;;  %v7591_v35 = vld [vmem:[#allocation228_spill] sm:$0xff]  ;;  %v6356_v51 = vpop.permute.xlu0 %2735 }
 0x3ae   : > { %v1495_v56 = vmul.f32 %v6279_v32, %v7582_v11  ;;  %v1497_v42 = vmul.f32 %v6279_v32, %v7583_v20  ;;  %v1260_v4 = vmul.f32 %v7585_v33, %v7584_v38  ;;  %v6338_v53 = vmul.f32 %v7587_v24, %v7586_v45  ;;  %v7592_v49 = vld [vmem:[#allocation124_spill] sm:$0xff]  ;;  %7593 = vst [vmem:[#allocation15_spill] sm:$0xff] %v6356_v51  ;;  %v7594_v9 = vld [vmem:[#allocation261_spill] sm:$0xff] }
 0x3af   : > { %v6341_v25 = vrot.slane %v3538_v60, %v7589_v8  ;;  %v6350_v11 = vrot.slane %v6346_v28, %v7562_v62  ;;  %v1284_v16 = vmul.f32 %v7591_v35, %v7590_v52  ;;  %v1166_v34 = vmul.f32 %v7532_v40, %v7592_v49  ;;  %v6358_v60 = vpop.permute.xlu1 %2208  ;;  %v7596_v38 = vld [vmem:[#allocation100_spill] sm:$0xff] }
 0x3b0   : > { %7588 = vst [vmem:[#allocation20_spill] sm:$0xff] %v6338_v53  ;;  %v1479_v24 = vadd.f32 %v1475_v55, %v1455_v26  ;;  %v1481_v7 = vadd.f32 %v1477_v39, %v1457_v48  ;;  %v6361_v20 = vadd.f32 %v7594_v9, %v828_v5  ;;  %v1304_v45 = vmul.f32 %v7530_v18, %v7596_v38  ;;  %v7597_v53 = vld [vmem:[#allocation18_spill] sm:$0xff]  ;;  %v7599_v49 = vld [vmem:[#allocation144_spill] sm:$0xff] }
 0x3b1   : > { %v6367_v27 = vrot.slane %v6346_v28, %v7597_v53  ;;  %v2201_v52 = vmul.f32 %v6229_v50, %v2191_v57  ;;  %v1264_v61 = vadd.f32 %v1260_v4, %v1244_v31  ;;  %v1150_v40 = vadd.f32 %v1146_v1, %v1130_v36  ;;  %v7598_v55 = vld [vmem:[#allocation102_spill] sm:$0xff]  ;;  %v7602_v36 = vld [vmem:[#allocation140_spill] sm:$0xff]  ;;  %v7603_v31 = vld [vmem:[#allocation141_spill] sm:$0xff]  ;;  %v6397_v18 = vpop.permute.xlu0 %2256 }
 0x3b2   : > { %7595 = vst [vmem:[#allocation55_spill] sm:$0xff] %v6361_v20  ;;  %v1499_v26 = vadd.f32 %v1495_v56, %v1479_v24  ;;  %v1501_v48 = vadd.f32 %v1497_v42, %v1481_v7  ;;  %v6372_v39 = vmul.f32 %v7546_v30, %v7598_v55  ;;  %v1400_v5 = vmul.f32 %v6137_v12, %v7599_v49  ;;  %v7600_v38 = vld [vmem:[#allocation30_spill] sm:$0xff]  ;;  %v7601_v20 = vld [vmem:[#allocation111_spill] sm:$0xff]  ;;  %v7606_v30 = vld [vmem:[#allocation265_spill] sm:$0xff] }
 0x3b3   : > { %v6378_v9 = vrot.slane %v6025_v41, %v7589_v8  ;;  %v2185_v51 = vadd.f32 %v7600_v38, %v6213_v43  ;;  %v1190_v4 = vmul.f32 %v7541_v14, %v7601_v20  ;;  %v1170_v1 = vadd.f32 %v1166_v34, %v1150_v40  ;;  %v2211_v42 = vpop.permute.xlu1 %2210  ;;  %v7604_v24 = vld [vmem:[#allocation143_spill] sm:$0xff]  ;;  %v7605_v55 = vld [vmem:[#allocation146_spill] sm:$0xff]  ;;  %v7607_v34 = vld [vmem:[#allocation289_spill] sm:$0xff]  ;;  %7609 = vst [vmem:[#allocation40_spill] sm:$0xff] %v6397_v18 }
 0x3b4   : > { %v1380_v57 = vmul.f32 %v6132_v23, %v7602_v36  ;;  %v1527_v56 = vmul.f32 %v6297_v6, %v7603_v31  ;;  %v1529_v7 = vmul.f32 %v6297_v6, %v7604_v24  ;;  %v1402_v41 = vmul.f32 %v6137_v12, %v7605_v55  ;;  %v7608_v40 = vld [vmem:[#allocation145_spill] sm:$0xff]  ;;  %v7610_v31 = vld [vmem:[#allocation142_spill] sm:$0xff] }
 0x3b5   : > { %v2205_v49 = vadd.f32 %v2201_v52, %v2185_v51  ;;  %v2221_v43 = vmul.f32 %v6250_v3, %v2211_v42  ;;  %v1288_v38 = vadd.f32 %v1284_v16, %v1264_v61  ;;  %v1511_v14 = vadd.f32 %v7606_v30, %v1499_v26  ;;  %v7612_v61 = vld [vmem:[#allocation147_spill] sm:$0xff]  ;;  %v7613_v16 = vld [vmem:[#allocation150_spill] sm:$0xff] }
 0x3b6   : > { %v1513_v20 = vadd.f32 %v7607_v34, %v1501_v48  ;;  %v1547_v36 = vmul.f32 %v6303_v22, %v7608_v40  ;;  %v1382_v15 = vmul.f32 %v6132_v23, %v7610_v31  ;;  %v1404_v24 = vadd.f32 %v1400_v5, %v1380_v57  ;;  %v7614_v55 = vld [vmem:[#allocation126_spill] sm:$0xff]  ;;  %v7619_v31 = vld [vmem:[#allocation267_spill] sm:$0xff] }
 0x3b7   : > { %v2245_v12 = vmul.f32 %v6378_v9, %v7611_v17  ;;  %v2225_v51 = vadd.f32 %v2221_v43, %v2205_v49  ;;  %v1194_v52 = vadd.f32 %v1190_v4, %v1170_v1  ;;  %v1531_v42 = vadd.f32 %v1527_v56, %v1511_v14  ;;  %v6407_v48 = vpop.permute.xlu1 %2671  ;;  %v7616_v17 = vld [vmem:[#allocation149_spill] sm:$0xff]  ;;  %v7617_v1 = vld [vmem:[#allocation152_spill] sm:$0xff]  ;;  %v7618_v49 = vld [vmem:[#allocation154_spill] sm:$0xff] }
 0x3b8   : > { %v1549_v30 = vmul.f32 %v6303_v22, %v7612_v61  ;;  %v1571_v26 = vmul.f32 %v6318_v0, %v7613_v16  ;;  %v1210_v34 = vmul.f32 %v7462_v37, %v7614_v55  ;;  %v1533_v40 = vadd.f32 %v1529_v7, %v1513_v20  ;;  %v7620_v16 = vld [vmem:[#allocation151_spill] sm:$0xff]  ;;  %v7621_v20 = vld [vmem:[#allocation153_spill] sm:$0xff] }
 0x3b9   : > { %v1406_v23 = vadd.f32 %v1402_v41, %v1382_v15  ;;  %v6411_v5 = vadd.f32 %v2245_v12, %v2225_v51  ;;  %v1551_v57 = vadd.f32 %v1547_v36, %v1531_v42  ;;  %v1432_v4 = vmul.f32 %v6157_v63, %v7616_v17  ;;  %v7622_v12 = vld [vmem:[#allocation156_spill] sm:$0xff]  ;;  %v6430_v42 = vpop.permute.xlu0 %3472 }
 0x3ba   : > { %v1573_v56 = vmul.f32 %v6318_v0, %v7617_v1  ;;  %v1591_v43 = vmul.f32 %v6321_v54, %v7618_v49  ;;  %v1308_v14 = vadd.f32 %v1304_v45, %v1288_v38  ;;  %v1416_v61 = vadd.f32 %v7619_v31, %v1404_v24  ;;  %7623 = vst [vmem:[#allocation200_spill] sm:$0xff] %v6430_v42  ;;  %v7624_v24 = vld [vmem:[#allocation291_spill] sm:$0xff]  ;;  %v7626_v1 = vld [vmem:[#allocation157_spill] sm:$0xff] }
 0x3bb   : > { %7615 = vst [vmem:[#allocation53_spill] sm:$0xff] %v6411_v5  ;;  %v1434_v37 = vmul.f32 %v6157_v63, %v7620_v16  ;;  %v6424_v15 = vrot.slane %v6346_v28, %v7450_v13  ;;  %v1553_v7 = vadd.f32 %v1549_v30, %v1533_v40  ;;  %v1575_v41 = vadd.f32 %v1571_v26, %v1551_v57  ;;  %v6432_v45 = vpop.permute.xlu1 %2232  ;;  %v7625_v63 = vld [vmem:[#allocation155_spill] sm:$0xff] }
 0x3bc   : > { %v1452_v36 = vmul.f32 %v6160_v10, %v7621_v20  ;;  %v1593_v51 = vmul.f32 %v6321_v54, %v7622_v12  ;;  %v1214_v38 = vadd.f32 %v1210_v34, %v1194_v52  ;;  %v1418_v55 = vadd.f32 %v7624_v24, %v1406_v23  ;;  %v7627_v31 = vld [vmem:[#allocation255_spill] sm:$0xff]  ;;  %v7629_v24 = vld [vmem:[#allocation158_spill] sm:$0xff] }
 0x3bd   : > { %v1454_v17 = vmul.f32 %v6160_v10, %v7625_v63  ;;  %v6439_v30 = vrot.slane %v6346_v28, %v7528_v21  ;;  %v1436_v26 = vadd.f32 %v1432_v4, %v1416_v61  ;;  %v1577_v40 = vadd.f32 %v1573_v56, %v1553_v7  ;;  %v7628_v12 = vld [vmem:[#allocation159_spill] sm:$0xff]  ;;  %v7630_v56 = vld [vmem:[#allocation161_spill] sm:$0xff] }
 0x3be   : > { %v1595_v57 = vadd.f32 %v1591_v43, %v1575_v41  ;;  %v1476_v49 = vmul.f32 %v6170_v29, %v7626_v1  ;;  %v1320_v16 = vadd.f32 %v7627_v31, %v1308_v14  ;;  %v1438_v20 = vadd.f32 %v1434_v37, %v1418_v55  ;;  %v7632_v7 = vld [vmem:[#allocation113_spill] sm:$0xff]  ;;  %v7633_v37 = vld [vmem:[#allocation286_spill] sm:$0xff]  ;;  %v7634_v55 = vld [vmem:[#allocation163_spill] sm:$0xff] }
 0x3bf   : > { %v1478_v52 = vmul.f32 %v6170_v29, %v7628_v12  ;;  %v6448_v34 = vrot.slane %v6346_v28, %v7510_v2  ;;  %v1456_v10 = vadd.f32 %v1452_v36, %v1436_v26  ;;  %v1597_v23 = vadd.f32 %v1593_v51, %v1577_v40  ;;  %v6454_v61 = vpop.permute.xlu1 %3457  ;;  %v7635_v36 = vld [vmem:[#allocation268_spill] sm:$0xff]  ;;  %v7637_v1 = vld [vmem:[#allocation162_spill] sm:$0xff]  ;;  %v6466_v12 = vpop.permute.xlu0 %2286 }
 0x3c0   : > { %v1623_v4 = vmul.f32 %v6341_v25, %v7629_v24  ;;  %v1496_v43 = vmul.f32 %v6279_v32, %v7630_v56  ;;  %7631 = vst [vmem:[#allocation56_spill] sm:$0xff] %v6454_v61  ;;  %v1242_v14 = vmul.f32 %v7501_v46, %v7632_v7  ;;  %v1226_v41 = vadd.f32 %v7633_v37, %v1214_v38  ;;  %v7636_v26 = vld [vmem:[#allocation160_spill] sm:$0xff] }
 0x3c1   : > { %v1458_v29 = vadd.f32 %v1454_v17, %v1438_v20  ;;  %v1498_v2 = vmul.f32 %v6279_v32, %v7634_v55  ;;  %v1480_v63 = vadd.f32 %v1476_v49, %v1456_v10  ;;  %v1607_v51 = vadd.f32 %v7635_v36, %v1595_v57  ;;  %7638 = vst [vmem:[#allocation204_spill] sm:$0xff] %v6466_v12  ;;  %v7639_v57 = vld [vmem:[#allocation279_spill] sm:$0xff]  ;;  %v7640_v10 = vld [vmem:[#allocation166_spill] sm:$0xff]  ;;  %v7641_v37 = vld [vmem:[#allocation128_spill] sm:$0xff] }
 0x3c2   : > { %v1625_v40 = vmul.f32 %v6341_v25, %v7636_v26  ;;  %v1643_v31 = vmul.f32 %v6350_v11, %v7637_v1  ;;  %v6470_v46 = vrot.slane %v6346_v28, %v7511_v59  ;;  %v6474_v38 = vrot.slane %v6346_v28, %v7589_v8  ;;  %v7642_v36 = vld [vmem:[#allocation164_spill] sm:$0xff]  ;;  %v7656_v12 = vld [vmem:[#allocation175_spill] sm:$0xff] }
 0x3c3   : > { %v1482_v24 = vadd.f32 %v1478_v52, %v1458_v29  ;;  %v6477_v32 = vadd.f32 %v6372_v39, %v1320_v16  ;;  %v1627_v17 = vadd.f32 %v1623_v4, %v1607_v51  ;;  %v1609_v49 = vadd.f32 %v7639_v57, %v1597_v23  ;;  %v6482_v7 = vpop.permute.xlu1 %2691  ;;  %v7643_v16 = vld [vmem:[#allocation165_spill] sm:$0xff]  ;;  %v7644_v23 = vld [vmem:[#allocation170_spill] sm:$0xff]  ;;  %v7646_v1 = vld [vmem:[#allocation168_spill] sm:$0xff] }
 0x3c4   : > { %v1500_v20 = vadd.f32 %v1496_v43, %v1480_v63  ;;  %v1667_v56 = vmul.f32 %v6367_v27, %v7640_v10  ;;  %v1246_v52 = vadd.f32 %v1242_v14, %v1226_v41  ;;  %v1262_v29 = vmul.f32 %v7585_v33, %v7641_v37  ;;  %v7645_v63 = vld [vmem:[#allocation167_spill] sm:$0xff]  ;;  %v6505_v57 = vld [vmem:[%s6810_s3 + $0x48] sm:$0xff] }
 0x3c5   : > { %v1502_v55 = vadd.f32 %v1498_v2, %v1482_v24  ;;  %v1645_v28 = vmul.f32 %v6350_v11, %v7642_v36  ;;  %v1629_v26 = vadd.f32 %v1625_v40, %v1609_v49  ;;  %v1647_v39 = vadd.f32 %v1643_v31, %v1627_v17  ;;  %v7647_v2 = vld [vmem:[#allocation269_spill] sm:$0xff]  ;;  %v6511_v49 = vpop.permute.xlu0 %2304  ;;  %v7649_v10 = vld [vmem:[#allocation292_spill] sm:$0xff] }
 0x3c6   : > { %v1528_v4 = vmul.f32 %v6297_v6, %v7643_v16  ;;  %v1687_v43 = vmul.f32 %v6424_v15, %v7644_v23  ;;  %v1530_v51 = vmul.f32 %v6297_v6, %v7645_v63  ;;  %v1669_v14 = vmul.f32 %v6367_v27, %v7646_v1  ;;  %v7648_v24 = vld [vmem:[#allocation169_spill] sm:$0xff]  ;;  %v6518_v37 = vld [vmem:[#allocation2 + $0x63] sm:$0xff] }
 0x3c7   : > { %v2649_v33 = vmul.f32 %v6192_v44, %v6240_v58  ;;  %v3459_v41 = vunpack.i.l.bf16 %v6454_v61  ;;  %v1512_v40 = vadd.f32 %v7647_v2, %v1500_v20  ;;  %v1671_v31 = vadd.f32 %v1667_v56, %v1647_v39  ;;  %v6513_v44 = vpop.permute.xlu1 %2252  ;;  %7650 = vst [vmem:[#allocation258_spill] sm:$0xff] %v6518_v37  ;;  %v7651_v36 = vld [vmem:[#allocation244_spill] sm:$0xff]  ;;  %v7653_v2 = vld [vmem:[#allocation174_spill] sm:$0xff] }
 0x3c8   : > { %v1548_v17 = vmul.f32 %v6303_v22, %v7648_v24  ;;  %v6509_v6 = vrot.slane %v6505_v57, %v7597_v53  ;;  %v6515_v58 = vadd.f32 %v1262_v29, %v1246_v52  ;;  %v1649_v20 = vadd.f32 %v1645_v28, %v1629_v26  ;;  %v7652_v63 = vld [vmem:[#allocation172_spill] sm:$0xff]  ;;  %v7654_v52 = vld [vmem:[#allocation38_spill] sm:$0xff]  ;;  %v7655_v26 = vld [vmem:[#allocation173_spill] sm:$0xff] }
 0x3c9   : > { %v1514_v56 = vadd.f32 %v7649_v10, %v1502_v55  ;;  %v2183_v39 = vmul.f32 %v6518_v37, %v7651_v36  ;;  %v1532_v16 = vadd.f32 %v1528_v4, %v1512_v40  ;;  %v1691_v23 = vadd.f32 %v1687_v43, %v1671_v31  ;;  %v7657_v43 = vld [vmem:[#allocation178_spill] sm:$0xff] }
 0x3ca   : > { %v1550_v1 = vmul.f32 %v6303_v22, %v7652_v63  ;;  %v1572_v24 = vmul.f32 %v6318_v0, %v7653_v2  ;;  %v1673_v42 = vadd.f32 %v1669_v14, %v1649_v20  ;;  %v2653_v29 = vadd.f32 %v2649_v33, %v7654_v52  ;;  %v7659_v31 = vld [vmem:[#allocation274_spill] sm:$0xff]  ;;  %v7660_v33 = vld [vmem:[#allocation223_spill] sm:$0xff]  ;;  %v6548_v52 = vpop.permute.xlu0 %2765 }
 0x3cb   : > { %v1534_v18 = vadd.f32 %v1530_v51, %v1514_v56  ;;  %v2203_v28 = vmul.f32 %v3459_v41, %v6229_v50  ;;  %v1552_v55 = vadd.f32 %v1548_v17, %v1532_v16  ;;  %v1689_v10 = vmul.f32 %v6424_v15, %v7655_v26  ;;  %v6534_v22 = vpop.permute.xlu1 %3462  ;;  %v3542_v51 = vld [vmem:[%s6810_s3 + $0x70] sm:$0xff]  ;;  %v7661_v56 = vld [vmem:[#allocation270_spill] sm:$0xff]  ;;  %v7662_v63 = vld [vmem:[#allocation179_spill] sm:$0xff] }
 0x3cc   : > { %v1719_v4 = vmul.f32 %v6439_v30, %v7656_v12  ;;  %v1592_v40 = vmul.f32 %v6321_v54, %v7657_v43  ;;  %7658 = vst [vmem:[#allocation243_spill] sm:$0xff] %v6534_v22  ;;  %v3450_v36 = vunpack.i.h.bf16 %v7659_v31  ;;  %v6541_v14 = vrot.slane %v3542_v51, %v7511_v59  ;;  %v7663_v26 = vld [vmem:[#allocation296_spill] sm:$0xff] }
 0x3cd   : > { %v2187_v41 = vadd.f32 %v2183_v39, %v7660_v33  ;;  %v3464_v17 = vunpack.i.l.bf16 %v6534_v22  ;;  %v1554_v20 = vadd.f32 %v1550_v1, %v1534_v18  ;;  %v1576_v12 = vadd.f32 %v1572_v24, %v1552_v55  ;;  %v7664_v31 = vld [vmem:[#allocation212_spill] sm:$0xff] }
 0x3ce   : > { %v1703_v16 = vadd.f32 %v7661_v56, %v1691_v23  ;;  %v1739_v2 = vmul.f32 %v6448_v34, %v7662_v63  ;;  %v3455_v43 = vunpack.i.h.bf16 %v7663_v26  ;;  %v2665_v37 = vadd.f32 %v7664_v31, %v2653_v29  ;;  %v7665_v39 = vld [vmem:[#allocation176_spill] sm:$0xff]  ;;  %v6558_v23 = vld [vmem:[%s6810_s3 + $0x60] sm:$0xff] }
 0x3cf   : > { %v2207_v61 = vadd.f32 %v2203_v28, %v2187_v41  ;;  %v2223_v59 = vmul.f32 %v3464_v17, %v6250_v3  ;;  %v1574_v33 = vmul.f32 %v6318_v0, %v7665_v39  ;;  %v1596_v18 = vadd.f32 %v1592_v40, %v1576_v12  ;;  %v6564_v24 = vpop.permute.xlu1 %3467  ;;  %v7667_v28 = vld [vmem:[#allocation239_spill] sm:$0xff]  ;;  %v7668_v41 = vld [vmem:[#allocation180_spill] sm:$0xff]  ;;  %v7669_v12 = vld [vmem:[#allocation182_spill] sm:$0xff] }
 0x3d0   : > { %v1723_v5 = vadd.f32 %v1719_v4, %v1703_v16  ;;  %v6562_v1 = vrot.slane %v6558_v23, %v7562_v62  ;;  %7666 = vst [vmem:[#allocation233_spill] sm:$0xff] %v6564_v24  ;;  %v2247_v29 = vmul.f32 %v3450_v36, %v6378_v9  ;;  %v2681_v55 = vmul.f32 %v6541_v14, %v7667_v28  ;;  %v7670_v16 = vld [vmem:[#allocation183_spill] sm:$0xff] }
 0x3d1   : > { %v6570_v4 = vrot.slane %v3542_v51, %v7589_v8  ;;  %v2227_v0 = vadd.f32 %v2223_v59, %v2207_v61  ;;  %v1594_v17 = vmul.f32 %v6321_v54, %v7668_v41  ;;  %v1624_v56 = vmul.f32 %v6341_v25, %v7669_v12  ;;  %v7671_v8 = vld [vmem:[#allocation271_spill] sm:$0xff]  ;;  %v7672_v61 = vld [vmem:[#allocation186_spill] sm:$0xff] }
 0x3d2   : > { %v1743_v40 = vadd.f32 %v1739_v2, %v1723_v5  ;;  %v1763_v63 = vmul.f32 %v6470_v46, %v7670_v16  ;;  %v2267_v26 = vmul.f32 %v3455_v43, %v6562_v1  ;;  %v2685_v36 = vadd.f32 %v2681_v55, %v2665_v37  ;;  %v7673_v2 = vld [vmem:[#allocation187_spill] sm:$0xff]  ;;  %v3544_v59 = vld [vmem:[%s6810_s3 + $0x78] sm:$0x1f]  ;;  %v6592_v37 = vpop.permute.xlu0 %2306 }
 0x3d3   : > { %v2200_v31 = vmul.f32 %v6229_v50, %v6299_v47  ;;  %v2251_v39 = vadd.f32 %v2247_v29, %v2227_v0  ;;  %v1608_v51 = vadd.f32 %v7671_v8, %v1596_v18  ;;  %v1644_v5 = vmul.f32 %v6350_v11, %v7672_v61  ;;  %7674 = vst [vmem:[#allocation240_spill] sm:$0xff] %v6592_v37  ;;  %v6594_v43 = vpop.permute.xlu1 %2236  ;;  %v7676_v50 = vld [vmem:[#allocation232_spill] sm:$0xff]  ;;  %v7677_v18 = vld [vmem:[#allocation35_spill] sm:$0xff] }
 0x3d4   : > { %v1783_v54 = vmul.f32 %v6474_v38, %v7673_v2  ;;  %v6590_v28 = vrot.slane %v3544_v59, %v7562_v62  ;;  %7675 = vst [vmem:[#allocation57_spill] sm:$0xff] %v6594_v43  ;;  %v2701_v47 = vmul.f32 %v6570_v4, %v7676_v50  ;;  %v7678_v29 = vld [vmem:[#allocation280_spill] sm:$0xff]  ;;  %v2220_v0 = vmul.f32 %v6250_v3, %v6358_v60  ;;  %v7679_v62 = vld [vmem:[#allocation190_spill] sm:$0xff] }
 0x3d5   : > { %v2184_v55 = vadd.f32 %v7678_v29, %v7677_v18  ;;  %v6602_v41 = vadd.f32 %v2267_v26, %v2251_v39  ;;  %v1578_v12 = vadd.f32 %v1574_v33, %v1554_v20  ;;  %v1628_v16 = vadd.f32 %v1624_v56, %v1608_v51  ;;  %v7680_v29 = vld [vmem:[#allocation195_spill] sm:$0xff] }
 0x3d6   : > { %v1767_v8 = vadd.f32 %v1763_v63, %v1743_v40  ;;  %v1668_v61 = vmul.f32 %v6367_v27, %v7679_v62  ;;  %v1693_v2 = vadd.f32 %v1689_v10, %v1673_v42  ;;  %v2705_v43 = vadd.f32 %v2701_v47, %v2685_v36  ;;  %v7681_v40 = vld [vmem:[#allocation131_spill] sm:$0xff] }
 0x3d7   : > { %v2204_v37 = vadd.f32 %v2200_v31, %v2184_v55  ;;  %v2244_v50 = vmul.f32 %v6378_v9, %v6432_v45  ;;  %v1598_v22 = vadd.f32 %v1594_v17, %v1578_v12  ;;  %v1648_v24 = vadd.f32 %v1644_v5, %v1628_v16  ;;  %v6610_v60 = vpop.permute.xlu1 %2695  ;;  %v7682_v17 = vld [vmem:[#allocation184_spill] sm:$0xff]  ;;  %v7683_v26 = vld [vmem:[#allocation191_spill] sm:$0xff]  ;;  %v6627_v31 = vpop.permute.xlu0 %1827  ;;  %v7689_v16 = vld [vmem:[#allocation21_spill] sm:$0xff] }
 0x3d8   : > { %v1787_v18 = vadd.f32 %v1783_v54, %v1767_v8  ;;  %v1688_v3 = vmul.f32 %v6424_v15, %v7680_v29  ;;  %v2725_v20 = vmul.f32 %v6590_v28, %v6218_v19  ;;  %v6615_v33 = vrot.slane %v3544_v59, %v7597_v53  ;;  %v7684_v19 = vld [vmem:[#allocation293_spill] sm:$0xff]  ;;  %v7685_v5 = vld [vmem:[#allocation283_spill] sm:$0xff]  ;;  %v7686_v54 = vld [vmem:[#allocation188_spill] sm:$0xff] }
 0x3d9   : > { %v2224_v42 = vadd.f32 %v2220_v0, %v2204_v37  ;;  %v2264_v10 = vmul.f32 %v6562_v1, %v6513_v44  ;;  %v6621_v45 = vmul.f32 %v7591_v35, %v7681_v40  ;;  %v1626_v56 = vmul.f32 %v6341_v25, %v7682_v17  ;;  %v7687_v25 = vld [vmem:[#allocation273_spill] sm:$0xff]  ;;  %v7688_v0 = vld [vmem:[#allocation79_spill] sm:$0xff] }
 0x3da   : > { %v1672_v63 = vadd.f32 %v1668_v61, %v1648_v24  ;;  %v1815_v36 = vmul.f32 %v6509_v6, %v7683_v26  ;;  %v1705_v53 = vadd.f32 %v7684_v19, %v1693_v2  ;;  %v2729_v39 = vadd.f32 %v2725_v20, %v2705_v43  ;;  %v7693_v17 = vld [vmem:[#allocation275_spill] sm:$0xff] }
 0x3db   : > { %v2248_v51 = vadd.f32 %v2244_v50, %v2224_v42  ;;  %v6632_v44 = vrot.slane %v6505_v57, %v7450_v13  ;;  %v1610_v35 = vadd.f32 %v7685_v5, %v1598_v22  ;;  %v1646_v37 = vmul.f32 %v6350_v11, %v7686_v54  ;;  %v1824_v55 = vpop.permute.xlu1 %1823  ;;  %v7690_v57 = vld [vmem:[#allocation177_spill] sm:$0xff]  ;;  %v7691_v50 = vld [vmem:[#allocation202_spill] sm:$0xff]  ;;  %v7697_v54 = vld [vmem:[#allocation215_spill] sm:$0xff] }
 0x3dc   : > { %v1799_v24 = vadd.f32 %v7687_v25, %v1787_v18  ;;  %v1692_v47 = vadd.f32 %v1688_v3, %v1672_v63  ;;  %v2745_v12 = vmul.f32 %v6615_v33, %v7688_v0  ;;  %v6641_v8 = vrot.slane %v3544_v59, %v7689_v16  ;;  %v7692_v42 = vld [vmem:[#allocation181_spill] sm:$0xff]  ;;  %v7694_v63 = vld [vmem:[#allocation208_spill] sm:$0xff] }
 0x3dd   : > { %v2268_v43 = vadd.f32 %v2264_v10, %v2248_v51  ;;  %v1835_v62 = vmul.f32 %v6632_v44, %v1824_v55  ;;  %v1721_v61 = vmul.f32 %v6439_v30, %v7690_v57  ;;  %v1630_v22 = vadd.f32 %v1626_v56, %v1610_v35 }
 0x3de   : > { %v1819_v2 = vadd.f32 %v1815_v36, %v1799_v24  ;;  %v1720_v11 = vmul.f32 %v6439_v30, %v7691_v50  ;;  %v2749_v18 = vadd.f32 %v2745_v12, %v2729_v39  ;;  %v6650_v29 = vrot.slane %v6558_v23, %v7450_v13  ;;  %v2786_v36 = vpop.permute.xlu0 %2785  ;;  %v7699_v12 = vld [vmem:[#allocation199_spill] sm:$0xff] }
 0x3df   : > { %v6654_v3 = vrot.slane %v6558_v23, %v7689_v16  ;;  %v6657_v20 = vrot.slane %v3544_v59, %v7528_v21  ;;  %v1741_v10 = vmul.f32 %v6448_v34, %v7692_v42  ;;  %v1650_v40 = vadd.f32 %v1646_v37, %v1630_v22  ;;  %v2285_v19 = vpop.permute.xlu1 %2284  ;;  %v7695_v23 = vld [vmem:[#allocation281_spill] sm:$0xff]  ;;  %v7696_v59 = vld [vmem:[#allocation192_spill] sm:$0xff] }
 0x3e0   : > { %v1704_v56 = vadd.f32 %v7693_v17, %v1692_v47  ;;  %v1740_v26 = vmul.f32 %v6448_v34, %v7694_v63  ;;  %v2777_v13 = vmul.f32 %v6641_v8, %v6548_v52  ;;  %v1839_v39 = vadd.f32 %v1835_v62, %v1819_v2  ;;  %v7698_v47 = vld [vmem:[#allocation300_spill] sm:$0xff]  ;;  %v7701_v62 = vld [vmem:[#allocation246_spill] sm:$0xff] }
 0x3e1   : > { %v2280_v51 = vadd.f32 %v7695_v23, %v2268_v43  ;;  %v2296_v21 = vmul.f32 %v6650_v29, %v2285_v19  ;;  %v1670_v5 = vmul.f32 %v6367_v27, %v7696_v59  ;;  %v1764_v37 = vmul.f32 %v6470_v46, %v7697_v54  ;;  %v7700_v27 = vld [vmem:[#allocation197_spill] sm:$0xff]  ;;  %v7704_v17 = vld [vmem:[#allocation134_spill] sm:$0xff]  ;;  %v7707_v59 = vld [vmem:[#allocation104_spill] sm:$0xff] }
 0x3e2   : > { %v1724_v35 = vadd.f32 %v1720_v11, %v1704_v56  ;;  %v2682_v25 = vmul.f32 %v6541_v14, %v6407_v48  ;;  %v2316_v24 = vmul.f32 %v6654_v3, %v6511_v49  ;;  %v2761_v52 = vadd.f32 %v7698_v47, %v2749_v18  ;;  %v7702_v48 = vld [vmem:[#allocation9_spill] sm:$0xff]  ;;  %v7703_v18 = vld [vmem:[#allocation254_spill] sm:$0xff] }
 0x3e3   : > { %v2797_v55 = vmul.f32 %v6657_v20, %v2786_v36  ;;  %v2300_v0 = vadd.f32 %v2296_v21, %v2280_v51  ;;  %v1690_v16 = vmul.f32 %v6424_v15, %v7699_v12  ;;  %v2666_v57 = vadd.f32 %v7701_v62, %v7700_v27  ;;  %v1826_v2 = vpop.permute.xlu1 %1825  ;;  %v7705_v56 = vld [vmem:[#allocation229_spill] sm:$0xff] }
 0x3e4   : > { %v1744_v43 = vadd.f32 %v1740_v26, %v1724_v35  ;;  %v2702_v22 = vmul.f32 %v6570_v4, %v6482_v7  ;;  %v1784_v50 = vmul.f32 %v6474_v38, %v7702_v48  ;;  %v2781_v49 = vadd.f32 %v2777_v13, %v2761_v52  ;;  %v7706_v15 = vld [vmem:[#allocation185_spill] sm:$0xff]  ;;  %v7708_v35 = vld [vmem:[#allocation14_spill] sm:$0xff] }
 0x3e5   : > { %v2320_v11 = vadd.f32 %v2316_v24, %v2300_v0  ;;  %v2809_v42 = vadd.f32 %v7703_v18, %v1839_v39  ;;  %v1306_v63 = vmul.f32 %v7705_v56, %v7704_v17  ;;  %v1725_v36 = vadd.f32 %v1721_v61, %v1705_v53  ;;  %v7709_v13 = vld [vmem:[#allocation189_spill] sm:$0xff] }
 0x3e6   : > { %v1765_v26 = vmul.f32 %v6470_v46, %v7706_v15  ;;  %v2686_v19 = vadd.f32 %v2682_v25, %v2666_v57  ;;  %v1674_v23 = vadd.f32 %v1670_v5, %v1650_v40  ;;  %v1768_v51 = vadd.f32 %v1764_v37, %v1744_v43  ;;  %v7710_v40 = vld [vmem:[#allocation238_spill] sm:$0xff]  ;;  %v7711_v37 = vld [vmem:[#allocation12_spill] sm:$0xff]  ;;  %v7712_v43 = vld [vmem:[#allocation55_spill] sm:$0xff] }
 0x3e7   : > { %v2801_v21 = vadd.f32 %v2797_v55, %v2781_v49  ;;  %v2813_v7 = vadd.f32 %v2809_v42, %v2320_v11  ;;  %v1356_v54 = vmul.f32 %v7708_v35, %v7707_v59  ;;  %v1745_v47 = vadd.f32 %v1741_v10, %v1725_v36  ;;  %v1808_v52 = vpop.permute.xlu1 %1807  ;;  %v7713_v27 = vld [vmem:[#allocation49_spill] sm:$0xff]  ;;  %v7717_v11 = vld [vmem:[#allocation56_spill] sm:$0xff]  ;;  %v7719_v36 = vld [vmem:[#allocation211_spill] sm:$0xff] }
 0x3e8   : > { %v1785_v24 = vmul.f32 %v6474_v38, %v7709_v13  ;;  %v2706_v39 = vadd.f32 %v2702_v22, %v2686_v19  ;;  %v1290_v53 = vadd.f32 %v6621_v45, %v6515_v58  ;;  %v1694_v61 = vadd.f32 %v1690_v16, %v1674_v23  ;;  %v7714_v22 = vld [vmem:[#allocation206_spill] sm:$0xff]  ;;  %v7715_v45 = vld [vmem:[#allocation4_spill] sm:$0xff]  ;;  %v7721_v19 = vld [vmem:[#allocation15_spill] sm:$0xff] }
 0x3e9   : > { %v1788_v0 = vadd.f32 %v1784_v50, %v1768_v51  ;;  %v2817_v12 = vadd.f32 %v2813_v7, %v2801_v21  ;;  %v1769_v25 = vadd.f32 %v1765_v26, %v1745_v47  ;;  %v2265_v5 = vmul.f32 %v6562_v1, %v7710_v40  ;;  %v7716_v50 = vld [vmem:[#allocation53_spill] sm:$0xff]  ;;  %v7720_v15 = vld [vmem:[#allocation148_spill] sm:$0xff]  ;;  %v7723_v21 = vld [vmem:[#allocation258_spill] sm:$0xff] }
 0x3ea   : > { %v2726_v55 = vmul.f32 %v6590_v28, %v7711_v37  ;;  %v1360_v10 = vadd.f32 %v1356_v54, %v6477_v32  ;;  %v6704_v62 = vadd.f32 %v7713_v27, %v7712_v43  ;;  %v1310_v57 = vadd.f32 %v1306_v63, %v1290_v53  ;;  %v7718_v32 = vld [vmem:[#allocation295_spill] sm:$0xff]  ;;  %v7722_v51 = vld [vmem:[#allocation236_spill] sm:$0xff]  ;;  %v7724_v59 = vld [vmem:[#allocation233_spill] sm:$0xff] }
 0x3eb   : > { %v1722_v58 = vmul.f32 %v6439_v30, %v7714_v22  ;;  %v1816_v16 = vmul.f32 %v6509_v6, %v7715_v45  ;;  %3113 = vmatprep.mubr.f32.mxu1 %v2817_v12  ;;  %v1789_v48 = vadd.f32 %v1785_v24, %v1769_v25  ;;  %v2269_v49 = vadd.f32 %v2265_v5, %v7716_v50  ;;  %v6712_v17 = vpop.permute.xlu1 %3477  ;;  %v7725_v47 = vld [vmem:[#allocation242_spill] sm:$0xff]  ;;  %v7726_v24 = vld [vmem:[#allocation288_spill] sm:$0xff]  ;;  %v7729_v40 = vld [vmem:[#allocation209_spill] sm:$0xff] }
 0x3ec   : > { %v3460_v18 = vunpack.i.h.bf16 %v7717_v11  ;;  %v2730_v42 = vadd.f32 %v2726_v55, %v2706_v39  ;;  %v1706_v56 = vadd.f32 %v7718_v32, %v1694_v61  ;;  %v1742_v63 = vmul.f32 %v6448_v34, %v7719_v36  ;;  %v3545_v12 = vld [vmem:[#allocation2 + $0x73] sm:$0xff]  ;;  %v7730_v22 = vld [vmem:[#allocation243_spill] sm:$0xff] }
 0x3ed   : > { %v1800_v26 = vadd.f32 %v7720_v15, %v1788_v0  ;;  %v1836_v30 = vmul.f32 %v6632_v44, %v1826_v2  ;;  %v2746_v23 = vmul.f32 %v6615_v33, %v7721_v19  ;;  %v2663_v7 = vmul.f32 %v7723_v21, %v7722_v51  ;;  %v7727_v0 = vld [vmem:[#allocation136_spill] sm:$0xff]  ;;  %v7728_v25 = vld [vmem:[#allocation6_spill] sm:$0xff]  ;;  %v7733_v11 = vld [vmem:[#allocation13_spill] sm:$0xff] }
 0x3ee   : > { %v3469_v54 = vunpack.i.l.bf16 %v7724_v59  ;;  %v2806_v13 = vadd.f32 %v1360_v10, %v7725_v47  ;;  %v1322_v39 = vadd.f32 %v7726_v24, %v1310_v57  ;;  %v1726_v53 = vadd.f32 %v1722_v58, %v1706_v56  ;;  %v7731_v57 = vld [vmem:[#allocation231_spill] sm:$0xff]  ;;  %v7734_v56 = vld [vmem:[#allocation240_spill] sm:$0xff]  ;;  %v7737_v19 = vld [vmem:[#allocation57_spill] sm:$0xff] }
 0x3ef   : > { %v1820_v61 = vadd.f32 %v1816_v16, %v1800_v26  ;;  %v2664_v34 = vmul.f32 %v3545_v12, %v7722_v51  ;;  %v1338_v2 = vmul.f32 %v7728_v25, %v7727_v0  ;;  %v2281_v5 = vadd.f32 %v7729_v40, %v2269_v49  ;;  %v6731_v55 = vpop.permute.xlu1 %1809  ;;  %v7732_v16 = vld [vmem:[#allocation204_spill] sm:$0xff]  ;;  %v2788_v26 = vpop.permute.xlu0 %2787  ;;  %v7739_v24 = vld [vmem:[#allocation297_spill] sm:$0xff] }
 0x3f0   : > { %v2683_v37 = vmul.f32 %v3460_v18, %v6541_v14  ;;  %v2750_v43 = vadd.f32 %v2746_v23, %v2730_v42  ;;  %v1746_v27 = vadd.f32 %v1742_v63, %v1726_v53  ;;  %v3465_v10 = vunpack.i.h.bf16 %v7730_v22  ;;  %v7735_v18 = vld [vmem:[#allocation3_spill] sm:$0xff]  ;;  %v7736_v42 = vld [vmem:[#allocation200_spill] sm:$0xff]  ;;  %v7740_v25 = vld [vmem:[#allocation77_spill] sm:$0xff] }
 0x3f1   : > { %v1840_v45 = vadd.f32 %v1836_v30, %v1820_v61  ;;  %v1801_v58 = vadd.f32 %v7731_v57, %v1789_v48  ;;  %v2297_v50 = vmul.f32 %v6650_v29, %v7732_v16  ;;  %v2667_v32 = vadd.f32 %v2663_v7, %v7733_v11  ;;  %v7738_v48 = vld [vmem:[#allocation294_spill] sm:$0xff] }
 0x3f2   : > { %v2317_v36 = vmul.f32 %v6654_v3, %v7734_v56  ;;  %v2684_v49 = vmul.f32 %v3469_v54, %v6541_v14  ;;  %v1766_v15 = vmul.f32 %v6470_v46, %v7735_v18  ;;  %v3475_v63 = vunpack.i.h.bf16 %v7736_v42  ;;  %v7741_v22 = vld [vmem:[#allocation130_spill] sm:$0xff] }
 0x3f3   : > { %v2246_v30 = vmul.f32 %v6378_v9, %v7737_v19  ;;  %v2668_v23 = vadd.f32 %v2664_v34, %v7738_v48  ;;  %v3474_v51 = vunpack.i.l.bf16 %v7736_v42  ;;  %v2301_v21 = vadd.f32 %v2297_v50, %v2281_v5  ;;  %v2768_v47 = vpop.permute.xlu1 %2767  ;;  %v3483_v42 = vpop.permute.xlu0 %3482  ;;  %v7745_v48 = vld [vmem:[#allocation245_spill] sm:$0xff] }
 0x3f4   : > { %v2687_v7 = vadd.f32 %v2683_v37, %v2667_v32  ;;  %v2762_v53 = vadd.f32 %v7739_v24, %v2750_v43  ;;  %v2703_v14 = vmul.f32 %v3465_v10, %v6570_v4  ;;  %v2704_v46 = vmul.f32 %v6570_v4, %v6610_v60  ;;  %v7742_v4 = vld [vmem:[#allocation40_spill] sm:$0xff] }
 0x3f5   : > { %v2810_v54 = vadd.f32 %v2806_v13, %v1840_v45  ;;  %v2778_v61 = vmul.f32 %v6641_v8, %v2768_v47  ;;  %v2321_v12 = vadd.f32 %v2317_v36, %v2301_v21  ;;  %v2798_v9 = vmul.f32 %v6657_v20, %v2788_v26  ;;  %v7743_v32 = vld [vmem:[#allocation20_spill] sm:$0xff]  ;;  %v7744_v26 = vld [vmem:[#allocation138_spill] sm:$0xff] }
 0x3f6   : > { %v2688_v0 = vadd.f32 %v2684_v49, %v2668_v23  ;;  %v1817_v34 = vmul.f32 %v6509_v6, %v1808_v52  ;;  %v2250_v40 = vadd.f32 %v2246_v30, %v7740_v25  ;;  %v3480_v5 = vunpack.i.h.bf16 %v6712_v17  ;;  %v7746_v23 = vld [vmem:[#allocation298_spill] sm:$0xff] }
 0x3f7   : > { %v3479_v37 = vunpack.i.l.bf16 %v6712_v17  ;;  %v2782_v43 = vadd.f32 %v2778_v61, %v2762_v53  ;;  %v1786_v10 = vmul.f32 %v6474_v38, %v7741_v22  ;;  %v2266_v60 = vmul.f32 %v6562_v1, %v7742_v4  ;;  %v2289_v57 = vpop.permute.xlu1 %2288  ;;  %v7750_v61 = vld [vmem:[#allocation287_spill] sm:$0xff] }
 0x3f8   : > { %v2728_v13 = vmul.f32 %v3475_v63, %v6590_v28  ;;  %v2727_v45 = vmul.f32 %v3474_v51, %v6590_v28  ;;  %v2707_v16 = vadd.f32 %v2703_v14, %v2687_v7  ;;  %v2708_v52 = vadd.f32 %v2704_v46, %v2688_v0  ;;  %v7748_v14 = vld [vmem:[#allocation32_spill] sm:$0xff] }
 0x3f9   : > { %v2802_v50 = vadd.f32 %v2798_v9, %v2782_v43  ;;  %v2814_v11 = vadd.f32 %v2810_v54, %v2321_v12  ;;  %v880_v56 = vadd.f32 %v7743_v32, %v6704_v62  ;;  %v1342_v17 = vadd.f32 %v1338_v2, %v1322_v39  ;;  %v7749_v54 = vld [vmem:[#allocation225_spill] sm:$0xff]  ;;  %v7751_v9 = vld [vmem:[#allocation19_spill] sm:$0xff] }
 0x3fa   : > { %v1770_v36 = vadd.f32 %v1766_v15, %v1746_v27  ;;  %v1821_v49 = vadd.f32 %v1817_v34, %v1801_v58  ;;  %v2270_v18 = vadd.f32 %v2266_v60, %v2250_v40  ;;  %v2748_v38 = vmul.f32 %v3480_v5, %v6615_v33  ;;  %v7747_v58 = vld [vmem:[#allocation36_spill] sm:$0xff]  ;;  %v7752_v5 = vld [vmem:[#allocation250_spill] sm:$0xff] }
 0x3fb   : > { %v2747_v1 = vmul.f32 %v3479_v37, %v6615_v33  ;;  %v2818_v63 = vadd.f32 %v2814_v11, %v2802_v50  ;;  %v1358_v28 = vmul.f32 %v7708_v35, %v7744_v26  ;;  %v1837_v30 = vmul.f32 %v6632_v44, %v6627_v31  ;;  %v1830_v39 = vpop.permute.xlu1 %1829  ;;  %v3546_v35 = vld [vmem:[#allocation2 + $0x74] sm:$0xff] }
 0x3fc   : > { %v1790_v19 = vadd.f32 %v1786_v10, %v1770_v36  ;;  %v2279_v62 = vmul.f32 %v7746_v23, %v7745_v48  ;;  %v2732_v2 = vadd.f32 %v2728_v13, %v2708_v52  ;;  %v2731_v27 = vadd.f32 %v2727_v45, %v2707_v16  ;;  %v7753_v52 = vld [vmem:[#allocation221_spill] sm:$0xff] }
 0x3fd   : > { %v2759_v15 = vmul.f32 %v7746_v23, %v7747_v58  ;;  %v2298_v33 = vmul.f32 %v6650_v29, %v2289_v57  ;;  %3114 = vmatmul.mubr.f32.vlgmr.msra.gmra.mrb[0].mxu1 %v2818_v63  ;;  %v1841_v51 = vadd.f32 %v1837_v30, %v1821_v49  ;;  %v3485_v21 = vunpack.i.h.bf16 %v3483_v42  ;;  %v2792_v57 = vpop.permute.xlu0 %2791  ;;  %v2998_v23 = vld [vmem:[%s6812_s5] ss:$0 sm:$0xff] }
 0x3fe   : > { %v3484_v7 = vunpack.i.l.bf16 %v3483_v42  ;;  %v2760_v47 = vmul.f32 %v3546_v35, %v7747_v58  ;;  %v2751_v24 = vadd.f32 %v2747_v1, %v2731_v27  ;;  %v2752_v31 = vadd.f32 %v2748_v38, %v2732_v2 }
 0x3ff   : > { %v1818_v53 = vmul.f32 %v6509_v6, %v6731_v55  ;;  %v2282_v46 = vadd.f32 %v7748_v14, %v2270_v18  ;;  %v861_v12 = vadd.f32 %v7750_v61, %v7749_v54  ;;  %v2807_v0 = vadd.f32 %v7751_v9, %v880_v56  ;;  %v2309_v40 = vpop.permute.xlu1 %2308 }
 0x400   : > { %v1362_v34 = vadd.f32 %v1358_v28, %v1342_v17  ;;  %v3470_v25 = vunpack.i.h.bf16 %v7724_v59  ;;  %v1802_v37 = vadd.f32 %v7752_v5, %v1790_v19  ;;  %v1838_v22 = vmul.f32 %v6632_v44, %v1830_v39 }
 0x401   : > { %v2302_v43 = vadd.f32 %v2298_v33, %v2282_v46  ;;  %v2318_v10 = vmul.f32 %v6654_v3, %v2309_v40  ;;  %v2283_v6 = vadd.f32 %v2279_v62, %v6602_v41  ;;  %v2780_v55 = vmul.f32 %v3485_v21, %v6641_v8 }
 0x402   : > { %v2779_v4 = vmul.f32 %v3484_v7, %v6641_v8  ;;  %v2811_v60 = vadd.f32 %v2807_v0, %v1841_v51  ;;  %v1822_v13 = vadd.f32 %v1818_v53, %v1802_v37  ;;  %v2763_v45 = vadd.f32 %v2759_v15, %v2751_v24 }
 0x403   : > { %v2764_v16 = vadd.f32 %v2760_v47, %v2752_v31  ;;  %v2322_v59 = vadd.f32 %v2318_v10, %v2302_v43  ;;  %v881_v50 = vadd.f32 %v7753_v52, %v861_v12  ;;  %v2299_v11 = vmul.f32 %v3470_v25, %v6650_v29  ;;  %v3488_v32 = vpop.permute.xlu1 %3487 }
 0x404   : > { %v1842_v44 = vadd.f32 %v1838_v22, %v1822_v13  ;;  %v3490_v17 = vunpack.i.h.bf16 %v3488_v32  ;;  %v3489_v36 = vunpack.i.l.bf16 %v3488_v32  ;;  %v2800_v8 = vmul.f32 %v6657_v20, %v2792_v57 }
 0x405   : > { %v2815_v56 = vadd.f32 %v2811_v60, %v2322_v59  ;;  %v2808_v41 = vadd.f32 %v1362_v34, %v881_v50  ;;  %v2303_v49 = vadd.f32 %v2299_v11, %v2283_v6  ;;  %v2783_v18 = vadd.f32 %v2779_v4, %v2763_v45 }
 0x406   : > { %v2784_v38 = vadd.f32 %v2780_v55, %v2764_v16  ;;  %v2799_v1 = vmul.f32 %v3490_v17, %v6657_v20  ;;  %v2319_v42 = vmul.f32 %v3489_v36, %v6654_v3 }
 0x407   : > { %v2812_v63 = vadd.f32 %v2808_v41, %v1842_v44 }
 0x408   : > { %v2323_v26 = vadd.f32 %v2319_v42, %v2303_v49  ;;  %v2803_v28 = vadd.f32 %v2799_v1, %v2783_v18  ;;  %v2804_v29 = vadd.f32 %v2800_v8, %v2784_v38 }
 0x40a   : > { %v2819_v19 = vadd.f32 %v2815_v56, %v2803_v28  ;;  %v2816_v30 = vadd.f32 %v2812_v63, %v2323_v26 }
 0x40c   : > { %3116 = vmatprep.mubr.f32.mxu1 %v2819_v19  ;;  %v2820_v48 = vadd.f32 %v2816_v30, %v2804_v29 }
 0x40e   : > { %3117 = vmatmul.mubr.f32.gmra.mrb[2].mxu1 %v2820_v48 }
 0x4d0   : > { %v3115_v20 = vpop.f32.mrb[0].mxu1 }
 0x4d1   : > { %v2916_v3 = vadd.f32 %v3115_v20, %v2998_v23  ;;  %v2910_v62 = vpop.f32.mrb[1].mxu1 }
 0x4d2   : > { %v2911_v39 = vadd.f32 %v2998_v23, %v2910_v62 }
 0x4d3   : > { %2930 = vst [vmem:[%s251_s19 + $0x8] sm:$0xff] %v2916_v3 }
 0x4d4   : > { %2929 = vst [vmem:[%s251_s19] sm:$0xff] %v2911_v39 }
 0x4e1   : > { %v3118_v2 = vpop.f32.mrb[2].mxu1 }
 0x4e2   : > { %v2926_v27 = vadd.f32 %v3118_v2, %v2998_v23  ;;  %v2920_v58 = vpop.f32.mrb[3].mxu1 }
 0x4e3   : > { %v2921_v15 = vadd.f32 %v2998_v23, %v2920_v58 }
 0x4e4   : > { %2932 = vst [vmem:[%s251_s19 + $0x18] sm:$0xff] %v2926_v27 }
 0x4e5   : > { %2931 = vst [vmem:[%s251_s19 + $0x10] sm:$0xff] %v2921_v15 }
 0x4e6 PF: > { %s16_s21 = sadd.s32 1, %s3553_s21  }
 0x4e7   : > { %p13_p4 = scmp.ge.s32.totalorder %s16_s21, 4  }
 0x4e9   :  { %15 = sbr.rel (!%p13_p4) target bundleno = 1 (0x1), region = 79 }

</bundles_post_ra>
